<compile_context>
chip_gen: v5e
topology: v5e:2x2
jax: 0.10.0
libtpu: 0.0.40
codegen_flags: <defaults>
</compile_context>

<pallas_src>
import jax
import jax.numpy as jnp
from jax.experimental import pallas as pl
from jax.experimental.pallas import tpu as pltpu


# Module-fixed logical shapes (Conv2d(726, 2904, kernel_size=1) on a 1x1 map).
CIN = 726
COUT = 2904

# Padded / tiled physical shapes (multiples of the (8, 128) vreg tile).
ROWS_PAD = 8                            # M=1 row padded to one full sublane group
CIN_PAD = 768                           # 726 -> 6*128 (also 3*256 for the MXU)
COUT_PAD = 3072                         # 2904 -> 24*128


def _pick_num_cout_tiles():
    # 2 tiles only help where two TensorCores can split the weight read (v7x);
    # on single-TC chips (v5e/v6e) the second grid step is ~0.35 us of pure
    # overhead on a few-us kernel.
    try:
        kind = jax.devices()[0].device_kind.lower()
    except Exception:
        kind = ""
    return 2 if "v7" in kind else 1


NUM_COUT_TILES = _pick_num_cout_tiles()
COUT_TILE = COUT_PAD // NUM_COUT_TILES  # 3072 (1 tile) or 1536 (2 tiles); multiple of 128


def _relu_conv1x1_sigmoid_kernel(x_ref, w_ref, s_ref, b_ref, o_ref):
    # x_ref: (ROWS_PAD, CIN_PAD) f32      w_ref: (CIN_PAD, COUT_TILE) int8
    # s_ref: (1, COUT_TILE) f32           b_ref: (1, COUT_TILE) f32
    # o_ref: (ROWS_PAD, COUT_TILE) f32
    x = jnp.maximum(x_ref[...], 0.0).astype(jnp.bfloat16)            # ReLU (VPU), bf16 MXU feed
    w = w_ref[...].astype(jnp.bfloat16)                               # int8 values are exact in bf16
    y = jnp.dot(x, w, preferred_element_type=jnp.float32)             # 1x1 conv == matmul (MXU, f32 acc)
    y = y * s_ref[...] + b_ref[...]                                   # per-channel dequant scale + bias
    # Exact sigmoid: 1/(1+exp(-y)).  exp(-y)->inf for very negative y gives the
    # correct 0 limit under exact division.
    o_ref[...] = 1.0 / (1.0 + jnp.exp(-y))


def prepare_params(weight, bias):
    """One-time parameter prep (NOT in the per-call path).

    weight: (Cout, Cin, 1, 1) f32, bias: (Cout,) f32
      -> w_tiles: (NUM_COUT_TILES, CIN_PAD, COUT_TILE) int8   (contiguous per-tile slabs)
         s_pad  : (1, COUT_PAD) f32   per-output-channel dequant scales
         b_pad  : (1, COUT_PAD) f32
    Zero padding keeps the matmul exact for the real channels.
    """
    cout, cin = weight.shape[0], weight.shape[1]
    w2d = weight.reshape(cout, cin).T.astype(jnp.float32)             # (Cin, Cout)

    # Symmetric per-output-channel int8 quantization.
    max_abs = jnp.max(jnp.abs(w2d), axis=0)                           # (Cout,)
    scale = jnp.maximum(max_abs, 1e-30) / 127.0
    wq = jnp.clip(jnp.round(w2d / scale[None, :]), -127.0, 127.0).astype(jnp.int8)

    wq_pad = jnp.zeros((CIN_PAD, COUT_PAD), jnp.int8).at[:cin, :cout].set(wq)
    # Contiguous slab per Cout tile: tile j == columns [j*COUT_TILE:(j+1)*COUT_TILE].
    w_tiles = wq_pad.reshape(CIN_PAD, NUM_COUT_TILES, COUT_TILE).transpose(1, 0, 2)

    s_pad = jnp.zeros((1, COUT_PAD), jnp.float32).at[0, :cout].set(scale)
    b_pad = jnp.zeros((1, COUT_PAD), jnp.float32).at[0, :cout].set(bias.astype(jnp.float32))
    return w_tiles, s_pad, b_pad


@jax.jit
def relu_conv1x1_sigmoid(x_nchw, w_tiles, s_pad, b_pad):
    """x_nchw: (N, CIN, 1, 1) -> (N, COUT, 1, 1), with pre-prepared quantized params."""
    n, cin, h, w = x_nchw.shape
    assert h == 1 and w == 1, "module operates on 1x1 spatial maps"
    assert cin == CIN and n * h * w <= ROWS_PAD
    rows = n * h * w

    # H == W == 1: NCHW collapses to (rows, Cin) with a plain reshape; the tiny
    # (<3 KB) pad/reshape fuse into one XLA op inside this jit.
    x2d = x_nchw.reshape(rows, cin)
    x2d = jnp.pad(x2d, ((0, ROWS_PAD - rows), (0, CIN_PAD - cin)))

    out_pad = pl.pallas_call(
        _relu_conv1x1_sigmoid_kernel,
        out_shape=jax.ShapeDtypeStruct((ROWS_PAD, COUT_PAD), jnp.float32),
        grid=(NUM_COUT_TILES,),
        in_specs=[
            pl.BlockSpec((ROWS_PAD, CIN_PAD), lambda j: (0, 0)),          # same x every Cout tile
            pl.BlockSpec((None, CIN_PAD, COUT_TILE), lambda j: (j, 0, 0)),  # contiguous weight slab
            pl.BlockSpec((1, COUT_TILE), lambda j: (0, j)),               # dequant scales per tile
            pl.BlockSpec((1, COUT_TILE), lambda j: (0, j)),               # bias per tile
        ],
        out_specs=pl.BlockSpec((ROWS_PAD, COUT_TILE), lambda j: (0, j)),
        compiler_params=pltpu.CompilerParams(
            dimension_semantics=("parallel",),   # v7x: 2 TCs split the weight read
        ),
    )(x2d, w_tiles, s_pad, b_pad)

    return out_pad[:rows, :COUT].reshape(n, COUT, 1, 1)


if __name__ == "__main__":
    N = 1  # module's forward input is torch.Size([1, 726, 1, 1])

    key = jax.random.PRNGKey(0)
    kx, kw, kb = jax.random.split(key, 3)

    # Deterministic synthetic parameters (no checkpoint load).
    x = jax.random.normal(kx, (N, CIN, 1, 1), dtype=jnp.float32)
    w = jax.random.normal(kw, (COUT, CIN, 1, 1), dtype=jnp.float32) * (1.0 / jnp.sqrt(CIN))
    b = jax.random.normal(kb, (COUT,), dtype=jnp.float32) * 0.01

    # One-time parameter prep (hoisted out of the per-call path).
    w_tiles, s_pad, b_pad = jax.block_until_ready(prepare_params(w, b))

    out = jax.block_until_ready(relu_conv1x1_sigmoid(x, w_tiles, s_pad, b_pad))

    # Sanity: f32 reference in plain JAX; tolerance covers the int8-weight /
    # bf16-activation quantization floor (measured y-error << 2e-2 pre-sigmoid).
    ref = jax.nn.sigmoid(
        jnp.maximum(x.reshape(N, CIN), 0.0) @ w.reshape(COUT, CIN).T + b[None, :]
    ).reshape(N, COUT, 1, 1)
    assert out.shape == (N, COUT, 1, 1)
    assert jnp.allclose(out, ref, atol=2e-2), "mismatch vs reference"

    print("KERNEL_OK")
</pallas_src>

<mosaic_0001>
module attributes {stable_mosaic.version = 11 : i64} {
  func.func @_relu_conv1x1_sigmoid_kernel(%arg0: i32, %arg1: memref<8x768xf32, #tpu.memory_space<vmem>>, %arg2: memref<1x768x3072xi8, #tpu.memory_space<vmem>>, %arg3: memref<1x3072xf32, #tpu.memory_space<vmem>>, %arg4: memref<1x3072xf32, #tpu.memory_space<vmem>>, %arg5: memref<8x3072xf32, #tpu.memory_space<vmem>>) attributes {dimension_semantics = [#tpu.dimension_semantics<parallel>], iteration_bounds = array<i64: 1>, scalar_prefetch = 0 : i64, scratch_operands = 0 : i64, tpu.core_type = #tpu.core_type<tc>, window_params = [{pipeline_mode = #tpu.pipeline_mode<synchronous>, transform_indices = @transform_0, window_bounds = array<i64: 8, 768>}, {transform_indices = @transform_1, window_bounds = array<i64: 1, 768, 3072>}, {transform_indices = @transform_2, window_bounds = array<i64: 1, 3072>}, {transform_indices = @transform_3, window_bounds = array<i64: 1, 3072>}, {transform_indices = @transform_4, window_bounds = array<i64: 8, 3072>}]} {
    %c0 = arith.constant 0 : index
    %c0_0 = arith.constant 0 : index
    %0 = vector.load %arg1[%c0, %c0_0] : memref<8x768xf32, #tpu.memory_space<vmem>>, vector<8x768xf32>
    %cst = arith.constant 0.000000e+00 : f32
    %1 = vector.broadcast %cst : f32 to vector<8x768xf32>
    %2 = arith.maximumf %0, %1 : vector<8x768xf32>
    %3 = arith.truncf %2 : vector<8x768xf32> to vector<8x768xbf16>
    %c0_1 = arith.constant 0 : index
    %c0_2 = arith.constant 0 : index
    %c0_3 = arith.constant 0 : index
    %4 = vector.load %arg2[%c0_1, %c0_2, %c0_3] : memref<1x768x3072xi8, #tpu.memory_space<vmem>>, vector<1x768x3072xi8>
    %5 = vector.shape_cast %4 : vector<1x768x3072xi8> to vector<768x3072xi8>
    %6 = arith.sitofp %5 : vector<768x3072xi8> to vector<768x3072xbf16>
    %cst_4 = arith.constant dense<0.000000e+00> : vector<8x3072xf32>
    %7 = tpu.matmul %3, %6, %cst_4 {dimension_numbers = #tpu.dot_dimension_numbers<[1], [0], [0], [1], [0, 0, 1, 1], [], []>} : vector<8x768xbf16>, vector<768x3072xbf16>, vector<8x3072xf32> -> vector<8x3072xf32>
    %c0_5 = arith.constant 0 : index
    %c0_6 = arith.constant 0 : index
    %8 = vector.load %arg3[%c0_5, %c0_6] : memref<1x3072xf32, #tpu.memory_space<vmem>>, vector<1x3072xf32>
    %9 = vector.broadcast %8 : vector<1x3072xf32> to vector<8x3072xf32>
    %10 = arith.mulf %7, %9 : vector<8x3072xf32>
    %c0_7 = arith.constant 0 : index
    %c0_8 = arith.constant 0 : index
    %11 = vector.load %arg4[%c0_7, %c0_8] : memref<1x3072xf32, #tpu.memory_space<vmem>>, vector<1x3072xf32>
    %12 = vector.broadcast %11 : vector<1x3072xf32> to vector<8x3072xf32>
    %13 = arith.addf %10, %12 : vector<8x3072xf32>
    %cst_9 = arith.constant 0.000000e+00 : f32
    %14 = vector.broadcast %cst_9 : f32 to vector<8x3072xf32>
    %15 = arith.subf %14, %13 : vector<8x3072xf32>
    %16 = math.exp %15 : vector<8x3072xf32>
    %cst_10 = arith.constant 1.000000e+00 : f32
    %17 = vector.broadcast %cst_10 : f32 to vector<8x3072xf32>
    %18 = arith.addf %17, %16 : vector<8x3072xf32>
    %cst_11 = arith.constant 1.000000e+00 : f32
    %19 = vector.broadcast %cst_11 : f32 to vector<8x3072xf32>
    %20 = arith.divf %19, %18 : vector<8x3072xf32>
    %c0_12 = arith.constant 0 : index
    %c0_13 = arith.constant 0 : index
    %21 = vector.load %arg5[%c0_12, %c0_13] : memref<8x3072xf32, #tpu.memory_space<vmem>>, vector<8x3072xf32>
    tpu.vector_store %arg5[%c0_12, %c0_13], %20 {strides = array<i32>} : memref<8x3072xf32, #tpu.memory_space<vmem>>, vector<8x3072xf32>,
    return
  }
  func.func @transform_0(%arg0: i32) -> (i32, i32) {
    %c0_i32 = arith.constant 0 : i32
    %c0_i32_0 = arith.constant 0 : i32
    %c0_i32_1 = arith.constant 0 : i32
    return %c0_i32, %c0_i32_0 : i32, i32
  }
  func.func @transform_1(%arg0: i32) -> (i32, i32, i32) {
    %c0_i32 = arith.constant 0 : i32
    %c0_i32_0 = arith.constant 0 : i32
    %c0_i32_1 = arith.constant 0 : i32
    return %arg0, %c0_i32, %c0_i32_0 : i32, i32, i32
  }
  func.func @transform_2(%arg0: i32) -> (i32, i32) {
    %c0_i32 = arith.constant 0 : i32
    %c0_i32_0 = arith.constant 0 : i32
    return %c0_i32, %arg0 : i32, i32
  }
  func.func @transform_3(%arg0: i32) -> (i32, i32) {
    %c0_i32 = arith.constant 0 : i32
    %c0_i32_0 = arith.constant 0 : i32
    return %c0_i32, %arg0 : i32, i32
  }
  func.func @transform_4(%arg0: i32) -> (i32, i32) {
    %c0_i32 = arith.constant 0 : i32
    %c0_i32_0 = arith.constant 0 : i32
    return %c0_i32, %arg0 : i32, i32
  }
}

</mosaic_0001>

<bundles_post_ra>
// kernel: relu_conv1x1_sigmoid.1
= control target key start
LH: loop header
LB: loop body
LE: loop exit
PB: predicated region body
PF: predicated region fallthrough
CT: control target
= control target key end

     0   :  { %9 = vsyncpa [#allocation3], 0  ;;  %s10882_s0 = inlined_call_operand.vmem [shape: f32[8,768], index: 0, kind: input, shape index: {}]   ;;  %s10883_s1 = inlined_call_operand.hbm [shape: s8[1,768,3072], index: 1, kind: input, shape index: {}]   ;;  %s10884_s2 = inlined_call_operand.hbm [shape: f32[1,3072], index: 2, kind: input, shape index: {}]   ;;  %s10885_s3 = inlined_call_operand.hbm [shape: f32[1,3072], index: 3, kind: input, shape index: {}]   ;;  %s10886_s4 = inlined_call_operand.vmem [shape: f32[8,3072], index: 4, kind: output, shape index: {}]  }
   0x1   :  { %10 = vsyncpa [#allocation5], 0  ;;  %s31_s17 = sshll.u32 %s10884_s2, 4  ;;  %s9121_s18 = smov [#allocation4]   ;;  %s32_s17 = int_to_ptr.hbm [resolvable:$true] %s31_s17 }
   0x2   :  { %s33_s19 = sshll.u32 %s9121_s18, 4  ;;  %s17_s22 = sshll.u32 %s10883_s1, 4  ;;  %s34_s19 = int_to_ptr.vmem [resolvable:$true] %s33_s19  ;;  %s18_s22 = int_to_ptr.hbm [resolvable:$true] %s17_s22 }
   0x3   :  { %36 = dma.hbm_to_vmem [thread:$0]  %s32_s17, 384, %s34_s19, [#allocation5]  }
   0x4   :  { %s9122_s23 = smov [#allocation2]   ;;  %s9123_s25 = smov 3072  }
   0x5   :  { %s19_s24 = sshll.u32 %s9122_s23, 4  ;;  %s9124_s26 = smov 192   ;;  %s20_s24 = int_to_ptr.vmem [resolvable:$true] %s19_s24 }
   0x6   :  { %25 = dma.hbm_to_vmem [thread:$0]  %s18_s22, 73728, %s20_s24, [#allocation3], %s9123_s25, %s9123_s25, %s9124_s26  }
   0x7   :  { %s42_s2 = sshll.u32 %s10885_s3, 4  ;;  %s9125_s29 = smov [#allocation6]   ;;  %s43_s2 = int_to_ptr.hbm [resolvable:$true] %s42_s2 }
   0x8   :  { %s44_s30 = sshll.u32 %s9125_s29, 4  ;;  %s45_s30 = int_to_ptr.vmem [resolvable:$true] %s44_s30 }
   0x9   :  { %47 = dma.hbm_to_vmem [thread:$0]  %s43_s2, 384, %s45_s30, [#allocation5]  }
   0xa   :  { %9117 = dma.done.wait [#allocation3], 73728  }
   0xb   :  { %9118 = vsyncadd [#allocation3], 4294893568 }
   0xc   :  { %9119 = dma.done.wait [#allocation5], 768  }
   0xd   :  { %9120 = vsyncadd [#allocation5], 4294966528  ;;  %v150_v0 = vld [vmem:[#allocation2 + $0x240] sm:$0xff] }
   0xe   :  { %v246_v1 = vld [vmem:[#allocation2 + $0x540] sm:$0xff]  ;;  %v990_v3 = vunpack.c.2.s8 %v150_v0  ;;  %v1014_v4 = vunpack.c.3.s8 %v150_v0  ;;  %v942_v22 = vunpack.c.0.s8 %v150_v0  ;;  %v966_v23 = vunpack.c.1.s8 %v150_v0 }
   0xf   :  { %v342_v2 = vld [vmem:[#allocation2 + $0x840] sm:$0xff]  ;;  %v1374_v5 = vunpack.c.2.s8 %v246_v1  ;;  %v1398_v6 = vunpack.c.3.s8 %v246_v1  ;;  %v1326_v26 = vunpack.c.0.s8 %v246_v1  ;;  %v1350_v27 = vunpack.c.1.s8 %v246_v1 }
  0x10   :  { %v438_v7 = vld [vmem:[#allocation2 + $0xb40] sm:$0xff]  ;;  %v1758_v8 = vunpack.c.2.s8 %v342_v2  ;;  %v1782_v9 = vunpack.c.3.s8 %v342_v2  ;;  %v3294_v12 = vcvt.s32.f32 %v990_v3  ;;  %v3318_v13 = vcvt.s32.f32 %v1014_v4 }
  0x11   :  { %v2142_v10 = vunpack.c.2.s8 %v438_v7  ;;  %v2166_v11 = vunpack.c.3.s8 %v438_v7  ;;  %v3678_v14 = vcvt.s32.f32 %v1374_v5  ;;  %v3702_v15 = vcvt.s32.f32 %v1398_v6  ;;  %v126_v28 = vld [vmem:[#allocation2 + $0x180] sm:$0xff] }
  0x12   :  { %v4062_v16 = vcvt.s32.f32 %v1758_v8  ;;  %v4086_v17 = vcvt.s32.f32 %v1782_v9  ;;  %v5430_v20 = vpack.c.bf16 %v3318_v13, %v3294_v12  ;;  %v3246_v29 = vcvt.s32.f32 %v942_v22  ;;  %v222_v37 = vld [vmem:[#allocation2 + $0x480] sm:$0xff] }
  0x13   :  { %v4446_v18 = vcvt.s32.f32 %v2142_v10  ;;  %v4470_v19 = vcvt.s32.f32 %v2166_v11  ;;  %v5622_v21 = vpack.c.bf16 %v3702_v15, %v3678_v14  ;;  %v3270_v30 = vcvt.s32.f32 %v966_v23  ;;  %v318_v42 = vld [vmem:[#allocation2 + $0x780] sm:$0xff] }
  0x14   :  { %v5814_v24 = vpack.c.bf16 %v4086_v17, %v4062_v16  ;;  %6414 = vmatpush.bf16.msra.mxu0 %v5430_v20  ;;  %v1710_v31 = vunpack.c.0.s8 %v342_v2  ;;  %v1734_v32 = vunpack.c.1.s8 %v342_v2  ;;  %v3630_v33 = vcvt.s32.f32 %v1326_v26  ;;  %v414_v47 = vld [vmem:[#allocation2 + $0xa80] sm:$0xff] }
  0x15   :  { %v6006_v25 = vpack.c.bf16 %v4470_v19, %v4446_v18  ;;  %6427 = vmatpush.bf16.msra.mxu1 %v5622_v21  ;;  %v3654_v34 = vcvt.s32.f32 %v1350_v27  ;;  %v2094_v35 = vunpack.c.0.s8 %v438_v7  ;;  %v2118_v36 = vunpack.c.1.s8 %v438_v7  ;;  %v102_v8 = vld [vmem:[#allocation2 + $0xc0] sm:$0xff] }
  0x16   :  { %6440 = vmatpush.bf16.msra.mxu2 %v5814_v24  ;;  %v5406_v38 = vpack.c.bf16 %v3270_v30, %v3246_v29  ;;  %v4014_v39 = vcvt.s32.f32 %v1710_v31  ;;  %v4038_v40 = vcvt.s32.f32 %v1734_v32  ;;  %v894_v41 = vunpack.c.2.s8 %v126_v28  ;;  %v198_v17 = vld [vmem:[#allocation2 + $0x3c0] sm:$0xff] }
  0x17   :  { %6453 = vmatpush.bf16.msra.mxu3 %v6006_v25  ;;  %v5598_v43 = vpack.c.bf16 %v3654_v34, %v3630_v33  ;;  %v4398_v44 = vcvt.s32.f32 %v2094_v35  ;;  %v4422_v45 = vcvt.s32.f32 %v2118_v36  ;;  %v918_v46 = vunpack.c.3.s8 %v126_v28  ;;  %v294_v22 = vld [vmem:[#allocation2 + $0x6c0] sm:$0xff] }
  0x18   :  { %6415 = vmatpush.bf16.msra.mxu0 %v5406_v38  ;;  %v5790_v48 = vpack.c.bf16 %v4038_v40, %v4014_v39  ;;  %v3198_v49 = vcvt.s32.f32 %v894_v41  ;;  %v1278_v50 = vunpack.c.2.s8 %v222_v37  ;;  %v1302_v51 = vunpack.c.3.s8 %v222_v37  ;;  %v390_v27 = vld [vmem:[#allocation2 + $0x9c0] sm:$0xff] }
  0x19   :  { %6428 = vmatpush.bf16.msra.mxu1 %v5598_v43  ;;  %v5982_v52 = vpack.c.bf16 %v4422_v45, %v4398_v44  ;;  %v3222_v53 = vcvt.s32.f32 %v918_v46  ;;  %v1662_v54 = vunpack.c.2.s8 %v318_v42  ;;  %v1686_v55 = vunpack.c.3.s8 %v318_v42 }
  0x1a   :  { %6441 = vmatpush.bf16.msra.mxu2 %v5790_v48  ;;  %v3582_v56 = vcvt.s32.f32 %v1278_v50  ;;  %v3606_v57 = vcvt.s32.f32 %v1302_v51  ;;  %v2046_v58 = vunpack.c.2.s8 %v414_v47  ;;  %v2070_v59 = vunpack.c.3.s8 %v414_v47 }
  0x1b   :  { %6454 = vmatpush.bf16.msra.mxu3 %v5982_v52  ;;  %v5382_v60 = vpack.c.bf16 %v3222_v53, %v3198_v49  ;;  %v3966_v61 = vcvt.s32.f32 %v1662_v54  ;;  %v3990_v62 = vcvt.s32.f32 %v1686_v55  ;;  %v846_v63 = vunpack.c.0.s8 %v126_v28  ;;  %v78_v52 = vld [vmem:[#allocation2] sm:$0xff] }
  0x1c   :  { %v5574_v0 = vpack.c.bf16 %v3606_v57, %v3582_v56  ;;  %v4350_v1 = vcvt.s32.f32 %v2046_v58  ;;  %v4374_v2 = vcvt.s32.f32 %v2070_v59  ;;  %v870_v3 = vunpack.c.1.s8 %v126_v28 }
  0x1d   :  { %6416 = vmatpush.bf16.msra.mxu0 %v5382_v60  ;;  %v5766_v4 = vpack.c.bf16 %v3990_v62, %v3966_v61  ;;  %v3150_v5 = vcvt.s32.f32 %v846_v63  ;;  %v1230_v6 = vunpack.c.0.s8 %v222_v37  ;;  %v1254_v7 = vunpack.c.1.s8 %v222_v37  ;;  %v174_v61 = vld [vmem:[#allocation2 + $0x300] sm:$0xff] }
  0x1e   :  { %6429 = vmatpush.bf16.msra.mxu1 %v5574_v0  ;;  %v5958_v9 = vpack.c.bf16 %v4374_v2, %v4350_v1  ;;  %v3174_v10 = vcvt.s32.f32 %v870_v3  ;;  %v1614_v11 = vunpack.c.0.s8 %v318_v42  ;;  %v1638_v12 = vunpack.c.1.s8 %v318_v42  ;;  %v270_v2 = vld [vmem:[#allocation2 + $0x600] sm:$0xff] }
  0x1f   :  { %6442 = vmatpush.bf16.msra.mxu2 %v5766_v4  ;;  %v3534_v13 = vcvt.s32.f32 %v1230_v6  ;;  %v3558_v14 = vcvt.s32.f32 %v1254_v7  ;;  %v1998_v15 = vunpack.c.0.s8 %v414_v47  ;;  %v2022_v16 = vunpack.c.1.s8 %v414_v47  ;;  %v366_v7 = vld [vmem:[#allocation2 + $0x900] sm:$0xff] }
  0x20   :  { %6455 = vmatpush.bf16.msra.mxu3 %v5958_v9  ;;  %v5358_v18 = vpack.c.bf16 %v3174_v10, %v3150_v5  ;;  %v3918_v19 = vcvt.s32.f32 %v1614_v11  ;;  %v3942_v20 = vcvt.s32.f32 %v1638_v12  ;;  %v798_v21 = vunpack.c.2.s8 %v102_v8 }
  0x21   :  { %v5550_v23 = vpack.c.bf16 %v3558_v14, %v3534_v13  ;;  %v4302_v24 = vcvt.s32.f32 %v1998_v15  ;;  %v4326_v25 = vcvt.s32.f32 %v2022_v16  ;;  %v822_v26 = vunpack.c.3.s8 %v102_v8 }
  0x22   :  { %6417 = vmatpush.bf16.msra.mxu0 %v5358_v18  ;;  %v5742_v28 = vpack.c.bf16 %v3942_v20, %v3918_v19  ;;  %v3102_v29 = vcvt.s32.f32 %v798_v21  ;;  %v1182_v30 = vunpack.c.2.s8 %v198_v17  ;;  %v1206_v31 = vunpack.c.3.s8 %v198_v17 }
  0x23   :  { %6430 = vmatpush.bf16.msra.mxu1 %v5550_v23  ;;  %v5934_v32 = vpack.c.bf16 %v4326_v25, %v4302_v24  ;;  %v3126_v33 = vcvt.s32.f32 %v822_v26  ;;  %v1566_v34 = vunpack.c.2.s8 %v294_v22  ;;  %v1590_v35 = vunpack.c.3.s8 %v294_v22 }
  0x24   :  { %6443 = vmatpush.bf16.msra.mxu2 %v5742_v28  ;;  %v3486_v36 = vcvt.s32.f32 %v1182_v30  ;;  %v3510_v37 = vcvt.s32.f32 %v1206_v31  ;;  %v1950_v38 = vunpack.c.2.s8 %v390_v27  ;;  %v1974_v39 = vunpack.c.3.s8 %v390_v27 }
  0x25   :  { %6456 = vmatpush.bf16.msra.mxu3 %v5934_v32  ;;  %v5334_v40 = vpack.c.bf16 %v3126_v33, %v3102_v29  ;;  %v3870_v41 = vcvt.s32.f32 %v1566_v34  ;;  %v3894_v42 = vcvt.s32.f32 %v1590_v35  ;;  %v750_v43 = vunpack.c.0.s8 %v102_v8  ;;  %v534_v32 = vld [vmem:[#allocation2 + $0xe40] sm:$0xff] }
  0x26   :  { %v5526_v44 = vpack.c.bf16 %v3510_v37, %v3486_v36  ;;  %v4254_v45 = vcvt.s32.f32 %v1950_v38  ;;  %v4278_v46 = vcvt.s32.f32 %v1974_v39  ;;  %v774_v47 = vunpack.c.1.s8 %v102_v8 }
  0x27   :  { %6418 = vmatpush.bf16.msra.mxu0 %v5334_v40  ;;  %v5718_v48 = vpack.c.bf16 %v3894_v42, %v3870_v41  ;;  %v3054_v49 = vcvt.s32.f32 %v750_v43  ;;  %v1134_v50 = vunpack.c.0.s8 %v198_v17  ;;  %v1158_v51 = vunpack.c.1.s8 %v198_v17  ;;  %v630_v41 = vld [vmem:[#allocation2 + $0x1140] sm:$0xff] }
  0x28   :  { %6431 = vmatpush.bf16.msra.mxu1 %v5526_v44  ;;  %v5910_v53 = vpack.c.bf16 %v4278_v46, %v4254_v45  ;;  %v3078_v54 = vcvt.s32.f32 %v774_v47  ;;  %v1518_v55 = vunpack.c.0.s8 %v294_v22  ;;  %v1542_v56 = vunpack.c.1.s8 %v294_v22  ;;  %v151_v46 = vld [vmem:[#allocation2 + $0x248] sm:$0xff] }
  0x29   :  { %6444 = vmatpush.bf16.msra.mxu2 %v5718_v48  ;;  %v3438_v57 = vcvt.s32.f32 %v1134_v50  ;;  %v3462_v58 = vcvt.s32.f32 %v1158_v51  ;;  %v1902_v59 = vunpack.c.0.s8 %v390_v27  ;;  %v1926_v60 = vunpack.c.1.s8 %v390_v27  ;;  %v247_v51 = vld [vmem:[#allocation2 + $0x548] sm:$0xff] }
  0x2a   :  { %6457 = vmatpush.bf16.msra.mxu3 %v5910_v53  ;;  %v5310_v62 = vpack.c.bf16 %v3078_v54, %v3054_v49  ;;  %v3822_v63 = vcvt.s32.f32 %v1518_v55  ;;  %v3846_v0 = vcvt.s32.f32 %v1542_v56  ;;  %v702_v1 = vunpack.c.2.s8 %v78_v52 }
  0x2b   :  { %v5502_v3 = vpack.c.bf16 %v3462_v58, %v3438_v57  ;;  %v4206_v4 = vcvt.s32.f32 %v1902_v59  ;;  %v4230_v5 = vcvt.s32.f32 %v1926_v60  ;;  %v726_v6 = vunpack.c.3.s8 %v78_v52 }
  0x2c   :  { %6419 = vmatpush.bf16.msra.mxu0 %v5310_v62  ;;  %v5694_v8 = vpack.c.bf16 %v3846_v0, %v3822_v63  ;;  %v3006_v9 = vcvt.s32.f32 %v702_v1  ;;  %v1086_v10 = vunpack.c.2.s8 %v174_v61  ;;  %v1110_v11 = vunpack.c.3.s8 %v174_v61 }
  0x2d   :  { %6432 = vmatpush.bf16.msra.mxu1 %v5502_v3  ;;  %v5886_v12 = vpack.c.bf16 %v4230_v5, %v4206_v4  ;;  %v3030_v13 = vcvt.s32.f32 %v726_v6  ;;  %v1470_v14 = vunpack.c.2.s8 %v270_v2  ;;  %v1494_v15 = vunpack.c.3.s8 %v270_v2 }
  0x2e   :  { %6445 = vmatpush.bf16.msra.mxu2 %v5694_v8  ;;  %v3390_v16 = vcvt.s32.f32 %v1086_v10  ;;  %v3414_v17 = vcvt.s32.f32 %v1110_v11  ;;  %v1854_v18 = vunpack.c.2.s8 %v366_v7  ;;  %v1878_v19 = vunpack.c.3.s8 %v366_v7 }
  0x2f   :  { %6458 = vmatpush.bf16.msra.mxu3 %v5886_v12  ;;  %v5286_v20 = vpack.c.bf16 %v3030_v13, %v3006_v9  ;;  %v3774_v21 = vcvt.s32.f32 %v1470_v14  ;;  %v3798_v22 = vcvt.s32.f32 %v1494_v15  ;;  %v654_v23 = vunpack.c.0.s8 %v78_v52  ;;  %v510_v12 = vld [vmem:[#allocation2 + $0xd80] sm:$0xff] }
  0x30   :  { %v5478_v24 = vpack.c.bf16 %v3414_v17, %v3390_v16  ;;  %v4158_v25 = vcvt.s32.f32 %v1854_v18  ;;  %v4182_v26 = vcvt.s32.f32 %v1878_v19  ;;  %v678_v27 = vunpack.c.1.s8 %v78_v52 }
  0x31   :  { %6420 = vmatpush.bf16.msra.mxu0 %v5286_v20  ;;  %v5670_v28 = vpack.c.bf16 %v3798_v22, %v3774_v21  ;;  %v2958_v29 = vcvt.s32.f32 %v654_v23  ;;  %v1038_v30 = vunpack.c.0.s8 %v174_v61  ;;  %v1062_v31 = vunpack.c.1.s8 %v174_v61  ;;  %v606_v21 = vld [vmem:[#allocation2 + $0x1080] sm:$0xff] }
  0x32   :  { %6433 = vmatpush.bf16.msra.mxu1 %v5478_v24  ;;  %v5862_v33 = vpack.c.bf16 %v4182_v26, %v4158_v25  ;;  %v2982_v34 = vcvt.s32.f32 %v678_v27  ;;  %v1422_v35 = vunpack.c.0.s8 %v270_v2  ;;  %v1446_v36 = vunpack.c.1.s8 %v270_v2  ;;  %v127_v26 = vld [vmem:[#allocation2 + $0x188] sm:$0xff] }
  0x33   :  { %6446 = vmatpush.bf16.msra.mxu2 %v5670_v28  ;;  %v3342_v37 = vcvt.s32.f32 %v1038_v30  ;;  %v3366_v38 = vcvt.s32.f32 %v1062_v31  ;;  %v1806_v39 = vunpack.c.0.s8 %v366_v7  ;;  %v1830_v40 = vunpack.c.1.s8 %v366_v7  ;;  %v223_v31 = vld [vmem:[#allocation2 + $0x488] sm:$0xff] }
  0x34   :  { %6459 = vmatpush.bf16.msra.mxu3 %v5862_v33  ;;  %v5262_v42 = vpack.c.bf16 %v2982_v34, %v2958_v29  ;;  %v3726_v43 = vcvt.s32.f32 %v1422_v35  ;;  %v3750_v44 = vcvt.s32.f32 %v1446_v36  ;;  %v2526_v45 = vunpack.c.2.s8 %v534_v32 }
  0x35   :  { %v5454_v47 = vpack.c.bf16 %v3366_v38, %v3342_v37  ;;  %v4110_v48 = vcvt.s32.f32 %v1806_v39  ;;  %v4134_v49 = vcvt.s32.f32 %v1830_v40  ;;  %v2550_v50 = vunpack.c.3.s8 %v534_v32 }
  0x36   :  { %6421 = vmatpush.bf16.msra.mxu0 %v5262_v42  ;;  %v5646_v52 = vpack.c.bf16 %v3750_v44, %v3726_v43  ;;  %v4830_v53 = vcvt.s32.f32 %v2526_v45  ;;  %v2910_v54 = vunpack.c.2.s8 %v630_v41  ;;  %v2934_v55 = vunpack.c.3.s8 %v630_v41 }
  0x37   :  { %6434 = vmatpush.bf16.msra.mxu1 %v5454_v47  ;;  %v5838_v56 = vpack.c.bf16 %v4134_v49, %v4110_v48  ;;  %v4854_v57 = vcvt.s32.f32 %v2550_v50  ;;  %v991_v58 = vunpack.c.2.s8 %v151_v46  ;;  %v1015_v59 = vunpack.c.3.s8 %v151_v46 }
  0x38   :  { %6447 = vmatpush.bf16.msra.mxu2 %v5646_v52  ;;  %v5214_v60 = vcvt.s32.f32 %v2910_v54  ;;  %v5238_v61 = vcvt.s32.f32 %v2934_v55  ;;  %v1375_v62 = vunpack.c.2.s8 %v247_v51  ;;  %v1399_v63 = vunpack.c.3.s8 %v247_v51 }
  0x39   :  { %6460 = vmatpush.bf16.msra.mxu3 %v5838_v56  ;;  %v6198_v0 = vpack.c.bf16 %v4854_v57, %v4830_v53  ;;  %v3295_v1 = vcvt.s32.f32 %v991_v58  ;;  %v3319_v2 = vcvt.s32.f32 %v1015_v59  ;;  %v2478_v3 = vunpack.c.0.s8 %v534_v32  ;;  %v60_v56 = vld [vmem:[%s10882_s0] sm:$0xff] }
  0x3a   :  { %v6390_v4 = vpack.c.bf16 %v5238_v61, %v5214_v60  ;;  %v3679_v5 = vcvt.s32.f32 %v1375_v62  ;;  %v3703_v6 = vcvt.s32.f32 %v1399_v63  ;;  %v2502_v7 = vunpack.c.1.s8 %v534_v32  ;;  %v486_v61 = vld [vmem:[#allocation2 + $0xcc0] sm:$0xff] }
  0x3b   :  { %6466 = vmatpush.bf16.msrb.mxu0 %v6198_v0  ;;  %v5431_v8 = vpack.c.bf16 %v3319_v2, %v3295_v1  ;;  %v4782_v9 = vcvt.s32.f32 %v2478_v3  ;;  %v2862_v10 = vunpack.c.0.s8 %v630_v41  ;;  %v2886_v11 = vunpack.c.1.s8 %v630_v41  ;;  %v582_v2 = vld [vmem:[#allocation2 + $0xfc0] sm:$0xff] }
  0x3c   :  { %6479 = vmatpush.bf16.msrb.mxu1 %v6390_v4  ;;  %v5623_v13 = vpack.c.bf16 %v3703_v6, %v3679_v5  ;;  %v4806_v14 = vcvt.s32.f32 %v2502_v7  ;;  %v943_v15 = vunpack.c.0.s8 %v151_v46  ;;  %v967_v16 = vunpack.c.1.s8 %v151_v46  ;;  %v103_v7 = vld [vmem:[#allocation2 + $0xc8] sm:$0xff] }
  0x3d   :  { %6492 = vmatpush.bf16.msrb.mxu2 %v5431_v8  ;;  %v5166_v17 = vcvt.s32.f32 %v2862_v10  ;;  %v5190_v18 = vcvt.s32.f32 %v2886_v11  ;;  %v1327_v19 = vunpack.c.0.s8 %v247_v51  ;;  %v1351_v20 = vunpack.c.1.s8 %v247_v51 }
  0x3e   :  { %6505 = vmatpush.bf16.msrb.mxu3 %v5623_v13  ;;  %v6174_v22 = vpack.c.bf16 %v4806_v14, %v4782_v9  ;;  %v3247_v23 = vcvt.s32.f32 %v943_v15  ;;  %v3271_v24 = vcvt.s32.f32 %v967_v16  ;;  %v2430_v25 = vunpack.c.2.s8 %v510_v12 }
  0x3f   :  { %v6366_v27 = vpack.c.bf16 %v5190_v18, %v5166_v17  ;;  %v3631_v28 = vcvt.s32.f32 %v1327_v19  ;;  %v3655_v29 = vcvt.s32.f32 %v1351_v20  ;;  %v2454_v30 = vunpack.c.3.s8 %v510_v12  ;;  %v61_v17 = vld [vmem:[%s10882_s0 + $0x8] sm:$0xff] }
  0x40   :  { %6467 = vmatpush.bf16.msrb.mxu0 %v6174_v22  ;;  %v5407_v32 = vpack.c.bf16 %v3271_v24, %v3247_v23  ;;  %v4734_v33 = vcvt.s32.f32 %v2430_v25  ;;  %v2814_v34 = vunpack.c.2.s8 %v606_v21  ;;  %v2838_v35 = vunpack.c.3.s8 %v606_v21 }
  0x41   :  { %6480 = vmatpush.bf16.msrb.mxu1 %v6366_v27  ;;  %v5599_v36 = vpack.c.bf16 %v3655_v29, %v3631_v28  ;;  %v4758_v37 = vcvt.s32.f32 %v2454_v30  ;;  %v895_v38 = vunpack.c.2.s8 %v127_v26  ;;  %v919_v39 = vunpack.c.3.s8 %v127_v26 }
  0x42   :  { %6493 = vmatpush.bf16.msrb.mxu2 %v5407_v32  ;;  %v5118_v40 = vcvt.s32.f32 %v2814_v34  ;;  %v5142_v41 = vcvt.s32.f32 %v2838_v35  ;;  %v1279_v42 = vunpack.c.2.s8 %v223_v31  ;;  %v1303_v43 = vunpack.c.3.s8 %v223_v31 }
  0x43   :  { %6506 = vmatpush.bf16.msrb.mxu3 %v5599_v36  ;;  %v6150_v44 = vpack.c.bf16 %v4758_v37, %v4734_v33  ;;  %v3199_v45 = vcvt.s32.f32 %v895_v38  ;;  %v3223_v46 = vcvt.s32.f32 %v919_v39  ;;  %v2382_v47 = vunpack.c.0.s8 %v510_v12 }
  0x44   :  { %v6342_v48 = vpack.c.bf16 %v5142_v41, %v5118_v40  ;;  %v3583_v49 = vcvt.s32.f32 %v1279_v42  ;;  %v3607_v50 = vcvt.s32.f32 %v1303_v43  ;;  %v2406_v51 = vunpack.c.1.s8 %v510_v12  ;;  %v199_v12 = vld [vmem:[#allocation2 + $0x3c8] sm:$0xff]  ;;  %v62_v42 = vld [vmem:[%s10882_s0 + $0x10] sm:$0xff] }
  0x45   :  { %6468 = vmatpush.bf16.msrb.mxu0 %v6150_v44  ;;  %v5383_v52 = vpack.c.bf16 %v3223_v46, %v3199_v45  ;;  %v4686_v53 = vcvt.s32.f32 %v2382_v47  ;;  %v2766_v54 = vunpack.c.0.s8 %v606_v21  ;;  %v2790_v55 = vunpack.c.1.s8 %v606_v21  ;;  %v63_v47 = vld [vmem:[%s10882_s0 + $0x18] sm:$0xff] }
  0x46   :  { %6481 = vmatpush.bf16.msrb.mxu1 %v6342_v48  ;;  %v5575_v57 = vpack.c.bf16 %v3607_v50, %v3583_v49  ;;  %v4710_v58 = vcvt.s32.f32 %v2406_v51  ;;  %v847_v59 = vunpack.c.0.s8 %v127_v26  ;;  %v871_v60 = vunpack.c.1.s8 %v127_v26 }
  0x47   :  { %6494 = vmatpush.bf16.msrb.mxu2 %v5383_v52  ;;  %v5070_v62 = vcvt.s32.f32 %v2766_v54  ;;  %v5094_v63 = vcvt.s32.f32 %v2790_v55  ;;  %v1231_v0 = vunpack.c.0.s8 %v223_v31  ;;  %v1255_v1 = vunpack.c.1.s8 %v223_v31  ;;  %v462_v52 = vld [vmem:[#allocation2 + $0xc00] sm:$0xff] }
  0x48   :  { %6507 = vmatpush.bf16.msrb.mxu3 %v5575_v57  ;;  %v6126_v3 = vpack.c.bf16 %v4710_v58, %v4686_v53  ;;  %v3151_v4 = vcvt.s32.f32 %v847_v59  ;;  %v3175_v5 = vcvt.s32.f32 %v871_v60  ;;  %v66_v6 = vmax.f32 %v60_v56, 0.0  ;;  %v558_v57 = vld [vmem:[#allocation2 + $0xf00] sm:$0xff] }
  0x49   :  { %v6318_v8 = vpack.c.bf16 %v5094_v63, %v5070_v62  ;;  %v3535_v9 = vcvt.s32.f32 %v1231_v0  ;;  %v3559_v10 = vcvt.s32.f32 %v1255_v1  ;;  %v2334_v11 = vunpack.c.2.s8 %v486_v61  ;;  %v79_v62 = vld [vmem:[#allocation2 + $0x8] sm:$0xff] }
  0x4a   :  { %6469 = vmatpush.bf16.msrb.mxu0 %v6126_v3  ;;  %v5359_v13 = vpack.c.bf16 %v3175_v5, %v3151_v4  ;;  %v9163_v14 = vpack.c.bf16 %v66_v6, %v66_v6  ;;  %v2358_v15 = vunpack.c.3.s8 %v486_v61  ;;  %v2718_v16 = vunpack.c.2.s8 %v582_v2  ;;  %v175_v3 = vld [vmem:[#allocation2 + $0x308] sm:$0xff] }
  0x4b   :  { %6482 = vmatpush.bf16.msrb.mxu1 %v6318_v8  ;;  %v5551_v18 = vpack.c.bf16 %v3559_v10, %v3535_v9  ;;  %v4638_v19 = vcvt.s32.f32 %v2334_v11  ;;  %v2742_v20 = vunpack.c.3.s8 %v582_v2  ;;  %v799_v21 = vunpack.c.2.s8 %v103_v7 }
  0x4c   :  { %6495 = vmatpush.bf16.msrb.mxu2 %v5359_v13  ;;  %6422 = vmatmul.bf16.vlgmr.msra.gmra.mxu0 %v9163_v14  ;;  %v4662_v22 = vcvt.s32.f32 %v2358_v15  ;;  %v5022_v23 = vcvt.s32.f32 %v2718_v16  ;;  %v823_v24 = vunpack.c.3.s8 %v103_v7  ;;  %v1183_v25 = vunpack.c.2.s8 %v199_v12 }
  0x4d   :  { %6508 = vmatpush.bf16.msrb.mxu3 %v5551_v18  ;;  %v5046_v26 = vcvt.s32.f32 %v2742_v20  ;;  %v3103_v27 = vcvt.s32.f32 %v799_v21  ;;  %v1207_v28 = vunpack.c.3.s8 %v199_v12  ;;  %v67_v29 = vmax.f32 %v61_v17, 0.0 }
  0x4e   :  { %v6102_v30 = vpack.c.bf16 %v4662_v22, %v4638_v19  ;;  %v3127_v31 = vcvt.s32.f32 %v823_v24  ;;  %v3487_v32 = vcvt.s32.f32 %v1183_v25  ;;  %v2286_v33 = vunpack.c.0.s8 %v486_v61 }
  0x4f   :  { %v6294_v34 = vpack.c.bf16 %v5046_v26, %v5022_v23  ;;  %v3511_v35 = vcvt.s32.f32 %v1207_v28  ;;  %v9169_v36 = vpack.c.bf16 %v67_v29, %v67_v29  ;;  %v2310_v37 = vunpack.c.1.s8 %v486_v61  ;;  %v9184_v29 = vld [vmem:[#allocation2 + $0x848] sm:$0xff] }
  0x50   :  { %6470 = vmatpush.bf16.msrb.mxu0 %v6102_v30  ;;  %v5335_v38 = vpack.c.bf16 %v3127_v31, %v3103_v27  ;;  %v4590_v39 = vcvt.s32.f32 %v2286_v33  ;;  %v2670_v40 = vunpack.c.0.s8 %v582_v2  ;;  %v2694_v41 = vunpack.c.1.s8 %v582_v2 }
  0x51   :  { %6483 = vmatpush.bf16.msrb.mxu1 %v6294_v34  ;;  %v5527_v43 = vpack.c.bf16 %v3511_v35, %v3487_v32  ;;  %v4614_v44 = vcvt.s32.f32 %v2310_v37  ;;  %v751_v45 = vunpack.c.0.s8 %v103_v7  ;;  %v775_v46 = vunpack.c.1.s8 %v103_v7 }
  0x52   :  { %6496 = vmatpush.bf16.msrb.mxu2 %v5335_v38  ;;  %6435 = vmatmul.bf16.vlgmr.msra.gmra.mxu1 %v9169_v36  ;;  %v4974_v48 = vcvt.s32.f32 %v2670_v40  ;;  %v4998_v49 = vcvt.s32.f32 %v2694_v41  ;;  %v1135_v50 = vunpack.c.0.s8 %v199_v12  ;;  %v1159_v51 = vunpack.c.1.s8 %v199_v12 }
  0x53   :  { %6509 = vmatpush.bf16.msrb.mxu3 %v5527_v43  ;;  %v6078_v53 = vpack.c.bf16 %v4614_v44, %v4590_v39  ;;  %v3055_v54 = vcvt.s32.f32 %v751_v45  ;;  %v3079_v55 = vcvt.s32.f32 %v775_v46  ;;  %v68_v56 = vmax.f32 %v62_v42, 0.0  ;;  %v439_v39 = vld [vmem:[#allocation2 + $0xb48] sm:$0xff] }
  0x54   :  { %v6270_v58 = vpack.c.bf16 %v4998_v49, %v4974_v48  ;;  %v3439_v59 = vcvt.s32.f32 %v1135_v50  ;;  %v3463_v60 = vcvt.s32.f32 %v1159_v51  ;;  %v69_v61 = vmax.f32 %v63_v47, 0.0  ;;  %v535_v44 = vld [vmem:[#allocation2 + $0xe48] sm:$0xff] }
  0x55   :  { %6471 = vmatpush.bf16.msrb.mxu0 %v6078_v53  ;;  %v5311_v63 = vpack.c.bf16 %v3079_v55, %v3055_v54  ;;  %v9178_v0 = vpack.c.bf16 %v68_v56, %v68_v56  ;;  %v2238_v1 = vunpack.c.2.s8 %v462_v52  ;;  %v2262_v2 = vunpack.c.3.s8 %v462_v52  ;;  %v631_v49 = vld [vmem:[#allocation2 + $0x1148] sm:$0xff]  ;;  %v64_v54 = vld [vmem:[%s10882_s0 + $0x20] sm:$0xff] }
  0x56   :  { %6484 = vmatpush.bf16.msrb.mxu1 %v6270_v58  ;;  %v5503_v4 = vpack.c.bf16 %v3463_v60, %v3439_v59  ;;  %v9180_v5 = vpack.c.bf16 %v69_v61, %v69_v61  ;;  %v2622_v6 = vunpack.c.2.s8 %v558_v57  ;;  %v2646_v7 = vunpack.c.3.s8 %v558_v57  ;;  %v65_v59 = vld [vmem:[%s10882_s0 + $0x28] sm:$0xff] }
  0x57   :  { %6497 = vmatpush.bf16.msrb.mxu2 %v5311_v63  ;;  %v4542_v8 = vcvt.s32.f32 %v2238_v1  ;;  %v4566_v9 = vcvt.s32.f32 %v2262_v2  ;;  %v703_v10 = vunpack.c.2.s8 %v79_v62  ;;  %v727_v11 = vunpack.c.3.s8 %v79_v62 }
  0x58   :  { %6510 = vmatpush.bf16.msrb.mxu3 %v5503_v4  ;;  %6448 = vmatmul.bf16.vlgmr.msra.gmra.mxu2 %v9178_v0  ;;  %v4926_v12 = vcvt.s32.f32 %v2622_v6  ;;  %v4950_v13 = vcvt.s32.f32 %v2646_v7  ;;  %v1087_v15 = vunpack.c.2.s8 %v175_v3  ;;  %v1111_v16 = vunpack.c.3.s8 %v175_v3 }
  0x59   :  { %6461 = vmatmul.bf16.vlgmr.msra.gmra.mxu3 %v9180_v5  ;;  %v6054_v17 = vpack.c.bf16 %v4566_v9, %v4542_v8  ;;  %v3007_v18 = vcvt.s32.f32 %v703_v10  ;;  %v3031_v19 = vcvt.s32.f32 %v727_v11  ;;  %v2190_v20 = vunpack.c.0.s8 %v462_v52 }
  0x5a   :  { %v6246_v21 = vpack.c.bf16 %v4950_v13, %v4926_v12  ;;  %v3391_v22 = vcvt.s32.f32 %v1087_v15  ;;  %v3415_v23 = vcvt.s32.f32 %v1111_v16  ;;  %v2214_v24 = vunpack.c.1.s8 %v462_v52 }
  0x5b   :  { %6472 = vmatpush.bf16.msrb.mxu0 %v6054_v17  ;;  %v5287_v25 = vpack.c.bf16 %v3031_v19, %v3007_v18  ;;  %v4494_v26 = vcvt.s32.f32 %v2190_v20  ;;  %v2574_v27 = vunpack.c.0.s8 %v558_v57  ;;  %v2598_v28 = vunpack.c.1.s8 %v558_v57  ;;  %v319_v19 = vld [vmem:[#allocation2 + $0x788] sm:$0xff] }
  0x5c   :  { %6485 = vmatpush.bf16.msrb.mxu1 %v6246_v21  ;;  %v5479_v30 = vpack.c.bf16 %v3415_v23, %v3391_v22  ;;  %v4518_v31 = vcvt.s32.f32 %v2214_v24  ;;  %v655_v32 = vunpack.c.0.s8 %v79_v62  ;;  %v679_v33 = vunpack.c.1.s8 %v79_v62 }
  0x5d   :  { %6498 = vmatpush.bf16.msrb.mxu2 %v5287_v25  ;;  %v4878_v34 = vcvt.s32.f32 %v2574_v27  ;;  %v4902_v35 = vcvt.s32.f32 %v2598_v28  ;;  %v1039_v37 = vunpack.c.0.s8 %v175_v3  ;;  %v1063_v38 = vunpack.c.1.s8 %v175_v3  ;;  %v415_v28 = vld [vmem:[#allocation2 + $0xa88] sm:$0xff] }
  0x5e   :  { %6511 = vmatpush.bf16.msrb.mxu3 %v5479_v30  ;;  %v6030_v40 = vpack.c.bf16 %v4518_v31, %v4494_v26  ;;  %v2959_v41 = vcvt.s32.f32 %v655_v32  ;;  %v2983_v42 = vcvt.s32.f32 %v679_v33  ;;  %v1759_v43 = vunpack.c.2.s8 %v9184_v29  ;;  %v511_v33 = vld [vmem:[#allocation2 + $0xd88] sm:$0xff] }
  0x5f   :  { %v6222_v45 = vpack.c.bf16 %v4902_v35, %v4878_v34  ;;  %v3343_v46 = vcvt.s32.f32 %v1039_v37  ;;  %v3367_v47 = vcvt.s32.f32 %v1063_v38  ;;  %v1783_v48 = vunpack.c.3.s8 %v9184_v29 }
  0x60   :  { %6473 = vmatpush.bf16.msrb.mxu0 %v6030_v40  ;;  %v5263_v50 = vpack.c.bf16 %v2983_v42, %v2959_v41  ;;  %v4063_v51 = vcvt.s32.f32 %v1759_v43  ;;  %v2143_v52 = vunpack.c.2.s8 %v439_v39  ;;  %v2167_v53 = vunpack.c.3.s8 %v439_v39 }
  0x61   :  { %6486 = vmatpush.bf16.msrb.mxu1 %v6222_v45  ;;  %v5455_v55 = vpack.c.bf16 %v3367_v47, %v3343_v46  ;;  %v4087_v56 = vcvt.s32.f32 %v1783_v48  ;;  %v2527_v57 = vunpack.c.2.s8 %v535_v44  ;;  %v2551_v58 = vunpack.c.3.s8 %v535_v44 }
  0x62   :  { %6499 = vmatpush.bf16.msrb.mxu2 %v5263_v50  ;;  %v4447_v60 = vcvt.s32.f32 %v2143_v52  ;;  %v4471_v61 = vcvt.s32.f32 %v2167_v53  ;;  %v2911_v62 = vunpack.c.2.s8 %v631_v49  ;;  %v2935_v63 = vunpack.c.3.s8 %v631_v49 }
  0x63   :  { %6512 = vmatpush.bf16.msrb.mxu3 %v5455_v55  ;;  %v5815_v1 = vpack.c.bf16 %v4087_v56, %v4063_v51  ;;  %v4831_v2 = vcvt.s32.f32 %v2527_v57  ;;  %v4855_v3 = vcvt.s32.f32 %v2551_v58  ;;  %v70_v4 = vmax.f32 %v64_v54, 0.0 }
  0x64   :  { %v6007_v6 = vpack.c.bf16 %v4471_v61, %v4447_v60  ;;  %v5215_v7 = vcvt.s32.f32 %v2911_v62  ;;  %v5239_v8 = vcvt.s32.f32 %v2935_v63  ;;  %v71_v9 = vmax.f32 %v65_v59, 0.0 }
  0x65   :  { %6518 = vmatpush.bf16.msra.mxu0 %v5815_v1  ;;  %v6199_v10 = vpack.c.bf16 %v4855_v3, %v4831_v2  ;;  %v9194_v11 = vpack.c.bf16 %v70_v4, %v70_v4  ;;  %v1711_v12 = vunpack.c.0.s8 %v9184_v29  ;;  %v1735_v13 = vunpack.c.1.s8 %v9184_v29  ;;  %v295_v1 = vld [vmem:[#allocation2 + $0x6c8] sm:$0xff] }
  0x66   :  { %6531 = vmatpush.bf16.msra.mxu1 %v6007_v6  ;;  %v6391_v15 = vpack.c.bf16 %v5239_v8, %v5215_v7  ;;  %v9198_v16 = vpack.c.bf16 %v71_v9, %v71_v9  ;;  %v2095_v17 = vunpack.c.0.s8 %v439_v39  ;;  %v2119_v18 = vunpack.c.1.s8 %v439_v39  ;;  %v607_v39 = vld [vmem:[#allocation2 + $0x1088] sm:$0xff] }
  0x67   :  { %6544 = vmatpush.bf16.msra.mxu2 %v6199_v10  ;;  %6474 = vmatmul.bf16.vlgmr.msrb.gmra.mxu0 %v9194_v11  ;;  %v4015_v20 = vcvt.s32.f32 %v1711_v12  ;;  %v4039_v21 = vcvt.s32.f32 %v1735_v13  ;;  %v2479_v22 = vunpack.c.0.s8 %v535_v44  ;;  %v2503_v23 = vunpack.c.1.s8 %v535_v44  ;;  %v391_v12 = vld [vmem:[#allocation2 + $0x9c8] sm:$0xff] }
  0x68   :  { %6557 = vmatpush.bf16.msra.mxu3 %v6391_v15  ;;  %6487 = vmatmul.bf16.vlgmr.msrb.gmra.mxu1 %v9198_v16  ;;  %v4399_v24 = vcvt.s32.f32 %v2095_v17  ;;  %v4423_v25 = vcvt.s32.f32 %v2119_v18  ;;  %v2863_v26 = vunpack.c.0.s8 %v631_v49  ;;  %v2887_v27 = vunpack.c.1.s8 %v631_v49 }
  0x69   :  { %v5791_v29 = vpack.c.bf16 %v4039_v21, %v4015_v20  ;;  %v4783_v30 = vcvt.s32.f32 %v2479_v22  ;;  %v4807_v31 = vcvt.s32.f32 %v2503_v23  ;;  %v1663_v32 = vunpack.c.2.s8 %v319_v19  ;;  %6500 = vmatmul.bf16.vlgmr.msrb.gmra.mxu2 %v9163_v14  ;;  %6513 = vmatmul.bf16.vlgmr.msrb.gmra.mxu3 %v9169_v36 }
  0x6a   :  { %v5983_v34 = vpack.c.bf16 %v4423_v25, %v4399_v24  ;;  %v5167_v35 = vcvt.s32.f32 %v2863_v26  ;;  %v5191_v37 = vcvt.s32.f32 %v2887_v27  ;;  %v1687_v38 = vunpack.c.3.s8 %v319_v19  ;;  %v583_v24 = vld [vmem:[#allocation2 + $0xfc8] sm:$0xff] }
  0x6b   :  { %6519 = vmatpush.bf16.msra.mxu0 %v5791_v29  ;;  %v6175_v40 = vpack.c.bf16 %v4807_v31, %v4783_v30  ;;  %v3967_v41 = vcvt.s32.f32 %v1663_v32  ;;  %v2047_v42 = vunpack.c.2.s8 %v415_v28  ;;  %v2071_v43 = vunpack.c.3.s8 %v415_v28 }
  0x6c   :  { %6532 = vmatpush.bf16.msra.mxu1 %v5983_v34  ;;  %v6367_v44 = vpack.c.bf16 %v5191_v37, %v5167_v35  ;;  %v3991_v45 = vcvt.s32.f32 %v1687_v38  ;;  %v2431_v46 = vunpack.c.2.s8 %v511_v33  ;;  %v2455_v47 = vunpack.c.3.s8 %v511_v33 }
  0x6d   :  { %6545 = vmatpush.bf16.msra.mxu2 %v6175_v40  ;;  %v4351_v48 = vcvt.s32.f32 %v2047_v42  ;;  %v4375_v49 = vcvt.s32.f32 %v2071_v43  ;;  %v2815_v50 = vunpack.c.2.s8 %v607_v39  ;;  %v2839_v51 = vunpack.c.3.s8 %v607_v39 }
  0x6e   :  { %6558 = vmatpush.bf16.msra.mxu3 %v6367_v44  ;;  %v5767_v52 = vpack.c.bf16 %v3991_v45, %v3967_v41  ;;  %v4735_v53 = vcvt.s32.f32 %v2431_v46  ;;  %v4759_v54 = vcvt.s32.f32 %v2455_v47  ;;  %v1615_v55 = vunpack.c.0.s8 %v319_v19 }
  0x6f   :  { %v5959_v56 = vpack.c.bf16 %v4375_v49, %v4351_v48  ;;  %v5119_v57 = vcvt.s32.f32 %v2815_v50  ;;  %v5143_v58 = vcvt.s32.f32 %v2839_v51  ;;  %v1639_v59 = vunpack.c.1.s8 %v319_v19  ;;  %v487_v19 = vld [vmem:[#allocation2 + $0xcc8] sm:$0xff] }
  0x70   :  { %6520 = vmatpush.bf16.msra.mxu0 %v5767_v52  ;;  %v6151_v60 = vpack.c.bf16 %v4759_v54, %v4735_v53  ;;  %v3919_v61 = vcvt.s32.f32 %v1615_v55  ;;  %v1999_v62 = vunpack.c.0.s8 %v415_v28  ;;  %v2023_v63 = vunpack.c.1.s8 %v415_v28  ;;  %v271_v50 = vld [vmem:[#allocation2 + $0x608] sm:$0xff] }
  0x71   :  { %6533 = vmatpush.bf16.msra.mxu1 %v5959_v56  ;;  %v6343_v2 = vpack.c.bf16 %v5143_v58, %v5119_v57  ;;  %v3943_v3 = vcvt.s32.f32 %v1639_v59  ;;  %v2383_v4 = vunpack.c.0.s8 %v511_v33  ;;  %v2407_v6 = vunpack.c.1.s8 %v511_v33  ;;  %v367_v59 = vld [vmem:[#allocation2 + $0x908] sm:$0xff] }
  0x72   :  { %6546 = vmatpush.bf16.msra.mxu2 %v6151_v60  ;;  %v4303_v7 = vcvt.s32.f32 %v1999_v62  ;;  %v4327_v8 = vcvt.s32.f32 %v2023_v63  ;;  %v2767_v9 = vunpack.c.0.s8 %v607_v39  ;;  %v2791_v10 = vunpack.c.1.s8 %v607_v39 }
  0x73   :  { %6559 = vmatpush.bf16.msra.mxu3 %v6343_v2  ;;  %v5743_v13 = vpack.c.bf16 %v3943_v3, %v3919_v61  ;;  %v4687_v15 = vcvt.s32.f32 %v2383_v4  ;;  %v4711_v17 = vcvt.s32.f32 %v2407_v6  ;;  %v1567_v18 = vunpack.c.2.s8 %v295_v1 }
  0x74   :  { %v5935_v20 = vpack.c.bf16 %v4327_v8, %v4303_v7  ;;  %v5071_v21 = vcvt.s32.f32 %v2767_v9  ;;  %v5095_v22 = vcvt.s32.f32 %v2791_v10  ;;  %v1591_v23 = vunpack.c.3.s8 %v295_v1  ;;  %v559_v7 = vld [vmem:[#allocation2 + $0xf08] sm:$0xff] }
  0x75   :  { %6521 = vmatpush.bf16.msra.mxu0 %v5743_v13  ;;  %v6127_v25 = vpack.c.bf16 %v4711_v17, %v4687_v15  ;;  %v3871_v26 = vcvt.s32.f32 %v1567_v18  ;;  %v1951_v27 = vunpack.c.2.s8 %v391_v12  ;;  %v1975_v28 = vunpack.c.3.s8 %v391_v12 }
  0x76   :  { %6534 = vmatpush.bf16.msra.mxu1 %v5935_v20  ;;  %v6319_v29 = vpack.c.bf16 %v5095_v22, %v5071_v21  ;;  %v3895_v30 = vcvt.s32.f32 %v1591_v23  ;;  %v2335_v31 = vunpack.c.2.s8 %v487_v19  ;;  %v2359_v32 = vunpack.c.3.s8 %v487_v19 }
  0x77   :  { %6547 = vmatpush.bf16.msra.mxu2 %v6127_v25  ;;  %v4255_v33 = vcvt.s32.f32 %v1951_v27  ;;  %v4279_v34 = vcvt.s32.f32 %v1975_v28  ;;  %v2719_v35 = vunpack.c.2.s8 %v583_v24  ;;  %v2743_v37 = vunpack.c.3.s8 %v583_v24 }
  0x78   :  { %6560 = vmatpush.bf16.msra.mxu3 %v6319_v29  ;;  %v5719_v38 = vpack.c.bf16 %v3895_v30, %v3871_v26  ;;  %v4639_v39 = vcvt.s32.f32 %v2335_v31  ;;  %v4663_v40 = vcvt.s32.f32 %v2359_v32  ;;  %v1519_v41 = vunpack.c.0.s8 %v295_v1 }
  0x79   :  { %v5911_v42 = vpack.c.bf16 %v4279_v34, %v4255_v33  ;;  %v5023_v43 = vcvt.s32.f32 %v2719_v35  ;;  %v5047_v44 = vcvt.s32.f32 %v2743_v37  ;;  %v1543_v45 = vunpack.c.1.s8 %v295_v1  ;;  %v463_v1 = vld [vmem:[#allocation2 + $0xc08] sm:$0xff]  ;;  %v152_v35 = vld [vmem:[#allocation2 + $0x250] sm:$0xff] }
  0x7a   :  { %6522 = vmatpush.bf16.msra.mxu0 %v5719_v38  ;;  %v6103_v46 = vpack.c.bf16 %v4663_v40, %v4639_v39  ;;  %v3823_v47 = vcvt.s32.f32 %v1519_v41  ;;  %v1903_v48 = vunpack.c.0.s8 %v391_v12  ;;  %v1927_v49 = vunpack.c.1.s8 %v391_v12 }
  0x7b   :  { %6535 = vmatpush.bf16.msra.mxu1 %v5911_v42  ;;  %v6295_v51 = vpack.c.bf16 %v5047_v44, %v5023_v43  ;;  %v3847_v52 = vcvt.s32.f32 %v1543_v45  ;;  %v2287_v53 = vunpack.c.0.s8 %v487_v19  ;;  %v2311_v54 = vunpack.c.1.s8 %v487_v19  ;;  %v248_v45 = vld [vmem:[#allocation2 + $0x550] sm:$0xff] }
  0x7c   :  { %6548 = vmatpush.bf16.msra.mxu2 %v6103_v46  ;;  %v4207_v55 = vcvt.s32.f32 %v1903_v48  ;;  %v4231_v56 = vcvt.s32.f32 %v1927_v49  ;;  %v2671_v57 = vunpack.c.0.s8 %v583_v24  ;;  %v2695_v58 = vunpack.c.1.s8 %v583_v24 }
  0x7d   :  { %6561 = vmatpush.bf16.msra.mxu3 %v6295_v51  ;;  %v5695_v60 = vpack.c.bf16 %v3847_v52, %v3823_v47  ;;  %v4591_v61 = vcvt.s32.f32 %v2287_v53  ;;  %v4615_v62 = vcvt.s32.f32 %v2311_v54  ;;  %v1471_v63 = vunpack.c.2.s8 %v271_v50 }
  0x7e   :  { %v5887_v2 = vpack.c.bf16 %v4231_v56, %v4207_v55  ;;  %v4975_v3 = vcvt.s32.f32 %v2671_v57  ;;  %v4999_v4 = vcvt.s32.f32 %v2695_v58  ;;  %v1495_v6 = vunpack.c.3.s8 %v271_v50  ;;  %v440_v55 = vld [vmem:[#allocation2 + $0xb50] sm:$0xff] }
  0x7f   :  { %6523 = vmatpush.bf16.msra.mxu0 %v5695_v60  ;;  %v6079_v8 = vpack.c.bf16 %v4615_v62, %v4591_v61  ;;  %v3775_v9 = vcvt.s32.f32 %v1471_v63  ;;  %v1855_v10 = vunpack.c.2.s8 %v367_v59  ;;  %v1879_v12 = vunpack.c.3.s8 %v367_v59 }
  0x80   :  { %6536 = vmatpush.bf16.msra.mxu1 %v5887_v2  ;;  %v6271_v13 = vpack.c.bf16 %v4999_v4, %v4975_v3  ;;  %v3799_v15 = vcvt.s32.f32 %v1495_v6  ;;  %v2239_v17 = vunpack.c.2.s8 %v463_v1  ;;  %v2263_v18 = vunpack.c.3.s8 %v463_v1 }
  0x81   :  { %6549 = vmatpush.bf16.msra.mxu2 %v6079_v8  ;;  %v4159_v19 = vcvt.s32.f32 %v1855_v10  ;;  %v4183_v20 = vcvt.s32.f32 %v1879_v12  ;;  %v2623_v21 = vunpack.c.2.s8 %v559_v7  ;;  %v2647_v22 = vunpack.c.3.s8 %v559_v7 }
  0x82   :  { %6562 = vmatpush.bf16.msra.mxu3 %v6271_v13  ;;  %v5671_v23 = vpack.c.bf16 %v3799_v15, %v3775_v9  ;;  %v4543_v24 = vcvt.s32.f32 %v2239_v17  ;;  %v4567_v25 = vcvt.s32.f32 %v2263_v18  ;;  %v1423_v26 = vunpack.c.0.s8 %v271_v50 }
  0x83   :  { %v5863_v27 = vpack.c.bf16 %v4183_v20, %v4159_v19  ;;  %v4927_v28 = vcvt.s32.f32 %v2623_v21  ;;  %v4951_v29 = vcvt.s32.f32 %v2647_v22  ;;  %v1447_v30 = vunpack.c.1.s8 %v271_v50  ;;  %v344_v50 = vld [vmem:[#allocation2 + $0x850] sm:$0xff] }
  0x84   :  { %6524 = vmatpush.bf16.msra.mxu0 %v5671_v23  ;;  %v6055_v31 = vpack.c.bf16 %v4567_v25, %v4543_v24  ;;  %v3727_v32 = vcvt.s32.f32 %v1423_v26  ;;  %v1807_v33 = vunpack.c.0.s8 %v367_v59  ;;  %v1831_v34 = vunpack.c.1.s8 %v367_v59  ;;  %v128_v21 = vld [vmem:[#allocation2 + $0x190] sm:$0xff] }
  0x85   :  { %6537 = vmatpush.bf16.msra.mxu1 %v5863_v27  ;;  %v6247_v37 = vpack.c.bf16 %v4951_v29, %v4927_v28  ;;  %v3751_v38 = vcvt.s32.f32 %v1447_v30  ;;  %v2191_v39 = vunpack.c.0.s8 %v463_v1  ;;  %v2215_v40 = vunpack.c.1.s8 %v463_v1  ;;  %v224_v30 = vld [vmem:[#allocation2 + $0x490] sm:$0xff] }
  0x86   :  { %6550 = vmatpush.bf16.msra.mxu2 %v6055_v31  ;;  %v4111_v41 = vcvt.s32.f32 %v1807_v33  ;;  %v4135_v42 = vcvt.s32.f32 %v1831_v34  ;;  %v2575_v43 = vunpack.c.0.s8 %v559_v7  ;;  %v2599_v44 = vunpack.c.1.s8 %v559_v7 }
  0x87   :  { %6563 = vmatpush.bf16.msra.mxu3 %v6247_v37  ;;  %v5647_v46 = vpack.c.bf16 %v3751_v38, %v3727_v32  ;;  %v4495_v47 = vcvt.s32.f32 %v2191_v39  ;;  %v4519_v48 = vcvt.s32.f32 %v2215_v40  ;;  %v992_v49 = vunpack.c.2.s8 %v152_v35 }
  0x88   :  { %v5839_v51 = vpack.c.bf16 %v4135_v42, %v4111_v41  ;;  %v4879_v52 = vcvt.s32.f32 %v2575_v43  ;;  %v4903_v53 = vcvt.s32.f32 %v2599_v44  ;;  %v1016_v54 = vunpack.c.3.s8 %v152_v35  ;;  %v416_v41 = vld [vmem:[#allocation2 + $0xa90] sm:$0xff] }
  0x89   :  { %6525 = vmatpush.bf16.msra.mxu0 %v5647_v46  ;;  %v6031_v56 = vpack.c.bf16 %v4519_v48, %v4495_v47  ;;  %v3296_v57 = vcvt.s32.f32 %v992_v49  ;;  %v1376_v58 = vunpack.c.2.s8 %v248_v45  ;;  %v1400_v59 = vunpack.c.3.s8 %v248_v45 }
  0x8a   :  { %6538 = vmatpush.bf16.msra.mxu1 %v5839_v51  ;;  %v6223_v60 = vpack.c.bf16 %v4903_v53, %v4879_v52  ;;  %v3320_v61 = vcvt.s32.f32 %v1016_v54  ;;  %v1760_v62 = vunpack.c.2.s8 %v344_v50  ;;  %v1784_v63 = vunpack.c.3.s8 %v344_v50 }
  0x8b   :  { %6551 = vmatpush.bf16.msra.mxu2 %v6031_v56  ;;  %v3680_v1 = vcvt.s32.f32 %v1376_v58  ;;  %v3704_v2 = vcvt.s32.f32 %v1400_v59  ;;  %v2144_v3 = vunpack.c.2.s8 %v440_v55  ;;  %v2168_v4 = vunpack.c.3.s8 %v440_v55 }
  0x8c   :  { %6564 = vmatpush.bf16.msra.mxu3 %v6223_v60  ;;  %v5432_v6 = vpack.c.bf16 %v3320_v61, %v3296_v57  ;;  %v4064_v7 = vcvt.s32.f32 %v1760_v62  ;;  %v4088_v8 = vcvt.s32.f32 %v1784_v63  ;;  %6526 = vmatmul.bf16.vlgmr.msra.gmra.mxu0 %v9178_v0  ;;  %v944_v9 = vunpack.c.0.s8 %v152_v35 }
  0x8d   :  { %v5624_v10 = vpack.c.bf16 %v3704_v2, %v3680_v1  ;;  %v4448_v12 = vcvt.s32.f32 %v2144_v3  ;;  %v4472_v13 = vcvt.s32.f32 %v2168_v4  ;;  %v968_v15 = vunpack.c.1.s8 %v152_v35  ;;  %6539 = vmatmul.bf16.vlgmr.msra.gmra.mxu1 %v9180_v5  ;;  %v320_v35 = vld [vmem:[#allocation2 + $0x790] sm:$0xff] }
  0x8e   :  { %6570 = vmatpush.bf16.msrb.mxu0 %v5432_v6  ;;  %v5816_v17 = vpack.c.bf16 %v4088_v8, %v4064_v7  ;;  %6552 = vmatmul.bf16.vlgmr.msra.gmra.mxu2 %v9194_v11  ;;  %v3248_v18 = vcvt.s32.f32 %v944_v9  ;;  %v1328_v19 = vunpack.c.0.s8 %v248_v45  ;;  %v1352_v20 = vunpack.c.1.s8 %v248_v45  ;;  %v104_v3 = vld [vmem:[#allocation2 + $0xd0] sm:$0xff] }
  0x8f   :  { %6583 = vmatpush.bf16.msrb.mxu1 %v5624_v10  ;;  %v6008_v22 = vpack.c.bf16 %v4472_v13, %v4448_v12  ;;  %6565 = vmatmul.bf16.vlgmr.msra.gmra.mxu3 %v9198_v16  ;;  %v3272_v23 = vcvt.s32.f32 %v968_v15  ;;  %v1712_v24 = vunpack.c.0.s8 %v344_v50  ;;  %v1736_v25 = vunpack.c.1.s8 %v344_v50  ;;  %v200_v15 = vld [vmem:[#allocation2 + $0x3d0] sm:$0xff] }
  0x90   :  { %6596 = vmatpush.bf16.msrb.mxu2 %v5816_v17  ;;  %v3632_v26 = vcvt.s32.f32 %v1328_v19  ;;  %v3656_v27 = vcvt.s32.f32 %v1352_v20  ;;  %v2096_v28 = vunpack.c.0.s8 %v440_v55  ;;  %v2120_v29 = vunpack.c.1.s8 %v440_v55 }
  0x91   :  { %6609 = vmatpush.bf16.msrb.mxu3 %v6008_v22  ;;  %v5408_v31 = vpack.c.bf16 %v3272_v23, %v3248_v18  ;;  %v4016_v32 = vcvt.s32.f32 %v1712_v24  ;;  %v4040_v33 = vcvt.s32.f32 %v1736_v25  ;;  %v896_v34 = vunpack.c.2.s8 %v128_v21 }
  0x92   :  { %v5600_v37 = vpack.c.bf16 %v3656_v27, %v3632_v26  ;;  %v4400_v38 = vcvt.s32.f32 %v2096_v28  ;;  %v4424_v39 = vcvt.s32.f32 %v2120_v29  ;;  %v920_v40 = vunpack.c.3.s8 %v128_v21  ;;  %v392_v26 = vld [vmem:[#allocation2 + $0x9d0] sm:$0xff] }
  0x93   :  { %6571 = vmatpush.bf16.msrb.mxu0 %v5408_v31  ;;  %v5792_v42 = vpack.c.bf16 %v4040_v33, %v4016_v32  ;;  %v3200_v43 = vcvt.s32.f32 %v896_v34  ;;  %v1280_v44 = vunpack.c.2.s8 %v224_v30  ;;  %v1304_v45 = vunpack.c.3.s8 %v224_v30 }
  0x94   :  { %6584 = vmatpush.bf16.msrb.mxu1 %v5600_v37  ;;  %v5984_v46 = vpack.c.bf16 %v4424_v39, %v4400_v38  ;;  %v3224_v47 = vcvt.s32.f32 %v920_v40  ;;  %v1664_v48 = vunpack.c.2.s8 %v320_v35  ;;  %v1688_v49 = vunpack.c.3.s8 %v320_v35 }
  0x95   :  { %6597 = vmatpush.bf16.msrb.mxu2 %v5792_v42  ;;  %v3584_v50 = vcvt.s32.f32 %v1280_v44  ;;  %v3608_v51 = vcvt.s32.f32 %v1304_v45  ;;  %v2048_v52 = vunpack.c.2.s8 %v416_v41  ;;  %v2072_v53 = vunpack.c.3.s8 %v416_v41 }
  0x96   :  { %6610 = vmatpush.bf16.msrb.mxu3 %v5984_v46  ;;  %v5384_v54 = vpack.c.bf16 %v3224_v47, %v3200_v43  ;;  %v3968_v55 = vcvt.s32.f32 %v1664_v48  ;;  %v3992_v56 = vcvt.s32.f32 %v1688_v49  ;;  %v848_v57 = vunpack.c.0.s8 %v128_v21 }
  0x97   :  { %v5576_v58 = vpack.c.bf16 %v3608_v51, %v3584_v50  ;;  %v4352_v59 = vcvt.s32.f32 %v2048_v52  ;;  %v4376_v60 = vcvt.s32.f32 %v2072_v53  ;;  %v872_v61 = vunpack.c.1.s8 %v128_v21  ;;  %v296_v21 = vld [vmem:[#allocation2 + $0x6d0] sm:$0xff] }
  0x98   :  { %6572 = vmatpush.bf16.msrb.mxu0 %v5384_v54  ;;  %v5768_v62 = vpack.c.bf16 %v3992_v56, %v3968_v55  ;;  %v3152_v63 = vcvt.s32.f32 %v848_v57  ;;  %v1232_v1 = vunpack.c.0.s8 %v224_v30  ;;  %v1256_v2 = vunpack.c.1.s8 %v224_v30  ;;  %v80_v52 = vld [vmem:[#allocation2 + $0x10] sm:$0xff] }
  0x99   :  { %6585 = vmatpush.bf16.msrb.mxu1 %v5576_v58  ;;  %v5960_v4 = vpack.c.bf16 %v4376_v60, %v4352_v59  ;;  %v3176_v6 = vcvt.s32.f32 %v872_v61  ;;  %v1616_v7 = vunpack.c.0.s8 %v320_v35  ;;  %v1640_v8 = vunpack.c.1.s8 %v320_v35  ;;  %v176_v61 = vld [vmem:[#allocation2 + $0x310] sm:$0xff] }
  0x9a   :  { %6598 = vmatpush.bf16.msrb.mxu2 %v5768_v62  ;;  %v3536_v9 = vcvt.s32.f32 %v1232_v1  ;;  %v3560_v10 = vcvt.s32.f32 %v1256_v2  ;;  %v2000_v12 = vunpack.c.0.s8 %v416_v41  ;;  %v2024_v13 = vunpack.c.1.s8 %v416_v41 }
  0x9b   :  { %6611 = vmatpush.bf16.msrb.mxu3 %v5960_v4  ;;  %v5360_v17 = vpack.c.bf16 %v3176_v6, %v3152_v63  ;;  %v3920_v18 = vcvt.s32.f32 %v1616_v7  ;;  %v3944_v19 = vcvt.s32.f32 %v1640_v8  ;;  %v800_v20 = vunpack.c.2.s8 %v104_v3 }
  0x9c   :  { %v5552_v22 = vpack.c.bf16 %v3560_v10, %v3536_v9  ;;  %v4304_v23 = vcvt.s32.f32 %v2000_v12  ;;  %v4328_v24 = vcvt.s32.f32 %v2024_v13  ;;  %v824_v25 = vunpack.c.3.s8 %v104_v3  ;;  %v368_v9 = vld [vmem:[#allocation2 + $0x910] sm:$0xff] }
  0x9d   :  { %6573 = vmatpush.bf16.msrb.mxu0 %v5360_v17  ;;  %v5744_v27 = vpack.c.bf16 %v3944_v19, %v3920_v18  ;;  %v3104_v28 = vcvt.s32.f32 %v800_v20  ;;  %v1184_v29 = vunpack.c.2.s8 %v200_v15  ;;  %v1208_v30 = vunpack.c.3.s8 %v200_v15 }
  0x9e   :  { %6586 = vmatpush.bf16.msrb.mxu1 %v5552_v22  ;;  %v5936_v31 = vpack.c.bf16 %v4328_v24, %v4304_v23  ;;  %v3128_v32 = vcvt.s32.f32 %v824_v25  ;;  %v1568_v33 = vunpack.c.2.s8 %v296_v21  ;;  %v1592_v34 = vunpack.c.3.s8 %v296_v21 }
  0x9f   :  { %6599 = vmatpush.bf16.msrb.mxu2 %v5744_v27  ;;  %v3488_v35 = vcvt.s32.f32 %v1184_v29  ;;  %v3512_v37 = vcvt.s32.f32 %v1208_v30  ;;  %v1952_v38 = vunpack.c.2.s8 %v392_v26  ;;  %v1976_v39 = vunpack.c.3.s8 %v392_v26 }
  0xa0   :  { %6612 = vmatpush.bf16.msrb.mxu3 %v5936_v31  ;;  %v5336_v40 = vpack.c.bf16 %v3128_v32, %v3104_v28  ;;  %v3872_v41 = vcvt.s32.f32 %v1568_v33  ;;  %v3896_v42 = vcvt.s32.f32 %v1592_v34  ;;  %v752_v43 = vunpack.c.0.s8 %v104_v3 }
  0xa1   :  { %v5528_v44 = vpack.c.bf16 %v3512_v37, %v3488_v35  ;;  %v4256_v45 = vcvt.s32.f32 %v1952_v38  ;;  %v4280_v46 = vcvt.s32.f32 %v1976_v39  ;;  %v776_v47 = vunpack.c.1.s8 %v104_v3  ;;  %v272_v3 = vld [vmem:[#allocation2 + $0x610] sm:$0xff] }
  0xa2   :  { %6574 = vmatpush.bf16.msrb.mxu0 %v5336_v40  ;;  %v5720_v48 = vpack.c.bf16 %v3896_v42, %v3872_v41  ;;  %v3056_v49 = vcvt.s32.f32 %v752_v43  ;;  %v1136_v50 = vunpack.c.0.s8 %v200_v15  ;;  %v1160_v51 = vunpack.c.1.s8 %v200_v15  ;;  %v536_v38 = vld [vmem:[#allocation2 + $0xe50] sm:$0xff] }
  0xa3   :  { %6587 = vmatpush.bf16.msrb.mxu1 %v5528_v44  ;;  %v5912_v53 = vpack.c.bf16 %v4280_v46, %v4256_v45  ;;  %v3080_v54 = vcvt.s32.f32 %v776_v47  ;;  %v1520_v55 = vunpack.c.0.s8 %v296_v21  ;;  %v1544_v56 = vunpack.c.1.s8 %v296_v21  ;;  %v632_v47 = vld [vmem:[#allocation2 + $0x1150] sm:$0xff] }
  0xa4   :  { %6600 = vmatpush.bf16.msrb.mxu2 %v5720_v48  ;;  %v3440_v57 = vcvt.s32.f32 %v1136_v50  ;;  %v3464_v58 = vcvt.s32.f32 %v1160_v51  ;;  %v1904_v59 = vunpack.c.0.s8 %v392_v26  ;;  %v1928_v60 = vunpack.c.1.s8 %v392_v26 }
  0xa5   :  { %6613 = vmatpush.bf16.msrb.mxu3 %v5912_v53  ;;  %v5312_v62 = vpack.c.bf16 %v3080_v54, %v3056_v49  ;;  %v3824_v63 = vcvt.s32.f32 %v1520_v55  ;;  %v3848_v1 = vcvt.s32.f32 %v1544_v56  ;;  %v704_v2 = vunpack.c.2.s8 %v80_v52 }
  0xa6   :  { %v5504_v4 = vpack.c.bf16 %v3464_v58, %v3440_v57  ;;  %v4208_v6 = vcvt.s32.f32 %v1904_v59  ;;  %v4232_v7 = vcvt.s32.f32 %v1928_v60  ;;  %v728_v8 = vunpack.c.3.s8 %v80_v52  ;;  %v249_v57 = vld [vmem:[#allocation2 + $0x558] sm:$0xff] }
  0xa7   :  { %6575 = vmatpush.bf16.msrb.mxu0 %v5312_v62  ;;  %v5696_v10 = vpack.c.bf16 %v3848_v1, %v3824_v63  ;;  %v3008_v12 = vcvt.s32.f32 %v704_v2  ;;  %v1088_v13 = vunpack.c.2.s8 %v176_v61  ;;  %v1112_v15 = vunpack.c.3.s8 %v176_v61 }
  0xa8   :  { %6588 = vmatpush.bf16.msrb.mxu1 %v5504_v4  ;;  %v5888_v17 = vpack.c.bf16 %v4232_v7, %v4208_v6  ;;  %v3032_v18 = vcvt.s32.f32 %v728_v8  ;;  %v1472_v19 = vunpack.c.2.s8 %v272_v3  ;;  %v1496_v20 = vunpack.c.3.s8 %v272_v3 }
  0xa9   :  { %6601 = vmatpush.bf16.msrb.mxu2 %v5696_v10  ;;  %v3392_v21 = vcvt.s32.f32 %v1088_v13  ;;  %v3416_v22 = vcvt.s32.f32 %v1112_v15  ;;  %v1856_v23 = vunpack.c.2.s8 %v368_v9  ;;  %v1880_v24 = vunpack.c.3.s8 %v368_v9 }
  0xaa   :  { %6614 = vmatpush.bf16.msrb.mxu3 %v5888_v17  ;;  %v5288_v25 = vpack.c.bf16 %v3032_v18, %v3008_v12  ;;  %v3776_v26 = vcvt.s32.f32 %v1472_v19  ;;  %v3800_v27 = vcvt.s32.f32 %v1496_v20  ;;  %v656_v28 = vunpack.c.0.s8 %v80_v52 }
  0xab   :  { %v5480_v29 = vpack.c.bf16 %v3416_v22, %v3392_v21  ;;  %v4160_v30 = vcvt.s32.f32 %v1856_v23  ;;  %v4184_v31 = vcvt.s32.f32 %v1880_v24  ;;  %v680_v32 = vunpack.c.1.s8 %v80_v52  ;;  %v153_v52 = vld [vmem:[#allocation2 + $0x258] sm:$0xff]  ;;  %v512_v23 = vld [vmem:[#allocation2 + $0xd90] sm:$0xff] }
  0xac   :  { %6576 = vmatpush.bf16.msrb.mxu0 %v5288_v25  ;;  %v5672_v33 = vpack.c.bf16 %v3800_v27, %v3776_v26  ;;  %v2960_v34 = vcvt.s32.f32 %v656_v28  ;;  %v1040_v35 = vunpack.c.0.s8 %v176_v61  ;;  %v1064_v37 = vunpack.c.1.s8 %v176_v61 }
  0xad   :  { %6589 = vmatpush.bf16.msrb.mxu1 %v5480_v29  ;;  %v5864_v39 = vpack.c.bf16 %v4184_v31, %v4160_v30  ;;  %v2984_v40 = vcvt.s32.f32 %v680_v32  ;;  %v1424_v41 = vunpack.c.0.s8 %v272_v3  ;;  %v1448_v42 = vunpack.c.1.s8 %v272_v3  ;;  %v608_v32 = vld [vmem:[#allocation2 + $0x1090] sm:$0xff] }
  0xae   :  { %6602 = vmatpush.bf16.msrb.mxu2 %v5672_v33  ;;  %v3344_v43 = vcvt.s32.f32 %v1040_v35  ;;  %v3368_v44 = vcvt.s32.f32 %v1064_v37  ;;  %v1808_v45 = vunpack.c.0.s8 %v368_v9  ;;  %v1832_v46 = vunpack.c.1.s8 %v368_v9 }
  0xaf   :  { %6615 = vmatpush.bf16.msrb.mxu3 %v5864_v39  ;;  %v5264_v48 = vpack.c.bf16 %v2984_v40, %v2960_v34  ;;  %v3728_v49 = vcvt.s32.f32 %v1424_v41  ;;  %v3752_v50 = vcvt.s32.f32 %v1448_v42  ;;  %v2528_v51 = vunpack.c.2.s8 %v536_v38 }
  0xb0   :  { %v5456_v53 = vpack.c.bf16 %v3368_v44, %v3344_v43  ;;  %v4112_v54 = vcvt.s32.f32 %v1808_v45  ;;  %v4136_v55 = vcvt.s32.f32 %v1832_v46  ;;  %v2552_v56 = vunpack.c.3.s8 %v536_v38  ;;  %v225_v43 = vld [vmem:[#allocation2 + $0x498] sm:$0xff] }
  0xb1   :  { %6577 = vmatpush.bf16.msrb.mxu0 %v5264_v48  ;;  %v5648_v58 = vpack.c.bf16 %v3752_v50, %v3728_v49  ;;  %v4832_v59 = vcvt.s32.f32 %v2528_v51  ;;  %v2912_v60 = vunpack.c.2.s8 %v632_v47  ;;  %v2936_v61 = vunpack.c.3.s8 %v632_v47 }
  0xb2   :  { %6590 = vmatpush.bf16.msrb.mxu1 %v5456_v53  ;;  %v5840_v62 = vpack.c.bf16 %v4136_v55, %v4112_v54  ;;  %v4856_v63 = vcvt.s32.f32 %v2552_v56  ;;  %v993_v1 = vunpack.c.2.s8 %v153_v52  ;;  %v1017_v2 = vunpack.c.3.s8 %v153_v52 }
  0xb3   :  { %6603 = vmatpush.bf16.msrb.mxu2 %v5648_v58  ;;  %v5216_v3 = vcvt.s32.f32 %v2912_v60  ;;  %v5240_v4 = vcvt.s32.f32 %v2936_v61  ;;  %v1377_v6 = vunpack.c.2.s8 %v249_v57  ;;  %v1401_v7 = vunpack.c.3.s8 %v249_v57 }
  0xb4   :  { %6616 = vmatpush.bf16.msrb.mxu3 %v5840_v62  ;;  %v6200_v8 = vpack.c.bf16 %v4856_v63, %v4832_v59  ;;  %v3297_v9 = vcvt.s32.f32 %v993_v1  ;;  %v3321_v10 = vcvt.s32.f32 %v1017_v2  ;;  %v2480_v12 = vunpack.c.0.s8 %v536_v38  ;;  %6578 = vmatmul.bf16.vlgmr.msrb.gmra.mxu0 %v9163_v14 }
  0xb5   :  { %v6392_v13 = vpack.c.bf16 %v5240_v4, %v5216_v3  ;;  %v3681_v15 = vcvt.s32.f32 %v1377_v6  ;;  %v3705_v17 = vcvt.s32.f32 %v1401_v7  ;;  %v2504_v18 = vunpack.c.1.s8 %v536_v38  ;;  %6591 = vmatmul.bf16.vlgmr.msrb.gmra.mxu1 %v9169_v36  ;;  %v129_v38 = vld [vmem:[#allocation2 + $0x198] sm:$0xff]  ;;  %v488_v6 = vld [vmem:[#allocation2 + $0xcd0] sm:$0xff] }
  0xb6   :  { %6622 = vmatpush.bf16.msra.mxu0 %v6200_v8  ;;  %v5433_v19 = vpack.c.bf16 %v3321_v10, %v3297_v9  ;;  %v4784_v20 = vcvt.s32.f32 %v2480_v12  ;;  %v2864_v21 = vunpack.c.0.s8 %v632_v47  ;;  %v2888_v22 = vunpack.c.1.s8 %v632_v47  ;;  %6604 = vmatmul.bf16.vlgmr.msrb.gmra.mxu2 %v9178_v0 }
  0xb7   :  { %6635 = vmatpush.bf16.msra.mxu1 %v6392_v13  ;;  %v5625_v24 = vpack.c.bf16 %v3705_v17, %v3681_v15  ;;  %v4808_v25 = vcvt.s32.f32 %v2504_v18  ;;  %v945_v26 = vunpack.c.0.s8 %v153_v52  ;;  %v969_v27 = vunpack.c.1.s8 %v153_v52  ;;  %6617 = vmatmul.bf16.vlgmr.msrb.gmra.mxu3 %v9180_v5  ;;  %v584_v18 = vld [vmem:[#allocation2 + $0xfd0] sm:$0xff] }
  0xb8   :  { %6648 = vmatpush.bf16.msra.mxu2 %v5433_v19  ;;  %v5168_v28 = vcvt.s32.f32 %v2864_v21  ;;  %v5192_v29 = vcvt.s32.f32 %v2888_v22  ;;  %v1329_v30 = vunpack.c.0.s8 %v249_v57  ;;  %v1353_v31 = vunpack.c.1.s8 %v249_v57 }
  0xb9   :  { %6661 = vmatpush.bf16.msra.mxu3 %v5625_v24  ;;  %v6176_v33 = vpack.c.bf16 %v4808_v25, %v4784_v20  ;;  %v3249_v34 = vcvt.s32.f32 %v945_v26  ;;  %v3273_v35 = vcvt.s32.f32 %v969_v27  ;;  %v2432_v37 = vunpack.c.2.s8 %v512_v23 }
  0xba   :  { %v6368_v39 = vpack.c.bf16 %v5192_v29, %v5168_v28  ;;  %v3633_v40 = vcvt.s32.f32 %v1329_v30  ;;  %v3657_v41 = vcvt.s32.f32 %v1353_v31  ;;  %v2456_v42 = vunpack.c.3.s8 %v512_v23  ;;  %v201_v28 = vld [vmem:[#allocation2 + $0x3d8] sm:$0xff] }
  0xbb   :  { %6623 = vmatpush.bf16.msra.mxu0 %v6176_v33  ;;  %v5409_v44 = vpack.c.bf16 %v3273_v35, %v3249_v34  ;;  %v4736_v45 = vcvt.s32.f32 %v2432_v37  ;;  %v2816_v46 = vunpack.c.2.s8 %v608_v32  ;;  %v2840_v47 = vunpack.c.3.s8 %v608_v32 }
  0xbc   :  { %6636 = vmatpush.bf16.msra.mxu1 %v6368_v39  ;;  %v5601_v48 = vpack.c.bf16 %v3657_v41, %v3633_v40  ;;  %v4760_v49 = vcvt.s32.f32 %v2456_v42  ;;  %v897_v50 = vunpack.c.2.s8 %v129_v38  ;;  %v921_v51 = vunpack.c.3.s8 %v129_v38 }
  0xbd   :  { %6649 = vmatpush.bf16.msra.mxu2 %v5409_v44  ;;  %v5120_v52 = vcvt.s32.f32 %v2816_v46  ;;  %v5144_v53 = vcvt.s32.f32 %v2840_v47  ;;  %v1281_v54 = vunpack.c.2.s8 %v225_v43  ;;  %v1305_v55 = vunpack.c.3.s8 %v225_v43 }
  0xbe   :  { %6662 = vmatpush.bf16.msra.mxu3 %v5601_v48  ;;  %v6152_v56 = vpack.c.bf16 %v4760_v49, %v4736_v45  ;;  %v3201_v57 = vcvt.s32.f32 %v897_v50  ;;  %v3225_v58 = vcvt.s32.f32 %v921_v51  ;;  %v2384_v59 = vunpack.c.0.s8 %v512_v23 }
  0xbf   :  { %v6344_v60 = vpack.c.bf16 %v5144_v53, %v5120_v52  ;;  %v3585_v61 = vcvt.s32.f32 %v1281_v54  ;;  %v3609_v62 = vcvt.s32.f32 %v1305_v55  ;;  %v2408_v63 = vunpack.c.1.s8 %v512_v23  ;;  %v105_v23 = vld [vmem:[#allocation2 + $0xd8] sm:$0xff]  ;;  %v464_v54 = vld [vmem:[#allocation2 + $0xc10] sm:$0xff] }
  0xc0   :  { %6624 = vmatpush.bf16.msra.mxu0 %v6152_v56  ;;  %v5385_v1 = vpack.c.bf16 %v3225_v58, %v3201_v57  ;;  %v4688_v2 = vcvt.s32.f32 %v2384_v59  ;;  %v2768_v3 = vunpack.c.0.s8 %v608_v32  ;;  %v2792_v4 = vunpack.c.1.s8 %v608_v32 }
  0xc1   :  { %6637 = vmatpush.bf16.msra.mxu1 %v6344_v60  ;;  %v5577_v7 = vpack.c.bf16 %v3609_v62, %v3585_v61  ;;  %v4712_v8 = vcvt.s32.f32 %v2408_v63  ;;  %v849_v9 = vunpack.c.0.s8 %v129_v38  ;;  %v873_v10 = vunpack.c.1.s8 %v129_v38  ;;  %v560_v63 = vld [vmem:[#allocation2 + $0xf10] sm:$0xff] }
  0xc2   :  { %6650 = vmatpush.bf16.msra.mxu2 %v5385_v1  ;;  %v5072_v12 = vcvt.s32.f32 %v2768_v3  ;;  %v5096_v13 = vcvt.s32.f32 %v2792_v4  ;;  %v1233_v15 = vunpack.c.0.s8 %v225_v43  ;;  %v1257_v17 = vunpack.c.1.s8 %v225_v43 }
  0xc3   :  { %6663 = vmatpush.bf16.msra.mxu3 %v5577_v7  ;;  %v6128_v19 = vpack.c.bf16 %v4712_v8, %v4688_v2  ;;  %v3153_v20 = vcvt.s32.f32 %v849_v9  ;;  %v3177_v21 = vcvt.s32.f32 %v873_v10  ;;  %v2336_v22 = vunpack.c.2.s8 %v488_v6 }
  0xc4   :  { %v6320_v24 = vpack.c.bf16 %v5096_v13, %v5072_v12  ;;  %v3537_v25 = vcvt.s32.f32 %v1233_v15  ;;  %v3561_v26 = vcvt.s32.f32 %v1257_v17  ;;  %v2360_v27 = vunpack.c.3.s8 %v488_v6  ;;  %v177_v12 = vld [vmem:[#allocation2 + $0x318] sm:$0xff] }
  0xc5   :  { %6625 = vmatpush.bf16.msra.mxu0 %v6128_v19  ;;  %v5361_v29 = vpack.c.bf16 %v3177_v21, %v3153_v20  ;;  %v4640_v30 = vcvt.s32.f32 %v2336_v22  ;;  %v2720_v31 = vunpack.c.2.s8 %v584_v18  ;;  %v2744_v32 = vunpack.c.3.s8 %v584_v18 }
  0xc6   :  { %6638 = vmatpush.bf16.msra.mxu1 %v6320_v24  ;;  %v5553_v33 = vpack.c.bf16 %v3561_v26, %v3537_v25  ;;  %v4664_v34 = vcvt.s32.f32 %v2360_v27  ;;  %v801_v35 = vunpack.c.2.s8 %v105_v23  ;;  %v825_v37 = vunpack.c.3.s8 %v105_v23 }
  0xc7   :  { %6651 = vmatpush.bf16.msra.mxu2 %v5361_v29  ;;  %v5024_v38 = vcvt.s32.f32 %v2720_v31  ;;  %v5048_v39 = vcvt.s32.f32 %v2744_v32  ;;  %v1185_v40 = vunpack.c.2.s8 %v201_v28  ;;  %v1209_v41 = vunpack.c.3.s8 %v201_v28 }
  0xc8   :  { %6664 = vmatpush.bf16.msra.mxu3 %v5553_v33  ;;  %v6104_v42 = vpack.c.bf16 %v4664_v34, %v4640_v30  ;;  %v3105_v43 = vcvt.s32.f32 %v801_v35  ;;  %v3129_v44 = vcvt.s32.f32 %v825_v37  ;;  %v2288_v45 = vunpack.c.0.s8 %v488_v6 }
  0xc9   :  { %v6296_v46 = vpack.c.bf16 %v5048_v39, %v5024_v38  ;;  %v3489_v47 = vcvt.s32.f32 %v1185_v40  ;;  %v3513_v48 = vcvt.s32.f32 %v1209_v41  ;;  %v2312_v49 = vunpack.c.1.s8 %v488_v6  ;;  %v81_v6 = vld [vmem:[#allocation2 + $0x18] sm:$0xff] }
  0xca   :  { %6626 = vmatpush.bf16.msra.mxu0 %v6104_v42  ;;  %v5337_v50 = vpack.c.bf16 %v3129_v44, %v3105_v43  ;;  %v4592_v51 = vcvt.s32.f32 %v2288_v45  ;;  %v2672_v52 = vunpack.c.0.s8 %v584_v18  ;;  %v2696_v53 = vunpack.c.1.s8 %v584_v18  ;;  %v345_v40 = vld [vmem:[#allocation2 + $0x858] sm:$0xff] }
  0xcb   :  { %6639 = vmatpush.bf16.msra.mxu1 %v6296_v46  ;;  %v5529_v55 = vpack.c.bf16 %v3513_v48, %v3489_v47  ;;  %v4616_v56 = vcvt.s32.f32 %v2312_v49  ;;  %v753_v57 = vunpack.c.0.s8 %v105_v23  ;;  %v777_v58 = vunpack.c.1.s8 %v105_v23  ;;  %v441_v49 = vld [vmem:[#allocation2 + $0xb58] sm:$0xff] }
  0xcc   :  { %6652 = vmatpush.bf16.msra.mxu2 %v5337_v50  ;;  %v4976_v59 = vcvt.s32.f32 %v2672_v52  ;;  %v5000_v60 = vcvt.s32.f32 %v2696_v53  ;;  %v1137_v61 = vunpack.c.0.s8 %v201_v28  ;;  %v1161_v62 = vunpack.c.1.s8 %v201_v28 }
  0xcd   :  { %6665 = vmatpush.bf16.msra.mxu3 %v5529_v55  ;;  %v6080_v1 = vpack.c.bf16 %v4616_v56, %v4592_v51  ;;  %v3057_v2 = vcvt.s32.f32 %v753_v57  ;;  %v3081_v3 = vcvt.s32.f32 %v777_v58  ;;  %v2240_v4 = vunpack.c.2.s8 %v464_v54 }
  0xce   :  { %v6272_v7 = vpack.c.bf16 %v5000_v60, %v4976_v59  ;;  %v3441_v8 = vcvt.s32.f32 %v1137_v61  ;;  %v3465_v9 = vcvt.s32.f32 %v1161_v62  ;;  %v2264_v10 = vunpack.c.3.s8 %v464_v54  ;;  %v633_v59 = vld [vmem:[#allocation2 + $0x1158] sm:$0xff] }
  0xcf   :  { %6627 = vmatpush.bf16.msra.mxu0 %v6080_v1  ;;  %v5313_v13 = vpack.c.bf16 %v3081_v3, %v3057_v2  ;;  %v4544_v15 = vcvt.s32.f32 %v2240_v4  ;;  %v2624_v17 = vunpack.c.2.s8 %v560_v63  ;;  %v2648_v18 = vunpack.c.3.s8 %v560_v63 }
  0xd0   :  { %6640 = vmatpush.bf16.msra.mxu1 %v6272_v7  ;;  %v5505_v19 = vpack.c.bf16 %v3465_v9, %v3441_v8  ;;  %v4568_v20 = vcvt.s32.f32 %v2264_v10  ;;  %v705_v21 = vunpack.c.2.s8 %v81_v6  ;;  %v729_v22 = vunpack.c.3.s8 %v81_v6 }
  0xd1   :  { %6653 = vmatpush.bf16.msra.mxu2 %v5313_v13  ;;  %v4928_v23 = vcvt.s32.f32 %v2624_v17  ;;  %v4952_v24 = vcvt.s32.f32 %v2648_v18  ;;  %v1089_v25 = vunpack.c.2.s8 %v177_v12  ;;  %v1113_v26 = vunpack.c.3.s8 %v177_v12 }
  0xd2   :  { %6666 = vmatpush.bf16.msra.mxu3 %v5505_v19  ;;  %v6056_v27 = vpack.c.bf16 %v4568_v20, %v4544_v15  ;;  %v3009_v28 = vcvt.s32.f32 %v705_v21  ;;  %v3033_v29 = vcvt.s32.f32 %v729_v22  ;;  %v2192_v30 = vunpack.c.0.s8 %v464_v54 }
  0xd3   :  { %v6248_v31 = vpack.c.bf16 %v4952_v24, %v4928_v23  ;;  %v3393_v32 = vcvt.s32.f32 %v1089_v25  ;;  %v3417_v33 = vcvt.s32.f32 %v1113_v26  ;;  %v2216_v34 = vunpack.c.1.s8 %v464_v54  ;;  %v537_v54 = vld [vmem:[#allocation2 + $0xe58] sm:$0xff] }
  0xd4   :  { %6628 = vmatpush.bf16.msra.mxu0 %v6056_v27  ;;  %v5289_v35 = vpack.c.bf16 %v3033_v29, %v3009_v28  ;;  %v4496_v37 = vcvt.s32.f32 %v2192_v30  ;;  %v2576_v38 = vunpack.c.0.s8 %v560_v63  ;;  %v2600_v39 = vunpack.c.1.s8 %v560_v63  ;;  %v321_v26 = vld [vmem:[#allocation2 + $0x798] sm:$0xff] }
  0xd5   :  { %6641 = vmatpush.bf16.msra.mxu1 %v6248_v31  ;;  %v5481_v41 = vpack.c.bf16 %v3417_v33, %v3393_v32  ;;  %v4520_v42 = vcvt.s32.f32 %v2216_v34  ;;  %v657_v43 = vunpack.c.0.s8 %v81_v6  ;;  %v681_v44 = vunpack.c.1.s8 %v81_v6  ;;  %v9212_v6 = vpop.f32.mrf.mxu0  ;;  %v9218_v31 = vpop.f32.mrf.mxu1 }
  0xd6   :  { %6654 = vmatpush.bf16.msra.mxu2 %v5289_v35  ;;  %v4880_v45 = vcvt.s32.f32 %v2576_v38  ;;  %v4904_v46 = vcvt.s32.f32 %v2600_v39  ;;  %v1041_v47 = vunpack.c.0.s8 %v177_v12  ;;  %v1065_v48 = vunpack.c.1.s8 %v177_v12 }
  0xd7   :  { %6667 = vmatpush.bf16.msra.mxu3 %v5481_v41  ;;  %v6032_v50 = vpack.c.bf16 %v4520_v42, %v4496_v37  ;;  %v2961_v51 = vcvt.s32.f32 %v657_v43  ;;  %v2985_v52 = vcvt.s32.f32 %v681_v44  ;;  %v1761_v53 = vunpack.c.2.s8 %v345_v40  ;;  %v417_v37 = vld [vmem:[#allocation2 + $0xa98] sm:$0xff] }
  0xd8   :  { %v6224_v55 = vpack.c.bf16 %v4904_v46, %v4880_v45  ;;  %v3345_v56 = vcvt.s32.f32 %v1041_v47  ;;  %v3369_v57 = vcvt.s32.f32 %v1065_v48  ;;  %v1785_v58 = vunpack.c.3.s8 %v345_v40  ;;  %v513_v42 = vld [vmem:[#allocation2 + $0xd98] sm:$0xff] }
  0xd9   :  { %6629 = vmatpush.bf16.msra.mxu0 %v6032_v50  ;;  %v5265_v60 = vpack.c.bf16 %v2985_v52, %v2961_v51  ;;  %v4065_v61 = vcvt.s32.f32 %v1761_v53  ;;  %v2145_v62 = vunpack.c.2.s8 %v441_v49  ;;  %v2169_v63 = vunpack.c.3.s8 %v441_v49  ;;  %v609_v47 = vld [vmem:[#allocation2 + $0x1098] sm:$0xff] }
  0xda   :  { %6642 = vmatpush.bf16.msra.mxu1 %v6224_v55  ;;  %v5457_v1 = vpack.c.bf16 %v3369_v57, %v3345_v56  ;;  %v4089_v2 = vcvt.s32.f32 %v1785_v58  ;;  %v2529_v3 = vunpack.c.2.s8 %v537_v54  ;;  %v2553_v4 = vunpack.c.3.s8 %v537_v54 }
  0xdb   :  { %6655 = vmatpush.bf16.msra.mxu2 %v5265_v60  ;;  %v4449_v7 = vcvt.s32.f32 %v2145_v62  ;;  %v4473_v8 = vcvt.s32.f32 %v2169_v63  ;;  %v2913_v9 = vunpack.c.2.s8 %v633_v59  ;;  %v2937_v10 = vunpack.c.3.s8 %v633_v59 }
  0xdc   :  { %6668 = vmatpush.bf16.msra.mxu3 %v5457_v1  ;;  %v5817_v12 = vpack.c.bf16 %v4089_v2, %v4065_v61  ;;  %v4833_v13 = vcvt.s32.f32 %v2529_v3  ;;  %v4857_v15 = vcvt.s32.f32 %v2553_v4  ;;  %6630 = vmatmul.bf16.vlgmr.msra.gmra.mxu0 %v9194_v11  ;;  %v1713_v17 = vunpack.c.0.s8 %v345_v40 }
  0xdd   :  { %v6009_v18 = vpack.c.bf16 %v4473_v8, %v4449_v7  ;;  %v5217_v19 = vcvt.s32.f32 %v2913_v9  ;;  %v5241_v20 = vcvt.s32.f32 %v2937_v10  ;;  %6643 = vmatmul.bf16.vlgmr.msra.gmra.mxu1 %v9198_v16  ;;  %v1737_v21 = vunpack.c.1.s8 %v345_v40  ;;  %v6425_v48 = vpop.f32.mrf.mxu0  ;;  %v6438_v8 = vpop.f32.mrf.mxu1 }
  0xde   :  { %6674 = vmatpush.bf16.msrb.mxu0 %v5817_v12  ;;  %v6201_v22 = vpack.c.bf16 %v4857_v15, %v4833_v13  ;;  %v4017_v23 = vcvt.s32.f32 %v1713_v17  ;;  %v2097_v24 = vunpack.c.0.s8 %v441_v49  ;;  %v2121_v25 = vunpack.c.1.s8 %v441_v49  ;;  %6656 = vmatmul.bf16.vlgmr.msra.gmra.mxu2 %v9163_v14  ;;  %v297_v15 = vld [vmem:[#allocation2 + $0x6d8] sm:$0xff] }
  0xdf   :  { %6687 = vmatpush.bf16.msrb.mxu1 %v6009_v18  ;;  %v6393_v27 = vpack.c.bf16 %v5241_v20, %v5217_v19  ;;  %v4041_v28 = vcvt.s32.f32 %v1737_v21  ;;  %v2481_v29 = vunpack.c.0.s8 %v537_v54  ;;  %v2505_v30 = vunpack.c.1.s8 %v537_v54  ;;  %6669 = vmatmul.bf16.vlgmr.msra.gmra.mxu3 %v9169_v36 }
  0xe0   :  { %6700 = vmatpush.bf16.msrb.mxu2 %v6201_v22  ;;  %v4401_v32 = vcvt.s32.f32 %v2097_v24  ;;  %v4425_v33 = vcvt.s32.f32 %v2121_v25  ;;  %v2865_v34 = vunpack.c.0.s8 %v633_v59  ;;  %v2889_v35 = vunpack.c.1.s8 %v633_v59  ;;  %v393_v25 = vld [vmem:[#allocation2 + $0x9d8] sm:$0xff] }
  0xe1   :  { %6713 = vmatpush.bf16.msrb.mxu3 %v6393_v27  ;;  %v5793_v38 = vpack.c.bf16 %v4041_v28, %v4017_v23  ;;  %v4785_v39 = vcvt.s32.f32 %v2481_v29  ;;  %v4809_v40 = vcvt.s32.f32 %v2505_v30  ;;  %v1665_v41 = vunpack.c.2.s8 %v321_v26  ;;  %v489_v30 = vld [vmem:[#allocation2 + $0xcd8] sm:$0xff] }
  0xe2   :  { %v5985_v43 = vpack.c.bf16 %v4425_v33, %v4401_v32  ;;  %v5169_v44 = vcvt.s32.f32 %v2865_v34  ;;  %v5193_v45 = vcvt.s32.f32 %v2889_v35  ;;  %v1689_v46 = vunpack.c.3.s8 %v321_v26 }
  0xe3   :  { %6675 = vmatpush.bf16.msrb.mxu0 %v5793_v38  ;;  %v6177_v49 = vpack.c.bf16 %v4809_v40, %v4785_v39  ;;  %v3969_v50 = vcvt.s32.f32 %v1665_v41  ;;  %v2049_v51 = vunpack.c.2.s8 %v417_v37  ;;  %v2073_v52 = vunpack.c.3.s8 %v417_v37 }
  0xe4   :  { %6688 = vmatpush.bf16.msrb.mxu1 %v5985_v43  ;;  %v6369_v53 = vpack.c.bf16 %v5193_v45, %v5169_v44  ;;  %v3993_v54 = vcvt.s32.f32 %v1689_v46  ;;  %v2433_v55 = vunpack.c.2.s8 %v513_v42  ;;  %v2457_v56 = vunpack.c.3.s8 %v513_v42 }
  0xe5   :  { %6701 = vmatpush.bf16.msrb.mxu2 %v6177_v49  ;;  %v4353_v57 = vcvt.s32.f32 %v2049_v51  ;;  %v4377_v58 = vcvt.s32.f32 %v2073_v52  ;;  %v2817_v59 = vunpack.c.2.s8 %v609_v47  ;;  %v2841_v60 = vunpack.c.3.s8 %v609_v47 }
  0xe6   :  { %6714 = vmatpush.bf16.msrb.mxu3 %v6369_v53  ;;  %v5769_v61 = vpack.c.bf16 %v3993_v54, %v3969_v50  ;;  %v4737_v62 = vcvt.s32.f32 %v2433_v55  ;;  %v4761_v63 = vcvt.s32.f32 %v2457_v56  ;;  %v1617_v1 = vunpack.c.0.s8 %v321_v26  ;;  %v9220_v50 = vpop.f32.mrf.mxu2 }
  0xe7   :  { %v5961_v2 = vpack.c.bf16 %v4377_v58, %v4353_v57  ;;  %v5121_v3 = vcvt.s32.f32 %v2817_v59  ;;  %v5145_v4 = vcvt.s32.f32 %v2841_v60  ;;  %v1641_v7 = vunpack.c.1.s8 %v321_v26 }
  0xe8   :  { %6676 = vmatpush.bf16.msrb.mxu0 %v5769_v61  ;;  %v6153_v9 = vpack.c.bf16 %v4761_v63, %v4737_v62  ;;  %v3921_v10 = vcvt.s32.f32 %v1617_v1  ;;  %v2001_v12 = vunpack.c.0.s8 %v417_v37  ;;  %v2025_v13 = vunpack.c.1.s8 %v417_v37  ;;  %v585_v37 = vld [vmem:[#allocation2 + $0xfd8] sm:$0xff] }
  0xe9   :  { %6689 = vmatpush.bf16.msrb.mxu1 %v5961_v2  ;;  %v6345_v17 = vpack.c.bf16 %v5145_v4, %v5121_v3  ;;  %v3945_v18 = vcvt.s32.f32 %v1641_v7  ;;  %v2385_v19 = vunpack.c.0.s8 %v513_v42  ;;  %v2409_v20 = vunpack.c.1.s8 %v513_v42  ;;  %v9222_v63 = vld [vmem:[#allocation2 + $0x618] sm:$0xff] }
  0xea   :  { %6702 = vmatpush.bf16.msrb.mxu2 %v6153_v9  ;;  %v4305_v21 = vcvt.s32.f32 %v2001_v12  ;;  %v4329_v22 = vcvt.s32.f32 %v2025_v13  ;;  %v2769_v23 = vunpack.c.0.s8 %v609_v47  ;;  %v2793_v24 = vunpack.c.1.s8 %v609_v47  ;;  %v369_v12 = vld [vmem:[#allocation2 + $0x918] sm:$0xff]  ;;  %v9224_v13 = vpop.f32.mrf.mxu3 }
  0xeb   :  { %6715 = vmatpush.bf16.msrb.mxu3 %v6345_v17  ;;  %v5745_v26 = vpack.c.bf16 %v3945_v18, %v3921_v10  ;;  %v4689_v27 = vcvt.s32.f32 %v2385_v19  ;;  %v4713_v28 = vcvt.s32.f32 %v2409_v20  ;;  %v1569_v29 = vunpack.c.2.s8 %v297_v15 }
  0xec   :  { %v5937_v32 = vpack.c.bf16 %v4329_v22, %v4305_v21  ;;  %v5073_v33 = vcvt.s32.f32 %v2769_v23  ;;  %v5097_v34 = vcvt.s32.f32 %v2793_v24  ;;  %v1593_v35 = vunpack.c.3.s8 %v297_v15  ;;  %v465_v21 = vld [vmem:[#allocation2 + $0xc18] sm:$0xff] }
  0xed   :  { %6677 = vmatpush.bf16.msrb.mxu0 %v5745_v26  ;;  %v6129_v38 = vpack.c.bf16 %v4713_v28, %v4689_v27  ;;  %v3873_v39 = vcvt.s32.f32 %v1569_v29  ;;  %v1953_v40 = vunpack.c.2.s8 %v393_v25  ;;  %v1977_v41 = vunpack.c.3.s8 %v393_v25  ;;  %v561_v26 = vld [vmem:[#allocation2 + $0xf18] sm:$0xff] }
  0xee   :  { %6690 = vmatpush.bf16.msrb.mxu1 %v5937_v32  ;;  %v6321_v42 = vpack.c.bf16 %v5097_v34, %v5073_v33  ;;  %v3897_v43 = vcvt.s32.f32 %v1593_v35  ;;  %v2337_v44 = vunpack.c.2.s8 %v489_v30  ;;  %v2361_v45 = vunpack.c.3.s8 %v489_v30  ;;  %v6451_v32 = vpop.f32.mrf.mxu2 }
  0xef   :  { %6703 = vmatpush.bf16.msrb.mxu2 %v6129_v38  ;;  %v4257_v46 = vcvt.s32.f32 %v1953_v40  ;;  %v4281_v47 = vcvt.s32.f32 %v1977_v41  ;;  %v2721_v48 = vunpack.c.2.s8 %v585_v37  ;;  %v2745_v49 = vunpack.c.3.s8 %v585_v37 }
  0xf0   :  { %6716 = vmatpush.bf16.msrb.mxu3 %v6321_v42  ;;  %v5721_v51 = vpack.c.bf16 %v3897_v43, %v3873_v39  ;;  %v4641_v52 = vcvt.s32.f32 %v2337_v44  ;;  %v4665_v53 = vcvt.s32.f32 %v2361_v45  ;;  %v1521_v54 = vunpack.c.0.s8 %v297_v15  ;;  %v9230_v42 = vpop.f32.mrf.mxu1 }
  0xf1   :  { %v5913_v55 = vpack.c.bf16 %v4281_v47, %v4257_v46  ;;  %v5025_v56 = vcvt.s32.f32 %v2721_v48  ;;  %v5049_v57 = vcvt.s32.f32 %v2745_v49  ;;  %v1545_v58 = vunpack.c.1.s8 %v297_v15  ;;  %v9226_v15 = vpop.f32.mrf.mxu0 }
  0xf2   :  { %6678 = vmatpush.bf16.msrb.mxu0 %v5721_v51  ;;  %v6105_v59 = vpack.c.bf16 %v4665_v53, %v4641_v52  ;;  %v3825_v60 = vcvt.s32.f32 %v1521_v54  ;;  %v1905_v61 = vunpack.c.0.s8 %v393_v25  ;;  %v1929_v62 = vunpack.c.1.s8 %v393_v25 }
  0xf3   :  { %6691 = vmatpush.bf16.msrb.mxu1 %v5913_v55  ;;  %v6297_v1 = vpack.c.bf16 %v5049_v57, %v5025_v56  ;;  %v3849_v2 = vcvt.s32.f32 %v1545_v58  ;;  %v2289_v3 = vunpack.c.0.s8 %v489_v30  ;;  %v2313_v4 = vunpack.c.1.s8 %v489_v30  ;;  %v154_v56 = vld [vmem:[#allocation2 + $0x260] sm:$0xff]  ;;  %v6464_v57 = vpop.f32.mrf.mxu3 }
  0xf4   :  { %6704 = vmatpush.bf16.msrb.mxu2 %v6105_v59  ;;  %v4209_v7 = vcvt.s32.f32 %v1905_v61  ;;  %v4233_v8 = vcvt.s32.f32 %v1929_v62  ;;  %v2673_v9 = vunpack.c.0.s8 %v585_v37  ;;  %v2697_v10 = vunpack.c.1.s8 %v585_v37 }
  0xf5   :  { %6717 = vmatpush.bf16.msrb.mxu3 %v6297_v1  ;;  %v5697_v17 = vpack.c.bf16 %v3849_v2, %v3825_v60  ;;  %v4593_v18 = vcvt.s32.f32 %v2289_v3  ;;  %v4617_v19 = vcvt.s32.f32 %v2313_v4  ;;  %v1473_v20 = vunpack.c.2.s8 %v9222_v63  ;;  %v250_v3 = vld [vmem:[#allocation2 + $0x560] sm:$0xff] }
  0xf6   :  { %v5889_v22 = vpack.c.bf16 %v4233_v8, %v4209_v7  ;;  %v4977_v23 = vcvt.s32.f32 %v2673_v9  ;;  %v5001_v24 = vcvt.s32.f32 %v2697_v10  ;;  %v1497_v25 = vunpack.c.3.s8 %v9222_v63  ;;  %v346_v9 = vld [vmem:[#allocation2 + $0x860] sm:$0xff] }
  0xf7   :  { %6679 = vmatpush.bf16.msrb.mxu0 %v5697_v17  ;;  %v6081_v27 = vpack.c.bf16 %v4617_v19, %v4593_v18  ;;  %v3777_v28 = vcvt.s32.f32 %v1473_v20  ;;  %v1857_v29 = vunpack.c.2.s8 %v369_v12  ;;  %v1881_v30 = vunpack.c.3.s8 %v369_v12  ;;  %v442_v19 = vld [vmem:[#allocation2 + $0xb60] sm:$0xff] }
  0xf8   :  { %6692 = vmatpush.bf16.msrb.mxu1 %v5889_v22  ;;  %v6273_v33 = vpack.c.bf16 %v5001_v24, %v4977_v23  ;;  %v3801_v34 = vcvt.s32.f32 %v1497_v25  ;;  %v2241_v35 = vunpack.c.2.s8 %v465_v21  ;;  %v2265_v37 = vunpack.c.3.s8 %v465_v21  ;;  %v6490_v24 = vpop.f32.mrf.mxu1 }
  0xf9   :  { %6705 = vmatpush.bf16.msrb.mxu2 %v6081_v27  ;;  %v4161_v38 = vcvt.s32.f32 %v1857_v29  ;;  %v4185_v39 = vcvt.s32.f32 %v1881_v30  ;;  %v2625_v40 = vunpack.c.2.s8 %v561_v26  ;;  %v2649_v41 = vunpack.c.3.s8 %v561_v26  ;;  %v6477_v58 = vpop.f32.mrf.mxu0 }
  0xfa   :  { %6718 = vmatpush.bf16.msrb.mxu3 %v6273_v33  ;;  %v5673_v43 = vpack.c.bf16 %v3801_v34, %v3777_v28  ;;  %v4545_v44 = vcvt.s32.f32 %v2241_v35  ;;  %v4569_v45 = vcvt.s32.f32 %v2265_v37  ;;  %v9234_v46 = vadd.f32 %v9218_v31, %v9212_v6 }
  0xfb   :  { %v5865_v47 = vpack.c.bf16 %v4185_v39, %v4161_v38  ;;  %v4929_v48 = vcvt.s32.f32 %v2625_v40  ;;  %v4953_v49 = vcvt.s32.f32 %v2649_v41  ;;  %v1425_v51 = vunpack.c.0.s8 %v9222_v63 }
  0xfc   :  { %6680 = vmatpush.bf16.msrb.mxu0 %v5673_v43  ;;  %v6057_v52 = vpack.c.bf16 %v4569_v45, %v4545_v44  ;;  %v1449_v53 = vunpack.c.1.s8 %v9222_v63  ;;  %v1809_v54 = vunpack.c.0.s8 %v369_v12  ;;  %v1833_v55 = vunpack.c.1.s8 %v369_v12 }
  0xfd   :  { %6693 = vmatpush.bf16.msrb.mxu1 %v5865_v47  ;;  %v6249_v59 = vpack.c.bf16 %v4953_v49, %v4929_v48  ;;  %v3729_v60 = vcvt.s32.f32 %v1425_v51  ;;  %v2193_v61 = vunpack.c.0.s8 %v465_v21  ;;  %v2217_v6 = vunpack.c.1.s8 %v465_v21 }
  0xfe   :  { %6706 = vmatpush.bf16.msrb.mxu2 %v6057_v52  ;;  %v3753_v31 = vcvt.s32.f32 %v1449_v53  ;;  %v4113_v62 = vcvt.s32.f32 %v1809_v54  ;;  %v4137_v1 = vcvt.s32.f32 %v1833_v55  ;;  %v2577_v2 = vunpack.c.0.s8 %v561_v26  ;;  %v130_v54 = vld [vmem:[#allocation2 + $0x1a0] sm:$0xff] }
  0xff   :  { %6719 = vmatpush.bf16.msrb.mxu3 %v6249_v59  ;;  %v4497_v4 = vcvt.s32.f32 %v2193_v61  ;;  %v4521_v7 = vcvt.s32.f32 %v2217_v6  ;;  %v2601_v63 = vunpack.c.1.s8 %v561_v26  ;;  %v994_v8 = vunpack.c.2.s8 %v154_v56  ;;  %v226_v59 = vld [vmem:[#allocation2 + $0x4a0] sm:$0xff] }
 0x100   :  { %v5649_v10 = vpack.c.bf16 %v3753_v31, %v3729_v60  ;;  %v5841_v12 = vpack.c.bf16 %v4137_v1, %v4113_v62  ;;  %v4881_v17 = vcvt.s32.f32 %v2577_v2  ;;  %v1018_v18 = vunpack.c.3.s8 %v154_v56  ;;  %v322_v62 = vld [vmem:[#allocation2 + $0x7a0] sm:$0xff] }
 0x101   :  { %v6033_v20 = vpack.c.bf16 %v4521_v7, %v4497_v4  ;;  %v4905_v22 = vcvt.s32.f32 %v2601_v63  ;;  %v3298_v21 = vcvt.s32.f32 %v994_v8  ;;  %v1378_v23 = vunpack.c.2.s8 %v250_v3 }
 0x102   :  { %6681 = vmatpush.bf16.msrb.mxu0 %v5649_v10  ;;  %6694 = vmatpush.bf16.msrb.mxu1 %v5841_v12  ;;  %v3322_v25 = vcvt.s32.f32 %v1018_v18  ;;  %v1402_v27 = vunpack.c.3.s8 %v250_v3  ;;  %v1762_v28 = vunpack.c.2.s8 %v346_v9  ;;  %v1786_v29 = vunpack.c.3.s8 %v346_v9  ;;  %v418_v10 = vld [vmem:[#allocation2 + $0xaa0] sm:$0xff] }
 0x103   :  { %6707 = vmatpush.bf16.msrb.mxu2 %v6033_v20  ;;  %v6225_v26 = vpack.c.bf16 %v4905_v22, %v4881_v17  ;;  %v3682_v30 = vcvt.s32.f32 %v1378_v23  ;;  %v2146_v32 = vunpack.c.2.s8 %v442_v19  ;;  %v2170_v33 = vunpack.c.3.s8 %v442_v19 }
 0x104   :  { %v5434_v34 = vpack.c.bf16 %v3322_v25, %v3298_v21  ;;  %v3706_v35 = vcvt.s32.f32 %v1402_v27  ;;  %v4066_v37 = vcvt.s32.f32 %v1762_v28  ;;  %v4090_v38 = vcvt.s32.f32 %v1786_v29 }
 0x105   :  { %6720 = vmatpush.bf16.msrb.mxu3 %v6225_v26  ;;  %v4450_v39 = vcvt.s32.f32 %v2146_v32  ;;  %v4474_v40 = vcvt.s32.f32 %v2170_v33  ;;  %6682 = vmatmul.bf16.vlgmr.msrb.gmra.mxu0 %v9178_v0  ;;  %v946_v41 = vunpack.c.0.s8 %v154_v56  ;;  %v970_v43 = vunpack.c.1.s8 %v154_v56 }
 0x106   :  { %6726 = vmatpush.bf16.msra.mxu0 %v5434_v34  ;;  %v5626_v44 = vpack.c.bf16 %v3706_v35, %v3682_v30  ;;  %v5818_v45 = vpack.c.bf16 %v4090_v38, %v4066_v37  ;;  %6708 = vmatmul.bf16.vlgmr.msrb.gmra.mxu2 %v9194_v11  ;;  %v1330_v47 = vunpack.c.0.s8 %v250_v3  ;;  %v1354_v48 = vunpack.c.1.s8 %v250_v3 }
 0x107   :  { %v6010_v49 = vpack.c.bf16 %v4474_v40, %v4450_v39  ;;  %v3250_v51 = vcvt.s32.f32 %v946_v41  ;;  %v3274_v52 = vcvt.s32.f32 %v970_v43  ;;  %v1714_v53 = vunpack.c.0.s8 %v346_v9  ;;  %6695 = vmatmul.bf16.vlgmr.msrb.gmra.mxu1 %v9180_v5 }
 0x108   :  { %6739 = vmatpush.bf16.msra.mxu1 %v5626_v44  ;;  %6752 = vmatpush.bf16.msra.mxu2 %v5818_v45  ;;  %v3634_v55 = vcvt.s32.f32 %v1330_v47  ;;  %v3658_v57 = vcvt.s32.f32 %v1354_v48  ;;  %v1738_v58 = vunpack.c.1.s8 %v346_v9  ;;  %v2098_v56 = vunpack.c.0.s8 %v442_v19  ;;  %v9246_v45 = vld [vmem:[#allocation4] sm:$0xff] }
 0x109   :  { %6765 = vmatpush.bf16.msra.mxu3 %v6010_v49  ;;  %v5410_v60 = vpack.c.bf16 %v3274_v52, %v3250_v51  ;;  %v4018_v61 = vcvt.s32.f32 %v1714_v53  ;;  %v2122_v6 = vunpack.c.1.s8 %v442_v19  ;;  %v6450_v31 = vadd.f32 %v9220_v50, %v9234_v46  ;;  %v9248_v51 = vld [vmem:[#allocation6] sm:$0xff]  ;;  %v106_v52 = vld [vmem:[#allocation2 + $0xe0] sm:$0xff] }
 0x10a   :  { %6721 = vmatmul.bf16.vlgmr.msrb.gmra.mxu3 %v9198_v16  ;;  %v5602_v1 = vpack.c.bf16 %v3658_v57, %v3634_v55  ;;  %v4042_v2 = vcvt.s32.f32 %v1738_v58  ;;  %v4402_v3 = vcvt.s32.f32 %v2098_v56  ;;  %v898_v4 = vunpack.c.2.s8 %v130_v54  ;;  %v202_v57 = vld [vmem:[#allocation2 + $0x3e0] sm:$0xff] }
 0x10b   :  { %6727 = vmatpush.bf16.msra.mxu0 %v5410_v60  ;;  %v4426_v7 = vcvt.s32.f32 %v2122_v6  ;;  %v922_v63 = vunpack.c.3.s8 %v130_v54  ;;  %v1282_v8 = vunpack.c.2.s8 %v226_v59  ;;  %v1306_v9 = vunpack.c.3.s8 %v226_v59 }
 0x10c   :  { %6740 = vmatpush.bf16.msra.mxu1 %v5602_v1  ;;  %v5794_v12 = vpack.c.bf16 %v4042_v2, %v4018_v61  ;;  %v3202_v17 = vcvt.s32.f32 %v898_v4  ;;  %v1666_v18 = vunpack.c.2.s8 %v322_v62  ;;  %v1690_v19 = vunpack.c.3.s8 %v322_v62  ;;  %v298_v61 = vld [vmem:[#allocation2 + $0x6e0] sm:$0xff] }
 0x10d   :  { %v5986_v20 = vpack.c.bf16 %v4426_v7, %v4402_v3  ;;  %v3226_v50 = vcvt.s32.f32 %v922_v63  ;;  %v3586_v46 = vcvt.s32.f32 %v1282_v8  ;;  %v3610_v22 = vcvt.s32.f32 %v1306_v9  ;;  %v394_v2 = vld [vmem:[#allocation2 + $0x9e0] sm:$0xff] }
 0x10e   :  { %6753 = vmatpush.bf16.msra.mxu2 %v5794_v12  ;;  %v3970_v21 = vcvt.s32.f32 %v1666_v18  ;;  %v3994_v23 = vcvt.s32.f32 %v1690_v19  ;;  %v2050_v24 = vunpack.c.2.s8 %v418_v10  ;;  %v2074_v25 = vunpack.c.3.s8 %v418_v10  ;;  %v9253_v12 = vpop.f32.mrf.mxu2 }
 0x10f   :  { %6766 = vmatpush.bf16.msra.mxu3 %v5986_v20  ;;  %v5386_v27 = vpack.c.bf16 %v3226_v50, %v3202_v17  ;;  %v5578_v28 = vpack.c.bf16 %v3610_v22, %v3586_v46  ;;  %v6463_v29 = vadd.f32 %v9224_v13, %v6450_v31  ;;  %v850_v26 = vunpack.c.0.s8 %v130_v54  ;;  %v9255_v50 = vpop.f32.mrf.mxu3 }
 0x110   :  { %v5770_v30 = vpack.c.bf16 %v3994_v23, %v3970_v21  ;;  %v4354_v32 = vcvt.s32.f32 %v2050_v24  ;;  %v4378_v33 = vcvt.s32.f32 %v2074_v25  ;;  %v874_v34 = vunpack.c.1.s8 %v130_v54 }
 0x111   :  { %6728 = vmatpush.bf16.msra.mxu0 %v5386_v27  ;;  %6741 = vmatpush.bf16.msra.mxu1 %v5578_v28  ;;  %v6476_v35 = vadd.f32 %v9226_v15, %v6463_v29  ;;  %v3154_v37 = vcvt.s32.f32 %v850_v26  ;;  %v1234_v38 = vunpack.c.0.s8 %v226_v59  ;;  %v1258_v39 = vunpack.c.1.s8 %v226_v59 }
 0x112   :  { %6754 = vmatpush.bf16.msra.mxu2 %v5770_v30  ;;  %v5962_v40 = vpack.c.bf16 %v4378_v33, %v4354_v32  ;;  %v3178_v41 = vcvt.s32.f32 %v874_v34  ;;  %v1618_v43 = vunpack.c.0.s8 %v322_v62  ;;  %v1642_v44 = vunpack.c.1.s8 %v322_v62 }
 0x113   :  { %v3538_v13 = vcvt.s32.f32 %v1234_v38  ;;  %v3562_v47 = vcvt.s32.f32 %v1258_v39  ;;  %v2002_v48 = vunpack.c.0.s8 %v418_v10  ;;  %v2026_v49 = vunpack.c.1.s8 %v418_v10  ;;  %v82_v38 = vld [vmem:[#allocation2 + $0x20] sm:$0xff] }
 0x114   :  { %6767 = vmatpush.bf16.msra.mxu3 %v5962_v40  ;;  %v5362_v53 = vpack.c.bf16 %v3178_v41, %v3154_v37  ;;  %v3922_v15 = vcvt.s32.f32 %v1618_v43  ;;  %v3946_v54 = vcvt.s32.f32 %v1642_v44  ;;  %v6489_v55 = vadd.f32 %v9230_v42, %v6476_v35  ;;  %v9257_v44 = vld [vmem:[#allocation2 + $0x320] sm:$0xff] }
 0x115   :  { %v5554_v58 = vpack.c.bf16 %v3562_v47, %v3538_v13  ;;  %v4306_v56 = vcvt.s32.f32 %v2002_v48  ;;  %v4330_v59 = vcvt.s32.f32 %v2026_v49  ;;  %v8292_v60 = vperm.slane %v9246_v45, 0 }
 0x116   :  { %6729 = vmatpush.bf16.msra.mxu0 %v5362_v53  ;;  %v5746_v6 = vpack.c.bf16 %v3946_v54, %v3922_v15  ;;  %v8370_v31 = vperm.slane %v9248_v51, 0  ;;  %v802_v62 = vunpack.c.2.s8 %v106_v52  ;;  %v826_v1 = vunpack.c.3.s8 %v106_v52  ;;  %v274_v54 = vld [vmem:[#allocation2 + $0x620] sm:$0xff] }
 0x117   :  { %6742 = vmatpush.bf16.msra.mxu1 %v5554_v58  ;;  %v5938_v3 = vpack.c.bf16 %v4330_v59, %v4306_v56  ;;  %v8340_v4 = vmul.f32 %v8292_v60, %v6489_v55  ;;  %v1186_v7 = vunpack.c.2.s8 %v202_v57  ;;  %v1210_v63 = vunpack.c.3.s8 %v202_v57  ;;  %v6503_v55 = vpop.f32.mrf.mxu2  ;;  %v370_v60 = vld [vmem:[#allocation2 + $0x920] sm:$0xff] }
 0x118   :  { %6755 = vmatpush.bf16.msra.mxu2 %v5746_v6  ;;  %v3106_v42 = vcvt.s32.f32 %v802_v62  ;;  %v3130_v8 = vcvt.s32.f32 %v826_v1  ;;  %v1570_v9 = vunpack.c.2.s8 %v298_v61  ;;  %v1594_v10 = vunpack.c.3.s8 %v298_v61 }
 0x119   :  { %6768 = vmatpush.bf16.msra.mxu3 %v5938_v3  ;;  %v8418_v17 = vadd.f32 %v8370_v31, %v8340_v4  ;;  %v3490_v18 = vcvt.s32.f32 %v1186_v7  ;;  %v3514_v19 = vcvt.s32.f32 %v1210_v63  ;;  %v1954_v20 = vunpack.c.2.s8 %v394_v2 }
 0x11a   :  { %v5338_v46 = vpack.c.bf16 %v3130_v8, %v3106_v42  ;;  %v3874_v22 = vcvt.s32.f32 %v1570_v9  ;;  %v3898_v21 = vcvt.s32.f32 %v1594_v10  ;;  %v1978_v23 = vunpack.c.3.s8 %v394_v2 }
 0x11b   :  { %v8442_v24 = vsub.f32 0.0, %v8418_v17  ;;  %v5530_v25 = vpack.c.bf16 %v3514_v19, %v3490_v18  ;;  %v4258_v27 = vcvt.s32.f32 %v1954_v20  ;;  %v754_v28 = vunpack.c.0.s8 %v106_v52 }
 0x11c   :  { %6730 = vmatpush.bf16.msra.mxu0 %v5338_v46  ;;  %v5722_v29 = vpack.c.bf16 %v3898_v21, %v3874_v22  ;;  %v4282_v26 = vcvt.s32.f32 %v1978_v23  ;;  %v778_v30 = vunpack.c.1.s8 %v106_v52  ;;  %v1138_v32 = vunpack.c.0.s8 %v202_v57 }
 0x11d   :  { %v8466_v33 = vmul.f32 1.442695, %v8442_v24  ;;  %6743 = vmatpush.bf16.msra.mxu1 %v5530_v25  ;;  %v3058_v34 = vcvt.s32.f32 %v754_v28  ;;  %v1162_v35 = vunpack.c.1.s8 %v202_v57  ;;  %v1522_v37 = vunpack.c.0.s8 %v298_v61 }
 0x11e   :  { %6756 = vmatpush.bf16.msra.mxu2 %v5722_v29  ;;  %v5914_v39 = vpack.c.bf16 %v4282_v26, %v4258_v27  ;;  %v3082_v40 = vcvt.s32.f32 %v778_v30  ;;  %v3442_v41 = vcvt.s32.f32 %v1138_v32  ;;  %v1546_v43 = vunpack.c.1.s8 %v298_v61  ;;  %v6516_v61 = vpop.f32.mrf.mxu3  ;;  %v9264_v29 = vpop.f32.mrf.mxu0 }
 0x11f   :  { %8933 = vpow2.f32 %v8466_v33  ;;  %v3466_v13 = vcvt.s32.f32 %v1162_v35  ;;  %v3826_v47 = vcvt.s32.f32 %v1522_v37  ;;  %v1906_v48 = vunpack.c.0.s8 %v394_v2  ;;  %v9266_v26 = vpop.f32.mrf.mxu1  ;;  %v9271_v37 = vld [vmem:[#allocation2 + $0xe60] sm:$0xff] }
 0x120   :  { %6769 = vmatpush.bf16.msra.mxu3 %v5914_v39  ;;  %v5314_v49 = vpack.c.bf16 %v3082_v40, %v3058_v34  ;;  %v3850_v52 = vcvt.s32.f32 %v1546_v43  ;;  %v1930_v53 = vunpack.c.1.s8 %v394_v2  ;;  %v706_v15 = vunpack.c.2.s8 %v82_v38  ;;  %v9276_v43 = vld [vmem:[#allocation2 + $0x1160] sm:$0xff] }
 0x121   :  { %v5506_v57 = vpack.c.bf16 %v3466_v13, %v3442_v41  ;;  %v4210_v58 = vcvt.s32.f32 %v1906_v48  ;;  %v730_v56 = vunpack.c.3.s8 %v82_v38  ;;  %v1090_v59 = vunpack.c.2.s8 %v9257_v44 }
 0x122   :  { %6731 = vmatpush.bf16.msra.mxu0 %v5314_v49  ;;  %v5698_v6 = vpack.c.bf16 %v3850_v52, %v3826_v47  ;;  %v4234_v31 = vcvt.s32.f32 %v1930_v53  ;;  %v3010_v62 = vcvt.s32.f32 %v706_v15  ;;  %v1114_v1 = vunpack.c.3.s8 %v9257_v44 }
 0x123   :  { %6744 = vmatpush.bf16.msra.mxu1 %v5506_v57  ;;  %v3034_v3 = vcvt.s32.f32 %v730_v56  ;;  %v3394_v4 = vcvt.s32.f32 %v1090_v59  ;;  %v1474_v2 = vunpack.c.2.s8 %v274_v54  ;;  %v1498_v7 = vunpack.c.3.s8 %v274_v54  ;;  %v9282_v56 = vld [vmem:[#allocation2 + $0x268] sm:$0xff]  ;;  %v9284_v59 = vpop.f32.mrf.mxu2 }
 0x124   :  { %6757 = vmatpush.bf16.msra.mxu2 %v5698_v6  ;;  %v5890_v63 = vpack.c.bf16 %v4234_v31, %v4210_v58  ;;  %v3418_v42 = vcvt.s32.f32 %v1114_v1  ;;  %v1858_v8 = vunpack.c.2.s8 %v370_v60  ;;  %v1882_v9 = vunpack.c.3.s8 %v370_v60 }
 0x125   :  { %v8934_v10 = vpop.eup %8933  ;;  %v5290_v17 = vpack.c.bf16 %v3034_v3, %v3010_v62  ;;  %v3778_v18 = vcvt.s32.f32 %v1474_v2  ;;  %v3802_v19 = vcvt.s32.f32 %v1498_v7  ;;  %v658_v20 = vunpack.c.0.s8 %v82_v38  ;;  %v9291_v3 = vld [vmem:[#allocation2 + $0x568] sm:$0xff] }
 0x126   :  { %v9261_v46 = vadd.f32 1.0, %v8934_v10  ;;  %6770 = vmatpush.bf16.msra.mxu3 %v5890_v63  ;;  %v5482_v22 = vpack.c.bf16 %v3418_v42, %v3394_v4  ;;  %v4162_v21 = vcvt.s32.f32 %v1858_v8  ;;  %v4186_v23 = vcvt.s32.f32 %v1882_v9  ;;  %v9286_v61 = vpop.f32.mrf.mxu3  ;;  %v6529_v42 = vpop.f32.mrf.mxu0 }
 0x127   :  { %6732 = vmatpush.bf16.msra.mxu0 %v5290_v17  ;;  %v5674_v24 = vpack.c.bf16 %v3802_v19, %v3778_v18  ;;  %v682_v25 = vunpack.c.1.s8 %v82_v38  ;;  %v2962_v27 = vcvt.s32.f32 %v658_v20  ;;  %v1042_v28 = vunpack.c.0.s8 %v9257_v44  ;;  %v6542_v8 = vpop.f32.mrf.mxu1 }
 0x128   :  { %8935 = vrcp.f32 %v9261_v46  ;;  %v8549_v30 = vand.u32 2147483648, %v9261_v46  ;;  %6745 = vmatpush.bf16.msra.mxu1 %v5482_v22  ;;  %v5866_v32 = vpack.c.bf16 %v4186_v23, %v4162_v21  ;;  %v1066_v34 = vunpack.c.1.s8 %v9257_v44 }
 0x129   :  { %6758 = vmatpush.bf16.msra.mxu2 %v5674_v24  ;;  %v2986_v33 = vcvt.s32.f32 %v682_v25  ;;  %v3346_v35 = vcvt.s32.f32 %v1042_v28  ;;  %v8547_v38 = vand.u32 2147483647, %v9261_v46  ;;  %v1426_v40 = vunpack.c.0.s8 %v274_v54 }
 0x12a   :  { %v9274_v39 = vor.u32 1.1754944e-38, %v8549_v30  ;;  %v1450_v41 = vunpack.c.1.s8 %v274_v54  ;;  %vm8543_vm0 = vweird.f32 %v9261_v46  ;;  %6771 = vmatpush.bf16.msra.mxu3 %v5866_v32  ;;  %v3370_v47 = vcvt.s32.f32 %v1066_v34 }
 0x12b   :  { %v5266_v13 = vpack.c.bf16 %v2986_v33, %v2962_v27  ;;  %v1810_v48 = vunpack.c.0.s8 %v370_v60  ;;  %v1834_v49 = vunpack.c.1.s8 %v370_v60  ;;  %v3730_v52 = vcvt.s32.f32 %v1426_v40 }
 0x12c   :  { %v3754_v44 = vcvt.s32.f32 %v1450_v41  ;;  %v2530_v53 = vunpack.c.2.s8 %v9271_v37  ;;  %v2554_v15 = vunpack.c.3.s8 %v9271_v37  ;;  %v5458_v55 = vpack.c.bf16 %v3370_v47, %v3346_v35  ;;  %v6555_v47 = vpop.f32.mrf.mxu2 }
 0x12d   :  { %6733 = vmatpush.bf16.msra.mxu0 %v5266_v13  ;;  %v4114_v57 = vcvt.s32.f32 %v1810_v48  ;;  %v4138_v58 = vcvt.s32.f32 %v1834_v49  ;;  %v2914_v54 = vunpack.c.2.s8 %v9276_v43  ;;  %v2938_v1 = vunpack.c.3.s8 %v9276_v43 }
 0x12e   :  { %v9288_v6 = vpop.eup %8935  ;;  %v5650_v60 = vpack.c.bf16 %v3754_v44, %v3730_v52  ;;  %v4834_v31 = vcvt.s32.f32 %v2530_v53  ;;  %v4858_v62 = vcvt.s32.f32 %v2554_v15  ;;  %vm9296_vm2 = vcmp.eq.f32.partialorder %v8547_v38, 8.507059e+37  ;;  %6746 = vmatpush.bf16.msra.mxu1 %v5458_v55  ;;  %v6568_v48 = vpop.f32.mrf.mxu3  ;;  %v514_v44 = vld [vmem:[#allocation2 + $0xda0] sm:$0xff] }
 0x12f   :  { %v8539_v4 = vmul.f32 %v9288_v6, %v9261_v46  ;;  %vm8544_vm1 = vweird.f32 %v9288_v6  ;;  %v5842_v7 = vpack.c.bf16 %v4138_v58, %v4114_v57  ;;  %v5218_v63 = vcvt.s32.f32 %v2914_v54  ;;  %v610_v53 = vld [vmem:[#allocation2 + $0x10a0] sm:$0xff]  ;;  %v131_v54 = vld [vmem:[#allocation2 + $0x1a8] sm:$0xff] }
 0x130   :  { %6759 = vmatpush.bf16.msra.mxu2 %v5650_v60  ;;  %v6202_v9 = vpack.c.bf16 %v4858_v62, %v4834_v31  ;;  %v5242_v10 = vcvt.s32.f32 %v2938_v1  ;;  %v995_v17 = vunpack.c.2.s8 %v9282_v56  ;;  %v1019_v18 = vunpack.c.3.s8 %v9282_v56  ;;  %6734 = vmatmul.bf16.vlgmr.msra.gmra.mxu0 %v9163_v14  ;;  %vm8545_vm3 = vmor %vm8543_vm0, %vm8544_vm1 }
 0x131   :  { %v8540_v19 = vsub.f32 1.0, %v8539_v4  ;;  %6772 = vmatpush.bf16.msra.mxu3 %v5842_v7  ;;  %v1379_v20 = vunpack.c.2.s8 %v9291_v3  ;;  %v1403_v22 = vunpack.c.3.s8 %v9291_v3  ;;  %v9307_v21 = vadd.f32 %v9255_v50, %v9253_v12  ;;  %6747 = vmatmul.bf16.vlgmr.msra.gmra.mxu1 %v9169_v36  ;;  %v227_v7 = vld [vmem:[#allocation2 + $0x4a8] sm:$0xff] }
 0x132   :  { %6778 = vmatpush.bf16.msrb.mxu0 %v6202_v9  ;;  %v6394_v23 = vpack.c.bf16 %v5242_v10, %v5218_v63  ;;  %v3299_v24 = vcvt.s32.f32 %v995_v17  ;;  %v3323_v25 = vcvt.s32.f32 %v1019_v18  ;;  %v2482_v27 = vunpack.c.0.s8 %v9271_v37 }
 0x133   :  { %v8541_v28 = vmul.f32 %v9288_v6, %v8540_v19  ;;  %v3683_v30 = vcvt.s32.f32 %v1379_v20  ;;  %v3707_v32 = vcvt.s32.f32 %v1403_v22  ;;  %v2506_v33 = vunpack.c.1.s8 %v9271_v37  ;;  %6760 = vmatmul.bf16.vlgmr.msra.gmra.mxu2 %v9178_v0 }
 0x134   :  { %6791 = vmatpush.bf16.msrb.mxu1 %v6394_v23  ;;  %v5435_v34 = vpack.c.bf16 %v3323_v25, %v3299_v24  ;;  %v4786_v12 = vcvt.s32.f32 %v2482_v27  ;;  %v2866_v50 = vunpack.c.0.s8 %v9276_v43  ;;  %v2890_v35 = vunpack.c.1.s8 %v9276_v43  ;;  %6773 = vmatmul.bf16.vlgmr.msra.gmra.mxu3 %v9180_v5 }
 0x135   :  { %v8542_v38 = vadd.f32 %v9288_v6, %v8541_v28  ;;  %v5627_v40 = vpack.c.bf16 %v3707_v32, %v3683_v30  ;;  %v4810_v41 = vcvt.s32.f32 %v2506_v33  ;;  %v947_v13 = vunpack.c.0.s8 %v9282_v56 }
 0x136   :  { %6804 = vmatpush.bf16.msrb.mxu2 %v5435_v34  ;;  %v5170_v37 = vcvt.s32.f32 %v2866_v50  ;;  %v5194_v49 = vcvt.s32.f32 %v2890_v35  ;;  %v971_v43 = vunpack.c.1.s8 %v9282_v56  ;;  %v1331_v52 = vunpack.c.0.s8 %v9291_v3 }
 0x137   :  { %v8546_v15 = vsel %vm8545_vm3, %v9288_v6, %v8542_v38  ;;  %6817 = vmatpush.bf16.msrb.mxu3 %v5627_v40  ;;  %v6178_v55 = vpack.c.bf16 %v4810_v41, %v4786_v12  ;;  %v3251_v57 = vcvt.s32.f32 %v947_v13  ;;  %v1355_v58 = vunpack.c.1.s8 %v9291_v3  ;;  %v490_v13 = vld [vmem:[#allocation2 + $0xce0] sm:$0xff] }
 0x138   :  { %v8551_v46 = vsel %vm9296_vm2, %v9274_v39, %v8546_v15  ;;  %v6370_v60 = vpack.c.bf16 %v5194_v49, %v5170_v37  ;;  %v3275_v31 = vcvt.s32.f32 %v971_v43  ;;  %v3635_v62 = vcvt.s32.f32 %v1331_v52  ;;  %v586_v43 = vld [vmem:[#allocation2 + $0xfe0] sm:$0xff] }
 0x139   :  { %8898 = vst [vmem:[%s10886_s4] sm:$0xff] %v8551_v46  ;;  %6779 = vmatpush.bf16.msrb.mxu0 %v6178_v55  ;;  %v3659_v56 = vcvt.s32.f32 %v1355_v58  ;;  %v2434_v6 = vunpack.c.2.s8 %v514_v44  ;;  %v2458_v1 = vunpack.c.3.s8 %v514_v44  ;;  %v2818_v4 = vunpack.c.2.s8 %v610_v53 }
 0x13a   :  { %6792 = vmatpush.bf16.msrb.mxu1 %v6370_v60  ;;  %v5411_v3 = vpack.c.bf16 %v3275_v31, %v3251_v57  ;;  %v2842_v63 = vunpack.c.3.s8 %v610_v53  ;;  %v899_v42 = vunpack.c.2.s8 %v131_v54  ;;  %v923_v8 = vunpack.c.3.s8 %v131_v54  ;;  %v107_v57 = vld [vmem:[#allocation2 + $0xe8] sm:$0xff] }
 0x13b   :  { %v5603_v2 = vpack.c.bf16 %v3659_v56, %v3635_v62  ;;  %v4738_v39 = vcvt.s32.f32 %v2434_v6  ;;  %v4762_v9 = vcvt.s32.f32 %v2458_v1  ;;  %v5122_v10 = vcvt.s32.f32 %v2818_v4  ;;  %v203_v60 = vld [vmem:[#allocation2 + $0x3e8] sm:$0xff] }
 0x13c   :  { %6805 = vmatpush.bf16.msrb.mxu2 %v5411_v3  ;;  %v5146_v17 = vcvt.s32.f32 %v2842_v63  ;;  %v3203_v18 = vcvt.s32.f32 %v899_v42  ;;  %v3227_v19 = vcvt.s32.f32 %v923_v8  ;;  %v1283_v20 = vunpack.c.2.s8 %v227_v7 }
 0x13d   :  { %6818 = vmatpush.bf16.msrb.mxu3 %v5603_v2  ;;  %v6154_v22 = vpack.c.bf16 %v4762_v9, %v4738_v39  ;;  %v1307_v23 = vunpack.c.3.s8 %v227_v7  ;;  %v2386_v24 = vunpack.c.0.s8 %v514_v44  ;;  %v2410_v25 = vunpack.c.1.s8 %v514_v44 }
 0x13e   :  { %v6346_v27 = vpack.c.bf16 %v5146_v17, %v5122_v10  ;;  %v5387_v28 = vpack.c.bf16 %v3227_v19, %v3203_v18  ;;  %v3587_v30 = vcvt.s32.f32 %v1283_v20  ;;  %v2770_v32 = vunpack.c.0.s8 %v610_v53 }
 0x13f   :  { %6780 = vmatpush.bf16.msrb.mxu0 %v6154_v22  ;;  %v3611_v33 = vcvt.s32.f32 %v1307_v23  ;;  %v4690_v34 = vcvt.s32.f32 %v2386_v24  ;;  %v4714_v12 = vcvt.s32.f32 %v2410_v25  ;;  %v2794_v50 = vunpack.c.1.s8 %v610_v53 }
 0x140   :  { %6793 = vmatpush.bf16.msrb.mxu1 %v6346_v27  ;;  %6806 = vmatpush.bf16.msrb.mxu2 %v5387_v28  ;;  %v5074_v35 = vcvt.s32.f32 %v2770_v32  ;;  %v851_v38 = vunpack.c.0.s8 %v131_v54  ;;  %v875_v40 = vunpack.c.1.s8 %v131_v54  ;;  %v1235_v41 = vunpack.c.0.s8 %v227_v7 }
 0x141   :  { %v5579_v47 = vpack.c.bf16 %v3611_v33, %v3587_v30  ;;  %v6130_v48 = vpack.c.bf16 %v4714_v12, %v4690_v34  ;;  %v5098_v37 = vcvt.s32.f32 %v2794_v50  ;;  %v1259_v49 = vunpack.c.1.s8 %v227_v7  ;;  %v466_v34 = vld [vmem:[#allocation2 + $0xc20] sm:$0xff] }
 0x142   :  { %v3155_v52 = vcvt.s32.f32 %v851_v38  ;;  %v3179_v44 = vcvt.s32.f32 %v875_v40  ;;  %v3539_v15 = vcvt.s32.f32 %v1235_v41  ;;  %v6528_v55 = vadd.f32 %v9264_v29, %v9307_v21  ;;  %v562_v41 = vld [vmem:[#allocation2 + $0xf20] sm:$0xff] }
 0x143   :  { %6819 = vmatpush.bf16.msrb.mxu3 %v5579_v47  ;;  %6781 = vmatpush.bf16.msrb.mxu0 %v6130_v48  ;;  %v6322_v53 = vpack.c.bf16 %v5098_v37, %v5074_v35  ;;  %v3563_v58 = vcvt.s32.f32 %v1259_v49  ;;  %v2338_v46 = vunpack.c.2.s8 %v490_v13  ;;  %v2362_v54 = vunpack.c.3.s8 %v490_v13  ;;  %v83_v49 = vld [vmem:[#allocation2 + $0x28] sm:$0xff] }
 0x144   :  { %v5363_v31 = vpack.c.bf16 %v3179_v44, %v3155_v52  ;;  %v6541_v62 = vadd.f32 %v9266_v26, %v6528_v55  ;;  %v2722_v56 = vunpack.c.2.s8 %v586_v43  ;;  %v2746_v6 = vunpack.c.3.s8 %v586_v43  ;;  %v179_v55 = vld [vmem:[#allocation2 + $0x328] sm:$0xff] }
 0x145   :  { %6794 = vmatpush.bf16.msrb.mxu1 %v6322_v53  ;;  %v5555_v1 = vpack.c.bf16 %v3563_v58, %v3539_v15  ;;  %v4642_v4 = vcvt.s32.f32 %v2338_v46  ;;  %v4666_v7 = vcvt.s32.f32 %v2362_v54  ;;  %v803_v3 = vunpack.c.2.s8 %v107_v57 }
 0x146   :  { %6807 = vmatpush.bf16.msrb.mxu2 %v5363_v31  ;;  %v5026_v29 = vcvt.s32.f32 %v2722_v56  ;;  %v5050_v21 = vcvt.s32.f32 %v2746_v6  ;;  %v827_v63 = vunpack.c.3.s8 %v107_v57  ;;  %v1187_v42 = vunpack.c.2.s8 %v203_v60 }
 0x147   :  { %6820 = vmatpush.bf16.msrb.mxu3 %v5555_v1  ;;  %v6106_v8 = vpack.c.bf16 %v4666_v7, %v4642_v4  ;;  %v3107_v2 = vcvt.s32.f32 %v803_v3  ;;  %v1211_v39 = vunpack.c.3.s8 %v203_v60  ;;  %v6554_v9 = vadd.f32 %v9284_v59, %v6541_v62 }
 0x148   :  { %v6298_v10 = vpack.c.bf16 %v5050_v21, %v5026_v29  ;;  %v3131_v26 = vcvt.s32.f32 %v827_v63  ;;  %v3491_v17 = vcvt.s32.f32 %v1187_v42  ;;  %v8293_v18 = vperm.slane %v9246_v45, 1 }
 0x149   :  { %6782 = vmatpush.bf16.msrb.mxu0 %v6106_v8  ;;  %v3515_v19 = vcvt.s32.f32 %v1211_v39  ;;  %v6567_v20 = vadd.f32 %v9286_v61, %v6554_v9  ;;  %v8371_v22 = vperm.slane %v9248_v51, 1  ;;  %v2290_v23 = vunpack.c.0.s8 %v490_v13 }
 0x14a   :  { %6795 = vmatpush.bf16.msrb.mxu1 %v6298_v10  ;;  %v5339_v24 = vpack.c.bf16 %v3131_v26, %v3107_v2  ;;  %v2314_v25 = vunpack.c.1.s8 %v490_v13  ;;  %v2674_v27 = vunpack.c.0.s8 %v586_v43  ;;  %v2698_v28 = vunpack.c.1.s8 %v586_v43 }
 0x14b   :  { %v5531_v30 = vpack.c.bf16 %v3515_v19, %v3491_v17  ;;  %v8341_v32 = vmul.f32 %v8293_v18, %v6567_v20  ;;  %v4594_v59 = vcvt.s32.f32 %v2290_v23  ;;  %v755_v33 = vunpack.c.0.s8 %v107_v57  ;;  %v347_v20 = vld [vmem:[#allocation2 + $0x868] sm:$0xff] }
 0x14c   :  { %6808 = vmatpush.bf16.msrb.mxu2 %v5339_v24  ;;  %v4618_v12 = vcvt.s32.f32 %v2314_v25  ;;  %v4978_v45 = vcvt.s32.f32 %v2674_v27  ;;  %v5002_v50 = vcvt.s32.f32 %v2698_v28  ;;  %v779_v35 = vunpack.c.1.s8 %v107_v57 }
 0x14d   :  { %6821 = vmatpush.bf16.msrb.mxu3 %v5531_v30  ;;  %v8419_v61 = vadd.f32 %v8371_v22, %v8341_v32  ;;  %v3059_v38 = vcvt.s32.f32 %v755_v33  ;;  %v1139_v51 = vunpack.c.0.s8 %v203_v60  ;;  %v1163_v40 = vunpack.c.1.s8 %v203_v60 }
 0x14e   :  { %v6082_v47 = vpack.c.bf16 %v4618_v12, %v4594_v59  ;;  %v6274_v13 = vpack.c.bf16 %v5002_v50, %v4978_v45  ;;  %v3083_v48 = vcvt.s32.f32 %v779_v35  ;;  %v2242_v37 = vunpack.c.2.s8 %v466_v34  ;;  %v443_v59 = vld [vmem:[#allocation2 + $0xb68] sm:$0xff] }
 0x14f   :  { %v8443_v43 = vsub.f32 0.0, %v8419_v61  ;;  %v3443_v52 = vcvt.s32.f32 %v1139_v51  ;;  %v3467_v44 = vcvt.s32.f32 %v1163_v40  ;;  %v2266_v15 = vunpack.c.3.s8 %v466_v34 }
 0x150   :  { %6783 = vmatpush.bf16.msrb.mxu0 %v6082_v47  ;;  %6796 = vmatpush.bf16.msrb.mxu1 %v6274_v13  ;;  %v5315_v53 = vpack.c.bf16 %v3083_v48, %v3059_v38  ;;  %v4546_v57 = vcvt.s32.f32 %v2242_v37  ;;  %v2626_v58 = vunpack.c.2.s8 %v562_v41  ;;  %v2650_v46 = vunpack.c.3.s8 %v562_v41  ;;  %v539_v48 = vld [vmem:[#allocation2 + $0xe68] sm:$0xff] }
 0x151   :  { %v8468_v54 = vmul.f32 1.442695, %v8443_v43  ;;  %v5507_v31 = vpack.c.bf16 %v3467_v44, %v3443_v52  ;;  %v4570_v60 = vcvt.s32.f32 %v2266_v15  ;;  %v707_v62 = vunpack.c.2.s8 %v83_v49 }
 0x152   :  { %6809 = vmatpush.bf16.msrb.mxu2 %v5315_v53  ;;  %v4930_v56 = vcvt.s32.f32 %v2626_v58  ;;  %v4954_v6 = vcvt.s32.f32 %v2650_v46  ;;  %v731_v1 = vunpack.c.3.s8 %v83_v49  ;;  %v1091_v4 = vunpack.c.2.s8 %v179_v55 }
 0x153   :  { %8937 = vpow2.f32 %v8468_v54  ;;  %6822 = vmatpush.bf16.msrb.mxu3 %v5507_v31  ;;  %v6058_v7 = vpack.c.bf16 %v4570_v60, %v4546_v57  ;;  %v3011_v3 = vcvt.s32.f32 %v707_v62  ;;  %v1115_v29 = vunpack.c.3.s8 %v179_v55  ;;  %v9349_v62 = vpop.f32.mrf.mxu0 }
 0x154   :  { %v6250_v21 = vpack.c.bf16 %v4954_v6, %v4930_v56  ;;  %v3035_v63 = vcvt.s32.f32 %v731_v1  ;;  %v3395_v42 = vcvt.s32.f32 %v1091_v4  ;;  %v2194_v8 = vunpack.c.0.s8 %v466_v34 }
 0x155   :  { %6784 = vmatpush.bf16.msrb.mxu0 %v6058_v7  ;;  %v3419_v2 = vcvt.s32.f32 %v1115_v29  ;;  %v2218_v39 = vunpack.c.1.s8 %v466_v34  ;;  %v2578_v9 = vunpack.c.0.s8 %v562_v41  ;;  %v2602_v10 = vunpack.c.1.s8 %v562_v41 }
 0x156   :  { %6797 = vmatpush.bf16.msrb.mxu1 %v6250_v21  ;;  %v5291_v26 = vpack.c.bf16 %v3035_v63, %v3011_v3  ;;  %v4498_v17 = vcvt.s32.f32 %v2194_v8  ;;  %v659_v18 = vunpack.c.0.s8 %v83_v49  ;;  %v683_v19 = vunpack.c.1.s8 %v83_v49  ;;  %v635_v49 = vld [vmem:[#allocation2 + $0x1168] sm:$0xff] }
 0x157   :  { %v5483_v22 = vpack.c.bf16 %v3419_v2, %v3395_v42  ;;  %v4522_v23 = vcvt.s32.f32 %v2218_v39  ;;  %v4882_v24 = vcvt.s32.f32 %v2578_v9  ;;  %v4906_v25 = vcvt.s32.f32 %v2602_v10  ;;  %v9353_v9 = vld [vmem:[#allocation2 + $0x7a8] sm:$0xff] }
 0x158   :  { %6810 = vmatpush.bf16.msrb.mxu2 %v5291_v26  ;;  %v2963_v27 = vcvt.s32.f32 %v659_v18  ;;  %v2987_v28 = vcvt.s32.f32 %v683_v19  ;;  %v1043_v30 = vunpack.c.0.s8 %v179_v55  ;;  %v1067_v32 = vunpack.c.1.s8 %v179_v55  ;;  %v9361_v19 = vld [vmem:[#allocation2 + $0xaa8] sm:$0xff] }
 0x159   :  { %v8938_v33 = vpop.eup %8937  ;;  %6823 = vmatpush.bf16.msrb.mxu3 %v5483_v22  ;;  %v6034_v34 = vpack.c.bf16 %v4522_v23, %v4498_v17  ;;  %v6226_v12 = vpack.c.bf16 %v4906_v25, %v4882_v24  ;;  %v1763_v45 = vunpack.c.2.s8 %v347_v20  ;;  %v1787_v50 = vunpack.c.3.s8 %v347_v20  ;;  %v9363_v25 = vpop.f32.mrf.mxu1 }
 0x15a   :  { %v9340_v35 = vadd.f32 1.0, %v8938_v33  ;;  %v5267_v61 = vpack.c.bf16 %v2987_v28, %v2963_v27  ;;  %v3347_v38 = vcvt.s32.f32 %v1043_v30  ;;  %v3371_v51 = vcvt.s32.f32 %v1067_v32 }
 0x15b   :  { %6785 = vmatpush.bf16.msrb.mxu0 %v6034_v34  ;;  %6798 = vmatpush.bf16.msrb.mxu1 %v6226_v12  ;;  %v4067_v40 = vcvt.s32.f32 %v1763_v45  ;;  %v4091_v41 = vcvt.s32.f32 %v1787_v50  ;;  %v2147_v47 = vunpack.c.2.s8 %v443_v59  ;;  %v2171_v13 = vunpack.c.3.s8 %v443_v59 }
 0x15c   :  { %8939 = vrcp.f32 %v9340_v35  ;;  %v8564_v37 = vand.u32 2147483648, %v9340_v35  ;;  %6811 = vmatpush.bf16.msrb.mxu2 %v5267_v61  ;;  %v5459_v43 = vpack.c.bf16 %v3371_v51, %v3347_v38  ;;  %v8562_v55 = vand.u32 2147483647, %v9340_v35 }
 0x15d   :  { %v5819_v52 = vpack.c.bf16 %v4091_v41, %v4067_v40  ;;  %v4451_v44 = vcvt.s32.f32 %v2147_v47  ;;  %v4475_v15 = vcvt.s32.f32 %v2171_v13  ;;  %v2531_v57 = vunpack.c.2.s8 %v539_v48  ;;  %v611_v40 = vld [vmem:[#allocation2 + $0x10a8] sm:$0xff]  ;;  %v6581_v41 = vpop.f32.mrf.mxu0 }
 0x15e   :  { %v9345_v53 = vor.u32 1.1754944e-38, %v8564_v37  ;;  %v2555_v58 = vunpack.c.3.s8 %v539_v48  ;;  %6786 = vmatmul.bf16.vlgmr.msrb.gmra.mxu0 %v9194_v11  ;;  %6799 = vmatmul.bf16.vlgmr.msrb.gmra.mxu1 %v9198_v16  ;;  %v2915_v54 = vunpack.c.2.s8 %v635_v49  ;;  %v2939_v31 = vunpack.c.3.s8 %v635_v49 }
 0x15f   :  { %6824 = vmatpush.bf16.msrb.mxu3 %v5459_v43  ;;  %6830 = vmatpush.bf16.msra.mxu0 %v5819_v52  ;;  %v6011_v46 = vpack.c.bf16 %v4475_v15, %v4451_v44  ;;  %v1715_v60 = vunpack.c.0.s8 %v347_v20  ;;  %v4835_v56 = vcvt.s32.f32 %v2531_v57  ;;  %v1739_v1 = vunpack.c.1.s8 %v347_v20 }
 0x160   :  { %v4859_v6 = vcvt.s32.f32 %v2555_v58  ;;  %v2099_v4 = vunpack.c.0.s8 %v443_v59  ;;  %6812 = vmatmul.bf16.vlgmr.msrb.gmra.mxu2 %v9163_v14  ;;  %vm8558_vm4 = vweird.f32 %v9340_v35  ;;  %v5219_v7 = vcvt.s32.f32 %v2915_v54 }
 0x161   :  { %6843 = vmatpush.bf16.msra.mxu1 %v6011_v46  ;;  %v5243_v3 = vcvt.s32.f32 %v2939_v31  ;;  %v4019_v29 = vcvt.s32.f32 %v1715_v60  ;;  %v2123_v21 = vunpack.c.1.s8 %v443_v59  ;;  %v4043_v8 = vcvt.s32.f32 %v1739_v1  ;;  %v515_v59 = vld [vmem:[#allocation2 + $0xda8] sm:$0xff] }
 0x162   :  { %v8940_v63 = vpop.eup %8939  ;;  %v6203_v42 = vpack.c.bf16 %v4859_v6, %v4835_v56  ;;  %v4403_v2 = vcvt.s32.f32 %v2099_v4  ;;  %v2483_v39 = vunpack.c.0.s8 %v539_v48  ;;  %6825 = vmatmul.bf16.vlgmr.msrb.gmra.mxu3 %v9169_v36  ;;  %vm9357_vm6 = vcmp.eq.f32.partialorder %v8562_v55, 8.507059e+37  ;;  %v6594_v4 = vpop.f32.mrf.mxu1 }
 0x163   :  { %v8554_v10 = vmul.f32 %v8940_v63, %v9340_v35  ;;  %vm8559_vm5 = vweird.f32 %v8940_v63  ;;  %v6395_v17 = vpack.c.bf16 %v5243_v3, %v5219_v7  ;;  %v4427_v18 = vcvt.s32.f32 %v2123_v21 }
 0x164   :  { %6856 = vmatpush.bf16.msra.mxu2 %v6203_v42  ;;  %v5795_v20 = vpack.c.bf16 %v4043_v8, %v4019_v29  ;;  %v2507_v22 = vunpack.c.1.s8 %v539_v48  ;;  %v4787_v23 = vcvt.s32.f32 %v2483_v39  ;;  %v2867_v24 = vunpack.c.0.s8 %v635_v49  ;;  %vm8560_vm7 = vmor %vm8558_vm4, %vm8559_vm5 }
 0x165   :  { %v8555_v27 = vsub.f32 1.0, %v8554_v10  ;;  %6869 = vmatpush.bf16.msra.mxu3 %v6395_v17  ;;  %v5987_v28 = vpack.c.bf16 %v4427_v18, %v4403_v2  ;;  %v2891_v30 = vunpack.c.1.s8 %v635_v49  ;;  %v1667_v32 = vunpack.c.2.s8 %v9353_v9  ;;  %v395_v17 = vld [vmem:[#allocation2 + $0x9e8] sm:$0xff] }
 0x166   :  { %6831 = vmatpush.bf16.msra.mxu0 %v5795_v20  ;;  %v4811_v33 = vcvt.s32.f32 %v2507_v22  ;;  %v5171_v34 = vcvt.s32.f32 %v2867_v24  ;;  %v1691_v12 = vunpack.c.3.s8 %v9353_v9  ;;  %v2051_v45 = vunpack.c.2.s8 %v9361_v19  ;;  %v491_v24 = vld [vmem:[#allocation2 + $0xce8] sm:$0xff] }
 0x167   :  { %v8556_v50 = vmul.f32 %v8940_v63, %v8555_v27  ;;  %6844 = vmatpush.bf16.msra.mxu1 %v5987_v28  ;;  %v5195_v61 = vcvt.s32.f32 %v2891_v30  ;;  %v3971_v38 = vcvt.s32.f32 %v1667_v32  ;;  %v2075_v51 = vunpack.c.3.s8 %v9361_v19  ;;  %v587_v32 = vld [vmem:[#allocation2 + $0xfe8] sm:$0xff] }
 0x168   :  { %v6179_v47 = vpack.c.bf16 %v4811_v33, %v4787_v23  ;;  %v3995_v13 = vcvt.s32.f32 %v1691_v12  ;;  %v4355_v48 = vcvt.s32.f32 %v2051_v45  ;;  %v2435_v37 = vunpack.c.2.s8 %v515_v59 }
 0x169   :  { %v8557_v49 = vadd.f32 %v8940_v63, %v8556_v50  ;;  %v6371_v43 = vpack.c.bf16 %v5195_v61, %v5171_v34  ;;  %v4379_v52 = vcvt.s32.f32 %v2075_v51  ;;  %v2459_v44 = vunpack.c.3.s8 %v515_v59 }
 0x16a   :  { %6857 = vmatpush.bf16.msra.mxu2 %v6179_v47  ;;  %v5771_v15 = vpack.c.bf16 %v3995_v13, %v3971_v38  ;;  %v4739_v55 = vcvt.s32.f32 %v2435_v37  ;;  %v2819_v57 = vunpack.c.2.s8 %v611_v40  ;;  %v2843_v58 = vunpack.c.3.s8 %v611_v40  ;;  %v9382_v13 = vpop.f32.mrf.mxu2 }
 0x16b   :  { %v8561_v46 = vsel %vm8560_vm7, %v8940_v63, %v8557_v49  ;;  %6870 = vmatpush.bf16.msra.mxu3 %v6371_v43  ;;  %v5963_v54 = vpack.c.bf16 %v4379_v52, %v4355_v48  ;;  %v4763_v31 = vcvt.s32.f32 %v2459_v44  ;;  %v1619_v60 = vunpack.c.0.s8 %v9353_v9  ;;  %v299_v63 = vld [vmem:[#allocation2 + $0x6e8] sm:$0xff] }
 0x16c   :  { %v8566_v56 = vsel %vm9357_vm6, %v9345_v53, %v8561_v46  ;;  %6832 = vmatpush.bf16.msra.mxu0 %v5771_v15  ;;  %v5123_v6 = vcvt.s32.f32 %v2819_v57  ;;  %v5147_v1 = vcvt.s32.f32 %v2843_v58  ;;  %v1643_v35 = vunpack.c.1.s8 %v9353_v9 }
 0x16d   :  { %8899 = vst [vmem:[%s10886_s4 + $0x8] sm:$0xff] %v8566_v56  ;;  %6845 = vmatpush.bf16.msra.mxu1 %v5963_v54  ;;  %v6155_v7 = vpack.c.bf16 %v4763_v31, %v4739_v55  ;;  %v3923_v3 = vcvt.s32.f32 %v1619_v60  ;;  %v2003_v29 = vunpack.c.0.s8 %v9361_v19  ;;  %v2027_v21 = vunpack.c.1.s8 %v9361_v19  ;;  %v9384_v31 = vld [vmem:[#allocation2 + $0x628] sm:$0xff] }
 0x16e   :  { %v6347_v42 = vpack.c.bf16 %v5147_v1, %v5123_v6  ;;  %v3947_v53 = vcvt.s32.f32 %v1643_v35  ;;  %v2387_v8 = vunpack.c.0.s8 %v515_v59  ;;  %v2411_v2 = vunpack.c.1.s8 %v515_v59 }
 0x16f   :  { %6858 = vmatpush.bf16.msra.mxu2 %v6155_v7  ;;  %v4307_v39 = vcvt.s32.f32 %v2003_v29  ;;  %v4331_v9 = vcvt.s32.f32 %v2027_v21  ;;  %v2771_v10 = vunpack.c.0.s8 %v611_v40  ;;  %v2795_v26 = vunpack.c.1.s8 %v611_v40  ;;  %v371_v29 = vld [vmem:[#allocation2 + $0x928] sm:$0xff]  ;;  %v9386_v21 = vpop.f32.mrf.mxu3 }
 0x170   :  { %6871 = vmatpush.bf16.msra.mxu3 %v6347_v42  ;;  %v5747_v18 = vpack.c.bf16 %v3947_v53, %v3923_v3  ;;  %v4691_v20 = vcvt.s32.f32 %v2387_v8  ;;  %v4715_v22 = vcvt.s32.f32 %v2411_v2  ;;  %v1571_v23 = vunpack.c.2.s8 %v299_v63 }
 0x171   :  { %v5939_v27 = vpack.c.bf16 %v4331_v9, %v4307_v39  ;;  %v5075_v28 = vcvt.s32.f32 %v2771_v10  ;;  %v5099_v19 = vcvt.s32.f32 %v2795_v26  ;;  %v1595_v30 = vunpack.c.3.s8 %v299_v63  ;;  %v467_v39 = vld [vmem:[#allocation2 + $0xc28] sm:$0xff] }
 0x172   :  { %6833 = vmatpush.bf16.msra.mxu0 %v5747_v18  ;;  %v6131_v33 = vpack.c.bf16 %v4715_v22, %v4691_v20  ;;  %v3875_v59 = vcvt.s32.f32 %v1571_v23  ;;  %v1955_v34 = vunpack.c.2.s8 %v395_v17  ;;  %v1979_v12 = vunpack.c.3.s8 %v395_v17  ;;  %v563_v18 = vld [vmem:[#allocation2 + $0xf28] sm:$0xff] }
 0x173   :  { %6846 = vmatpush.bf16.msra.mxu1 %v5939_v27  ;;  %v6323_v45 = vpack.c.bf16 %v5099_v19, %v5075_v28  ;;  %v3899_v50 = vcvt.s32.f32 %v1595_v30  ;;  %v2339_v61 = vunpack.c.2.s8 %v491_v24  ;;  %v2363_v38 = vunpack.c.3.s8 %v491_v24  ;;  %v6607_v27 = vpop.f32.mrf.mxu2 }
 0x174   :  { %6859 = vmatpush.bf16.msra.mxu2 %v6131_v33  ;;  %v4259_v51 = vcvt.s32.f32 %v1955_v34  ;;  %v4283_v40 = vcvt.s32.f32 %v1979_v12  ;;  %v2723_v41 = vunpack.c.2.s8 %v587_v32  ;;  %v2747_v47 = vunpack.c.3.s8 %v587_v32 }
 0x175   :  { %6872 = vmatpush.bf16.msra.mxu3 %v6323_v45  ;;  %v5723_v48 = vpack.c.bf16 %v3899_v50, %v3875_v59  ;;  %v4643_v37 = vcvt.s32.f32 %v2339_v61  ;;  %v4667_v49 = vcvt.s32.f32 %v2363_v38  ;;  %v1523_v43 = vunpack.c.0.s8 %v299_v63  ;;  %v9392_v45 = vpop.f32.mrf.mxu1 }
 0x176   :  { %v5915_v52 = vpack.c.bf16 %v4283_v40, %v4259_v51  ;;  %v5027_v44 = vcvt.s32.f32 %v2723_v41  ;;  %v5051_v15 = vcvt.s32.f32 %v2747_v47  ;;  %v1547_v55 = vunpack.c.1.s8 %v299_v63  ;;  %v9388_v63 = vpop.f32.mrf.mxu0 }
 0x177   :  { %6834 = vmatpush.bf16.msra.mxu0 %v5723_v48  ;;  %v6107_v57 = vpack.c.bf16 %v4667_v49, %v4643_v37  ;;  %v3827_v58 = vcvt.s32.f32 %v1523_v43  ;;  %v1907_v46 = vunpack.c.0.s8 %v395_v17  ;;  %v1931_v54 = vunpack.c.1.s8 %v395_v17 }
 0x178   :  { %6847 = vmatpush.bf16.msra.mxu1 %v5915_v52  ;;  %v6299_v60 = vpack.c.bf16 %v5051_v15, %v5027_v44  ;;  %v3851_v56 = vcvt.s32.f32 %v1547_v55  ;;  %v2291_v6 = vunpack.c.0.s8 %v491_v24  ;;  %v2315_v1 = vunpack.c.1.s8 %v491_v24  ;;  %v156_v44 = vld [vmem:[#allocation2 + $0x270] sm:$0xff]  ;;  %v6620_v15 = vpop.f32.mrf.mxu3 }
 0x179   :  { %6860 = vmatpush.bf16.msra.mxu2 %v6107_v57  ;;  %v4211_v35 = vcvt.s32.f32 %v1907_v46  ;;  %v4235_v4 = vcvt.s32.f32 %v1931_v54  ;;  %v2675_v7 = vunpack.c.0.s8 %v587_v32  ;;  %v2699_v3 = vunpack.c.1.s8 %v587_v32 }
 0x17a   :  { %6873 = vmatpush.bf16.msra.mxu3 %v6299_v60  ;;  %v5699_v42 = vpack.c.bf16 %v3851_v56, %v3827_v58  ;;  %v4595_v53 = vcvt.s32.f32 %v2291_v6  ;;  %v4619_v8 = vcvt.s32.f32 %v2315_v1  ;;  %v1475_v2 = vunpack.c.2.s8 %v9384_v31  ;;  %v252_v6 = vld [vmem:[#allocation2 + $0x570] sm:$0xff] }
 0x17b   :  { %v5891_v9 = vpack.c.bf16 %v4235_v4, %v4211_v35  ;;  %v4979_v10 = vcvt.s32.f32 %v2675_v7  ;;  %v5003_v26 = vcvt.s32.f32 %v2699_v3  ;;  %v1499_v17 = vunpack.c.3.s8 %v9384_v31  ;;  %v348_v7 = vld [vmem:[#allocation2 + $0x870] sm:$0xff] }
 0x17c   :  { %6835 = vmatpush.bf16.msra.mxu0 %v5699_v42  ;;  %v6083_v20 = vpack.c.bf16 %v4619_v8, %v4595_v53  ;;  %v3779_v22 = vcvt.s32.f32 %v1475_v2  ;;  %v1859_v23 = vunpack.c.2.s8 %v371_v29  ;;  %v1883_v24 = vunpack.c.3.s8 %v371_v29  ;;  %v444_v8 = vld [vmem:[#allocation2 + $0xb70] sm:$0xff] }
 0x17d   :  { %6848 = vmatpush.bf16.msra.mxu1 %v5891_v9  ;;  %v6275_v28 = vpack.c.bf16 %v5003_v26, %v4979_v10  ;;  %v3803_v19 = vcvt.s32.f32 %v1499_v17  ;;  %v2243_v30 = vunpack.c.2.s8 %v467_v39  ;;  %v2267_v32 = vunpack.c.3.s8 %v467_v39  ;;  %v6646_v26 = vpop.f32.mrf.mxu1 }
 0x17e   :  { %6861 = vmatpush.bf16.msra.mxu2 %v6083_v20  ;;  %v4163_v33 = vcvt.s32.f32 %v1859_v23  ;;  %v4187_v59 = vcvt.s32.f32 %v1883_v24  ;;  %v2627_v34 = vunpack.c.2.s8 %v563_v18  ;;  %v2651_v12 = vunpack.c.3.s8 %v563_v18  ;;  %v6633_v55 = vpop.f32.mrf.mxu0 }
 0x17f   :  { %6874 = vmatpush.bf16.msra.mxu3 %v6275_v28  ;;  %v5675_v50 = vpack.c.bf16 %v3803_v19, %v3779_v22  ;;  %v4547_v61 = vcvt.s32.f32 %v2243_v30  ;;  %v4571_v38 = vcvt.s32.f32 %v2267_v32  ;;  %v9396_v51 = vadd.f32 %v9363_v25, %v9349_v62 }
 0x180   :  { %v5867_v40 = vpack.c.bf16 %v4187_v59, %v4163_v33  ;;  %v4931_v41 = vcvt.s32.f32 %v2627_v34  ;;  %v4955_v47 = vcvt.s32.f32 %v2651_v12  ;;  %v1427_v48 = vunpack.c.0.s8 %v9384_v31 }
 0x181   :  { %6836 = vmatpush.bf16.msra.mxu0 %v5675_v50  ;;  %v6059_v37 = vpack.c.bf16 %v4571_v38, %v4547_v61  ;;  %v1451_v49 = vunpack.c.1.s8 %v9384_v31  ;;  %v1811_v43 = vunpack.c.0.s8 %v371_v29  ;;  %v1835_v52 = vunpack.c.1.s8 %v371_v29 }
 0x182   :  { %6849 = vmatpush.bf16.msra.mxu1 %v5867_v40  ;;  %v6251_v57 = vpack.c.bf16 %v4955_v47, %v4931_v41  ;;  %v3731_v58 = vcvt.s32.f32 %v1427_v48  ;;  %v2195_v46 = vunpack.c.0.s8 %v467_v39  ;;  %v2219_v62 = vunpack.c.1.s8 %v467_v39 }
 0x183   :  { %6862 = vmatpush.bf16.msra.mxu2 %v6059_v37  ;;  %v3755_v25 = vcvt.s32.f32 %v1451_v49  ;;  %v4115_v54 = vcvt.s32.f32 %v1811_v43  ;;  %v4139_v60 = vcvt.s32.f32 %v1835_v52  ;;  %v2579_v56 = vunpack.c.0.s8 %v563_v18  ;;  %v132_v43 = vld [vmem:[#allocation2 + $0x1b0] sm:$0xff] }
 0x184   :  { %6875 = vmatpush.bf16.msra.mxu3 %v6251_v57  ;;  %v4499_v1 = vcvt.s32.f32 %v2195_v46  ;;  %v4523_v35 = vcvt.s32.f32 %v2219_v62  ;;  %v2603_v31 = vunpack.c.1.s8 %v563_v18  ;;  %v996_v4 = vunpack.c.2.s8 %v156_v44  ;;  %v228_v57 = vld [vmem:[#allocation2 + $0x4b0] sm:$0xff] }
 0x185   :  { %v5651_v3 = vpack.c.bf16 %v3755_v25, %v3731_v58  ;;  %v5843_v29 = vpack.c.bf16 %v4139_v60, %v4115_v54  ;;  %v4883_v42 = vcvt.s32.f32 %v2579_v56  ;;  %v1020_v53 = vunpack.c.3.s8 %v156_v44  ;;  %v324_v54 = vld [vmem:[#allocation2 + $0x7b0] sm:$0xff] }
 0x186   :  { %v6035_v2 = vpack.c.bf16 %v4523_v35, %v4499_v1  ;;  %v4907_v9 = vcvt.s32.f32 %v2603_v31  ;;  %v3300_v39 = vcvt.s32.f32 %v996_v4  ;;  %v1380_v10 = vunpack.c.2.s8 %v252_v6 }
 0x187   :  { %6837 = vmatpush.bf16.msra.mxu0 %v5651_v3  ;;  %6850 = vmatpush.bf16.msra.mxu1 %v5843_v29  ;;  %v3324_v17 = vcvt.s32.f32 %v1020_v53  ;;  %v1404_v20 = vunpack.c.3.s8 %v252_v6  ;;  %v1764_v22 = vunpack.c.2.s8 %v348_v7  ;;  %v1788_v23 = vunpack.c.3.s8 %v348_v7  ;;  %v420_v3 = vld [vmem:[#allocation2 + $0xab0] sm:$0xff] }
 0x188   :  { %6863 = vmatpush.bf16.msra.mxu2 %v6035_v2  ;;  %v6227_v18 = vpack.c.bf16 %v4907_v9, %v4883_v42  ;;  %v3684_v24 = vcvt.s32.f32 %v1380_v10  ;;  %v2148_v27 = vunpack.c.2.s8 %v444_v8  ;;  %v2172_v28 = vunpack.c.3.s8 %v444_v8 }
 0x189   :  { %v5436_v19 = vpack.c.bf16 %v3324_v17, %v3300_v39  ;;  %v3708_v30 = vcvt.s32.f32 %v1404_v20  ;;  %v4068_v32 = vcvt.s32.f32 %v1764_v22  ;;  %v4092_v33 = vcvt.s32.f32 %v1788_v23 }
 0x18a   :  { %6876 = vmatpush.bf16.msra.mxu3 %v6227_v18  ;;  %v4452_v59 = vcvt.s32.f32 %v2148_v27  ;;  %v4476_v34 = vcvt.s32.f32 %v2172_v28  ;;  %6838 = vmatmul.bf16.vlgmr.msra.gmra.mxu0 %v9178_v0  ;;  %v948_v12 = vunpack.c.0.s8 %v156_v44  ;;  %v972_v50 = vunpack.c.1.s8 %v156_v44 }
 0x18b   :  { %6882 = vmatpush.bf16.msrb.mxu0 %v5436_v19  ;;  %v5628_v61 = vpack.c.bf16 %v3708_v30, %v3684_v24  ;;  %v5820_v38 = vpack.c.bf16 %v4092_v33, %v4068_v32  ;;  %6864 = vmatmul.bf16.vlgmr.msra.gmra.mxu2 %v9194_v11  ;;  %v1332_v40 = vunpack.c.0.s8 %v252_v6  ;;  %v1356_v41 = vunpack.c.1.s8 %v252_v6 }
 0x18c   :  { %v6012_v47 = vpack.c.bf16 %v4476_v34, %v4452_v59  ;;  %v3252_v48 = vcvt.s32.f32 %v948_v12  ;;  %v3276_v37 = vcvt.s32.f32 %v972_v50  ;;  %v1716_v49 = vunpack.c.0.s8 %v348_v7  ;;  %6851 = vmatmul.bf16.vlgmr.msra.gmra.mxu1 %v9180_v5 }
 0x18d   :  { %6895 = vmatpush.bf16.msrb.mxu1 %v5628_v61  ;;  %6908 = vmatpush.bf16.msrb.mxu2 %v5820_v38  ;;  %v3636_v52 = vcvt.s32.f32 %v1332_v40  ;;  %v3660_v15 = vcvt.s32.f32 %v1356_v41  ;;  %v1740_v55 = vunpack.c.1.s8 %v348_v7  ;;  %v2100_v44 = vunpack.c.0.s8 %v444_v8 }
 0x18e   :  { %6921 = vmatpush.bf16.msrb.mxu3 %v6012_v47  ;;  %v5412_v58 = vpack.c.bf16 %v3276_v37, %v3252_v48  ;;  %v4020_v46 = vcvt.s32.f32 %v1716_v49  ;;  %v2124_v62 = vunpack.c.1.s8 %v444_v8  ;;  %v6606_v25 = vadd.f32 %v9382_v13, %v9396_v51  ;;  %v108_v47 = vld [vmem:[#allocation2 + $0xf0] sm:$0xff] }
 0x18f   :  { %6877 = vmatmul.bf16.vlgmr.msra.gmra.mxu3 %v9198_v16  ;;  %v5604_v60 = vpack.c.bf16 %v3660_v15, %v3636_v52  ;;  %v4044_v56 = vcvt.s32.f32 %v1740_v55  ;;  %v4404_v6 = vcvt.s32.f32 %v2100_v44  ;;  %v900_v1 = vunpack.c.2.s8 %v132_v43  ;;  %v9409_v44 = vld [vmem:[#allocation4] sm:$0xff] }
 0x190   :  { %6883 = vmatpush.bf16.msrb.mxu0 %v5412_v58  ;;  %v4428_v35 = vcvt.s32.f32 %v2124_v62  ;;  %v924_v31 = vunpack.c.3.s8 %v132_v43  ;;  %v1284_v4 = vunpack.c.2.s8 %v228_v57  ;;  %v1308_v7 = vunpack.c.3.s8 %v228_v57  ;;  %v300_v58 = vld [vmem:[#allocation2 + $0x6f0] sm:$0xff]  ;;  %v9412_v62 = vld [vmem:[#allocation6] sm:$0xff] }
 0x191   :  { %6896 = vmatpush.bf16.msrb.mxu1 %v5604_v60  ;;  %v5796_v29 = vpack.c.bf16 %v4044_v56, %v4020_v46  ;;  %v3204_v42 = vcvt.s32.f32 %v900_v1  ;;  %v1668_v53 = vunpack.c.2.s8 %v324_v54  ;;  %v1692_v8 = vunpack.c.3.s8 %v324_v54  ;;  %v396_v56 = vld [vmem:[#allocation2 + $0x9f0] sm:$0xff] }
 0x192   :  { %v5988_v2 = vpack.c.bf16 %v4428_v35, %v4404_v6  ;;  %v3228_v13 = vcvt.s32.f32 %v924_v31  ;;  %v3588_v51 = vcvt.s32.f32 %v1284_v4  ;;  %v3612_v9 = vcvt.s32.f32 %v1308_v7 }
 0x193   :  { %6909 = vmatpush.bf16.msrb.mxu2 %v5796_v29  ;;  %v3972_v39 = vcvt.s32.f32 %v1668_v53  ;;  %v3996_v10 = vcvt.s32.f32 %v1692_v8  ;;  %v2052_v26 = vunpack.c.2.s8 %v420_v3  ;;  %v2076_v17 = vunpack.c.3.s8 %v420_v3  ;;  %v9415_v29 = vpop.f32.mrf.mxu2 }
 0x194   :  { %6922 = vmatpush.bf16.msrb.mxu3 %v5988_v2  ;;  %v5388_v20 = vpack.c.bf16 %v3228_v13, %v3204_v42  ;;  %v5580_v22 = vpack.c.bf16 %v3612_v9, %v3588_v51  ;;  %v6619_v23 = vadd.f32 %v9386_v21, %v6606_v25  ;;  %v852_v18 = vunpack.c.0.s8 %v132_v43  ;;  %v9417_v13 = vpop.f32.mrf.mxu3 }
 0x195   :  { %v5772_v24 = vpack.c.bf16 %v3996_v10, %v3972_v39  ;;  %v4356_v27 = vcvt.s32.f32 %v2052_v26  ;;  %v4380_v28 = vcvt.s32.f32 %v2076_v17  ;;  %v876_v19 = vunpack.c.1.s8 %v132_v43 }
 0x196   :  { %6884 = vmatpush.bf16.msrb.mxu0 %v5388_v20  ;;  %6897 = vmatpush.bf16.msrb.mxu1 %v5580_v22  ;;  %v6632_v30 = vadd.f32 %v9388_v63, %v6619_v23  ;;  %v3156_v32 = vcvt.s32.f32 %v852_v18  ;;  %v1236_v33 = vunpack.c.0.s8 %v228_v57  ;;  %v1260_v59 = vunpack.c.1.s8 %v228_v57  ;;  %v204_v63 = vld [vmem:[#allocation2 + $0x3f0] sm:$0xff] }
 0x197   :  { %6910 = vmatpush.bf16.msrb.mxu2 %v5772_v24  ;;  %v5964_v34 = vpack.c.bf16 %v4380_v28, %v4356_v27  ;;  %v3180_v12 = vcvt.s32.f32 %v876_v19  ;;  %v1620_v50 = vunpack.c.0.s8 %v324_v54  ;;  %v1644_v61 = vunpack.c.1.s8 %v324_v54 }
 0x198   :  { %v3540_v38 = vcvt.s32.f32 %v1236_v33  ;;  %v3564_v40 = vcvt.s32.f32 %v1260_v59  ;;  %v2004_v21 = vunpack.c.0.s8 %v420_v3  ;;  %v2028_v41 = vunpack.c.1.s8 %v420_v3  ;;  %v84_v33 = vld [vmem:[#allocation2 + $0x30] sm:$0xff] }
 0x199   :  { %6923 = vmatpush.bf16.msrb.mxu3 %v5964_v34  ;;  %v5364_v48 = vpack.c.bf16 %v3180_v12, %v3156_v32  ;;  %v3924_v37 = vcvt.s32.f32 %v1620_v50  ;;  %v3948_v49 = vcvt.s32.f32 %v1644_v61  ;;  %v6645_v43 = vadd.f32 %v9392_v45, %v6632_v30  ;;  %v9419_v61 = vld [vmem:[#allocation2 + $0x330] sm:$0xff] }
 0x19a   :  { %v5556_v52 = vpack.c.bf16 %v3564_v40, %v3540_v38  ;;  %v4308_v15 = vcvt.s32.f32 %v2004_v21  ;;  %v4332_v55 = vcvt.s32.f32 %v2028_v41  ;;  %v8294_v57 = vperm.slane %v9409_v44, 2 }
 0x19b   :  { %6885 = vmatpush.bf16.msrb.mxu0 %v5364_v48  ;;  %v5748_v46 = vpack.c.bf16 %v3948_v49, %v3924_v37  ;;  %v8372_v25 = vperm.slane %v9412_v62, 2  ;;  %v804_v54 = vunpack.c.2.s8 %v108_v47  ;;  %v828_v60 = vunpack.c.3.s8 %v108_v47  ;;  %v276_v49 = vld [vmem:[#allocation2 + $0x630] sm:$0xff] }
 0x19c   :  { %6898 = vmatpush.bf16.msrb.mxu1 %v5556_v52  ;;  %v5940_v45 = vpack.c.bf16 %v4332_v55, %v4308_v15  ;;  %v8342_v6 = vmul.f32 %v8294_v57, %v6645_v43  ;;  %v1188_v1 = vunpack.c.2.s8 %v204_v63  ;;  %v1212_v35 = vunpack.c.3.s8 %v204_v63  ;;  %v6659_v43 = vpop.f32.mrf.mxu2  ;;  %v372_v57 = vld [vmem:[#allocation2 + $0x930] sm:$0xff] }
 0x19d   :  { %6911 = vmatpush.bf16.msrb.mxu2 %v5748_v46  ;;  %v3108_v31 = vcvt.s32.f32 %v804_v54  ;;  %v3132_v4 = vcvt.s32.f32 %v828_v60  ;;  %v1572_v7 = vunpack.c.2.s8 %v300_v58  ;;  %v1596_v3 = vunpack.c.3.s8 %v300_v58 }
 0x19e   :  { %6924 = vmatpush.bf16.msrb.mxu3 %v5940_v45  ;;  %v8420_v42 = vadd.f32 %v8372_v25, %v8342_v6  ;;  %v3492_v53 = vcvt.s32.f32 %v1188_v1  ;;  %v3516_v8 = vcvt.s32.f32 %v1212_v35  ;;  %v1956_v2 = vunpack.c.2.s8 %v396_v56 }
 0x19f   :  { %v5340_v51 = vpack.c.bf16 %v3132_v4, %v3108_v31  ;;  %v3876_v9 = vcvt.s32.f32 %v1572_v7  ;;  %v3900_v39 = vcvt.s32.f32 %v1596_v3  ;;  %v1980_v10 = vunpack.c.3.s8 %v396_v56 }
 0x1a0   :  { %v8444_v26 = vsub.f32 0.0, %v8420_v42  ;;  %v5532_v17 = vpack.c.bf16 %v3516_v8, %v3492_v53  ;;  %v4260_v20 = vcvt.s32.f32 %v1956_v2  ;;  %v756_v22 = vunpack.c.0.s8 %v108_v47 }
 0x1a1   :  { %6886 = vmatpush.bf16.msrb.mxu0 %v5340_v51  ;;  %v5724_v23 = vpack.c.bf16 %v3900_v39, %v3876_v9  ;;  %v4284_v18 = vcvt.s32.f32 %v1980_v10  ;;  %v780_v24 = vunpack.c.1.s8 %v108_v47  ;;  %v1140_v27 = vunpack.c.0.s8 %v204_v63 }
 0x1a2   :  { %v8470_v28 = vmul.f32 1.442695, %v8444_v26  ;;  %6899 = vmatpush.bf16.msrb.mxu1 %v5532_v17  ;;  %v3060_v19 = vcvt.s32.f32 %v756_v22  ;;  %v1164_v30 = vunpack.c.1.s8 %v204_v63  ;;  %v1524_v32 = vunpack.c.0.s8 %v300_v58 }
 0x1a3   :  { %6912 = vmatpush.bf16.msrb.mxu2 %v5724_v23  ;;  %v5916_v59 = vpack.c.bf16 %v4284_v18, %v4260_v20  ;;  %v3084_v34 = vcvt.s32.f32 %v780_v24  ;;  %v3444_v12 = vcvt.s32.f32 %v1140_v27  ;;  %v1548_v50 = vunpack.c.1.s8 %v300_v58  ;;  %v6672_v58 = vpop.f32.mrf.mxu3  ;;  %v9426_v23 = vpop.f32.mrf.mxu0 }
 0x1a4   :  { %8941 = vpow2.f32 %v8470_v28  ;;  %v3468_v38 = vcvt.s32.f32 %v1164_v30  ;;  %v3828_v40 = vcvt.s32.f32 %v1524_v32  ;;  %v1908_v21 = vunpack.c.0.s8 %v396_v56  ;;  %v9428_v18 = vpop.f32.mrf.mxu1  ;;  %v9433_v32 = vld [vmem:[#allocation2 + $0xe70] sm:$0xff] }
 0x1a5   :  { %6925 = vmatpush.bf16.msrb.mxu3 %v5916_v59  ;;  %v5316_v41 = vpack.c.bf16 %v3084_v34, %v3060_v19  ;;  %v3852_v47 = vcvt.s32.f32 %v1548_v50  ;;  %v1932_v48 = vunpack.c.1.s8 %v396_v56  ;;  %v708_v37 = vunpack.c.2.s8 %v84_v33  ;;  %v9438_v50 = vld [vmem:[#allocation2 + $0x1170] sm:$0xff] }
 0x1a6   :  { %v5508_v63 = vpack.c.bf16 %v3468_v38, %v3444_v12  ;;  %v4212_v52 = vcvt.s32.f32 %v1908_v21  ;;  %v732_v15 = vunpack.c.3.s8 %v84_v33  ;;  %v1092_v55 = vunpack.c.2.s8 %v9419_v61 }
 0x1a7   :  { %6887 = vmatpush.bf16.msrb.mxu0 %v5316_v41  ;;  %v5700_v46 = vpack.c.bf16 %v3852_v47, %v3828_v40  ;;  %v4236_v25 = vcvt.s32.f32 %v1932_v48  ;;  %v3012_v54 = vcvt.s32.f32 %v708_v37  ;;  %v1116_v60 = vunpack.c.3.s8 %v9419_v61 }
 0x1a8   :  { %6900 = vmatpush.bf16.msrb.mxu1 %v5508_v63  ;;  %v3036_v45 = vcvt.s32.f32 %v732_v15  ;;  %v3396_v6 = vcvt.s32.f32 %v1092_v55  ;;  %v1476_v56 = vunpack.c.2.s8 %v276_v49  ;;  %v1500_v1 = vunpack.c.3.s8 %v276_v49  ;;  %v9444_v15 = vld [vmem:[#allocation2 + $0x278] sm:$0xff]  ;;  %v9446_v55 = vpop.f32.mrf.mxu2 }
 0x1a9   :  { %6913 = vmatpush.bf16.msrb.mxu2 %v5700_v46  ;;  %v5892_v35 = vpack.c.bf16 %v4236_v25, %v4212_v52  ;;  %v3420_v31 = vcvt.s32.f32 %v1116_v60  ;;  %v1860_v4 = vunpack.c.2.s8 %v372_v57  ;;  %v1884_v7 = vunpack.c.3.s8 %v372_v57 }
 0x1aa   :  { %v8942_v3 = vpop.eup %8941  ;;  %v5292_v42 = vpack.c.bf16 %v3036_v45, %v3012_v54  ;;  %v3780_v53 = vcvt.s32.f32 %v1476_v56  ;;  %v3804_v8 = vcvt.s32.f32 %v1500_v1  ;;  %v660_v2 = vunpack.c.0.s8 %v84_v33  ;;  %v9453_v45 = vld [vmem:[#allocation2 + $0x578] sm:$0xff] }
 0x1ab   :  { %v9423_v51 = vadd.f32 1.0, %v8942_v3  ;;  %6926 = vmatpush.bf16.msrb.mxu3 %v5892_v35  ;;  %v5484_v9 = vpack.c.bf16 %v3420_v31, %v3396_v6  ;;  %v4164_v39 = vcvt.s32.f32 %v1860_v4  ;;  %v4188_v10 = vcvt.s32.f32 %v1884_v7  ;;  %v9448_v58 = vpop.f32.mrf.mxu3  ;;  %v6685_v31 = vpop.f32.mrf.mxu0 }
 0x1ac   :  { %6888 = vmatpush.bf16.msrb.mxu0 %v5292_v42  ;;  %v5676_v26 = vpack.c.bf16 %v3804_v8, %v3780_v53  ;;  %v684_v17 = vunpack.c.1.s8 %v84_v33  ;;  %v2964_v20 = vcvt.s32.f32 %v660_v2  ;;  %v1044_v22 = vunpack.c.0.s8 %v9419_v61  ;;  %v6698_v4 = vpop.f32.mrf.mxu1 }
 0x1ad   :  { %8943 = vrcp.f32 %v9423_v51  ;;  %v8579_v24 = vand.u32 2147483648, %v9423_v51  ;;  %6901 = vmatpush.bf16.msrb.mxu1 %v5484_v9  ;;  %v5868_v27 = vpack.c.bf16 %v4188_v10, %v4164_v39  ;;  %v1068_v19 = vunpack.c.1.s8 %v9419_v61 }
 0x1ae   :  { %6914 = vmatpush.bf16.msrb.mxu2 %v5676_v26  ;;  %v2988_v28 = vcvt.s32.f32 %v684_v17  ;;  %v3348_v30 = vcvt.s32.f32 %v1044_v22  ;;  %v8577_v33 = vand.u32 2147483647, %v9423_v51  ;;  %v1428_v34 = vunpack.c.0.s8 %v276_v49 }
 0x1af   :  { %v9436_v59 = vor.u32 1.1754944e-38, %v8579_v24  ;;  %v1452_v12 = vunpack.c.1.s8 %v276_v49  ;;  %vm8573_vm8 = vweird.f32 %v9423_v51  ;;  %6927 = vmatpush.bf16.msrb.mxu3 %v5868_v27  ;;  %v3372_v40 = vcvt.s32.f32 %v1068_v19 }
 0x1b0   :  { %v5268_v38 = vpack.c.bf16 %v2988_v28, %v2964_v20  ;;  %v1812_v21 = vunpack.c.0.s8 %v372_v57  ;;  %v1836_v41 = vunpack.c.1.s8 %v372_v57  ;;  %v3732_v47 = vcvt.s32.f32 %v1428_v34 }
 0x1b1   :  { %v3756_v61 = vcvt.s32.f32 %v1452_v12  ;;  %v2532_v48 = vunpack.c.2.s8 %v9433_v32  ;;  %v2556_v37 = vunpack.c.3.s8 %v9433_v32  ;;  %v5460_v43 = vpack.c.bf16 %v3372_v40, %v3348_v30  ;;  %v6711_v40 = vpop.f32.mrf.mxu2 }
 0x1b2   :  { %6889 = vmatpush.bf16.msrb.mxu0 %v5268_v38  ;;  %v4116_v63 = vcvt.s32.f32 %v1812_v21  ;;  %v4140_v52 = vcvt.s32.f32 %v1836_v41  ;;  %v2916_v49 = vunpack.c.2.s8 %v9438_v50  ;;  %v2940_v60 = vunpack.c.3.s8 %v9438_v50 }
 0x1b3   :  { %v9450_v46 = vpop.eup %8943  ;;  %v5652_v57 = vpack.c.bf16 %v3756_v61, %v3732_v47  ;;  %v4836_v25 = vcvt.s32.f32 %v2532_v48  ;;  %v4860_v54 = vcvt.s32.f32 %v2556_v37  ;;  %vm9458_vm10 = vcmp.eq.f32.partialorder %v8577_v33, 8.507059e+37  ;;  %6902 = vmatpush.bf16.msrb.mxu1 %v5460_v43  ;;  %v6724_v21 = vpop.f32.mrf.mxu3  ;;  %v516_v61 = vld [vmem:[#allocation2 + $0xdb0] sm:$0xff] }
 0x1b4   :  { %v8569_v6 = vmul.f32 %v9450_v46, %v9423_v51  ;;  %vm8574_vm9 = vweird.f32 %v9450_v46  ;;  %v5844_v1 = vpack.c.bf16 %v4140_v52, %v4116_v63  ;;  %v5220_v35 = vcvt.s32.f32 %v2916_v49  ;;  %v612_v48 = vld [vmem:[#allocation2 + $0x10b0] sm:$0xff]  ;;  %v133_v49 = vld [vmem:[#allocation2 + $0x1b8] sm:$0xff] }
 0x1b5   :  { %6915 = vmatpush.bf16.msrb.mxu2 %v5652_v57  ;;  %v6204_v7 = vpack.c.bf16 %v4860_v54, %v4836_v25  ;;  %v5244_v3 = vcvt.s32.f32 %v2940_v60  ;;  %v997_v42 = vunpack.c.2.s8 %v9444_v15  ;;  %v1021_v53 = vunpack.c.3.s8 %v9444_v15  ;;  %6890 = vmatmul.bf16.vlgmr.msrb.gmra.mxu0 %v9163_v14  ;;  %vm8575_vm11 = vmor %vm8573_vm8, %vm8574_vm9 }
 0x1b6   :  { %v8570_v8 = vsub.f32 1.0, %v8569_v6  ;;  %6928 = vmatpush.bf16.msrb.mxu3 %v5844_v1  ;;  %v1381_v2 = vunpack.c.2.s8 %v9453_v45  ;;  %v1405_v9 = vunpack.c.3.s8 %v9453_v45  ;;  %v9469_v39 = vadd.f32 %v9417_v13, %v9415_v29  ;;  %6903 = vmatmul.bf16.vlgmr.msrb.gmra.mxu1 %v9169_v36  ;;  %v229_v1 = vld [vmem:[#allocation2 + $0x4b8] sm:$0xff] }
 0x1b7   :  { %6934 = vmatpush.bf16.msra.mxu0 %v6204_v7  ;;  %v6396_v10 = vpack.c.bf16 %v5244_v3, %v5220_v35  ;;  %v3301_v26 = vcvt.s32.f32 %v997_v42  ;;  %v3325_v17 = vcvt.s32.f32 %v1021_v53  ;;  %v2484_v20 = vunpack.c.0.s8 %v9433_v32 }
 0x1b8   :  { %v8571_v22 = vmul.f32 %v9450_v46, %v8570_v8  ;;  %v3685_v24 = vcvt.s32.f32 %v1381_v2  ;;  %v3709_v27 = vcvt.s32.f32 %v1405_v9  ;;  %v2508_v28 = vunpack.c.1.s8 %v9433_v32  ;;  %6916 = vmatmul.bf16.vlgmr.msrb.gmra.mxu2 %v9178_v0 }
 0x1b9   :  { %6947 = vmatpush.bf16.msra.mxu1 %v6396_v10  ;;  %v5437_v19 = vpack.c.bf16 %v3325_v17, %v3301_v26  ;;  %v4788_v29 = vcvt.s32.f32 %v2484_v20  ;;  %v2868_v13 = vunpack.c.0.s8 %v9438_v50  ;;  %v2892_v30 = vunpack.c.1.s8 %v9438_v50  ;;  %6929 = vmatmul.bf16.vlgmr.msrb.gmra.mxu3 %v9180_v5 }
 0x1ba   :  { %v8572_v33 = vadd.f32 %v9450_v46, %v8571_v22  ;;  %v5629_v34 = vpack.c.bf16 %v3709_v27, %v3685_v24  ;;  %v4812_v12 = vcvt.s32.f32 %v2508_v28  ;;  %v949_v38 = vunpack.c.0.s8 %v9444_v15 }
 0x1bb   :  { %6960 = vmatpush.bf16.msra.mxu2 %v5437_v19  ;;  %v5172_v32 = vcvt.s32.f32 %v2868_v13  ;;  %v5196_v41 = vcvt.s32.f32 %v2892_v30  ;;  %v973_v50 = vunpack.c.1.s8 %v9444_v15  ;;  %v1333_v47 = vunpack.c.0.s8 %v9453_v45 }
 0x1bc   :  { %v8576_v37 = vsel %vm8575_vm11, %v9450_v46, %v8572_v33  ;;  %6973 = vmatpush.bf16.msra.mxu3 %v5629_v34  ;;  %v6180_v43 = vpack.c.bf16 %v4812_v12, %v4788_v29  ;;  %v3253_v63 = vcvt.s32.f32 %v949_v38  ;;  %v1357_v52 = vunpack.c.1.s8 %v9453_v45  ;;  %v492_v38 = vld [vmem:[#allocation2 + $0xcf0] sm:$0xff] }
 0x1bd   :  { %v8581_v51 = vsel %vm9458_vm10, %v9436_v59, %v8576_v37  ;;  %v6372_v57 = vpack.c.bf16 %v5196_v41, %v5172_v32  ;;  %v3277_v25 = vcvt.s32.f32 %v973_v50  ;;  %v3637_v54 = vcvt.s32.f32 %v1333_v47  ;;  %v588_v50 = vld [vmem:[#allocation2 + $0xff0] sm:$0xff] }
 0x1be   :  { %8900 = vst [vmem:[%s10886_s4 + $0x10] sm:$0xff] %v8581_v51  ;;  %6935 = vmatpush.bf16.msra.mxu0 %v6180_v43  ;;  %v3661_v15 = vcvt.s32.f32 %v1357_v52  ;;  %v2436_v46 = vunpack.c.2.s8 %v516_v61  ;;  %v2460_v60 = vunpack.c.3.s8 %v516_v61  ;;  %v2820_v6 = vunpack.c.2.s8 %v612_v48 }
 0x1bf   :  { %6948 = vmatpush.bf16.msra.mxu1 %v6372_v57  ;;  %v5413_v45 = vpack.c.bf16 %v3277_v25, %v3253_v63  ;;  %v2844_v35 = vunpack.c.3.s8 %v612_v48  ;;  %v901_v31 = vunpack.c.2.s8 %v133_v49  ;;  %v925_v4 = vunpack.c.3.s8 %v133_v49  ;;  %v109_v63 = vld [vmem:[#allocation2 + $0xf8] sm:$0xff] }
 0x1c0   :  { %v5605_v56 = vpack.c.bf16 %v3661_v15, %v3637_v54  ;;  %v4740_v59 = vcvt.s32.f32 %v2436_v46  ;;  %v4764_v7 = vcvt.s32.f32 %v2460_v60  ;;  %v5124_v3 = vcvt.s32.f32 %v2820_v6  ;;  %v205_v57 = vld [vmem:[#allocation2 + $0x3f8] sm:$0xff] }
 0x1c1   :  { %6961 = vmatpush.bf16.msra.mxu2 %v5413_v45  ;;  %v5148_v42 = vcvt.s32.f32 %v2844_v35  ;;  %v3205_v53 = vcvt.s32.f32 %v901_v31  ;;  %v3229_v8 = vcvt.s32.f32 %v925_v4  ;;  %v1285_v2 = vunpack.c.2.s8 %v229_v1 }
 0x1c2   :  { %6974 = vmatpush.bf16.msra.mxu3 %v5605_v56  ;;  %v6156_v9 = vpack.c.bf16 %v4764_v7, %v4740_v59  ;;  %v1309_v10 = vunpack.c.3.s8 %v229_v1  ;;  %v2388_v26 = vunpack.c.0.s8 %v516_v61  ;;  %v2412_v17 = vunpack.c.1.s8 %v516_v61 }
 0x1c3   :  { %v6348_v20 = vpack.c.bf16 %v5148_v42, %v5124_v3  ;;  %v5389_v22 = vpack.c.bf16 %v3229_v8, %v3205_v53  ;;  %v3589_v24 = vcvt.s32.f32 %v1285_v2  ;;  %v2772_v27 = vunpack.c.0.s8 %v612_v48 }
 0x1c4   :  { %6936 = vmatpush.bf16.msra.mxu0 %v6156_v9  ;;  %v3613_v28 = vcvt.s32.f32 %v1309_v10  ;;  %v4692_v19 = vcvt.s32.f32 %v2388_v26  ;;  %v4716_v29 = vcvt.s32.f32 %v2412_v17  ;;  %v2796_v13 = vunpack.c.1.s8 %v612_v48 }
 0x1c5   :  { %6949 = vmatpush.bf16.msra.mxu1 %v6348_v20  ;;  %6962 = vmatpush.bf16.msra.mxu2 %v5389_v22  ;;  %v5076_v30 = vcvt.s32.f32 %v2772_v27  ;;  %v853_v33 = vunpack.c.0.s8 %v133_v49  ;;  %v877_v34 = vunpack.c.1.s8 %v133_v49  ;;  %v1237_v12 = vunpack.c.0.s8 %v229_v1 }
 0x1c6   :  { %v5581_v40 = vpack.c.bf16 %v3613_v28, %v3589_v24  ;;  %v6132_v21 = vpack.c.bf16 %v4716_v29, %v4692_v19  ;;  %v5100_v32 = vcvt.s32.f32 %v2796_v13  ;;  %v1261_v41 = vunpack.c.1.s8 %v229_v1  ;;  %v468_v19 = vld [vmem:[#allocation2 + $0xc30] sm:$0xff] }
 0x1c7   :  { %v3157_v47 = vcvt.s32.f32 %v853_v33  ;;  %v3181_v61 = vcvt.s32.f32 %v877_v34  ;;  %v3541_v37 = vcvt.s32.f32 %v1237_v12  ;;  %v6684_v43 = vadd.f32 %v9426_v23, %v9469_v39  ;;  %v564_v12 = vld [vmem:[#allocation2 + $0xf30] sm:$0xff] }
 0x1c8   :  { %6975 = vmatpush.bf16.msra.mxu3 %v5581_v40  ;;  %6937 = vmatpush.bf16.msra.mxu0 %v6132_v21  ;;  %v6324_v48 = vpack.c.bf16 %v5100_v32, %v5076_v30  ;;  %v3565_v52 = vcvt.s32.f32 %v1261_v41  ;;  %v2340_v51 = vunpack.c.2.s8 %v492_v38  ;;  %v2364_v49 = vunpack.c.3.s8 %v492_v38  ;;  %v85_v41 = vld [vmem:[#allocation2 + $0x38] sm:$0xff] }
 0x1c9   :  { %v5365_v25 = vpack.c.bf16 %v3181_v61, %v3157_v47  ;;  %v6697_v54 = vadd.f32 %v9428_v18, %v6684_v43  ;;  %v2724_v15 = vunpack.c.2.s8 %v588_v50  ;;  %v2748_v46 = vunpack.c.3.s8 %v588_v50  ;;  %v181_v43 = vld [vmem:[#allocation2 + $0x338] sm:$0xff] }
 0x1ca   :  { %6950 = vmatpush.bf16.msra.mxu1 %v6324_v48  ;;  %v5557_v60 = vpack.c.bf16 %v3565_v52, %v3541_v37  ;;  %v4644_v6 = vcvt.s32.f32 %v2340_v51  ;;  %v4668_v1 = vcvt.s32.f32 %v2364_v49  ;;  %v805_v45 = vunpack.c.2.s8 %v109_v63 }
 0x1cb   :  { %6963 = vmatpush.bf16.msra.mxu2 %v5365_v25  ;;  %v5028_v23 = vcvt.s32.f32 %v2724_v15  ;;  %v5052_v39 = vcvt.s32.f32 %v2748_v46  ;;  %v829_v35 = vunpack.c.3.s8 %v109_v63  ;;  %v1189_v31 = vunpack.c.2.s8 %v205_v57 }
 0x1cc   :  { %6976 = vmatpush.bf16.msra.mxu3 %v5557_v60  ;;  %v6108_v4 = vpack.c.bf16 %v4668_v1, %v4644_v6  ;;  %v3109_v56 = vcvt.s32.f32 %v805_v45  ;;  %v1213_v59 = vunpack.c.3.s8 %v205_v57  ;;  %v6710_v7 = vadd.f32 %v9446_v55, %v6697_v54 }
 0x1cd   :  { %v6300_v3 = vpack.c.bf16 %v5052_v39, %v5028_v23  ;;  %v3133_v18 = vcvt.s32.f32 %v829_v35  ;;  %v3493_v42 = vcvt.s32.f32 %v1189_v31  ;;  %v8295_v53 = vperm.slane %v9409_v44, 3 }
 0x1ce   :  { %6938 = vmatpush.bf16.msra.mxu0 %v6108_v4  ;;  %v3517_v8 = vcvt.s32.f32 %v1213_v59  ;;  %v6723_v2 = vadd.f32 %v9448_v58, %v6710_v7  ;;  %v8373_v9 = vperm.slane %v9412_v62, 3  ;;  %v2292_v10 = vunpack.c.0.s8 %v492_v38 }
 0x1cf   :  { %6951 = vmatpush.bf16.msra.mxu1 %v6300_v3  ;;  %v5341_v26 = vpack.c.bf16 %v3133_v18, %v3109_v56  ;;  %v2316_v17 = vunpack.c.1.s8 %v492_v38  ;;  %v2676_v20 = vunpack.c.0.s8 %v588_v50  ;;  %v2700_v22 = vunpack.c.1.s8 %v588_v50 }
 0x1d0   :  { %v5533_v24 = vpack.c.bf16 %v3517_v8, %v3493_v42  ;;  %v8343_v27 = vmul.f32 %v8295_v53, %v6723_v2  ;;  %v4596_v55 = vcvt.s32.f32 %v2292_v10  ;;  %v757_v28 = vunpack.c.0.s8 %v109_v63  ;;  %v349_v2 = vld [vmem:[#allocation2 + $0x878] sm:$0xff] }
 0x1d1   :  { %6964 = vmatpush.bf16.msra.mxu2 %v5341_v26  ;;  %v4620_v29 = vcvt.s32.f32 %v2316_v17  ;;  %v4980_v44 = vcvt.s32.f32 %v2676_v20  ;;  %v5004_v13 = vcvt.s32.f32 %v2700_v22  ;;  %v781_v30 = vunpack.c.1.s8 %v109_v63 }
 0x1d2   :  { %6977 = vmatpush.bf16.msra.mxu3 %v5533_v24  ;;  %v8421_v58 = vadd.f32 %v8373_v9, %v8343_v27  ;;  %v3061_v33 = vcvt.s32.f32 %v757_v28  ;;  %v1141_v62 = vunpack.c.0.s8 %v205_v57  ;;  %v1165_v34 = vunpack.c.1.s8 %v205_v57 }
 0x1d3   :  { %v6084_v40 = vpack.c.bf16 %v4620_v29, %v4596_v55  ;;  %v6276_v38 = vpack.c.bf16 %v5004_v13, %v4980_v44  ;;  %v3085_v21 = vcvt.s32.f32 %v781_v30  ;;  %v2244_v32 = vunpack.c.2.s8 %v468_v19  ;;  %v445_v55 = vld [vmem:[#allocation2 + $0xb78] sm:$0xff] }
 0x1d4   :  { %v8445_v50 = vsub.f32 0.0, %v8421_v58  ;;  %v3445_v47 = vcvt.s32.f32 %v1141_v62  ;;  %v3469_v61 = vcvt.s32.f32 %v1165_v34  ;;  %v2268_v37 = vunpack.c.3.s8 %v468_v19 }
 0x1d5   :  { %6939 = vmatpush.bf16.msra.mxu0 %v6084_v40  ;;  %6952 = vmatpush.bf16.msra.mxu1 %v6276_v38  ;;  %v5317_v48 = vpack.c.bf16 %v3085_v21, %v3061_v33  ;;  %v4548_v63 = vcvt.s32.f32 %v2244_v32  ;;  %v2628_v52 = vunpack.c.2.s8 %v564_v12  ;;  %v2652_v51 = vunpack.c.3.s8 %v564_v12  ;;  %v541_v21 = vld [vmem:[#allocation2 + $0xe78] sm:$0xff] }
 0x1d6   :  { %v8472_v49 = vmul.f32 1.442695, %v8445_v50  ;;  %v5509_v25 = vpack.c.bf16 %v3469_v61, %v3445_v47  ;;  %v4572_v57 = vcvt.s32.f32 %v2268_v37  ;;  %v709_v54 = vunpack.c.2.s8 %v85_v41 }
 0x1d7   :  { %6965 = vmatpush.bf16.msra.mxu2 %v5317_v48  ;;  %v4932_v15 = vcvt.s32.f32 %v2628_v52  ;;  %v4956_v46 = vcvt.s32.f32 %v2652_v51  ;;  %v733_v60 = vunpack.c.3.s8 %v85_v41  ;;  %v1093_v6 = vunpack.c.2.s8 %v181_v43 }
 0x1d8   :  { %8945 = vpow2.f32 %v8472_v49  ;;  %6978 = vmatpush.bf16.msra.mxu3 %v5509_v25  ;;  %v6060_v1 = vpack.c.bf16 %v4572_v57, %v4548_v63  ;;  %v3013_v45 = vcvt.s32.f32 %v709_v54  ;;  %v1117_v23 = vunpack.c.3.s8 %v181_v43  ;;  %v9511_v54 = vpop.f32.mrf.mxu0 }
 0x1d9   :  { %v6252_v39 = vpack.c.bf16 %v4956_v46, %v4932_v15  ;;  %v3037_v35 = vcvt.s32.f32 %v733_v60  ;;  %v3397_v31 = vcvt.s32.f32 %v1093_v6  ;;  %v2196_v4 = vunpack.c.0.s8 %v468_v19 }
 0x1da   :  { %6940 = vmatpush.bf16.msra.mxu0 %v6060_v1  ;;  %v3421_v56 = vcvt.s32.f32 %v1117_v23  ;;  %v2220_v59 = vunpack.c.1.s8 %v468_v19  ;;  %v2580_v7 = vunpack.c.0.s8 %v564_v12  ;;  %v2604_v3 = vunpack.c.1.s8 %v564_v12 }
 0x1db   :  { %6953 = vmatpush.bf16.msra.mxu1 %v6252_v39  ;;  %v5293_v18 = vpack.c.bf16 %v3037_v35, %v3013_v45  ;;  %v4500_v42 = vcvt.s32.f32 %v2196_v4  ;;  %v661_v53 = vunpack.c.0.s8 %v85_v41  ;;  %v685_v8 = vunpack.c.1.s8 %v85_v41  ;;  %v637_v41 = vld [vmem:[#allocation2 + $0x1178] sm:$0xff] }
 0x1dc   :  { %v5485_v9 = vpack.c.bf16 %v3421_v56, %v3397_v31  ;;  %v4524_v10 = vcvt.s32.f32 %v2220_v59  ;;  %v4884_v26 = vcvt.s32.f32 %v2580_v7  ;;  %v4908_v17 = vcvt.s32.f32 %v2604_v3  ;;  %v9515_v7 = vld [vmem:[#allocation2 + $0x7b8] sm:$0xff] }
 0x1dd   :  { %6966 = vmatpush.bf16.msra.mxu2 %v5293_v18  ;;  %v2965_v20 = vcvt.s32.f32 %v661_v53  ;;  %v2989_v22 = vcvt.s32.f32 %v685_v8  ;;  %v1045_v24 = vunpack.c.0.s8 %v181_v43  ;;  %v1069_v27 = vunpack.c.1.s8 %v181_v43  ;;  %v9523_v8 = vld [vmem:[#allocation2 + $0xab8] sm:$0xff] }
 0x1de   :  { %v8946_v28 = vpop.eup %8945  ;;  %6979 = vmatpush.bf16.msra.mxu3 %v5485_v9  ;;  %v6036_v19 = vpack.c.bf16 %v4524_v10, %v4500_v42  ;;  %v6228_v29 = vpack.c.bf16 %v4908_v17, %v4884_v26  ;;  %v1765_v44 = vunpack.c.2.s8 %v349_v2  ;;  %v1789_v13 = vunpack.c.3.s8 %v349_v2  ;;  %v9525_v17 = vpop.f32.mrf.mxu1 }
 0x1df   :  { %v9502_v30 = vadd.f32 1.0, %v8946_v28  ;;  %v5269_v58 = vpack.c.bf16 %v2989_v22, %v2965_v20  ;;  %v3349_v33 = vcvt.s32.f32 %v1045_v24  ;;  %v3373_v62 = vcvt.s32.f32 %v1069_v27 }
 0x1e0   :  { %6941 = vmatpush.bf16.msra.mxu0 %v6036_v19  ;;  %6954 = vmatpush.bf16.msra.mxu1 %v6228_v29  ;;  %v4069_v34 = vcvt.s32.f32 %v1765_v44  ;;  %v4093_v12 = vcvt.s32.f32 %v1789_v13  ;;  %v2149_v40 = vunpack.c.2.s8 %v445_v55  ;;  %v2173_v38 = vunpack.c.3.s8 %v445_v55 }
 0x1e1   :  { %8947 = vrcp.f32 %v9502_v30  ;;  %v8594_v32 = vand.u32 2147483648, %v9502_v30  ;;  %6967 = vmatpush.bf16.msra.mxu2 %v5269_v58  ;;  %v5461_v50 = vpack.c.bf16 %v3373_v62, %v3349_v33  ;;  %v8592_v43 = vand.u32 2147483647, %v9502_v30 }
 0x1e2   :  { %v5821_v47 = vpack.c.bf16 %v4093_v12, %v4069_v34  ;;  %v4453_v61 = vcvt.s32.f32 %v2149_v40  ;;  %v4477_v37 = vcvt.s32.f32 %v2173_v38  ;;  %v2533_v63 = vunpack.c.2.s8 %v541_v21  ;;  %v613_v34 = vld [vmem:[#allocation2 + $0x10b8] sm:$0xff]  ;;  %v6737_v12 = vpop.f32.mrf.mxu0 }
 0x1e3   :  { %v9507_v48 = vor.u32 1.1754944e-38, %v8594_v32  ;;  %v2557_v52 = vunpack.c.3.s8 %v541_v21  ;;  %6942 = vmatmul.bf16.vlgmr.msra.gmra.mxu0 %v9194_v11  ;;  %6955 = vmatmul.bf16.vlgmr.msra.gmra.mxu1 %v9198_v16  ;;  %v2917_v49 = vunpack.c.2.s8 %v637_v41  ;;  %v2941_v25 = vunpack.c.3.s8 %v637_v41 }
 0x1e4   :  { %6980 = vmatpush.bf16.msra.mxu3 %v5461_v50  ;;  %6986 = vmatpush.bf16.msrb.mxu0 %v5821_v47  ;;  %v6013_v51 = vpack.c.bf16 %v4477_v37, %v4453_v61  ;;  %v1717_v57 = vunpack.c.0.s8 %v349_v2  ;;  %v4837_v15 = vcvt.s32.f32 %v2533_v63  ;;  %v1741_v60 = vunpack.c.1.s8 %v349_v2 }
 0x1e5   :  { %v4861_v46 = vcvt.s32.f32 %v2557_v52  ;;  %v2101_v6 = vunpack.c.0.s8 %v445_v55  ;;  %6968 = vmatmul.bf16.vlgmr.msra.gmra.mxu2 %v9163_v14  ;;  %vm8588_vm12 = vweird.f32 %v9502_v30  ;;  %v5221_v1 = vcvt.s32.f32 %v2917_v49 }
 0x1e6   :  { %6999 = vmatpush.bf16.msrb.mxu1 %v6013_v51  ;;  %v5245_v45 = vcvt.s32.f32 %v2941_v25  ;;  %v4021_v23 = vcvt.s32.f32 %v1717_v57  ;;  %v2125_v39 = vunpack.c.1.s8 %v445_v55  ;;  %v4045_v4 = vcvt.s32.f32 %v1741_v60  ;;  %v517_v55 = vld [vmem:[#allocation2 + $0xdb8] sm:$0xff] }
 0x1e7   :  { %v8948_v35 = vpop.eup %8947  ;;  %v6205_v31 = vpack.c.bf16 %v4861_v46, %v4837_v15  ;;  %v4405_v56 = vcvt.s32.f32 %v2101_v6  ;;  %v2485_v59 = vunpack.c.0.s8 %v541_v21  ;;  %6981 = vmatmul.bf16.vlgmr.msra.gmra.mxu3 %v9169_v36  ;;  %vm9519_vm14 = vcmp.eq.f32.partialorder %v8592_v43, 8.507059e+37  ;;  %v6750_v6 = vpop.f32.mrf.mxu1 }
 0x1e8   :  { %v8584_v3 = vmul.f32 %v8948_v35, %v9502_v30  ;;  %vm8589_vm13 = vweird.f32 %v8948_v35  ;;  %v6397_v42 = vpack.c.bf16 %v5245_v45, %v5221_v1  ;;  %v4429_v53 = vcvt.s32.f32 %v2125_v39 }
 0x1e9   :  { %7012 = vmatpush.bf16.msrb.mxu2 %v6205_v31  ;;  %v5797_v2 = vpack.c.bf16 %v4045_v4, %v4021_v23  ;;  %v2509_v9 = vunpack.c.1.s8 %v541_v21  ;;  %v4789_v10 = vcvt.s32.f32 %v2485_v59  ;;  %v2869_v26 = vunpack.c.0.s8 %v637_v41  ;;  %vm8590_vm15 = vmor %vm8588_vm12, %vm8589_vm13 }
 0x1ea   :  { %v8585_v20 = vsub.f32 1.0, %v8584_v3  ;;  %7025 = vmatpush.bf16.msrb.mxu3 %v6397_v42  ;;  %v5989_v22 = vpack.c.bf16 %v4429_v53, %v4405_v56  ;;  %v2893_v24 = vunpack.c.1.s8 %v637_v41  ;;  %v1669_v27 = vunpack.c.2.s8 %v9515_v7  ;;  %v397_v42 = vld [vmem:[#allocation2 + $0x9f8] sm:$0xff] }
 0x1eb   :  { %6987 = vmatpush.bf16.msrb.mxu0 %v5797_v2  ;;  %v4813_v28 = vcvt.s32.f32 %v2509_v9  ;;  %v5173_v19 = vcvt.s32.f32 %v2869_v26  ;;  %v1693_v29 = vunpack.c.3.s8 %v9515_v7  ;;  %v2053_v44 = vunpack.c.2.s8 %v9523_v8  ;;  %v493_v26 = vld [vmem:[#allocation2 + $0xcf8] sm:$0xff] }
 0x1ec   :  { %v8586_v13 = vmul.f32 %v8948_v35, %v8585_v20  ;;  %7000 = vmatpush.bf16.msrb.mxu1 %v5989_v22  ;;  %v5197_v58 = vcvt.s32.f32 %v2893_v24  ;;  %v3973_v33 = vcvt.s32.f32 %v1669_v27  ;;  %v2077_v62 = vunpack.c.3.s8 %v9523_v8  ;;  %v589_v27 = vld [vmem:[#allocation2 + $0xff8] sm:$0xff] }
 0x1ed   :  { %v6181_v40 = vpack.c.bf16 %v4813_v28, %v4789_v10  ;;  %v3997_v38 = vcvt.s32.f32 %v1693_v29  ;;  %v4357_v21 = vcvt.s32.f32 %v2053_v44  ;;  %v2437_v32 = vunpack.c.2.s8 %v517_v55 }
 0x1ee   :  { %v8587_v41 = vadd.f32 %v8948_v35, %v8586_v13  ;;  %v6373_v50 = vpack.c.bf16 %v5197_v58, %v5173_v19  ;;  %v4381_v47 = vcvt.s32.f32 %v2077_v62  ;;  %v2461_v61 = vunpack.c.3.s8 %v517_v55 }
 0x1ef   :  { %7013 = vmatpush.bf16.msrb.mxu2 %v6181_v40  ;;  %v5773_v37 = vpack.c.bf16 %v3997_v38, %v3973_v33  ;;  %v4741_v43 = vcvt.s32.f32 %v2437_v32  ;;  %v2821_v63 = vunpack.c.2.s8 %v613_v34  ;;  %v2845_v52 = vunpack.c.3.s8 %v613_v34  ;;  %v9544_v38 = vpop.f32.mrf.mxu2 }
 0x1f0   :  { %v8591_v51 = vsel %vm8590_vm15, %v8948_v35, %v8587_v41  ;;  %7026 = vmatpush.bf16.msrb.mxu3 %v6373_v50  ;;  %v5965_v49 = vpack.c.bf16 %v4381_v47, %v4357_v21  ;;  %v4765_v25 = vcvt.s32.f32 %v2461_v61  ;;  %v1621_v57 = vunpack.c.0.s8 %v9515_v7  ;;  %v301_v35 = vld [vmem:[#allocation2 + $0x6f8] sm:$0xff] }
 0x1f1   :  { %v8596_v15 = vsel %vm9519_vm14, %v9507_v48, %v8591_v51  ;;  %6988 = vmatpush.bf16.msrb.mxu0 %v5773_v37  ;;  %v5125_v46 = vcvt.s32.f32 %v2821_v63  ;;  %v5149_v60 = vcvt.s32.f32 %v2845_v52  ;;  %v1645_v30 = vunpack.c.1.s8 %v9515_v7 }
 0x1f2   :  { %8901 = vst [vmem:[%s10886_s4 + $0x18] sm:$0xff] %v8596_v15  ;;  %7001 = vmatpush.bf16.msrb.mxu1 %v5965_v49  ;;  %v6157_v1 = vpack.c.bf16 %v4765_v25, %v4741_v43  ;;  %v3925_v45 = vcvt.s32.f32 %v1621_v57  ;;  %v2005_v23 = vunpack.c.0.s8 %v9523_v8  ;;  %v2029_v39 = vunpack.c.1.s8 %v9523_v8  ;;  %v9546_v25 = vld [vmem:[#allocation2 + $0x638] sm:$0xff] }
 0x1f3   :  { %v6349_v31 = vpack.c.bf16 %v5149_v60, %v5125_v46  ;;  %v3949_v48 = vcvt.s32.f32 %v1645_v30  ;;  %v2389_v4 = vunpack.c.0.s8 %v517_v55  ;;  %v2413_v56 = vunpack.c.1.s8 %v517_v55 }
 0x1f4   :  { %7014 = vmatpush.bf16.msrb.mxu2 %v6157_v1  ;;  %v4309_v59 = vcvt.s32.f32 %v2005_v23  ;;  %v4333_v7 = vcvt.s32.f32 %v2029_v39  ;;  %v2773_v3 = vunpack.c.0.s8 %v613_v34  ;;  %v2797_v18 = vunpack.c.1.s8 %v613_v34  ;;  %v373_v23 = vld [vmem:[#allocation2 + $0x938] sm:$0xff]  ;;  %v9548_v39 = vpop.f32.mrf.mxu3 }
 0x1f5   :  { %7027 = vmatpush.bf16.msrb.mxu3 %v6349_v31  ;;  %v5749_v53 = vpack.c.bf16 %v3949_v48, %v3925_v45  ;;  %v4693_v2 = vcvt.s32.f32 %v2389_v4  ;;  %v4717_v9 = vcvt.s32.f32 %v2413_v56  ;;  %v1573_v10 = vunpack.c.2.s8 %v301_v35 }
 0x1f6   :  { %v5941_v20 = vpack.c.bf16 %v4333_v7, %v4309_v59  ;;  %v5077_v22 = vcvt.s32.f32 %v2773_v3  ;;  %v5101_v8 = vcvt.s32.f32 %v2797_v18  ;;  %v1597_v24 = vunpack.c.3.s8 %v301_v35  ;;  %v469_v59 = vld [vmem:[#allocation2 + $0xc38] sm:$0xff] }
 0x1f7   :  { %6989 = vmatpush.bf16.msrb.mxu0 %v5749_v53  ;;  %v6133_v28 = vpack.c.bf16 %v4717_v9, %v4693_v2  ;;  %v3877_v55 = vcvt.s32.f32 %v1573_v10  ;;  %v1957_v19 = vunpack.c.2.s8 %v397_v42  ;;  %v1981_v29 = vunpack.c.3.s8 %v397_v42  ;;  %v565_v53 = vld [vmem:[#allocation2 + $0xf38] sm:$0xff] }
 0x1f8   :  { %7002 = vmatpush.bf16.msrb.mxu1 %v5941_v20  ;;  %v6325_v44 = vpack.c.bf16 %v5101_v8, %v5077_v22  ;;  %v3901_v13 = vcvt.s32.f32 %v1597_v24  ;;  %v2341_v58 = vunpack.c.2.s8 %v493_v26  ;;  %v2365_v33 = vunpack.c.3.s8 %v493_v26  ;;  %v6763_v20 = vpop.f32.mrf.mxu2 }
 0x1f9   :  { %7015 = vmatpush.bf16.msrb.mxu2 %v6133_v28  ;;  %v4261_v62 = vcvt.s32.f32 %v1957_v19  ;;  %v4285_v34 = vcvt.s32.f32 %v1981_v29  ;;  %v2725_v12 = vunpack.c.2.s8 %v589_v27  ;;  %v2749_v40 = vunpack.c.3.s8 %v589_v27 }
 0x1fa   :  { %7028 = vmatpush.bf16.msrb.mxu3 %v6325_v44  ;;  %v5725_v21 = vpack.c.bf16 %v3901_v13, %v3877_v55  ;;  %v4645_v32 = vcvt.s32.f32 %v2341_v58  ;;  %v4669_v41 = vcvt.s32.f32 %v2365_v33  ;;  %v1525_v50 = vunpack.c.0.s8 %v301_v35  ;;  %v9554_v44 = vpop.f32.mrf.mxu1 }
 0x1fb   :  { %v5917_v47 = vpack.c.bf16 %v4285_v34, %v4261_v62  ;;  %v5029_v61 = vcvt.s32.f32 %v2725_v12  ;;  %v5053_v37 = vcvt.s32.f32 %v2749_v40  ;;  %v1549_v43 = vunpack.c.1.s8 %v301_v35  ;;  %v9550_v35 = vpop.f32.mrf.mxu0 }
 0x1fc   :  { %6990 = vmatpush.bf16.msrb.mxu0 %v5725_v21  ;;  %v6109_v63 = vpack.c.bf16 %v4669_v41, %v4645_v32  ;;  %v3829_v52 = vcvt.s32.f32 %v1525_v50  ;;  %v1909_v51 = vunpack.c.0.s8 %v397_v42  ;;  %v1933_v49 = vunpack.c.1.s8 %v397_v42 }
 0x1fd   :  { %7003 = vmatpush.bf16.msrb.mxu1 %v5917_v47  ;;  %v6301_v57 = vpack.c.bf16 %v5053_v37, %v5029_v61  ;;  %v3853_v15 = vcvt.s32.f32 %v1549_v43  ;;  %v2293_v46 = vunpack.c.0.s8 %v493_v26  ;;  %v2317_v60 = vunpack.c.1.s8 %v493_v26  ;;  %v158_v61 = vld [vmem:[#allocation2 + $0x280] sm:$0xff]  ;;  %v6776_v37 = vpop.f32.mrf.mxu3 }
 0x1fe   :  { %7016 = vmatpush.bf16.msrb.mxu2 %v6109_v63  ;;  %v4213_v30 = vcvt.s32.f32 %v1909_v51  ;;  %v4237_v6 = vcvt.s32.f32 %v1933_v49  ;;  %v2677_v1 = vunpack.c.0.s8 %v589_v27  ;;  %v2701_v45 = vunpack.c.1.s8 %v589_v27 }
 0x1ff   :  { %7029 = vmatpush.bf16.msrb.mxu3 %v6301_v57  ;;  %v5701_v31 = vpack.c.bf16 %v3853_v15, %v3829_v52  ;;  %v4597_v48 = vcvt.s32.f32 %v2293_v46  ;;  %v4621_v4 = vcvt.s32.f32 %v2317_v60  ;;  %v1477_v56 = vunpack.c.2.s8 %v9546_v25  ;;  %v254_v46 = vld [vmem:[#allocation2 + $0x580] sm:$0xff] }
 0x200   :  { %v5893_v7 = vpack.c.bf16 %v4237_v6, %v4213_v30  ;;  %v4981_v3 = vcvt.s32.f32 %v2677_v1  ;;  %v5005_v18 = vcvt.s32.f32 %v2701_v45  ;;  %v1501_v42 = vunpack.c.3.s8 %v9546_v25  ;;  %v350_v1 = vld [vmem:[#allocation2 + $0x880] sm:$0xff] }
 0x201   :  { %6991 = vmatpush.bf16.msrb.mxu0 %v5701_v31  ;;  %v6085_v2 = vpack.c.bf16 %v4621_v4, %v4597_v48  ;;  %v3781_v9 = vcvt.s32.f32 %v1477_v56  ;;  %v1861_v10 = vunpack.c.2.s8 %v373_v23  ;;  %v1885_v26 = vunpack.c.3.s8 %v373_v23  ;;  %v446_v4 = vld [vmem:[#allocation2 + $0xb80] sm:$0xff] }
 0x202   :  { %7004 = vmatpush.bf16.msrb.mxu1 %v5893_v7  ;;  %v6277_v22 = vpack.c.bf16 %v5005_v18, %v4981_v3  ;;  %v3805_v8 = vcvt.s32.f32 %v1501_v42  ;;  %v2245_v24 = vunpack.c.2.s8 %v469_v59  ;;  %v2269_v27 = vunpack.c.3.s8 %v469_v59  ;;  %v6802_v18 = vpop.f32.mrf.mxu1 }
 0x203   :  { %7017 = vmatpush.bf16.msrb.mxu2 %v6085_v2  ;;  %v4165_v28 = vcvt.s32.f32 %v1861_v10  ;;  %v4189_v55 = vcvt.s32.f32 %v1885_v26  ;;  %v2629_v19 = vunpack.c.2.s8 %v565_v53  ;;  %v2653_v29 = vunpack.c.3.s8 %v565_v53  ;;  %v6789_v43 = vpop.f32.mrf.mxu0 }
 0x204   :  { %7030 = vmatpush.bf16.msrb.mxu3 %v6277_v22  ;;  %v5677_v13 = vpack.c.bf16 %v3805_v8, %v3781_v9  ;;  %v4549_v58 = vcvt.s32.f32 %v2245_v24  ;;  %v4573_v33 = vcvt.s32.f32 %v2269_v27  ;;  %v9558_v62 = vadd.f32 %v9525_v17, %v9511_v54 }
 0x205   :  { %v5869_v34 = vpack.c.bf16 %v4189_v55, %v4165_v28  ;;  %v4933_v12 = vcvt.s32.f32 %v2629_v19  ;;  %v4957_v40 = vcvt.s32.f32 %v2653_v29  ;;  %v1429_v21 = vunpack.c.0.s8 %v9546_v25 }
 0x206   :  { %6992 = vmatpush.bf16.msrb.mxu0 %v5677_v13  ;;  %v6061_v32 = vpack.c.bf16 %v4573_v33, %v4549_v58  ;;  %v1453_v41 = vunpack.c.1.s8 %v9546_v25  ;;  %v1813_v50 = vunpack.c.0.s8 %v373_v23  ;;  %v1837_v47 = vunpack.c.1.s8 %v373_v23 }
 0x207   :  { %7005 = vmatpush.bf16.msrb.mxu1 %v5869_v34  ;;  %v6253_v63 = vpack.c.bf16 %v4957_v40, %v4933_v12  ;;  %v3733_v52 = vcvt.s32.f32 %v1429_v21  ;;  %v2197_v51 = vunpack.c.0.s8 %v469_v59  ;;  %v2221_v54 = vunpack.c.1.s8 %v469_v59 }
 0x208   :  { %7018 = vmatpush.bf16.msrb.mxu2 %v6061_v32  ;;  %v3757_v17 = vcvt.s32.f32 %v1453_v41  ;;  %v4117_v49 = vcvt.s32.f32 %v1813_v50  ;;  %v4141_v57 = vcvt.s32.f32 %v1837_v47  ;;  %v2581_v15 = vunpack.c.0.s8 %v565_v53  ;;  %v134_v50 = vld [vmem:[#allocation2 + $0x1c0] sm:$0xff] }
 0x209   :  { %7031 = vmatpush.bf16.msrb.mxu3 %v6253_v63  ;;  %v4501_v60 = vcvt.s32.f32 %v2197_v51  ;;  %v4525_v30 = vcvt.s32.f32 %v2221_v54  ;;  %v2605_v25 = vunpack.c.1.s8 %v565_v53  ;;  %v998_v6 = vunpack.c.2.s8 %v158_v61  ;;  %v230_v63 = vld [vmem:[#allocation2 + $0x4c0] sm:$0xff] }
 0x20a   :  { %v5653_v45 = vpack.c.bf16 %v3757_v17, %v3733_v52  ;;  %v5845_v23 = vpack.c.bf16 %v4141_v57, %v4117_v49  ;;  %v4885_v31 = vcvt.s32.f32 %v2581_v15  ;;  %v1022_v48 = vunpack.c.3.s8 %v158_v61  ;;  %v326_v49 = vld [vmem:[#allocation2 + $0x7c0] sm:$0xff] }
 0x20b   :  { %v6037_v56 = vpack.c.bf16 %v4525_v30, %v4501_v60  ;;  %v4909_v7 = vcvt.s32.f32 %v2605_v25  ;;  %v3302_v59 = vcvt.s32.f32 %v998_v6  ;;  %v1382_v3 = vunpack.c.2.s8 %v254_v46 }
 0x20c   :  { %6993 = vmatpush.bf16.msrb.mxu0 %v5653_v45  ;;  %7006 = vmatpush.bf16.msrb.mxu1 %v5845_v23  ;;  %v3326_v42 = vcvt.s32.f32 %v1022_v48  ;;  %v1406_v2 = vunpack.c.3.s8 %v254_v46  ;;  %v1766_v9 = vunpack.c.2.s8 %v350_v1  ;;  %v1790_v10 = vunpack.c.3.s8 %v350_v1  ;;  %v422_v45 = vld [vmem:[#allocation2 + $0xac0] sm:$0xff] }
 0x20d   :  { %7019 = vmatpush.bf16.msrb.mxu2 %v6037_v56  ;;  %v6229_v53 = vpack.c.bf16 %v4909_v7, %v4885_v31  ;;  %v3686_v26 = vcvt.s32.f32 %v1382_v3  ;;  %v2150_v20 = vunpack.c.2.s8 %v446_v4  ;;  %v2174_v22 = vunpack.c.3.s8 %v446_v4 }
 0x20e   :  { %v5438_v8 = vpack.c.bf16 %v3326_v42, %v3302_v59  ;;  %v3710_v24 = vcvt.s32.f32 %v1406_v2  ;;  %v4070_v27 = vcvt.s32.f32 %v1766_v9  ;;  %v4094_v28 = vcvt.s32.f32 %v1790_v10 }
 0x20f   :  { %7032 = vmatpush.bf16.msrb.mxu3 %v6229_v53  ;;  %v4454_v55 = vcvt.s32.f32 %v2150_v20  ;;  %v4478_v19 = vcvt.s32.f32 %v2174_v22  ;;  %6994 = vmatmul.bf16.vlgmr.msrb.gmra.mxu0 %v9178_v0  ;;  %v950_v29 = vunpack.c.0.s8 %v158_v61  ;;  %v974_v13 = vunpack.c.1.s8 %v158_v61 }
 0x210   :  { %7038 = vmatpush.bf16.msra.mxu0 %v5438_v8  ;;  %v5630_v58 = vpack.c.bf16 %v3710_v24, %v3686_v26  ;;  %v5822_v33 = vpack.c.bf16 %v4094_v28, %v4070_v27  ;;  %7020 = vmatmul.bf16.vlgmr.msrb.gmra.mxu2 %v9194_v11  ;;  %v1334_v34 = vunpack.c.0.s8 %v254_v46  ;;  %v1358_v12 = vunpack.c.1.s8 %v254_v46 }
 0x211   :  { %v6014_v40 = vpack.c.bf16 %v4478_v19, %v4454_v55  ;;  %v3254_v21 = vcvt.s32.f32 %v950_v29  ;;  %v3278_v32 = vcvt.s32.f32 %v974_v13  ;;  %v1718_v41 = vunpack.c.0.s8 %v350_v1  ;;  %7007 = vmatmul.bf16.vlgmr.msrb.gmra.mxu1 %v9180_v5 }
 0x212   :  { %7051 = vmatpush.bf16.msra.mxu1 %v5630_v58  ;;  %7064 = vmatpush.bf16.msra.mxu2 %v5822_v33  ;;  %v3638_v47 = vcvt.s32.f32 %v1334_v34  ;;  %v3662_v37 = vcvt.s32.f32 %v1358_v12  ;;  %v1742_v43 = vunpack.c.1.s8 %v350_v1  ;;  %v2102_v61 = vunpack.c.0.s8 %v446_v4 }
 0x213   :  { %7077 = vmatpush.bf16.msra.mxu3 %v6014_v40  ;;  %v5414_v52 = vpack.c.bf16 %v3278_v32, %v3254_v21  ;;  %v4022_v51 = vcvt.s32.f32 %v1718_v41  ;;  %v2126_v54 = vunpack.c.1.s8 %v446_v4  ;;  %v6762_v17 = vadd.f32 %v9544_v38, %v9558_v62  ;;  %v110_v40 = vld [vmem:[#allocation2 + $0x100] sm:$0xff] }
 0x214   :  { %7033 = vmatmul.bf16.vlgmr.msrb.gmra.mxu3 %v9198_v16  ;;  %v5606_v57 = vpack.c.bf16 %v3662_v37, %v3638_v47  ;;  %v4046_v15 = vcvt.s32.f32 %v1742_v43  ;;  %v4406_v46 = vcvt.s32.f32 %v2102_v61  ;;  %v902_v60 = vunpack.c.2.s8 %v134_v50  ;;  %v9571_v61 = vld [vmem:[#allocation4] sm:$0xff] }
 0x215   :  { %7039 = vmatpush.bf16.msra.mxu0 %v5414_v52  ;;  %v4430_v30 = vcvt.s32.f32 %v2126_v54  ;;  %v926_v25 = vunpack.c.3.s8 %v134_v50  ;;  %v1286_v6 = vunpack.c.2.s8 %v230_v63  ;;  %v1310_v1 = vunpack.c.3.s8 %v230_v63  ;;  %v302_v52 = vld [vmem:[#allocation2 + $0x700] sm:$0xff]  ;;  %v9574_v54 = vld [vmem:[#allocation6] sm:$0xff] }
 0x216   :  { %7052 = vmatpush.bf16.msra.mxu1 %v5606_v57  ;;  %v5798_v23 = vpack.c.bf16 %v4046_v15, %v4022_v51  ;;  %v3206_v31 = vcvt.s32.f32 %v902_v60  ;;  %v1670_v48 = vunpack.c.2.s8 %v326_v49  ;;  %v1694_v4 = vunpack.c.3.s8 %v326_v49  ;;  %v398_v15 = vld [vmem:[#allocation2 + $0xa00] sm:$0xff] }
 0x217   :  { %v5990_v56 = vpack.c.bf16 %v4430_v30, %v4406_v46  ;;  %v3230_v38 = vcvt.s32.f32 %v926_v25  ;;  %v3590_v62 = vcvt.s32.f32 %v1286_v6  ;;  %v3614_v7 = vcvt.s32.f32 %v1310_v1 }
 0x218   :  { %7065 = vmatpush.bf16.msra.mxu2 %v5798_v23  ;;  %v3974_v59 = vcvt.s32.f32 %v1670_v48  ;;  %v3998_v3 = vcvt.s32.f32 %v1694_v4  ;;  %v2054_v18 = vunpack.c.2.s8 %v422_v45  ;;  %v2078_v42 = vunpack.c.3.s8 %v422_v45  ;;  %v9577_v23 = vpop.f32.mrf.mxu2 }
 0x219   :  { %7078 = vmatpush.bf16.msra.mxu3 %v5990_v56  ;;  %v5390_v2 = vpack.c.bf16 %v3230_v38, %v3206_v31  ;;  %v5582_v9 = vpack.c.bf16 %v3614_v7, %v3590_v62  ;;  %v6775_v10 = vadd.f32 %v9548_v39, %v6762_v17  ;;  %v854_v53 = vunpack.c.0.s8 %v134_v50  ;;  %v9579_v38 = vpop.f32.mrf.mxu3 }
 0x21a   :  { %v5774_v26 = vpack.c.bf16 %v3998_v3, %v3974_v59  ;;  %v4358_v20 = vcvt.s32.f32 %v2054_v18  ;;  %v4382_v22 = vcvt.s32.f32 %v2078_v42  ;;  %v878_v8 = vunpack.c.1.s8 %v134_v50 }
 0x21b   :  { %7040 = vmatpush.bf16.msra.mxu0 %v5390_v2  ;;  %7053 = vmatpush.bf16.msra.mxu1 %v5582_v9  ;;  %v6788_v24 = vadd.f32 %v9550_v35, %v6775_v10  ;;  %v3158_v27 = vcvt.s32.f32 %v854_v53  ;;  %v1238_v28 = vunpack.c.0.s8 %v230_v63  ;;  %v1262_v55 = vunpack.c.1.s8 %v230_v63  ;;  %v206_v35 = vld [vmem:[#allocation2 + $0x400] sm:$0xff] }
 0x21c   :  { %7066 = vmatpush.bf16.msra.mxu2 %v5774_v26  ;;  %v5966_v19 = vpack.c.bf16 %v4382_v22, %v4358_v20  ;;  %v3182_v29 = vcvt.s32.f32 %v878_v8  ;;  %v1622_v13 = vunpack.c.0.s8 %v326_v49  ;;  %v1646_v58 = vunpack.c.1.s8 %v326_v49 }
 0x21d   :  { %v3542_v33 = vcvt.s32.f32 %v1238_v28  ;;  %v3566_v34 = vcvt.s32.f32 %v1262_v55  ;;  %v2006_v39 = vunpack.c.0.s8 %v422_v45  ;;  %v2030_v12 = vunpack.c.1.s8 %v422_v45  ;;  %v86_v28 = vld [vmem:[#allocation2 + $0x40] sm:$0xff] }
 0x21e   :  { %7079 = vmatpush.bf16.msra.mxu3 %v5966_v19  ;;  %v5366_v21 = vpack.c.bf16 %v3182_v29, %v3158_v27  ;;  %v3926_v32 = vcvt.s32.f32 %v1622_v13  ;;  %v3950_v41 = vcvt.s32.f32 %v1646_v58  ;;  %v6801_v50 = vadd.f32 %v9554_v44, %v6788_v24  ;;  %v9581_v58 = vld [vmem:[#allocation2 + $0x340] sm:$0xff] }
 0x21f   :  { %v5558_v47 = vpack.c.bf16 %v3566_v34, %v3542_v33  ;;  %v4310_v37 = vcvt.s32.f32 %v2006_v39  ;;  %v4334_v43 = vcvt.s32.f32 %v2030_v12  ;;  %v8296_v63 = vperm.slane %v9571_v61, 4 }
 0x220   :  { %7041 = vmatpush.bf16.msra.mxu0 %v5366_v21  ;;  %v5750_v51 = vpack.c.bf16 %v3950_v41, %v3926_v32  ;;  %v8374_v17 = vperm.slane %v9574_v54, 4  ;;  %v806_v49 = vunpack.c.2.s8 %v110_v40  ;;  %v830_v57 = vunpack.c.3.s8 %v110_v40  ;;  %v278_v41 = vld [vmem:[#allocation2 + $0x640] sm:$0xff] }
 0x221   :  { %7054 = vmatpush.bf16.msra.mxu1 %v5558_v47  ;;  %v5942_v44 = vpack.c.bf16 %v4334_v43, %v4310_v37  ;;  %v8344_v46 = vmul.f32 %v8296_v63, %v6801_v50  ;;  %v1190_v60 = vunpack.c.2.s8 %v206_v35  ;;  %v1214_v30 = vunpack.c.3.s8 %v206_v35  ;;  %v6815_v50 = vpop.f32.mrf.mxu2  ;;  %v374_v63 = vld [vmem:[#allocation2 + $0x940] sm:$0xff] }
 0x222   :  { %7067 = vmatpush.bf16.msra.mxu2 %v5750_v51  ;;  %v3110_v25 = vcvt.s32.f32 %v806_v49  ;;  %v3134_v6 = vcvt.s32.f32 %v830_v57  ;;  %v1574_v1 = vunpack.c.2.s8 %v302_v52  ;;  %v1598_v45 = vunpack.c.3.s8 %v302_v52 }
 0x223   :  { %7080 = vmatpush.bf16.msra.mxu3 %v5942_v44  ;;  %v8422_v31 = vadd.f32 %v8374_v17, %v8344_v46  ;;  %v3494_v48 = vcvt.s32.f32 %v1190_v60  ;;  %v3518_v4 = vcvt.s32.f32 %v1214_v30  ;;  %v1958_v56 = vunpack.c.2.s8 %v398_v15 }
 0x224   :  { %v5342_v62 = vpack.c.bf16 %v3134_v6, %v3110_v25  ;;  %v3878_v7 = vcvt.s32.f32 %v1574_v1  ;;  %v3902_v59 = vcvt.s32.f32 %v1598_v45  ;;  %v1982_v3 = vunpack.c.3.s8 %v398_v15 }
 0x225   :  { %v8446_v18 = vsub.f32 0.0, %v8422_v31  ;;  %v5534_v42 = vpack.c.bf16 %v3518_v4, %v3494_v48  ;;  %v4262_v2 = vcvt.s32.f32 %v1958_v56  ;;  %v758_v9 = vunpack.c.0.s8 %v110_v40 }
 0x226   :  { %7042 = vmatpush.bf16.msra.mxu0 %v5342_v62  ;;  %v5726_v10 = vpack.c.bf16 %v3902_v59, %v3878_v7  ;;  %v4286_v53 = vcvt.s32.f32 %v1982_v3  ;;  %v782_v26 = vunpack.c.1.s8 %v110_v40  ;;  %v1142_v20 = vunpack.c.0.s8 %v206_v35 }
 0x227   :  { %v8474_v22 = vmul.f32 1.442695, %v8446_v18  ;;  %7055 = vmatpush.bf16.msra.mxu1 %v5534_v42  ;;  %v3062_v8 = vcvt.s32.f32 %v758_v9  ;;  %v1166_v24 = vunpack.c.1.s8 %v206_v35  ;;  %v1526_v27 = vunpack.c.0.s8 %v302_v52 }
 0x228   :  { %7068 = vmatpush.bf16.msra.mxu2 %v5726_v10  ;;  %v5918_v55 = vpack.c.bf16 %v4286_v53, %v4262_v2  ;;  %v3086_v19 = vcvt.s32.f32 %v782_v26  ;;  %v3446_v29 = vcvt.s32.f32 %v1142_v20  ;;  %v1550_v13 = vunpack.c.1.s8 %v302_v52  ;;  %v6828_v52 = vpop.f32.mrf.mxu3  ;;  %v9588_v10 = vpop.f32.mrf.mxu0 }
 0x229   :  { %8949 = vpow2.f32 %v8474_v22  ;;  %v3470_v33 = vcvt.s32.f32 %v1166_v24  ;;  %v3830_v34 = vcvt.s32.f32 %v1526_v27  ;;  %v1910_v39 = vunpack.c.0.s8 %v398_v15  ;;  %v9590_v53 = vpop.f32.mrf.mxu1  ;;  %v9595_v27 = vld [vmem:[#allocation2 + $0xe80] sm:$0xff] }
 0x22a   :  { %7081 = vmatpush.bf16.msra.mxu3 %v5918_v55  ;;  %v5318_v12 = vpack.c.bf16 %v3086_v19, %v3062_v8  ;;  %v3854_v40 = vcvt.s32.f32 %v1550_v13  ;;  %v1934_v21 = vunpack.c.1.s8 %v398_v15  ;;  %v710_v32 = vunpack.c.2.s8 %v86_v28  ;;  %v9600_v13 = vld [vmem:[#allocation2 + $0x1180] sm:$0xff] }
 0x22b   :  { %v5510_v35 = vpack.c.bf16 %v3470_v33, %v3446_v29  ;;  %v4214_v47 = vcvt.s32.f32 %v1910_v39  ;;  %v734_v37 = vunpack.c.3.s8 %v86_v28  ;;  %v1094_v43 = vunpack.c.2.s8 %v9581_v58 }
 0x22c   :  { %7043 = vmatpush.bf16.msra.mxu0 %v5318_v12  ;;  %v5702_v51 = vpack.c.bf16 %v3854_v40, %v3830_v34  ;;  %v4238_v17 = vcvt.s32.f32 %v1934_v21  ;;  %v3014_v49 = vcvt.s32.f32 %v710_v32  ;;  %v1118_v57 = vunpack.c.3.s8 %v9581_v58 }
 0x22d   :  { %7056 = vmatpush.bf16.msra.mxu1 %v5510_v35  ;;  %v3038_v44 = vcvt.s32.f32 %v734_v37  ;;  %v3398_v46 = vcvt.s32.f32 %v1094_v43  ;;  %v1478_v15 = vunpack.c.2.s8 %v278_v41  ;;  %v1502_v60 = vunpack.c.3.s8 %v278_v41  ;;  %v9606_v37 = vld [vmem:[#allocation2 + $0x288] sm:$0xff]  ;;  %v9608_v43 = vpop.f32.mrf.mxu2 }
 0x22e   :  { %7069 = vmatpush.bf16.msra.mxu2 %v5702_v51  ;;  %v5894_v30 = vpack.c.bf16 %v4238_v17, %v4214_v47  ;;  %v3422_v25 = vcvt.s32.f32 %v1118_v57  ;;  %v1862_v6 = vunpack.c.2.s8 %v374_v63  ;;  %v1886_v1 = vunpack.c.3.s8 %v374_v63 }
 0x22f   :  { %v8950_v45 = vpop.eup %8949  ;;  %v5294_v31 = vpack.c.bf16 %v3038_v44, %v3014_v49  ;;  %v3782_v48 = vcvt.s32.f32 %v1478_v15  ;;  %v3806_v4 = vcvt.s32.f32 %v1502_v60  ;;  %v662_v56 = vunpack.c.0.s8 %v86_v28  ;;  %v9615_v44 = vld [vmem:[#allocation2 + $0x588] sm:$0xff] }
 0x230   :  { %v9585_v62 = vadd.f32 1.0, %v8950_v45  ;;  %7082 = vmatpush.bf16.msra.mxu3 %v5894_v30  ;;  %v5486_v7 = vpack.c.bf16 %v3422_v25, %v3398_v46  ;;  %v4166_v59 = vcvt.s32.f32 %v1862_v6  ;;  %v4190_v3 = vcvt.s32.f32 %v1886_v1  ;;  %v9610_v52 = vpop.f32.mrf.mxu3  ;;  %v6841_v25 = vpop.f32.mrf.mxu0 }
 0x231   :  { %7044 = vmatpush.bf16.msra.mxu0 %v5294_v31  ;;  %v5678_v18 = vpack.c.bf16 %v3806_v4, %v3782_v48  ;;  %v686_v42 = vunpack.c.1.s8 %v86_v28  ;;  %v2966_v2 = vcvt.s32.f32 %v662_v56  ;;  %v1046_v9 = vunpack.c.0.s8 %v9581_v58  ;;  %v6854_v6 = vpop.f32.mrf.mxu1 }
 0x232   :  { %8951 = vrcp.f32 %v9585_v62  ;;  %v8609_v26 = vand.u32 2147483648, %v9585_v62  ;;  %7057 = vmatpush.bf16.msra.mxu1 %v5486_v7  ;;  %v5870_v20 = vpack.c.bf16 %v4190_v3, %v4166_v59  ;;  %v1070_v8 = vunpack.c.1.s8 %v9581_v58 }
 0x233   :  { %7070 = vmatpush.bf16.msra.mxu2 %v5678_v18  ;;  %v2990_v22 = vcvt.s32.f32 %v686_v42  ;;  %v3350_v24 = vcvt.s32.f32 %v1046_v9  ;;  %v8607_v28 = vand.u32 2147483647, %v9585_v62  ;;  %v1430_v19 = vunpack.c.0.s8 %v278_v41 }
 0x234   :  { %v9598_v55 = vor.u32 1.1754944e-38, %v8609_v26  ;;  %v1454_v29 = vunpack.c.1.s8 %v278_v41  ;;  %vm8603_vm0 = vweird.f32 %v9585_v62  ;;  %7083 = vmatpush.bf16.msra.mxu3 %v5870_v20  ;;  %v3374_v34 = vcvt.s32.f32 %v1070_v8 }
 0x235   :  { %v5270_v33 = vpack.c.bf16 %v2990_v22, %v2966_v2  ;;  %v1814_v39 = vunpack.c.0.s8 %v374_v63  ;;  %v1838_v12 = vunpack.c.1.s8 %v374_v63  ;;  %v3734_v40 = vcvt.s32.f32 %v1430_v19 }
 0x236   :  { %v3758_v58 = vcvt.s32.f32 %v1454_v29  ;;  %v2534_v21 = vunpack.c.2.s8 %v9595_v27  ;;  %v2558_v32 = vunpack.c.3.s8 %v9595_v27  ;;  %v5462_v50 = vpack.c.bf16 %v3374_v34, %v3350_v24  ;;  %v6867_v34 = vpop.f32.mrf.mxu2 }
 0x237   :  { %7045 = vmatpush.bf16.msra.mxu0 %v5270_v33  ;;  %v4118_v35 = vcvt.s32.f32 %v1814_v39  ;;  %v4142_v47 = vcvt.s32.f32 %v1838_v12  ;;  %v2918_v41 = vunpack.c.2.s8 %v9600_v13  ;;  %v2942_v57 = vunpack.c.3.s8 %v9600_v13 }
 0x238   :  { %v9612_v51 = vpop.eup %8951  ;;  %v5654_v63 = vpack.c.bf16 %v3758_v58, %v3734_v40  ;;  %v4838_v17 = vcvt.s32.f32 %v2534_v21  ;;  %v4862_v49 = vcvt.s32.f32 %v2558_v32  ;;  %vm9620_vm2 = vcmp.eq.f32.partialorder %v8607_v28, 8.507059e+37  ;;  %7058 = vmatpush.bf16.msra.mxu1 %v5462_v50  ;;  %v6880_v39 = vpop.f32.mrf.mxu3  ;;  %v518_v58 = vld [vmem:[#allocation2 + $0xdc0] sm:$0xff] }
 0x239   :  { %v8599_v46 = vmul.f32 %v9612_v51, %v9585_v62  ;;  %vm8604_vm1 = vweird.f32 %v9612_v51  ;;  %v5846_v60 = vpack.c.bf16 %v4142_v47, %v4118_v35  ;;  %v5222_v30 = vcvt.s32.f32 %v2918_v41  ;;  %v614_v21 = vld [vmem:[#allocation2 + $0x10c0] sm:$0xff]  ;;  %v135_v41 = vld [vmem:[#allocation2 + $0x1c8] sm:$0xff] }
 0x23a   :  { %7071 = vmatpush.bf16.msra.mxu2 %v5654_v63  ;;  %v6206_v1 = vpack.c.bf16 %v4862_v49, %v4838_v17  ;;  %v5246_v45 = vcvt.s32.f32 %v2942_v57  ;;  %v999_v31 = vunpack.c.2.s8 %v9606_v37  ;;  %v1023_v48 = vunpack.c.3.s8 %v9606_v37  ;;  %7046 = vmatmul.bf16.vlgmr.msra.gmra.mxu0 %v9163_v14  ;;  %vm8605_vm3 = vmor %vm8603_vm0, %vm8604_vm1 }
 0x23b   :  { %v8600_v4 = vsub.f32 1.0, %v8599_v46  ;;  %7084 = vmatpush.bf16.msra.mxu3 %v5846_v60  ;;  %v1383_v56 = vunpack.c.2.s8 %v9615_v44  ;;  %v1407_v7 = vunpack.c.3.s8 %v9615_v44  ;;  %v9631_v59 = vadd.f32 %v9579_v38, %v9577_v23  ;;  %7059 = vmatmul.bf16.vlgmr.msra.gmra.mxu1 %v9169_v36  ;;  %v231_v60 = vld [vmem:[#allocation2 + $0x4c8] sm:$0xff] }
 0x23c   :  { %7090 = vmatpush.bf16.msrb.mxu0 %v6206_v1  ;;  %v6398_v3 = vpack.c.bf16 %v5246_v45, %v5222_v30  ;;  %v3303_v18 = vcvt.s32.f32 %v999_v31  ;;  %v3327_v42 = vcvt.s32.f32 %v1023_v48  ;;  %v2486_v2 = vunpack.c.0.s8 %v9595_v27 }
 0x23d   :  { %v8601_v9 = vmul.f32 %v9612_v51, %v8600_v4  ;;  %v3687_v26 = vcvt.s32.f32 %v1383_v56  ;;  %v3711_v20 = vcvt.s32.f32 %v1407_v7  ;;  %v2510_v22 = vunpack.c.1.s8 %v9595_v27  ;;  %7072 = vmatmul.bf16.vlgmr.msra.gmra.mxu2 %v9178_v0 }
 0x23e   :  { %7103 = vmatpush.bf16.msrb.mxu1 %v6398_v3  ;;  %v5439_v8 = vpack.c.bf16 %v3327_v42, %v3303_v18  ;;  %v4790_v23 = vcvt.s32.f32 %v2486_v2  ;;  %v2870_v38 = vunpack.c.0.s8 %v9600_v13  ;;  %v2894_v24 = vunpack.c.1.s8 %v9600_v13  ;;  %7085 = vmatmul.bf16.vlgmr.msra.gmra.mxu3 %v9180_v5 }
 0x23f   :  { %v8602_v28 = vadd.f32 %v9612_v51, %v8601_v9  ;;  %v5631_v19 = vpack.c.bf16 %v3711_v20, %v3687_v26  ;;  %v4814_v29 = vcvt.s32.f32 %v2510_v22  ;;  %v951_v33 = vunpack.c.0.s8 %v9606_v37 }
 0x240   :  { %7116 = vmatpush.bf16.msrb.mxu2 %v5439_v8  ;;  %v5174_v27 = vcvt.s32.f32 %v2870_v38  ;;  %v5198_v12 = vcvt.s32.f32 %v2894_v24  ;;  %v975_v13 = vunpack.c.1.s8 %v9606_v37  ;;  %v1335_v40 = vunpack.c.0.s8 %v9615_v44 }
 0x241   :  { %v8606_v32 = vsel %vm8605_vm3, %v9612_v51, %v8602_v28  ;;  %7129 = vmatpush.bf16.msrb.mxu3 %v5631_v19  ;;  %v6182_v50 = vpack.c.bf16 %v4814_v29, %v4790_v23  ;;  %v3255_v35 = vcvt.s32.f32 %v951_v33  ;;  %v1359_v47 = vunpack.c.1.s8 %v9615_v44  ;;  %v494_v33 = vld [vmem:[#allocation2 + $0xd00] sm:$0xff] }
 0x242   :  { %v8611_v62 = vsel %vm9620_vm2, %v9598_v55, %v8606_v32  ;;  %v6374_v63 = vpack.c.bf16 %v5198_v12, %v5174_v27  ;;  %v3279_v17 = vcvt.s32.f32 %v975_v13  ;;  %v3639_v49 = vcvt.s32.f32 %v1335_v40  ;;  %v590_v13 = vld [vmem:[#allocation2 + $0x1000] sm:$0xff] }
 0x243   :  { %8902 = vst [vmem:[%s10886_s4 + $0x20] sm:$0xff] %v8611_v62  ;;  %7091 = vmatpush.bf16.msrb.mxu0 %v6182_v50  ;;  %v3663_v37 = vcvt.s32.f32 %v1359_v47  ;;  %v2438_v51 = vunpack.c.2.s8 %v518_v58  ;;  %v2462_v57 = vunpack.c.3.s8 %v518_v58  ;;  %v2822_v46 = vunpack.c.2.s8 %v614_v21 }
 0x244   :  { %7104 = vmatpush.bf16.msrb.mxu1 %v6374_v63  ;;  %v5415_v44 = vpack.c.bf16 %v3279_v17, %v3255_v35  ;;  %v2846_v30 = vunpack.c.3.s8 %v614_v21  ;;  %v903_v25 = vunpack.c.2.s8 %v135_v41  ;;  %v927_v6 = vunpack.c.3.s8 %v135_v41  ;;  %v111_v35 = vld [vmem:[#allocation2 + $0x108] sm:$0xff] }
 0x245   :  { %v5607_v15 = vpack.c.bf16 %v3663_v37, %v3639_v49  ;;  %v4742_v55 = vcvt.s32.f32 %v2438_v51  ;;  %v4766_v1 = vcvt.s32.f32 %v2462_v57  ;;  %v5126_v45 = vcvt.s32.f32 %v2822_v46  ;;  %v207_v63 = vld [vmem:[#allocation2 + $0x408] sm:$0xff] }
 0x246   :  { %7117 = vmatpush.bf16.msrb.mxu2 %v5415_v44  ;;  %v5150_v31 = vcvt.s32.f32 %v2846_v30  ;;  %v3207_v48 = vcvt.s32.f32 %v903_v25  ;;  %v3231_v4 = vcvt.s32.f32 %v927_v6  ;;  %v1287_v56 = vunpack.c.2.s8 %v231_v60 }
 0x247   :  { %7130 = vmatpush.bf16.msrb.mxu3 %v5607_v15  ;;  %v6158_v7 = vpack.c.bf16 %v4766_v1, %v4742_v55  ;;  %v1311_v3 = vunpack.c.3.s8 %v231_v60  ;;  %v2390_v18 = vunpack.c.0.s8 %v518_v58  ;;  %v2414_v42 = vunpack.c.1.s8 %v518_v58 }
 0x248   :  { %v6350_v2 = vpack.c.bf16 %v5150_v31, %v5126_v45  ;;  %v5391_v9 = vpack.c.bf16 %v3231_v4, %v3207_v48  ;;  %v3591_v26 = vcvt.s32.f32 %v1287_v56  ;;  %v2774_v20 = vunpack.c.0.s8 %v614_v21 }
 0x249   :  { %7092 = vmatpush.bf16.msrb.mxu0 %v6158_v7  ;;  %v3615_v22 = vcvt.s32.f32 %v1311_v3  ;;  %v4694_v8 = vcvt.s32.f32 %v2390_v18  ;;  %v4718_v23 = vcvt.s32.f32 %v2414_v42  ;;  %v2798_v38 = vunpack.c.1.s8 %v614_v21 }
 0x24a   :  { %7105 = vmatpush.bf16.msrb.mxu1 %v6350_v2  ;;  %7118 = vmatpush.bf16.msrb.mxu2 %v5391_v9  ;;  %v5078_v24 = vcvt.s32.f32 %v2774_v20  ;;  %v855_v28 = vunpack.c.0.s8 %v135_v41  ;;  %v879_v19 = vunpack.c.1.s8 %v135_v41  ;;  %v1239_v29 = vunpack.c.0.s8 %v231_v60 }
 0x24b   :  { %v5583_v34 = vpack.c.bf16 %v3615_v22, %v3591_v26  ;;  %v6134_v39 = vpack.c.bf16 %v4718_v23, %v4694_v8  ;;  %v5102_v27 = vcvt.s32.f32 %v2798_v38  ;;  %v1263_v12 = vunpack.c.1.s8 %v231_v60  ;;  %v470_v8 = vld [vmem:[#allocation2 + $0xc40] sm:$0xff] }
 0x24c   :  { %v3159_v40 = vcvt.s32.f32 %v855_v28  ;;  %v3183_v58 = vcvt.s32.f32 %v879_v19  ;;  %v3543_v32 = vcvt.s32.f32 %v1239_v29  ;;  %v6840_v50 = vadd.f32 %v9588_v10, %v9631_v59  ;;  %v566_v29 = vld [vmem:[#allocation2 + $0xf40] sm:$0xff] }
 0x24d   :  { %7131 = vmatpush.bf16.msrb.mxu3 %v5583_v34  ;;  %7093 = vmatpush.bf16.msrb.mxu0 %v6134_v39  ;;  %v6326_v21 = vpack.c.bf16 %v5102_v27, %v5078_v24  ;;  %v3567_v47 = vcvt.s32.f32 %v1263_v12  ;;  %v2342_v62 = vunpack.c.2.s8 %v494_v33  ;;  %v2366_v41 = vunpack.c.3.s8 %v494_v33  ;;  %v87_v12 = vld [vmem:[#allocation2 + $0x48] sm:$0xff] }
 0x24e   :  { %v5367_v17 = vpack.c.bf16 %v3183_v58, %v3159_v40  ;;  %v6853_v49 = vadd.f32 %v9590_v53, %v6840_v50  ;;  %v2726_v37 = vunpack.c.2.s8 %v590_v13  ;;  %v2750_v51 = vunpack.c.3.s8 %v590_v13  ;;  %v183_v50 = vld [vmem:[#allocation2 + $0x348] sm:$0xff] }
 0x24f   :  { %7106 = vmatpush.bf16.msrb.mxu1 %v6326_v21  ;;  %v5559_v57 = vpack.c.bf16 %v3567_v47, %v3543_v32  ;;  %v4646_v46 = vcvt.s32.f32 %v2342_v62  ;;  %v4670_v60 = vcvt.s32.f32 %v2366_v41  ;;  %v807_v44 = vunpack.c.2.s8 %v111_v35 }
 0x250   :  { %7119 = vmatpush.bf16.msrb.mxu2 %v5367_v17  ;;  %v5030_v10 = vcvt.s32.f32 %v2726_v37  ;;  %v5054_v59 = vcvt.s32.f32 %v2750_v51  ;;  %v831_v30 = vunpack.c.3.s8 %v111_v35  ;;  %v1191_v25 = vunpack.c.2.s8 %v207_v63 }
 0x251   :  { %7132 = vmatpush.bf16.msrb.mxu3 %v5559_v57  ;;  %v6110_v6 = vpack.c.bf16 %v4670_v60, %v4646_v46  ;;  %v3111_v15 = vcvt.s32.f32 %v807_v44  ;;  %v1215_v55 = vunpack.c.3.s8 %v207_v63  ;;  %v6866_v1 = vadd.f32 %v9608_v43, %v6853_v49 }
 0x252   :  { %v6302_v45 = vpack.c.bf16 %v5054_v59, %v5030_v10  ;;  %v3135_v53 = vcvt.s32.f32 %v831_v30  ;;  %v3495_v31 = vcvt.s32.f32 %v1191_v25  ;;  %v8297_v48 = vperm.slane %v9571_v61, 5 }
 0x253   :  { %7094 = vmatpush.bf16.msrb.mxu0 %v6110_v6  ;;  %v3519_v4 = vcvt.s32.f32 %v1215_v55  ;;  %v6879_v56 = vadd.f32 %v9610_v52, %v6866_v1  ;;  %v8375_v7 = vperm.slane %v9574_v54, 5  ;;  %v2294_v3 = vunpack.c.0.s8 %v494_v33 }
 0x254   :  { %7107 = vmatpush.bf16.msrb.mxu1 %v6302_v45  ;;  %v5343_v18 = vpack.c.bf16 %v3135_v53, %v3111_v15  ;;  %v2318_v42 = vunpack.c.1.s8 %v494_v33  ;;  %v2678_v2 = vunpack.c.0.s8 %v590_v13  ;;  %v2702_v9 = vunpack.c.1.s8 %v590_v13 }
 0x255   :  { %v5535_v26 = vpack.c.bf16 %v3519_v4, %v3495_v31  ;;  %v8345_v20 = vmul.f32 %v8297_v48, %v6879_v56  ;;  %v4598_v43 = vcvt.s32.f32 %v2294_v3  ;;  %v759_v22 = vunpack.c.0.s8 %v111_v35  ;;  %v351_v56 = vld [vmem:[#allocation2 + $0x888] sm:$0xff] }
 0x256   :  { %7120 = vmatpush.bf16.msrb.mxu2 %v5343_v18  ;;  %v4622_v23 = vcvt.s32.f32 %v2318_v42  ;;  %v4982_v61 = vcvt.s32.f32 %v2678_v2  ;;  %v5006_v38 = vcvt.s32.f32 %v2702_v9  ;;  %v783_v24 = vunpack.c.1.s8 %v111_v35 }
 0x257   :  { %7133 = vmatpush.bf16.msrb.mxu3 %v5535_v26  ;;  %v8423_v52 = vadd.f32 %v8375_v7, %v8345_v20  ;;  %v3063_v28 = vcvt.s32.f32 %v759_v22  ;;  %v1143_v54 = vunpack.c.0.s8 %v207_v63  ;;  %v1167_v19 = vunpack.c.1.s8 %v207_v63 }
 0x258   :  { %v6086_v34 = vpack.c.bf16 %v4622_v23, %v4598_v43  ;;  %v6278_v33 = vpack.c.bf16 %v5006_v38, %v4982_v61  ;;  %v3087_v39 = vcvt.s32.f32 %v783_v24  ;;  %v2246_v27 = vunpack.c.2.s8 %v470_v8  ;;  %v447_v43 = vld [vmem:[#allocation2 + $0xb88] sm:$0xff] }
 0x259   :  { %v8447_v13 = vsub.f32 0.0, %v8423_v52  ;;  %v3447_v40 = vcvt.s32.f32 %v1143_v54  ;;  %v3471_v58 = vcvt.s32.f32 %v1167_v19  ;;  %v2270_v32 = vunpack.c.3.s8 %v470_v8 }
 0x25a   :  { %7095 = vmatpush.bf16.msrb.mxu0 %v6086_v34  ;;  %7108 = vmatpush.bf16.msrb.mxu1 %v6278_v33  ;;  %v5319_v21 = vpack.c.bf16 %v3087_v39, %v3063_v28  ;;  %v4550_v35 = vcvt.s32.f32 %v2246_v27  ;;  %v2630_v47 = vunpack.c.2.s8 %v566_v29  ;;  %v2654_v62 = vunpack.c.3.s8 %v566_v29  ;;  %v543_v39 = vld [vmem:[#allocation2 + $0xe88] sm:$0xff] }
 0x25b   :  { %v8476_v41 = vmul.f32 1.442695, %v8447_v13  ;;  %v5511_v17 = vpack.c.bf16 %v3471_v58, %v3447_v40  ;;  %v4574_v63 = vcvt.s32.f32 %v2270_v32  ;;  %v711_v49 = vunpack.c.2.s8 %v87_v12 }
 0x25c   :  { %7121 = vmatpush.bf16.msrb.mxu2 %v5319_v21  ;;  %v4934_v37 = vcvt.s32.f32 %v2630_v47  ;;  %v4958_v51 = vcvt.s32.f32 %v2654_v62  ;;  %v735_v57 = vunpack.c.3.s8 %v87_v12  ;;  %v1095_v46 = vunpack.c.2.s8 %v183_v50 }
 0x25d   :  { %8953 = vpow2.f32 %v8476_v41  ;;  %7134 = vmatpush.bf16.msrb.mxu3 %v5511_v17  ;;  %v6062_v60 = vpack.c.bf16 %v4574_v63, %v4550_v35  ;;  %v3015_v44 = vcvt.s32.f32 %v711_v49  ;;  %v1119_v10 = vunpack.c.3.s8 %v183_v50  ;;  %v9673_v49 = vpop.f32.mrf.mxu0 }
 0x25e   :  { %v6254_v59 = vpack.c.bf16 %v4958_v51, %v4934_v37  ;;  %v3039_v30 = vcvt.s32.f32 %v735_v57  ;;  %v3399_v25 = vcvt.s32.f32 %v1095_v46  ;;  %v2198_v6 = vunpack.c.0.s8 %v470_v8 }
 0x25f   :  { %7096 = vmatpush.bf16.msrb.mxu0 %v6062_v60  ;;  %v3423_v15 = vcvt.s32.f32 %v1119_v10  ;;  %v2222_v55 = vunpack.c.1.s8 %v470_v8  ;;  %v2582_v1 = vunpack.c.0.s8 %v566_v29  ;;  %v2606_v45 = vunpack.c.1.s8 %v566_v29 }
 0x260   :  { %7109 = vmatpush.bf16.msrb.mxu1 %v6254_v59  ;;  %v5295_v53 = vpack.c.bf16 %v3039_v30, %v3015_v44  ;;  %v4502_v31 = vcvt.s32.f32 %v2198_v6  ;;  %v663_v48 = vunpack.c.0.s8 %v87_v12  ;;  %v687_v4 = vunpack.c.1.s8 %v87_v12  ;;  %v639_v12 = vld [vmem:[#allocation2 + $0x1188] sm:$0xff] }
 0x261   :  { %v5487_v7 = vpack.c.bf16 %v3423_v15, %v3399_v25  ;;  %v4526_v3 = vcvt.s32.f32 %v2222_v55  ;;  %v4886_v18 = vcvt.s32.f32 %v2582_v1  ;;  %v4910_v42 = vcvt.s32.f32 %v2606_v45  ;;  %v9677_v1 = vld [vmem:[#allocation2 + $0x7c8] sm:$0xff] }
 0x262   :  { %7122 = vmatpush.bf16.msrb.mxu2 %v5295_v53  ;;  %v2967_v2 = vcvt.s32.f32 %v663_v48  ;;  %v2991_v9 = vcvt.s32.f32 %v687_v4  ;;  %v1047_v26 = vunpack.c.0.s8 %v183_v50  ;;  %v1071_v20 = vunpack.c.1.s8 %v183_v50  ;;  %v9685_v4 = vld [vmem:[#allocation2 + $0xac8] sm:$0xff] }
 0x263   :  { %v8954_v22 = vpop.eup %8953  ;;  %7135 = vmatpush.bf16.msrb.mxu3 %v5487_v7  ;;  %v6038_v8 = vpack.c.bf16 %v4526_v3, %v4502_v31  ;;  %v6230_v23 = vpack.c.bf16 %v4910_v42, %v4886_v18  ;;  %v1767_v61 = vunpack.c.2.s8 %v351_v56  ;;  %v1791_v38 = vunpack.c.3.s8 %v351_v56  ;;  %v9687_v42 = vpop.f32.mrf.mxu1 }
 0x264   :  { %v9664_v24 = vadd.f32 1.0, %v8954_v22  ;;  %v5271_v52 = vpack.c.bf16 %v2991_v9, %v2967_v2  ;;  %v3351_v28 = vcvt.s32.f32 %v1047_v26  ;;  %v3375_v54 = vcvt.s32.f32 %v1071_v20 }
 0x265   :  { %7097 = vmatpush.bf16.msrb.mxu0 %v6038_v8  ;;  %7110 = vmatpush.bf16.msrb.mxu1 %v6230_v23  ;;  %v4071_v19 = vcvt.s32.f32 %v1767_v61  ;;  %v4095_v29 = vcvt.s32.f32 %v1791_v38  ;;  %v2151_v34 = vunpack.c.2.s8 %v447_v43  ;;  %v2175_v33 = vunpack.c.3.s8 %v447_v43 }
 0x266   :  { %8955 = vrcp.f32 %v9664_v24  ;;  %v8624_v27 = vand.u32 2147483648, %v9664_v24  ;;  %7123 = vmatpush.bf16.msrb.mxu2 %v5271_v52  ;;  %v5463_v13 = vpack.c.bf16 %v3375_v54, %v3351_v28  ;;  %v8622_v50 = vand.u32 2147483647, %v9664_v24 }
 0x267   :  { %v5823_v40 = vpack.c.bf16 %v4095_v29, %v4071_v19  ;;  %v4455_v58 = vcvt.s32.f32 %v2151_v34  ;;  %v4479_v32 = vcvt.s32.f32 %v2175_v33  ;;  %v2535_v35 = vunpack.c.2.s8 %v543_v39  ;;  %v615_v19 = vld [vmem:[#allocation2 + $0x10c8] sm:$0xff]  ;;  %v6893_v29 = vpop.f32.mrf.mxu0 }
 0x268   :  { %v9669_v21 = vor.u32 1.1754944e-38, %v8624_v27  ;;  %v2559_v47 = vunpack.c.3.s8 %v543_v39  ;;  %7098 = vmatmul.bf16.vlgmr.msrb.gmra.mxu0 %v9194_v11  ;;  %7111 = vmatmul.bf16.vlgmr.msrb.gmra.mxu1 %v9198_v16  ;;  %v2919_v41 = vunpack.c.2.s8 %v639_v12  ;;  %v2943_v17 = vunpack.c.3.s8 %v639_v12 }
 0x269   :  { %7136 = vmatpush.bf16.msrb.mxu3 %v5463_v13  ;;  %7142 = vmatpush.bf16.msra.mxu0 %v5823_v40  ;;  %v6015_v62 = vpack.c.bf16 %v4479_v32, %v4455_v58  ;;  %v1719_v63 = vunpack.c.0.s8 %v351_v56  ;;  %v4839_v37 = vcvt.s32.f32 %v2535_v35  ;;  %v1743_v57 = vunpack.c.1.s8 %v351_v56 }
 0x26a   :  { %v4863_v51 = vcvt.s32.f32 %v2559_v47  ;;  %v2103_v46 = vunpack.c.0.s8 %v447_v43  ;;  %7124 = vmatmul.bf16.vlgmr.msrb.gmra.mxu2 %v9163_v14  ;;  %vm8618_vm4 = vweird.f32 %v9664_v24  ;;  %v5223_v60 = vcvt.s32.f32 %v2919_v41 }
 0x26b   :  { %7155 = vmatpush.bf16.msra.mxu1 %v6015_v62  ;;  %v5247_v44 = vcvt.s32.f32 %v2943_v17  ;;  %v4023_v10 = vcvt.s32.f32 %v1719_v63  ;;  %v2127_v59 = vunpack.c.1.s8 %v447_v43  ;;  %v4047_v6 = vcvt.s32.f32 %v1743_v57  ;;  %v519_v43 = vld [vmem:[#allocation2 + $0xdc8] sm:$0xff] }
 0x26c   :  { %v8956_v30 = vpop.eup %8955  ;;  %v6207_v25 = vpack.c.bf16 %v4863_v51, %v4839_v37  ;;  %v4407_v15 = vcvt.s32.f32 %v2103_v46  ;;  %v2487_v55 = vunpack.c.0.s8 %v543_v39  ;;  %7137 = vmatmul.bf16.vlgmr.msrb.gmra.mxu3 %v9169_v36  ;;  %vm9681_vm6 = vcmp.eq.f32.partialorder %v8622_v50, 8.507059e+37  ;;  %v6906_v46 = vpop.f32.mrf.mxu1 }
 0x26d   :  { %v8614_v45 = vmul.f32 %v8956_v30, %v9664_v24  ;;  %vm8619_vm5 = vweird.f32 %v8956_v30  ;;  %v6399_v31 = vpack.c.bf16 %v5247_v44, %v5223_v60  ;;  %v4431_v48 = vcvt.s32.f32 %v2127_v59 }
 0x26e   :  { %7168 = vmatpush.bf16.msra.mxu2 %v6207_v25  ;;  %v5799_v56 = vpack.c.bf16 %v4047_v6, %v4023_v10  ;;  %v2511_v7 = vunpack.c.1.s8 %v543_v39  ;;  %v4791_v3 = vcvt.s32.f32 %v2487_v55  ;;  %v2871_v18 = vunpack.c.0.s8 %v639_v12  ;;  %vm8620_vm7 = vmor %vm8618_vm4, %vm8619_vm5 }
 0x26f   :  { %v8615_v2 = vsub.f32 1.0, %v8614_v45  ;;  %7181 = vmatpush.bf16.msra.mxu3 %v6399_v31  ;;  %v5991_v9 = vpack.c.bf16 %v4431_v48, %v4407_v15  ;;  %v2895_v26 = vunpack.c.1.s8 %v639_v12  ;;  %v1671_v20 = vunpack.c.2.s8 %v9677_v1  ;;  %v399_v31 = vld [vmem:[#allocation2 + $0xa08] sm:$0xff] }
 0x270   :  { %7143 = vmatpush.bf16.msra.mxu0 %v5799_v56  ;;  %v4815_v22 = vcvt.s32.f32 %v2511_v7  ;;  %v5175_v8 = vcvt.s32.f32 %v2871_v18  ;;  %v1695_v23 = vunpack.c.3.s8 %v9677_v1  ;;  %v2055_v61 = vunpack.c.2.s8 %v9685_v4  ;;  %v495_v18 = vld [vmem:[#allocation2 + $0xd08] sm:$0xff] }
 0x271   :  { %v8616_v38 = vmul.f32 %v8956_v30, %v8615_v2  ;;  %7156 = vmatpush.bf16.msra.mxu1 %v5991_v9  ;;  %v5199_v52 = vcvt.s32.f32 %v2895_v26  ;;  %v3975_v28 = vcvt.s32.f32 %v1671_v20  ;;  %v2079_v54 = vunpack.c.3.s8 %v9685_v4  ;;  %v591_v20 = vld [vmem:[#allocation2 + $0x1008] sm:$0xff] }
 0x272   :  { %v6183_v34 = vpack.c.bf16 %v4815_v22, %v4791_v3  ;;  %v3999_v33 = vcvt.s32.f32 %v1695_v23  ;;  %v4359_v39 = vcvt.s32.f32 %v2055_v61  ;;  %v2439_v27 = vunpack.c.2.s8 %v519_v43 }
 0x273   :  { %v8617_v12 = vadd.f32 %v8956_v30, %v8616_v38  ;;  %v6375_v13 = vpack.c.bf16 %v5199_v52, %v5175_v8  ;;  %v4383_v40 = vcvt.s32.f32 %v2079_v54  ;;  %v2463_v58 = vunpack.c.3.s8 %v519_v43 }
 0x274   :  { %7169 = vmatpush.bf16.msra.mxu2 %v6183_v34  ;;  %v5775_v32 = vpack.c.bf16 %v3999_v33, %v3975_v28  ;;  %v4743_v50 = vcvt.s32.f32 %v2439_v27  ;;  %v2823_v35 = vunpack.c.2.s8 %v615_v19  ;;  %v2847_v47 = vunpack.c.3.s8 %v615_v19  ;;  %v9706_v33 = vpop.f32.mrf.mxu2 }
 0x275   :  { %v8621_v62 = vsel %vm8620_vm7, %v8956_v30, %v8617_v12  ;;  %7182 = vmatpush.bf16.msra.mxu3 %v6375_v13  ;;  %v5967_v41 = vpack.c.bf16 %v4383_v40, %v4359_v39  ;;  %v4767_v17 = vcvt.s32.f32 %v2463_v58  ;;  %v1623_v63 = vunpack.c.0.s8 %v9677_v1  ;;  %v303_v30 = vld [vmem:[#allocation2 + $0x708] sm:$0xff] }
 0x276   :  { %v8626_v37 = vsel %vm9681_vm6, %v9669_v21, %v8621_v62  ;;  %7144 = vmatpush.bf16.msra.mxu0 %v5775_v32  ;;  %v5127_v51 = vcvt.s32.f32 %v2823_v35  ;;  %v5151_v57 = vcvt.s32.f32 %v2847_v47  ;;  %v1647_v24 = vunpack.c.1.s8 %v9677_v1 }
 0x277   :  { %8903 = vst [vmem:[%s10886_s4 + $0x28] sm:$0xff] %v8626_v37  ;;  %7157 = vmatpush.bf16.msra.mxu1 %v5967_v41  ;;  %v6159_v60 = vpack.c.bf16 %v4767_v17, %v4743_v50  ;;  %v3927_v44 = vcvt.s32.f32 %v1623_v63  ;;  %v2007_v10 = vunpack.c.0.s8 %v9685_v4  ;;  %v2031_v59 = vunpack.c.1.s8 %v9685_v4  ;;  %v9708_v17 = vld [vmem:[#allocation2 + $0x648] sm:$0xff] }
 0x278   :  { %v6351_v25 = vpack.c.bf16 %v5151_v57, %v5127_v51  ;;  %v3951_v21 = vcvt.s32.f32 %v1647_v24  ;;  %v2391_v6 = vunpack.c.0.s8 %v519_v43  ;;  %v2415_v15 = vunpack.c.1.s8 %v519_v43 }
 0x279   :  { %7170 = vmatpush.bf16.msra.mxu2 %v6159_v60  ;;  %v4311_v55 = vcvt.s32.f32 %v2007_v10  ;;  %v4335_v1 = vcvt.s32.f32 %v2031_v59  ;;  %v2775_v45 = vunpack.c.0.s8 %v615_v19  ;;  %v2799_v53 = vunpack.c.1.s8 %v615_v19  ;;  %v375_v10 = vld [vmem:[#allocation2 + $0x948] sm:$0xff]  ;;  %v9710_v59 = vpop.f32.mrf.mxu3 }
 0x27a   :  { %7183 = vmatpush.bf16.msra.mxu3 %v6351_v25  ;;  %v5751_v48 = vpack.c.bf16 %v3951_v21, %v3927_v44  ;;  %v4695_v56 = vcvt.s32.f32 %v2391_v6  ;;  %v4719_v7 = vcvt.s32.f32 %v2415_v15  ;;  %v1575_v3 = vunpack.c.2.s8 %v303_v30 }
 0x27b   :  { %v5943_v2 = vpack.c.bf16 %v4335_v1, %v4311_v55  ;;  %v5079_v9 = vcvt.s32.f32 %v2775_v45  ;;  %v5103_v4 = vcvt.s32.f32 %v2799_v53  ;;  %v1599_v26 = vunpack.c.3.s8 %v303_v30  ;;  %v471_v55 = vld [vmem:[#allocation2 + $0xc48] sm:$0xff] }
 0x27c   :  { %7145 = vmatpush.bf16.msra.mxu0 %v5751_v48  ;;  %v6135_v22 = vpack.c.bf16 %v4719_v7, %v4695_v56  ;;  %v3879_v43 = vcvt.s32.f32 %v1575_v3  ;;  %v1959_v8 = vunpack.c.2.s8 %v399_v31  ;;  %v1983_v23 = vunpack.c.3.s8 %v399_v31  ;;  %v567_v48 = vld [vmem:[#allocation2 + $0xf48] sm:$0xff] }
 0x27d   :  { %7158 = vmatpush.bf16.msra.mxu1 %v5943_v2  ;;  %v6327_v61 = vpack.c.bf16 %v5103_v4, %v5079_v9  ;;  %v3903_v38 = vcvt.s32.f32 %v1599_v26  ;;  %v2343_v52 = vunpack.c.2.s8 %v495_v18  ;;  %v2367_v28 = vunpack.c.3.s8 %v495_v18  ;;  %v6919_v2 = vpop.f32.mrf.mxu2 }
 0x27e   :  { %7171 = vmatpush.bf16.msra.mxu2 %v6135_v22  ;;  %v4263_v54 = vcvt.s32.f32 %v1959_v8  ;;  %v4287_v19 = vcvt.s32.f32 %v1983_v23  ;;  %v2727_v29 = vunpack.c.2.s8 %v591_v20  ;;  %v2751_v34 = vunpack.c.3.s8 %v591_v20 }
 0x27f   :  { %7184 = vmatpush.bf16.msra.mxu3 %v6327_v61  ;;  %v5727_v39 = vpack.c.bf16 %v3903_v38, %v3879_v43  ;;  %v4647_v27 = vcvt.s32.f32 %v2343_v52  ;;  %v4671_v12 = vcvt.s32.f32 %v2367_v28  ;;  %v1527_v13 = vunpack.c.0.s8 %v303_v30  ;;  %v9716_v61 = vpop.f32.mrf.mxu1 }
 0x280   :  { %v5919_v40 = vpack.c.bf16 %v4287_v19, %v4263_v54  ;;  %v5031_v58 = vcvt.s32.f32 %v2727_v29  ;;  %v5055_v32 = vcvt.s32.f32 %v2751_v34  ;;  %v1551_v50 = vunpack.c.1.s8 %v303_v30  ;;  %v9712_v30 = vpop.f32.mrf.mxu0 }
 0x281   :  { %7146 = vmatpush.bf16.msra.mxu0 %v5727_v39  ;;  %v6111_v35 = vpack.c.bf16 %v4671_v12, %v4647_v27  ;;  %v3831_v47 = vcvt.s32.f32 %v1527_v13  ;;  %v1911_v62 = vunpack.c.0.s8 %v399_v31  ;;  %v1935_v41 = vunpack.c.1.s8 %v399_v31 }
 0x282   :  { %7159 = vmatpush.bf16.msra.mxu1 %v5919_v40  ;;  %v6303_v63 = vpack.c.bf16 %v5055_v32, %v5031_v58  ;;  %v3855_v37 = vcvt.s32.f32 %v1551_v50  ;;  %v2295_v51 = vunpack.c.0.s8 %v495_v18  ;;  %v2319_v57 = vunpack.c.1.s8 %v495_v18  ;;  %v160_v58 = vld [vmem:[#allocation2 + $0x290] sm:$0xff]  ;;  %v6932_v32 = vpop.f32.mrf.mxu3 }
 0x283   :  { %7172 = vmatpush.bf16.msra.mxu2 %v6111_v35  ;;  %v4215_v24 = vcvt.s32.f32 %v1911_v62  ;;  %v4239_v46 = vcvt.s32.f32 %v1935_v41  ;;  %v2679_v60 = vunpack.c.0.s8 %v591_v20  ;;  %v2703_v44 = vunpack.c.1.s8 %v591_v20 }
 0x284   :  { %7185 = vmatpush.bf16.msra.mxu3 %v6303_v63  ;;  %v5703_v25 = vpack.c.bf16 %v3855_v37, %v3831_v47  ;;  %v4599_v21 = vcvt.s32.f32 %v2295_v51  ;;  %v4623_v6 = vcvt.s32.f32 %v2319_v57  ;;  %v1479_v15 = vunpack.c.2.s8 %v9708_v17  ;;  %v256_v51 = vld [vmem:[#allocation2 + $0x590] sm:$0xff] }
 0x285   :  { %v5895_v1 = vpack.c.bf16 %v4239_v46, %v4215_v24  ;;  %v4983_v45 = vcvt.s32.f32 %v2679_v60  ;;  %v5007_v53 = vcvt.s32.f32 %v2703_v44  ;;  %v1503_v31 = vunpack.c.3.s8 %v9708_v17  ;;  %v352_v60 = vld [vmem:[#allocation2 + $0x890] sm:$0xff] }
 0x286   :  { %7147 = vmatpush.bf16.msra.mxu0 %v5703_v25  ;;  %v6087_v56 = vpack.c.bf16 %v4623_v6, %v4599_v21  ;;  %v3783_v7 = vcvt.s32.f32 %v1479_v15  ;;  %v1863_v3 = vunpack.c.2.s8 %v375_v10  ;;  %v1887_v18 = vunpack.c.3.s8 %v375_v10  ;;  %v448_v6 = vld [vmem:[#allocation2 + $0xb90] sm:$0xff] }
 0x287   :  { %7160 = vmatpush.bf16.msra.mxu1 %v5895_v1  ;;  %v6279_v9 = vpack.c.bf16 %v5007_v53, %v4983_v45  ;;  %v3807_v4 = vcvt.s32.f32 %v1503_v31  ;;  %v2247_v26 = vunpack.c.2.s8 %v471_v55  ;;  %v2271_v20 = vunpack.c.3.s8 %v471_v55  ;;  %v6958_v53 = vpop.f32.mrf.mxu1 }
 0x288   :  { %7173 = vmatpush.bf16.msra.mxu2 %v6087_v56  ;;  %v4167_v22 = vcvt.s32.f32 %v1863_v3  ;;  %v4191_v43 = vcvt.s32.f32 %v1887_v18  ;;  %v2631_v8 = vunpack.c.2.s8 %v567_v48  ;;  %v2655_v23 = vunpack.c.3.s8 %v567_v48  ;;  %v6945_v50 = vpop.f32.mrf.mxu0 }
 0x289   :  { %7186 = vmatpush.bf16.msra.mxu3 %v6279_v9  ;;  %v5679_v38 = vpack.c.bf16 %v3807_v4, %v3783_v7  ;;  %v4551_v52 = vcvt.s32.f32 %v2247_v26  ;;  %v4575_v28 = vcvt.s32.f32 %v2271_v20  ;;  %v9720_v54 = vadd.f32 %v9687_v42, %v9673_v49 }
 0x28a   :  { %v5871_v19 = vpack.c.bf16 %v4191_v43, %v4167_v22  ;;  %v4935_v29 = vcvt.s32.f32 %v2631_v8  ;;  %v4959_v34 = vcvt.s32.f32 %v2655_v23  ;;  %v1431_v39 = vunpack.c.0.s8 %v9708_v17 }
 0x28b   :  { %7148 = vmatpush.bf16.msra.mxu0 %v5679_v38  ;;  %v6063_v27 = vpack.c.bf16 %v4575_v28, %v4551_v52  ;;  %v1455_v12 = vunpack.c.1.s8 %v9708_v17  ;;  %v1815_v13 = vunpack.c.0.s8 %v375_v10  ;;  %v1839_v40 = vunpack.c.1.s8 %v375_v10 }
 0x28c   :  { %7161 = vmatpush.bf16.msra.mxu1 %v5871_v19  ;;  %v6255_v35 = vpack.c.bf16 %v4959_v34, %v4935_v29  ;;  %v3735_v47 = vcvt.s32.f32 %v1431_v39  ;;  %v2199_v62 = vunpack.c.0.s8 %v471_v55  ;;  %v2223_v49 = vunpack.c.1.s8 %v471_v55 }
 0x28d   :  { %7174 = vmatpush.bf16.msra.mxu2 %v6063_v27  ;;  %v3759_v42 = vcvt.s32.f32 %v1455_v12  ;;  %v4119_v41 = vcvt.s32.f32 %v1815_v13  ;;  %v4143_v63 = vcvt.s32.f32 %v1839_v40  ;;  %v2583_v37 = vunpack.c.0.s8 %v567_v48  ;;  %v136_v13 = vld [vmem:[#allocation2 + $0x1d0] sm:$0xff] }
 0x28e   :  { %7187 = vmatpush.bf16.msra.mxu3 %v6255_v35  ;;  %v4503_v57 = vcvt.s32.f32 %v2199_v62  ;;  %v4527_v24 = vcvt.s32.f32 %v2223_v49  ;;  %v2607_v17 = vunpack.c.1.s8 %v567_v48  ;;  %v1000_v46 = vunpack.c.2.s8 %v160_v58  ;;  %v232_v35 = vld [vmem:[#allocation2 + $0x4d0] sm:$0xff] }
 0x28f   :  { %v5655_v44 = vpack.c.bf16 %v3759_v42, %v3735_v47  ;;  %v5847_v10 = vpack.c.bf16 %v4143_v63, %v4119_v41  ;;  %v4887_v25 = vcvt.s32.f32 %v2583_v37  ;;  %v1024_v21 = vunpack.c.3.s8 %v160_v58  ;;  %v328_v41 = vld [vmem:[#allocation2 + $0x7d0] sm:$0xff] }
 0x290   :  { %v6039_v15 = vpack.c.bf16 %v4527_v24, %v4503_v57  ;;  %v4911_v1 = vcvt.s32.f32 %v2607_v17  ;;  %v3304_v55 = vcvt.s32.f32 %v1000_v46  ;;  %v1384_v45 = vunpack.c.2.s8 %v256_v51 }
 0x291   :  { %7149 = vmatpush.bf16.msra.mxu0 %v5655_v44  ;;  %7162 = vmatpush.bf16.msra.mxu1 %v5847_v10  ;;  %v3328_v31 = vcvt.s32.f32 %v1024_v21  ;;  %v1408_v56 = vunpack.c.3.s8 %v256_v51  ;;  %v1768_v7 = vunpack.c.2.s8 %v352_v60  ;;  %v1792_v3 = vunpack.c.3.s8 %v352_v60  ;;  %v424_v44 = vld [vmem:[#allocation2 + $0xad0] sm:$0xff] }
 0x292   :  { %7175 = vmatpush.bf16.msra.mxu2 %v6039_v15  ;;  %v6231_v48 = vpack.c.bf16 %v4911_v1, %v4887_v25  ;;  %v3688_v18 = vcvt.s32.f32 %v1384_v45  ;;  %v2152_v2 = vunpack.c.2.s8 %v448_v6  ;;  %v2176_v9 = vunpack.c.3.s8 %v448_v6 }
 0x293   :  { %v5440_v4 = vpack.c.bf16 %v3328_v31, %v3304_v55  ;;  %v3712_v26 = vcvt.s32.f32 %v1408_v56  ;;  %v4072_v20 = vcvt.s32.f32 %v1768_v7  ;;  %v4096_v22 = vcvt.s32.f32 %v1792_v3 }
 0x294   :  { %7188 = vmatpush.bf16.msra.mxu3 %v6231_v48  ;;  %v4456_v43 = vcvt.s32.f32 %v2152_v2  ;;  %v4480_v8 = vcvt.s32.f32 %v2176_v9  ;;  %7150 = vmatmul.bf16.vlgmr.msra.gmra.mxu0 %v9178_v0  ;;  %v952_v23 = vunpack.c.0.s8 %v160_v58  ;;  %v976_v38 = vunpack.c.1.s8 %v160_v58 }
 0x295   :  { %7194 = vmatpush.bf16.msrb.mxu0 %v5440_v4  ;;  %v5632_v52 = vpack.c.bf16 %v3712_v26, %v3688_v18  ;;  %v5824_v28 = vpack.c.bf16 %v4096_v22, %v4072_v20  ;;  %7176 = vmatmul.bf16.vlgmr.msra.gmra.mxu2 %v9194_v11  ;;  %v1336_v19 = vunpack.c.0.s8 %v256_v51  ;;  %v1360_v29 = vunpack.c.1.s8 %v256_v51 }
 0x296   :  { %v6016_v34 = vpack.c.bf16 %v4480_v8, %v4456_v43  ;;  %v3256_v39 = vcvt.s32.f32 %v952_v23  ;;  %v3280_v27 = vcvt.s32.f32 %v976_v38  ;;  %v1720_v12 = vunpack.c.0.s8 %v352_v60  ;;  %7163 = vmatmul.bf16.vlgmr.msra.gmra.mxu1 %v9180_v5 }
 0x297   :  { %7207 = vmatpush.bf16.msrb.mxu1 %v5632_v52  ;;  %7220 = vmatpush.bf16.msrb.mxu2 %v5824_v28  ;;  %v3640_v40 = vcvt.s32.f32 %v1336_v19  ;;  %v3664_v32 = vcvt.s32.f32 %v1360_v29  ;;  %v1744_v50 = vunpack.c.1.s8 %v352_v60  ;;  %v2104_v58 = vunpack.c.0.s8 %v448_v6 }
 0x298   :  { %7233 = vmatpush.bf16.msrb.mxu3 %v6016_v34  ;;  %v5416_v47 = vpack.c.bf16 %v3280_v27, %v3256_v39  ;;  %v4024_v62 = vcvt.s32.f32 %v1720_v12  ;;  %v2128_v49 = vunpack.c.1.s8 %v448_v6  ;;  %v6918_v42 = vadd.f32 %v9706_v33, %v9720_v54  ;;  %v112_v34 = vld [vmem:[#allocation2 + $0x110] sm:$0xff] }
 0x299   :  { %7189 = vmatmul.bf16.vlgmr.msra.gmra.mxu3 %v9198_v16  ;;  %v5608_v63 = vpack.c.bf16 %v3664_v32, %v3640_v40  ;;  %v4048_v37 = vcvt.s32.f32 %v1744_v50  ;;  %v4408_v51 = vcvt.s32.f32 %v2104_v58  ;;  %v904_v57 = vunpack.c.2.s8 %v136_v13  ;;  %v9733_v58 = vld [vmem:[#allocation4] sm:$0xff] }
 0x29a   :  { %7195 = vmatpush.bf16.msrb.mxu0 %v5416_v47  ;;  %v4432_v24 = vcvt.s32.f32 %v2128_v49  ;;  %v928_v17 = vunpack.c.3.s8 %v136_v13  ;;  %v1288_v46 = vunpack.c.2.s8 %v232_v35  ;;  %v1312_v60 = vunpack.c.3.s8 %v232_v35  ;;  %v304_v47 = vld [vmem:[#allocation2 + $0x710] sm:$0xff]  ;;  %v9736_v49 = vld [vmem:[#allocation6] sm:$0xff] }
 0x29b   :  { %7208 = vmatpush.bf16.msrb.mxu1 %v5608_v63  ;;  %v5800_v10 = vpack.c.bf16 %v4048_v37, %v4024_v62  ;;  %v3208_v25 = vcvt.s32.f32 %v904_v57  ;;  %v1672_v21 = vunpack.c.2.s8 %v328_v41  ;;  %v1696_v6 = vunpack.c.3.s8 %v328_v41  ;;  %v400_v37 = vld [vmem:[#allocation2 + $0xa10] sm:$0xff] }
 0x29c   :  { %v5992_v15 = vpack.c.bf16 %v4432_v24, %v4408_v51  ;;  %v3232_v33 = vcvt.s32.f32 %v928_v17  ;;  %v3592_v54 = vcvt.s32.f32 %v1288_v46  ;;  %v3616_v1 = vcvt.s32.f32 %v1312_v60 }
 0x29d   :  { %7221 = vmatpush.bf16.msrb.mxu2 %v5800_v10  ;;  %v3976_v55 = vcvt.s32.f32 %v1672_v21  ;;  %v4000_v45 = vcvt.s32.f32 %v1696_v6  ;;  %v2056_v53 = vunpack.c.2.s8 %v424_v44  ;;  %v2080_v31 = vunpack.c.3.s8 %v424_v44  ;;  %v9739_v10 = vpop.f32.mrf.mxu2 }
 0x29e   :  { %7234 = vmatpush.bf16.msrb.mxu3 %v5992_v15  ;;  %v5392_v56 = vpack.c.bf16 %v3232_v33, %v3208_v25  ;;  %v5584_v7 = vpack.c.bf16 %v3616_v1, %v3592_v54  ;;  %v6931_v3 = vadd.f32 %v9710_v59, %v6918_v42  ;;  %v856_v48 = vunpack.c.0.s8 %v136_v13  ;;  %v9741_v33 = vpop.f32.mrf.mxu3 }
 0x29f   :  { %v5776_v18 = vpack.c.bf16 %v4000_v45, %v3976_v55  ;;  %v4360_v2 = vcvt.s32.f32 %v2056_v53  ;;  %v4384_v9 = vcvt.s32.f32 %v2080_v31  ;;  %v880_v4 = vunpack.c.1.s8 %v136_v13 }
 0x2a0   :  { %7196 = vmatpush.bf16.msrb.mxu0 %v5392_v56  ;;  %7209 = vmatpush.bf16.msrb.mxu1 %v5584_v7  ;;  %v6944_v26 = vadd.f32 %v9712_v30, %v6931_v3  ;;  %v3160_v20 = vcvt.s32.f32 %v856_v48  ;;  %v1240_v22 = vunpack.c.0.s8 %v232_v35  ;;  %v1264_v43 = vunpack.c.1.s8 %v232_v35  ;;  %v208_v30 = vld [vmem:[#allocation2 + $0x410] sm:$0xff] }
 0x2a1   :  { %7222 = vmatpush.bf16.msrb.mxu2 %v5776_v18  ;;  %v5968_v8 = vpack.c.bf16 %v4384_v9, %v4360_v2  ;;  %v3184_v23 = vcvt.s32.f32 %v880_v4  ;;  %v1624_v38 = vunpack.c.0.s8 %v328_v41  ;;  %v1648_v52 = vunpack.c.1.s8 %v328_v41 }
 0x2a2   :  { %v3544_v28 = vcvt.s32.f32 %v1240_v22  ;;  %v3568_v19 = vcvt.s32.f32 %v1264_v43  ;;  %v2008_v59 = vunpack.c.0.s8 %v424_v44  ;;  %v2032_v29 = vunpack.c.1.s8 %v424_v44  ;;  %v88_v22 = vld [vmem:[#allocation2 + $0x50] sm:$0xff] }
 0x2a3   :  { %7235 = vmatpush.bf16.msrb.mxu3 %v5968_v8  ;;  %v5368_v39 = vpack.c.bf16 %v3184_v23, %v3160_v20  ;;  %v3928_v27 = vcvt.s32.f32 %v1624_v38  ;;  %v3952_v12 = vcvt.s32.f32 %v1648_v52  ;;  %v6957_v13 = vadd.f32 %v9716_v61, %v6944_v26  ;;  %v9743_v52 = vld [vmem:[#allocation2 + $0x350] sm:$0xff] }
 0x2a4   :  { %v5560_v40 = vpack.c.bf16 %v3568_v19, %v3544_v28  ;;  %v4312_v32 = vcvt.s32.f32 %v2008_v59  ;;  %v4336_v50 = vcvt.s32.f32 %v2032_v29  ;;  %v8298_v35 = vperm.slane %v9733_v58, 6 }
 0x2a5   :  { %7197 = vmatpush.bf16.msrb.mxu0 %v5368_v39  ;;  %v5752_v62 = vpack.c.bf16 %v3952_v12, %v3928_v27  ;;  %v8376_v42 = vperm.slane %v9736_v49, 6  ;;  %v808_v41 = vunpack.c.2.s8 %v112_v34  ;;  %v832_v63 = vunpack.c.3.s8 %v112_v34  ;;  %v280_v12 = vld [vmem:[#allocation2 + $0x650] sm:$0xff] }
 0x2a6   :  { %7210 = vmatpush.bf16.msrb.mxu1 %v5560_v40  ;;  %v5944_v61 = vpack.c.bf16 %v4336_v50, %v4312_v32  ;;  %v8346_v51 = vmul.f32 %v8298_v35, %v6957_v13  ;;  %v1192_v57 = vunpack.c.2.s8 %v208_v30  ;;  %v1216_v24 = vunpack.c.3.s8 %v208_v30  ;;  %v6971_v13 = vpop.f32.mrf.mxu2  ;;  %v376_v35 = vld [vmem:[#allocation2 + $0x950] sm:$0xff] }
 0x2a7   :  { %7223 = vmatpush.bf16.msrb.mxu2 %v5752_v62  ;;  %v3112_v17 = vcvt.s32.f32 %v808_v41  ;;  %v3136_v46 = vcvt.s32.f32 %v832_v63  ;;  %v1576_v60 = vunpack.c.2.s8 %v304_v47  ;;  %v1600_v44 = vunpack.c.3.s8 %v304_v47 }
 0x2a8   :  { %7236 = vmatpush.bf16.msrb.mxu3 %v5944_v61  ;;  %v8424_v25 = vadd.f32 %v8376_v42, %v8346_v51  ;;  %v3496_v21 = vcvt.s32.f32 %v1192_v57  ;;  %v3520_v6 = vcvt.s32.f32 %v1216_v24  ;;  %v1960_v15 = vunpack.c.2.s8 %v400_v37 }
 0x2a9   :  { %v5344_v54 = vpack.c.bf16 %v3136_v46, %v3112_v17  ;;  %v3880_v1 = vcvt.s32.f32 %v1576_v60  ;;  %v3904_v55 = vcvt.s32.f32 %v1600_v44  ;;  %v1984_v45 = vunpack.c.3.s8 %v400_v37 }
 0x2aa   :  { %v8448_v53 = vsub.f32 0.0, %v8424_v25  ;;  %v5536_v31 = vpack.c.bf16 %v3520_v6, %v3496_v21  ;;  %v4264_v56 = vcvt.s32.f32 %v1960_v15  ;;  %v760_v7 = vunpack.c.0.s8 %v112_v34 }
 0x2ab   :  { %7198 = vmatpush.bf16.msrb.mxu0 %v5344_v54  ;;  %v5728_v3 = vpack.c.bf16 %v3904_v55, %v3880_v1  ;;  %v4288_v48 = vcvt.s32.f32 %v1984_v45  ;;  %v784_v18 = vunpack.c.1.s8 %v112_v34  ;;  %v1144_v2 = vunpack.c.0.s8 %v208_v30 }
 0x2ac   :  { %v8478_v9 = vmul.f32 1.442695, %v8448_v53  ;;  %7211 = vmatpush.bf16.msrb.mxu1 %v5536_v31  ;;  %v3064_v4 = vcvt.s32.f32 %v760_v7  ;;  %v1168_v26 = vunpack.c.1.s8 %v208_v30  ;;  %v1528_v20 = vunpack.c.0.s8 %v304_v47 }
 0x2ad   :  { %7224 = vmatpush.bf16.msrb.mxu2 %v5728_v3  ;;  %v5920_v43 = vpack.c.bf16 %v4288_v48, %v4264_v56  ;;  %v3088_v8 = vcvt.s32.f32 %v784_v18  ;;  %v3448_v23 = vcvt.s32.f32 %v1144_v2  ;;  %v1552_v38 = vunpack.c.1.s8 %v304_v47  ;;  %v6984_v47 = vpop.f32.mrf.mxu3  ;;  %v9750_v3 = vpop.f32.mrf.mxu0 }
 0x2ae   :  { %8957 = vpow2.f32 %v8478_v9  ;;  %v3472_v28 = vcvt.s32.f32 %v1168_v26  ;;  %v3832_v19 = vcvt.s32.f32 %v1528_v20  ;;  %v1912_v59 = vunpack.c.0.s8 %v400_v37  ;;  %v9752_v48 = vpop.f32.mrf.mxu1  ;;  %v9757_v20 = vld [vmem:[#allocation2 + $0xe90] sm:$0xff] }
 0x2af   :  { %7237 = vmatpush.bf16.msrb.mxu3 %v5920_v43  ;;  %v5320_v29 = vpack.c.bf16 %v3088_v8, %v3064_v4  ;;  %v3856_v34 = vcvt.s32.f32 %v1552_v38  ;;  %v1936_v39 = vunpack.c.1.s8 %v400_v37  ;;  %v712_v27 = vunpack.c.2.s8 %v88_v22  ;;  %v9762_v38 = vld [vmem:[#allocation2 + $0x1190] sm:$0xff] }
 0x2b0   :  { %v5512_v30 = vpack.c.bf16 %v3472_v28, %v3448_v23  ;;  %v4216_v40 = vcvt.s32.f32 %v1912_v59  ;;  %v736_v32 = vunpack.c.3.s8 %v88_v22  ;;  %v1096_v50 = vunpack.c.2.s8 %v9743_v52 }
 0x2b1   :  { %7199 = vmatpush.bf16.msrb.mxu0 %v5320_v29  ;;  %v5704_v62 = vpack.c.bf16 %v3856_v34, %v3832_v19  ;;  %v4240_v42 = vcvt.s32.f32 %v1936_v39  ;;  %v3016_v41 = vcvt.s32.f32 %v712_v27  ;;  %v1120_v63 = vunpack.c.3.s8 %v9743_v52 }
 0x2b2   :  { %7212 = vmatpush.bf16.msrb.mxu1 %v5512_v30  ;;  %v3040_v61 = vcvt.s32.f32 %v736_v32  ;;  %v3400_v51 = vcvt.s32.f32 %v1096_v50  ;;  %v1480_v37 = vunpack.c.2.s8 %v280_v12  ;;  %v1504_v57 = vunpack.c.3.s8 %v280_v12  ;;  %v9768_v32 = vld [vmem:[#allocation2 + $0x298] sm:$0xff]  ;;  %v9770_v50 = vpop.f32.mrf.mxu2 }
 0x2b3   :  { %7225 = vmatpush.bf16.msrb.mxu2 %v5704_v62  ;;  %v5896_v24 = vpack.c.bf16 %v4240_v42, %v4216_v40  ;;  %v3424_v17 = vcvt.s32.f32 %v1120_v63  ;;  %v1864_v46 = vunpack.c.2.s8 %v376_v35  ;;  %v1888_v60 = vunpack.c.3.s8 %v376_v35 }
 0x2b4   :  { %v8958_v44 = vpop.eup %8957  ;;  %v5296_v25 = vpack.c.bf16 %v3040_v61, %v3016_v41  ;;  %v3784_v21 = vcvt.s32.f32 %v1480_v37  ;;  %v3808_v6 = vcvt.s32.f32 %v1504_v57  ;;  %v664_v15 = vunpack.c.0.s8 %v88_v22  ;;  %v9777_v61 = vld [vmem:[#allocation2 + $0x598] sm:$0xff] }
 0x2b5   :  { %v9747_v54 = vadd.f32 1.0, %v8958_v44  ;;  %7238 = vmatpush.bf16.msrb.mxu3 %v5896_v24  ;;  %v5488_v1 = vpack.c.bf16 %v3424_v17, %v3400_v51  ;;  %v4168_v55 = vcvt.s32.f32 %v1864_v46  ;;  %v4192_v45 = vcvt.s32.f32 %v1888_v60  ;;  %v9772_v47 = vpop.f32.mrf.mxu3  ;;  %v6997_v17 = vpop.f32.mrf.mxu0 }
 0x2b6   :  { %7200 = vmatpush.bf16.msrb.mxu0 %v5296_v25  ;;  %v5680_v53 = vpack.c.bf16 %v3808_v6, %v3784_v21  ;;  %v688_v31 = vunpack.c.1.s8 %v88_v22  ;;  %v2968_v56 = vcvt.s32.f32 %v664_v15  ;;  %v1048_v7 = vunpack.c.0.s8 %v9743_v52  ;;  %v7010_v46 = vpop.f32.mrf.mxu1 }
 0x2b7   :  { %8959 = vrcp.f32 %v9747_v54  ;;  %v8639_v18 = vand.u32 2147483648, %v9747_v54  ;;  %7213 = vmatpush.bf16.msrb.mxu1 %v5488_v1  ;;  %v5872_v2 = vpack.c.bf16 %v4192_v45, %v4168_v55  ;;  %v1072_v4 = vunpack.c.1.s8 %v9743_v52 }
 0x2b8   :  { %7226 = vmatpush.bf16.msrb.mxu2 %v5680_v53  ;;  %v2992_v9 = vcvt.s32.f32 %v688_v31  ;;  %v3352_v26 = vcvt.s32.f32 %v1048_v7  ;;  %v8637_v22 = vand.u32 2147483647, %v9747_v54  ;;  %v1432_v8 = vunpack.c.0.s8 %v280_v12 }
 0x2b9   :  { %v9760_v43 = vor.u32 1.1754944e-38, %v8639_v18  ;;  %v1456_v23 = vunpack.c.1.s8 %v280_v12  ;;  %vm8633_vm8 = vweird.f32 %v9747_v54  ;;  %7239 = vmatpush.bf16.msrb.mxu3 %v5872_v2  ;;  %v3376_v19 = vcvt.s32.f32 %v1072_v4 }
 0x2ba   :  { %v5272_v28 = vpack.c.bf16 %v2992_v9, %v2968_v56  ;;  %v1816_v59 = vunpack.c.0.s8 %v376_v35  ;;  %v1840_v29 = vunpack.c.1.s8 %v376_v35  ;;  %v3736_v34 = vcvt.s32.f32 %v1432_v8 }
 0x2bb   :  { %v3760_v52 = vcvt.s32.f32 %v1456_v23  ;;  %v2536_v39 = vunpack.c.2.s8 %v9757_v20  ;;  %v2560_v27 = vunpack.c.3.s8 %v9757_v20  ;;  %v5464_v13 = vpack.c.bf16 %v3376_v19, %v3352_v26  ;;  %v7023_v19 = vpop.f32.mrf.mxu2 }
 0x2bc   :  { %7201 = vmatpush.bf16.msrb.mxu0 %v5272_v28  ;;  %v4120_v30 = vcvt.s32.f32 %v1816_v59  ;;  %v4144_v40 = vcvt.s32.f32 %v1840_v29  ;;  %v2920_v12 = vunpack.c.2.s8 %v9762_v38  ;;  %v2944_v63 = vunpack.c.3.s8 %v9762_v38 }
 0x2bd   :  { %v9774_v62 = vpop.eup %8959  ;;  %v5656_v35 = vpack.c.bf16 %v3760_v52, %v3736_v34  ;;  %v4840_v42 = vcvt.s32.f32 %v2536_v39  ;;  %v4864_v41 = vcvt.s32.f32 %v2560_v27  ;;  %vm9782_vm10 = vcmp.eq.f32.partialorder %v8637_v22, 8.507059e+37  ;;  %7214 = vmatpush.bf16.msrb.mxu1 %v5464_v13  ;;  %v7036_v59 = vpop.f32.mrf.mxu3  ;;  %v520_v52 = vld [vmem:[#allocation2 + $0xdd0] sm:$0xff] }
 0x2be   :  { %v8629_v51 = vmul.f32 %v9774_v62, %v9747_v54  ;;  %vm8634_vm9 = vweird.f32 %v9774_v62  ;;  %v5848_v57 = vpack.c.bf16 %v4144_v40, %v4120_v30  ;;  %v5224_v24 = vcvt.s32.f32 %v2920_v12  ;;  %v616_v39 = vld [vmem:[#allocation2 + $0x10d0] sm:$0xff]  ;;  %v137_v12 = vld [vmem:[#allocation2 + $0x1d8] sm:$0xff] }
 0x2bf   :  { %7227 = vmatpush.bf16.msrb.mxu2 %v5656_v35  ;;  %v6208_v60 = vpack.c.bf16 %v4864_v41, %v4840_v42  ;;  %v5248_v44 = vcvt.s32.f32 %v2944_v63  ;;  %v1001_v25 = vunpack.c.2.s8 %v9768_v32  ;;  %v1025_v21 = vunpack.c.3.s8 %v9768_v32  ;;  %7202 = vmatmul.bf16.vlgmr.msrb.gmra.mxu0 %v9163_v14  ;;  %vm8635_vm11 = vmor %vm8633_vm8, %vm8634_vm9 }
 0x2c0   :  { %v8630_v6 = vsub.f32 1.0, %v8629_v51  ;;  %7240 = vmatpush.bf16.msrb.mxu3 %v5848_v57  ;;  %v1385_v15 = vunpack.c.2.s8 %v9777_v61  ;;  %v1409_v1 = vunpack.c.3.s8 %v9777_v61  ;;  %v9793_v55 = vadd.f32 %v9741_v33, %v9739_v10  ;;  %7215 = vmatmul.bf16.vlgmr.msrb.gmra.mxu1 %v9169_v36  ;;  %v233_v57 = vld [vmem:[#allocation2 + $0x4d8] sm:$0xff] }
 0x2c1   :  { %7246 = vmatpush.bf16.msra.mxu0 %v6208_v60  ;;  %v6400_v45 = vpack.c.bf16 %v5248_v44, %v5224_v24  ;;  %v3305_v53 = vcvt.s32.f32 %v1001_v25  ;;  %v3329_v31 = vcvt.s32.f32 %v1025_v21  ;;  %v2488_v56 = vunpack.c.0.s8 %v9757_v20 }
 0x2c2   :  { %v8631_v7 = vmul.f32 %v9774_v62, %v8630_v6  ;;  %v3689_v18 = vcvt.s32.f32 %v1385_v15  ;;  %v3713_v2 = vcvt.s32.f32 %v1409_v1  ;;  %v2512_v9 = vunpack.c.1.s8 %v9757_v20  ;;  %7228 = vmatmul.bf16.vlgmr.msrb.gmra.mxu2 %v9178_v0 }
 0x2c3   :  { %7259 = vmatpush.bf16.msra.mxu1 %v6400_v45  ;;  %v5441_v4 = vpack.c.bf16 %v3329_v31, %v3305_v53  ;;  %v4792_v10 = vcvt.s32.f32 %v2488_v56  ;;  %v2872_v33 = vunpack.c.0.s8 %v9762_v38  ;;  %v2896_v26 = vunpack.c.1.s8 %v9762_v38  ;;  %7241 = vmatmul.bf16.vlgmr.msrb.gmra.mxu3 %v9180_v5 }
 0x2c4   :  { %v8632_v22 = vadd.f32 %v9774_v62, %v8631_v7  ;;  %v5633_v8 = vpack.c.bf16 %v3713_v2, %v3689_v18  ;;  %v4816_v23 = vcvt.s32.f32 %v2512_v9  ;;  %v953_v28 = vunpack.c.0.s8 %v9768_v32 }
 0x2c5   :  { %7272 = vmatpush.bf16.msra.mxu2 %v5441_v4  ;;  %v5176_v20 = vcvt.s32.f32 %v2872_v33  ;;  %v5200_v29 = vcvt.s32.f32 %v2896_v26  ;;  %v977_v38 = vunpack.c.1.s8 %v9768_v32  ;;  %v1337_v34 = vunpack.c.0.s8 %v9777_v61 }
 0x2c6   :  { %v8636_v27 = vsel %vm8635_vm11, %v9774_v62, %v8632_v22  ;;  %7285 = vmatpush.bf16.msra.mxu3 %v5633_v8  ;;  %v6184_v13 = vpack.c.bf16 %v4816_v23, %v4792_v10  ;;  %v3257_v30 = vcvt.s32.f32 %v953_v28  ;;  %v1361_v40 = vunpack.c.1.s8 %v9777_v61  ;;  %v496_v28 = vld [vmem:[#allocation2 + $0xd10] sm:$0xff] }
 0x2c7   :  { %v8641_v54 = vsel %vm9782_vm10, %v9760_v43, %v8636_v27  ;;  %v6376_v35 = vpack.c.bf16 %v5200_v29, %v5176_v20  ;;  %v3281_v42 = vcvt.s32.f32 %v977_v38  ;;  %v3641_v41 = vcvt.s32.f32 %v1337_v34  ;;  %v592_v38 = vld [vmem:[#allocation2 + $0x1010] sm:$0xff] }
 0x2c8   :  { %8904 = vst [vmem:[%s10886_s4 + $0x30] sm:$0xff] %v8641_v54  ;;  %7247 = vmatpush.bf16.msra.mxu0 %v6184_v13  ;;  %v3665_v32 = vcvt.s32.f32 %v1361_v40  ;;  %v2440_v62 = vunpack.c.2.s8 %v520_v52  ;;  %v2464_v63 = vunpack.c.3.s8 %v520_v52  ;;  %v2824_v51 = vunpack.c.2.s8 %v616_v39 }
 0x2c9   :  { %7260 = vmatpush.bf16.msra.mxu1 %v6376_v35  ;;  %v5417_v61 = vpack.c.bf16 %v3281_v42, %v3257_v30  ;;  %v2848_v24 = vunpack.c.3.s8 %v616_v39  ;;  %v905_v17 = vunpack.c.2.s8 %v137_v12  ;;  %v929_v46 = vunpack.c.3.s8 %v137_v12  ;;  %v113_v30 = vld [vmem:[#allocation2 + $0x118] sm:$0xff] }
 0x2ca   :  { %v5609_v37 = vpack.c.bf16 %v3665_v32, %v3641_v41  ;;  %v4744_v43 = vcvt.s32.f32 %v2440_v62  ;;  %v4768_v60 = vcvt.s32.f32 %v2464_v63  ;;  %v5128_v44 = vcvt.s32.f32 %v2824_v51  ;;  %v209_v35 = vld [vmem:[#allocation2 + $0x418] sm:$0xff] }
 0x2cb   :  { %7273 = vmatpush.bf16.msra.mxu2 %v5417_v61  ;;  %v5152_v25 = vcvt.s32.f32 %v2848_v24  ;;  %v3209_v21 = vcvt.s32.f32 %v905_v17  ;;  %v3233_v6 = vcvt.s32.f32 %v929_v46  ;;  %v1289_v15 = vunpack.c.2.s8 %v233_v57 }
 0x2cc   :  { %7286 = vmatpush.bf16.msra.mxu3 %v5609_v37  ;;  %v6160_v1 = vpack.c.bf16 %v4768_v60, %v4744_v43  ;;  %v1313_v45 = vunpack.c.3.s8 %v233_v57  ;;  %v2392_v53 = vunpack.c.0.s8 %v520_v52  ;;  %v2416_v31 = vunpack.c.1.s8 %v520_v52 }
 0x2cd   :  { %v6352_v56 = vpack.c.bf16 %v5152_v25, %v5128_v44  ;;  %v5393_v7 = vpack.c.bf16 %v3233_v6, %v3209_v21  ;;  %v3593_v18 = vcvt.s32.f32 %v1289_v15  ;;  %v2776_v2 = vunpack.c.0.s8 %v616_v39 }
 0x2ce   :  { %7248 = vmatpush.bf16.msra.mxu0 %v6160_v1  ;;  %v3617_v9 = vcvt.s32.f32 %v1313_v45  ;;  %v4696_v4 = vcvt.s32.f32 %v2392_v53  ;;  %v4720_v10 = vcvt.s32.f32 %v2416_v31  ;;  %v2800_v33 = vunpack.c.1.s8 %v616_v39 }
 0x2cf   :  { %7261 = vmatpush.bf16.msra.mxu1 %v6352_v56  ;;  %7274 = vmatpush.bf16.msra.mxu2 %v5393_v7  ;;  %v5080_v26 = vcvt.s32.f32 %v2776_v2  ;;  %v857_v22 = vunpack.c.0.s8 %v137_v12  ;;  %v881_v8 = vunpack.c.1.s8 %v137_v12  ;;  %v1241_v23 = vunpack.c.0.s8 %v233_v57 }
 0x2d0   :  { %v5585_v19 = vpack.c.bf16 %v3617_v9, %v3593_v18  ;;  %v6136_v59 = vpack.c.bf16 %v4720_v10, %v4696_v4  ;;  %v5104_v20 = vcvt.s32.f32 %v2800_v33  ;;  %v1265_v29 = vunpack.c.1.s8 %v233_v57  ;;  %v472_v4 = vld [vmem:[#allocation2 + $0xc50] sm:$0xff] }
 0x2d1   :  { %v3161_v34 = vcvt.s32.f32 %v857_v22  ;;  %v3185_v52 = vcvt.s32.f32 %v881_v8  ;;  %v3545_v27 = vcvt.s32.f32 %v1241_v23  ;;  %v6996_v13 = vadd.f32 %v9750_v3, %v9793_v55  ;;  %v568_v23 = vld [vmem:[#allocation2 + $0xf50] sm:$0xff] }
 0x2d2   :  { %7287 = vmatpush.bf16.msra.mxu3 %v5585_v19  ;;  %7249 = vmatpush.bf16.msra.mxu0 %v6136_v59  ;;  %v6328_v39 = vpack.c.bf16 %v5104_v20, %v5080_v26  ;;  %v3569_v40 = vcvt.s32.f32 %v1265_v29  ;;  %v2344_v54 = vunpack.c.2.s8 %v496_v28  ;;  %v2368_v12 = vunpack.c.3.s8 %v496_v28  ;;  %v89_v29 = vld [vmem:[#allocation2 + $0x58] sm:$0xff] }
 0x2d3   :  { %v5369_v42 = vpack.c.bf16 %v3185_v52, %v3161_v34  ;;  %v7009_v41 = vadd.f32 %v9752_v48, %v6996_v13  ;;  %v2728_v32 = vunpack.c.2.s8 %v592_v38  ;;  %v2752_v62 = vunpack.c.3.s8 %v592_v38  ;;  %v185_v13 = vld [vmem:[#allocation2 + $0x358] sm:$0xff] }
 0x2d4   :  { %7262 = vmatpush.bf16.msra.mxu1 %v6328_v39  ;;  %v5561_v63 = vpack.c.bf16 %v3569_v40, %v3545_v27  ;;  %v4648_v51 = vcvt.s32.f32 %v2344_v54  ;;  %v4672_v57 = vcvt.s32.f32 %v2368_v12  ;;  %v809_v61 = vunpack.c.2.s8 %v113_v30 }
 0x2d5   :  { %7275 = vmatpush.bf16.msra.mxu2 %v5369_v42  ;;  %v5032_v3 = vcvt.s32.f32 %v2728_v32  ;;  %v5056_v55 = vcvt.s32.f32 %v2752_v62  ;;  %v833_v24 = vunpack.c.3.s8 %v113_v30  ;;  %v1193_v17 = vunpack.c.2.s8 %v209_v35 }
 0x2d6   :  { %7288 = vmatpush.bf16.msra.mxu3 %v5561_v63  ;;  %v6112_v46 = vpack.c.bf16 %v4672_v57, %v4648_v51  ;;  %v3113_v37 = vcvt.s32.f32 %v809_v61  ;;  %v1217_v43 = vunpack.c.3.s8 %v209_v35  ;;  %v7022_v60 = vadd.f32 %v9770_v50, %v7009_v41 }
 0x2d7   :  { %v6304_v44 = vpack.c.bf16 %v5056_v55, %v5032_v3  ;;  %v3137_v48 = vcvt.s32.f32 %v833_v24  ;;  %v3497_v25 = vcvt.s32.f32 %v1193_v17  ;;  %v8299_v21 = vperm.slane %v9733_v58, 7 }
 0x2d8   :  { %7250 = vmatpush.bf16.msra.mxu0 %v6112_v46  ;;  %v3521_v6 = vcvt.s32.f32 %v1217_v43  ;;  %v7035_v15 = vadd.f32 %v9772_v47, %v7022_v60  ;;  %v8377_v1 = vperm.slane %v9736_v49, 7  ;;  %v2296_v45 = vunpack.c.0.s8 %v496_v28 }
 0x2d9   :  { %7263 = vmatpush.bf16.msra.mxu1 %v6304_v44  ;;  %v5345_v53 = vpack.c.bf16 %v3137_v48, %v3113_v37  ;;  %v2320_v31 = vunpack.c.1.s8 %v496_v28  ;;  %v2680_v56 = vunpack.c.0.s8 %v592_v38  ;;  %v2704_v7 = vunpack.c.1.s8 %v592_v38 }
 0x2da   :  { %v5537_v18 = vpack.c.bf16 %v3521_v6, %v3497_v25  ;;  %v8347_v2 = vmul.f32 %v8299_v21, %v7035_v15  ;;  %v4600_v50 = vcvt.s32.f32 %v2296_v45  ;;  %v761_v9 = vunpack.c.0.s8 %v113_v30  ;;  %v353_v15 = vld [vmem:[#allocation2 + $0x898] sm:$0xff] }
 0x2db   :  { %7276 = vmatpush.bf16.msra.mxu2 %v5345_v53  ;;  %v4624_v10 = vcvt.s32.f32 %v2320_v31  ;;  %v4984_v58 = vcvt.s32.f32 %v2680_v56  ;;  %v5008_v33 = vcvt.s32.f32 %v2704_v7  ;;  %v785_v26 = vunpack.c.1.s8 %v113_v30 }
 0x2dc   :  { %7289 = vmatpush.bf16.msra.mxu3 %v5537_v18  ;;  %v8425_v47 = vadd.f32 %v8377_v1, %v8347_v2  ;;  %v3065_v22 = vcvt.s32.f32 %v761_v9  ;;  %v1145_v49 = vunpack.c.0.s8 %v209_v35  ;;  %v1169_v8 = vunpack.c.1.s8 %v209_v35 }
 0x2dd   :  { %v6088_v19 = vpack.c.bf16 %v4624_v10, %v4600_v50  ;;  %v6280_v28 = vpack.c.bf16 %v5008_v33, %v4984_v58  ;;  %v3089_v59 = vcvt.s32.f32 %v785_v26  ;;  %v2248_v20 = vunpack.c.2.s8 %v472_v4  ;;  %v449_v50 = vld [vmem:[#allocation2 + $0xb98] sm:$0xff] }
 0x2de   :  { %v8449_v38 = vsub.f32 0.0, %v8425_v47  ;;  %v3449_v34 = vcvt.s32.f32 %v1145_v49  ;;  %v3473_v52 = vcvt.s32.f32 %v1169_v8  ;;  %v2272_v27 = vunpack.c.3.s8 %v472_v4 }
 0x2df   :  { %7251 = vmatpush.bf16.msra.mxu0 %v6088_v19  ;;  %7264 = vmatpush.bf16.msra.mxu1 %v6280_v28  ;;  %v5321_v39 = vpack.c.bf16 %v3089_v59, %v3065_v22  ;;  %v4552_v30 = vcvt.s32.f32 %v2248_v20  ;;  %v2632_v40 = vunpack.c.2.s8 %v568_v23  ;;  %v2656_v54 = vunpack.c.3.s8 %v568_v23  ;;  %v545_v59 = vld [vmem:[#allocation2 + $0xe98] sm:$0xff] }
 0x2e0   :  { %v8480_v12 = vmul.f32 1.442695, %v8449_v38  ;;  %v5513_v42 = vpack.c.bf16 %v3473_v52, %v3449_v34  ;;  %v4576_v35 = vcvt.s32.f32 %v2272_v27  ;;  %v713_v41 = vunpack.c.2.s8 %v89_v29 }
 0x2e1   :  { %7277 = vmatpush.bf16.msra.mxu2 %v5321_v39  ;;  %v4936_v32 = vcvt.s32.f32 %v2632_v40  ;;  %v4960_v62 = vcvt.s32.f32 %v2656_v54  ;;  %v737_v63 = vunpack.c.3.s8 %v89_v29  ;;  %v1097_v51 = vunpack.c.2.s8 %v185_v13 }
 0x2e2   :  { %8961 = vpow2.f32 %v8480_v12  ;;  %7290 = vmatpush.bf16.msra.mxu3 %v5513_v42  ;;  %v6064_v57 = vpack.c.bf16 %v4576_v35, %v4552_v30  ;;  %v3017_v61 = vcvt.s32.f32 %v713_v41  ;;  %v1121_v3 = vunpack.c.3.s8 %v185_v13  ;;  %v9835_v41 = vpop.f32.mrf.mxu0 }
 0x2e3   :  { %v6256_v55 = vpack.c.bf16 %v4960_v62, %v4936_v32  ;;  %v3041_v24 = vcvt.s32.f32 %v737_v63  ;;  %v3401_v17 = vcvt.s32.f32 %v1097_v51  ;;  %v2200_v46 = vunpack.c.0.s8 %v472_v4 }
 0x2e4   :  { %7252 = vmatpush.bf16.msra.mxu0 %v6064_v57  ;;  %v3425_v37 = vcvt.s32.f32 %v1121_v3  ;;  %v2224_v43 = vunpack.c.1.s8 %v472_v4  ;;  %v2584_v60 = vunpack.c.0.s8 %v568_v23  ;;  %v2608_v44 = vunpack.c.1.s8 %v568_v23 }
 0x2e5   :  { %7265 = vmatpush.bf16.msra.mxu1 %v6256_v55  ;;  %v5297_v48 = vpack.c.bf16 %v3041_v24, %v3017_v61  ;;  %v4504_v25 = vcvt.s32.f32 %v2200_v46  ;;  %v665_v21 = vunpack.c.0.s8 %v89_v29  ;;  %v689_v6 = vunpack.c.1.s8 %v89_v29  ;;  %v641_v29 = vld [vmem:[#allocation2 + $0x1198] sm:$0xff] }
 0x2e6   :  { %v5489_v1 = vpack.c.bf16 %v3425_v37, %v3401_v17  ;;  %v4528_v45 = vcvt.s32.f32 %v2224_v43  ;;  %v4888_v53 = vcvt.s32.f32 %v2584_v60  ;;  %v4912_v31 = vcvt.s32.f32 %v2608_v44  ;;  %v9839_v60 = vld [vmem:[#allocation2 + $0x7d8] sm:$0xff] }
 0x2e7   :  { %7278 = vmatpush.bf16.msra.mxu2 %v5297_v48  ;;  %v2969_v56 = vcvt.s32.f32 %v665_v21  ;;  %v2993_v7 = vcvt.s32.f32 %v689_v6  ;;  %v1049_v18 = vunpack.c.0.s8 %v185_v13  ;;  %v1073_v2 = vunpack.c.1.s8 %v185_v13  ;;  %v9847_v6 = vld [vmem:[#allocation2 + $0xad8] sm:$0xff] }
 0x2e8   :  { %v8962_v9 = vpop.eup %8961  ;;  %7291 = vmatpush.bf16.msra.mxu3 %v5489_v1  ;;  %v6040_v4 = vpack.c.bf16 %v4528_v45, %v4504_v25  ;;  %v6232_v10 = vpack.c.bf16 %v4912_v31, %v4888_v53  ;;  %v1769_v58 = vunpack.c.2.s8 %v353_v15  ;;  %v1793_v33 = vunpack.c.3.s8 %v353_v15  ;;  %v9849_v31 = vpop.f32.mrf.mxu1 }
 0x2e9   :  { %v9826_v26 = vadd.f32 1.0, %v8962_v9  ;;  %v5273_v47 = vpack.c.bf16 %v2993_v7, %v2969_v56  ;;  %v3353_v22 = vcvt.s32.f32 %v1049_v18  ;;  %v3377_v49 = vcvt.s32.f32 %v1073_v2 }
 0x2ea   :  { %7253 = vmatpush.bf16.msra.mxu0 %v6040_v4  ;;  %7266 = vmatpush.bf16.msra.mxu1 %v6232_v10  ;;  %v4073_v8 = vcvt.s32.f32 %v1769_v58  ;;  %v4097_v23 = vcvt.s32.f32 %v1793_v33  ;;  %v2153_v19 = vunpack.c.2.s8 %v449_v50  ;;  %v2177_v28 = vunpack.c.3.s8 %v449_v50 }
 0x2eb   :  { %8963 = vrcp.f32 %v9826_v26  ;;  %v8654_v20 = vand.u32 2147483648, %v9826_v26  ;;  %7279 = vmatpush.bf16.msra.mxu2 %v5273_v47  ;;  %v5465_v38 = vpack.c.bf16 %v3377_v49, %v3353_v22  ;;  %v8652_v13 = vand.u32 2147483647, %v9826_v26 }
 0x2ec   :  { %v5825_v34 = vpack.c.bf16 %v4097_v23, %v4073_v8  ;;  %v4457_v52 = vcvt.s32.f32 %v2153_v19  ;;  %v4481_v27 = vcvt.s32.f32 %v2177_v28  ;;  %v2537_v30 = vunpack.c.2.s8 %v545_v59  ;;  %v617_v8 = vld [vmem:[#allocation2 + $0x10d8] sm:$0xff]  ;;  %v7049_v23 = vpop.f32.mrf.mxu0 }
 0x2ed   :  { %v9831_v39 = vor.u32 1.1754944e-38, %v8654_v20  ;;  %v2561_v40 = vunpack.c.3.s8 %v545_v59  ;;  %7254 = vmatmul.bf16.vlgmr.msra.gmra.mxu0 %v9194_v11  ;;  %7267 = vmatmul.bf16.vlgmr.msra.gmra.mxu1 %v9198_v16  ;;  %v2921_v12 = vunpack.c.2.s8 %v641_v29  ;;  %v2945_v42 = vunpack.c.3.s8 %v641_v29 }
 0x2ee   :  { %7292 = vmatpush.bf16.msra.mxu3 %v5465_v38  ;;  %7298 = vmatpush.bf16.msrb.mxu0 %v5825_v34  ;;  %v6017_v54 = vpack.c.bf16 %v4481_v27, %v4457_v52  ;;  %v1721_v35 = vunpack.c.0.s8 %v353_v15  ;;  %v4841_v32 = vcvt.s32.f32 %v2537_v30  ;;  %v1745_v63 = vunpack.c.1.s8 %v353_v15 }
 0x2ef   :  { %v4865_v62 = vcvt.s32.f32 %v2561_v40  ;;  %v2105_v51 = vunpack.c.0.s8 %v449_v50  ;;  %7280 = vmatmul.bf16.vlgmr.msra.gmra.mxu2 %v9163_v14  ;;  %vm8648_vm12 = vweird.f32 %v9826_v26  ;;  %v5225_v57 = vcvt.s32.f32 %v2921_v12 }
 0x2f0   :  { %7311 = vmatpush.bf16.msrb.mxu1 %v6017_v54  ;;  %v5249_v61 = vcvt.s32.f32 %v2945_v42  ;;  %v4025_v3 = vcvt.s32.f32 %v1721_v35  ;;  %v2129_v55 = vunpack.c.1.s8 %v449_v50  ;;  %v4049_v46 = vcvt.s32.f32 %v1745_v63  ;;  %v521_v50 = vld [vmem:[#allocation2 + $0xdd8] sm:$0xff] }
 0x2f1   :  { %v8964_v24 = vpop.eup %8963  ;;  %v6209_v17 = vpack.c.bf16 %v4865_v62, %v4841_v32  ;;  %v4409_v37 = vcvt.s32.f32 %v2105_v51  ;;  %v2489_v43 = vunpack.c.0.s8 %v545_v59  ;;  %7293 = vmatmul.bf16.vlgmr.msra.gmra.mxu3 %v9169_v36  ;;  %vm9843_vm14 = vcmp.eq.f32.partialorder %v8652_v13, 8.507059e+37  ;;  %v7062_v51 = vpop.f32.mrf.mxu1 }
 0x2f2   :  { %v8644_v44 = vmul.f32 %v8964_v24, %v9826_v26  ;;  %vm8649_vm13 = vweird.f32 %v8964_v24  ;;  %v6401_v25 = vpack.c.bf16 %v5249_v61, %v5225_v57  ;;  %v4433_v21 = vcvt.s32.f32 %v2129_v55 }
 0x2f3   :  { %7324 = vmatpush.bf16.msrb.mxu2 %v6209_v17  ;;  %v5801_v15 = vpack.c.bf16 %v4049_v46, %v4025_v3  ;;  %v2513_v1 = vunpack.c.1.s8 %v545_v59  ;;  %v4793_v45 = vcvt.s32.f32 %v2489_v43  ;;  %v2873_v53 = vunpack.c.0.s8 %v641_v29  ;;  %vm8650_vm15 = vmor %vm8648_vm12, %vm8649_vm13 }
 0x2f4   :  { %v8645_v56 = vsub.f32 1.0, %v8644_v44  ;;  %7337 = vmatpush.bf16.msrb.mxu3 %v6401_v25  ;;  %v5993_v7 = vpack.c.bf16 %v4433_v21, %v4409_v37  ;;  %v2897_v18 = vunpack.c.1.s8 %v641_v29  ;;  %v1673_v2 = vunpack.c.2.s8 %v9839_v60  ;;  %v401_v25 = vld [vmem:[#allocation2 + $0xa18] sm:$0xff] }
 0x2f5   :  { %7299 = vmatpush.bf16.msrb.mxu0 %v5801_v15  ;;  %v4817_v9 = vcvt.s32.f32 %v2513_v1  ;;  %v5177_v4 = vcvt.s32.f32 %v2873_v53  ;;  %v1697_v10 = vunpack.c.3.s8 %v9839_v60  ;;  %v2057_v58 = vunpack.c.2.s8 %v9847_v6  ;;  %v497_v53 = vld [vmem:[#allocation2 + $0xd18] sm:$0xff] }
 0x2f6   :  { %v8646_v33 = vmul.f32 %v8964_v24, %v8645_v56  ;;  %7312 = vmatpush.bf16.msrb.mxu1 %v5993_v7  ;;  %v5201_v47 = vcvt.s32.f32 %v2897_v18  ;;  %v3977_v22 = vcvt.s32.f32 %v1673_v2  ;;  %v2081_v49 = vunpack.c.3.s8 %v9847_v6  ;;  %v593_v2 = vld [vmem:[#allocation2 + $0x1018] sm:$0xff] }
 0x2f7   :  { %v6185_v19 = vpack.c.bf16 %v4817_v9, %v4793_v45  ;;  %v4001_v28 = vcvt.s32.f32 %v1697_v10  ;;  %v4361_v59 = vcvt.s32.f32 %v2057_v58  ;;  %v2441_v20 = vunpack.c.2.s8 %v521_v50 }
 0x2f8   :  { %v8647_v29 = vadd.f32 %v8964_v24, %v8646_v33  ;;  %v6377_v38 = vpack.c.bf16 %v5201_v47, %v5177_v4  ;;  %v4385_v34 = vcvt.s32.f32 %v2081_v49  ;;  %v2465_v52 = vunpack.c.3.s8 %v521_v50 }
 0x2f9   :  { %7325 = vmatpush.bf16.msrb.mxu2 %v6185_v19  ;;  %v5777_v27 = vpack.c.bf16 %v4001_v28, %v3977_v22  ;;  %v4745_v13 = vcvt.s32.f32 %v2441_v20  ;;  %v2825_v30 = vunpack.c.2.s8 %v617_v8  ;;  %v2849_v40 = vunpack.c.3.s8 %v617_v8  ;;  %v9868_v28 = vpop.f32.mrf.mxu2 }
 0x2fa   :  { %v8651_v54 = vsel %vm8650_vm15, %v8964_v24, %v8647_v29  ;;  %7338 = vmatpush.bf16.msrb.mxu3 %v6377_v38  ;;  %v5969_v12 = vpack.c.bf16 %v4385_v34, %v4361_v59  ;;  %v4769_v42 = vcvt.s32.f32 %v2465_v52  ;;  %v1625_v35 = vunpack.c.0.s8 %v9839_v60  ;;  %v305_v24 = vld [vmem:[#allocation2 + $0x718] sm:$0xff] }
 0x2fb   :  { %v8656_v32 = vsel %vm9843_vm14, %v9831_v39, %v8651_v54  ;;  %7300 = vmatpush.bf16.msrb.mxu0 %v5777_v27  ;;  %v5129_v62 = vcvt.s32.f32 %v2825_v30  ;;  %v5153_v63 = vcvt.s32.f32 %v2849_v40  ;;  %v1649_v26 = vunpack.c.1.s8 %v9839_v60 }
 0x2fc   :  { %8905 = vst [vmem:[%s10886_s4 + $0x38] sm:$0xff] %v8656_v32  ;;  %7313 = vmatpush.bf16.msrb.mxu1 %v5969_v12  ;;  %v6161_v57 = vpack.c.bf16 %v4769_v42, %v4745_v13  ;;  %v3929_v61 = vcvt.s32.f32 %v1625_v35  ;;  %v2009_v3 = vunpack.c.0.s8 %v9847_v6  ;;  %v2033_v55 = vunpack.c.1.s8 %v9847_v6  ;;  %v9870_v42 = vld [vmem:[#allocation2 + $0x658] sm:$0xff] }
 0x2fd   :  { %v6353_v17 = vpack.c.bf16 %v5153_v63, %v5129_v62  ;;  %v3953_v39 = vcvt.s32.f32 %v1649_v26  ;;  %v2393_v46 = vunpack.c.0.s8 %v521_v50  ;;  %v2417_v37 = vunpack.c.1.s8 %v521_v50 }
 0x2fe   :  { %7326 = vmatpush.bf16.msrb.mxu2 %v6161_v57  ;;  %v4313_v43 = vcvt.s32.f32 %v2009_v3  ;;  %v4337_v60 = vcvt.s32.f32 %v2033_v55  ;;  %v2777_v44 = vunpack.c.0.s8 %v617_v8  ;;  %v2801_v48 = vunpack.c.1.s8 %v617_v8  ;;  %v377_v3 = vld [vmem:[#allocation2 + $0x958] sm:$0xff]  ;;  %v9872_v55 = vpop.f32.mrf.mxu3 }
 0x2ff   :  { %7339 = vmatpush.bf16.msrb.mxu3 %v6353_v17  ;;  %v5753_v21 = vpack.c.bf16 %v3953_v39, %v3929_v61  ;;  %v4697_v15 = vcvt.s32.f32 %v2393_v46  ;;  %v4721_v1 = vcvt.s32.f32 %v2417_v37  ;;  %v1577_v45 = vunpack.c.2.s8 %v305_v24 }
 0x300   :  { %v5945_v56 = vpack.c.bf16 %v4337_v60, %v4313_v43  ;;  %v5081_v7 = vcvt.s32.f32 %v2777_v44  ;;  %v5105_v6 = vcvt.s32.f32 %v2801_v48  ;;  %v1601_v18 = vunpack.c.3.s8 %v305_v24  ;;  %v473_v43 = vld [vmem:[#allocation2 + $0xc58] sm:$0xff] }
 0x301   :  { %7301 = vmatpush.bf16.msrb.mxu0 %v5753_v21  ;;  %v6137_v9 = vpack.c.bf16 %v4721_v1, %v4697_v15  ;;  %v3881_v50 = vcvt.s32.f32 %v1577_v45  ;;  %v1961_v4 = vunpack.c.2.s8 %v401_v25  ;;  %v1985_v10 = vunpack.c.3.s8 %v401_v25  ;;  %v569_v21 = vld [vmem:[#allocation2 + $0xf58] sm:$0xff] }
 0x302   :  { %7314 = vmatpush.bf16.msrb.mxu1 %v5945_v56  ;;  %v6329_v58 = vpack.c.bf16 %v5105_v6, %v5081_v7  ;;  %v3905_v33 = vcvt.s32.f32 %v1601_v18  ;;  %v2345_v47 = vunpack.c.2.s8 %v497_v53  ;;  %v2369_v22 = vunpack.c.3.s8 %v497_v53  ;;  %v7075_v56 = vpop.f32.mrf.mxu2 }
 0x303   :  { %7327 = vmatpush.bf16.msrb.mxu2 %v6137_v9  ;;  %v4265_v49 = vcvt.s32.f32 %v1961_v4  ;;  %v4289_v8 = vcvt.s32.f32 %v1985_v10  ;;  %v2729_v23 = vunpack.c.2.s8 %v593_v2  ;;  %v2753_v19 = vunpack.c.3.s8 %v593_v2 }
 0x304   :  { %7340 = vmatpush.bf16.msrb.mxu3 %v6329_v58  ;;  %v5729_v59 = vpack.c.bf16 %v3905_v33, %v3881_v50  ;;  %v4649_v20 = vcvt.s32.f32 %v2345_v47  ;;  %v4673_v29 = vcvt.s32.f32 %v2369_v22  ;;  %v1529_v38 = vunpack.c.0.s8 %v305_v24  ;;  %v9878_v58 = vpop.f32.mrf.mxu1 }
 0x305   :  { %v5921_v34 = vpack.c.bf16 %v4289_v8, %v4265_v49  ;;  %v5033_v52 = vcvt.s32.f32 %v2729_v23  ;;  %v5057_v27 = vcvt.s32.f32 %v2753_v19  ;;  %v1553_v13 = vunpack.c.1.s8 %v305_v24  ;;  %v9874_v24 = vpop.f32.mrf.mxu0 }
 0x306   :  { %7302 = vmatpush.bf16.msrb.mxu0 %v5729_v59  ;;  %v6113_v30 = vpack.c.bf16 %v4673_v29, %v4649_v20  ;;  %v3833_v40 = vcvt.s32.f32 %v1529_v38  ;;  %v1913_v54 = vunpack.c.0.s8 %v401_v25  ;;  %v1937_v12 = vunpack.c.1.s8 %v401_v25 }
 0x307   :  { %7315 = vmatpush.bf16.msrb.mxu1 %v5921_v34  ;;  %v6305_v35 = vpack.c.bf16 %v5057_v27, %v5033_v52  ;;  %v3857_v32 = vcvt.s32.f32 %v1553_v13  ;;  %v2297_v62 = vunpack.c.0.s8 %v497_v53  ;;  %v2321_v63 = vunpack.c.1.s8 %v497_v53  ;;  %v162_v52 = vld [vmem:[#allocation2 + $0x2a0] sm:$0xff]  ;;  %v7088_v27 = vpop.f32.mrf.mxu3 }
 0x308   :  { %7328 = vmatpush.bf16.msrb.mxu2 %v6113_v30  ;;  %v4217_v26 = vcvt.s32.f32 %v1913_v54  ;;  %v4241_v51 = vcvt.s32.f32 %v1937_v12  ;;  %v2681_v57 = vunpack.c.0.s8 %v593_v2  ;;  %v2705_v61 = vunpack.c.1.s8 %v593_v2 }
 0x309   :  { %7341 = vmatpush.bf16.msrb.mxu3 %v6305_v35  ;;  %v5705_v17 = vpack.c.bf16 %v3857_v32, %v3833_v40  ;;  %v4601_v39 = vcvt.s32.f32 %v2297_v62  ;;  %v4625_v46 = vcvt.s32.f32 %v2321_v63  ;;  %v1481_v37 = vunpack.c.2.s8 %v9870_v42  ;;  %v258_v62 = vld [vmem:[#allocation2 + $0x5a0] sm:$0xff] }
 0x30a   :  { %v5897_v60 = vpack.c.bf16 %v4241_v51, %v4217_v26  ;;  %v4985_v44 = vcvt.s32.f32 %v2681_v57  ;;  %v5009_v48 = vcvt.s32.f32 %v2705_v61  ;;  %v1505_v25 = vunpack.c.3.s8 %v9870_v42  ;;  %v354_v57 = vld [vmem:[#allocation2 + $0x8a0] sm:$0xff] }
 0x30b   :  { %7303 = vmatpush.bf16.msrb.mxu0 %v5705_v17  ;;  %v6089_v15 = vpack.c.bf16 %v4625_v46, %v4601_v39  ;;  %v3785_v1 = vcvt.s32.f32 %v1481_v37  ;;  %v1865_v45 = vunpack.c.2.s8 %v377_v3  ;;  %v1889_v53 = vunpack.c.3.s8 %v377_v3  ;;  %v450_v46 = vld [vmem:[#allocation2 + $0xba0] sm:$0xff] }
 0x30c   :  { %7316 = vmatpush.bf16.msrb.mxu1 %v5897_v60  ;;  %v6281_v7 = vpack.c.bf16 %v5009_v48, %v4985_v44  ;;  %v3809_v6 = vcvt.s32.f32 %v1505_v25  ;;  %v2249_v18 = vunpack.c.2.s8 %v473_v43  ;;  %v2273_v2 = vunpack.c.3.s8 %v473_v43  ;;  %v7114_v48 = vpop.f32.mrf.mxu1 }
 0x30d   :  { %7329 = vmatpush.bf16.msrb.mxu2 %v6089_v15  ;;  %v4169_v9 = vcvt.s32.f32 %v1865_v45  ;;  %v4193_v50 = vcvt.s32.f32 %v1889_v53  ;;  %v2633_v4 = vunpack.c.2.s8 %v569_v21  ;;  %v2657_v10 = vunpack.c.3.s8 %v569_v21  ;;  %v7101_v13 = vpop.f32.mrf.mxu0 }
 0x30e   :  { %7342 = vmatpush.bf16.msrb.mxu3 %v6281_v7  ;;  %v5681_v33 = vpack.c.bf16 %v3809_v6, %v3785_v1  ;;  %v4553_v47 = vcvt.s32.f32 %v2249_v18  ;;  %v4577_v22 = vcvt.s32.f32 %v2273_v2  ;;  %v9882_v49 = vadd.f32 %v9849_v31, %v9835_v41 }
 0x30f   :  { %v5873_v8 = vpack.c.bf16 %v4193_v50, %v4169_v9  ;;  %v4937_v23 = vcvt.s32.f32 %v2633_v4  ;;  %v4961_v19 = vcvt.s32.f32 %v2657_v10  ;;  %v1433_v59 = vunpack.c.0.s8 %v9870_v42 }
 0x310   :  { %7304 = vmatpush.bf16.msrb.mxu0 %v5681_v33  ;;  %v6065_v20 = vpack.c.bf16 %v4577_v22, %v4553_v47  ;;  %v1457_v29 = vunpack.c.1.s8 %v9870_v42  ;;  %v1817_v38 = vunpack.c.0.s8 %v377_v3  ;;  %v1841_v34 = vunpack.c.1.s8 %v377_v3 }
 0x311   :  { %7317 = vmatpush.bf16.msrb.mxu1 %v5873_v8  ;;  %v6257_v30 = vpack.c.bf16 %v4961_v19, %v4937_v23  ;;  %v3737_v40 = vcvt.s32.f32 %v1433_v59  ;;  %v2201_v54 = vunpack.c.0.s8 %v473_v43  ;;  %v2225_v41 = vunpack.c.1.s8 %v473_v43 }
 0x312   :  { %7330 = vmatpush.bf16.msrb.mxu2 %v6065_v20  ;;  %v3761_v31 = vcvt.s32.f32 %v1457_v29  ;;  %v4121_v12 = vcvt.s32.f32 %v1817_v38  ;;  %v4145_v35 = vcvt.s32.f32 %v1841_v34  ;;  %v2585_v32 = vunpack.c.0.s8 %v569_v21  ;;  %v138_v38 = vld [vmem:[#allocation2 + $0x1e0] sm:$0xff] }
 0x313   :  { %7343 = vmatpush.bf16.msrb.mxu3 %v6257_v30  ;;  %v4505_v63 = vcvt.s32.f32 %v2201_v54  ;;  %v4529_v26 = vcvt.s32.f32 %v2225_v41  ;;  %v2609_v42 = vunpack.c.1.s8 %v569_v21  ;;  %v1002_v51 = vunpack.c.2.s8 %v162_v52  ;;  %v234_v30 = vld [vmem:[#allocation2 + $0x4e0] sm:$0xff] }
 0x314   :  { %v5657_v61 = vpack.c.bf16 %v3761_v31, %v3737_v40  ;;  %v5849_v3 = vpack.c.bf16 %v4145_v35, %v4121_v12  ;;  %v4889_v17 = vcvt.s32.f32 %v2585_v32  ;;  %v1026_v39 = vunpack.c.3.s8 %v162_v52  ;;  %v330_v12 = vld [vmem:[#allocation2 + $0x7e0] sm:$0xff] }
 0x315   :  { %v6041_v37 = vpack.c.bf16 %v4529_v26, %v4505_v63  ;;  %v4913_v60 = vcvt.s32.f32 %v2609_v42  ;;  %v3306_v43 = vcvt.s32.f32 %v1002_v51  ;;  %v1386_v44 = vunpack.c.2.s8 %v258_v62 }
 0x316   :  { %7305 = vmatpush.bf16.msrb.mxu0 %v5657_v61  ;;  %7318 = vmatpush.bf16.msrb.mxu1 %v5849_v3  ;;  %v3330_v25 = vcvt.s32.f32 %v1026_v39  ;;  %v1410_v15 = vunpack.c.3.s8 %v258_v62  ;;  %v1770_v1 = vunpack.c.2.s8 %v354_v57  ;;  %v1794_v45 = vunpack.c.3.s8 %v354_v57  ;;  %v426_v61 = vld [vmem:[#allocation2 + $0xae0] sm:$0xff] }
 0x317   :  { %7331 = vmatpush.bf16.msrb.mxu2 %v6041_v37  ;;  %v6233_v21 = vpack.c.bf16 %v4913_v60, %v4889_v17  ;;  %v3690_v53 = vcvt.s32.f32 %v1386_v44  ;;  %v2154_v56 = vunpack.c.2.s8 %v450_v46  ;;  %v2178_v7 = vunpack.c.3.s8 %v450_v46 }
 0x318   :  { %v5442_v6 = vpack.c.bf16 %v3330_v25, %v3306_v43  ;;  %v3714_v18 = vcvt.s32.f32 %v1410_v15  ;;  %v4074_v2 = vcvt.s32.f32 %v1770_v1  ;;  %v4098_v9 = vcvt.s32.f32 %v1794_v45 }
 0x319   :  { %7344 = vmatpush.bf16.msrb.mxu3 %v6233_v21  ;;  %v4458_v50 = vcvt.s32.f32 %v2154_v56  ;;  %v4482_v4 = vcvt.s32.f32 %v2178_v7  ;;  %7306 = vmatmul.bf16.vlgmr.msrb.gmra.mxu0 %v9178_v0  ;;  %v954_v10 = vunpack.c.0.s8 %v162_v52  ;;  %v978_v33 = vunpack.c.1.s8 %v162_v52 }
 0x31a   :  { %7350 = vmatpush.bf16.msra.mxu0 %v5442_v6  ;;  %v5634_v47 = vpack.c.bf16 %v3714_v18, %v3690_v53  ;;  %v5826_v22 = vpack.c.bf16 %v4098_v9, %v4074_v2  ;;  %7332 = vmatmul.bf16.vlgmr.msrb.gmra.mxu2 %v9194_v11  ;;  %v1338_v8 = vunpack.c.0.s8 %v258_v62  ;;  %v1362_v23 = vunpack.c.1.s8 %v258_v62 }
 0x31b   :  { %v6018_v19 = vpack.c.bf16 %v4482_v4, %v4458_v50  ;;  %v3258_v59 = vcvt.s32.f32 %v954_v10  ;;  %v3282_v20 = vcvt.s32.f32 %v978_v33  ;;  %v1722_v29 = vunpack.c.0.s8 %v354_v57  ;;  %7319 = vmatmul.bf16.vlgmr.msrb.gmra.mxu1 %v9180_v5 }
 0x31c   :  { %7363 = vmatpush.bf16.msra.mxu1 %v5634_v47  ;;  %7376 = vmatpush.bf16.msra.mxu2 %v5826_v22  ;;  %v3642_v34 = vcvt.s32.f32 %v1338_v8  ;;  %v3666_v27 = vcvt.s32.f32 %v1362_v23  ;;  %v1746_v13 = vunpack.c.1.s8 %v354_v57  ;;  %v2106_v52 = vunpack.c.0.s8 %v450_v46  ;;  %v9894_v22 = vld [vmem:[#allocation4 + $0x8] sm:$0xff] }
 0x31d   :  { %7389 = vmatpush.bf16.msra.mxu3 %v6018_v19  ;;  %v5418_v40 = vpack.c.bf16 %v3282_v20, %v3258_v59  ;;  %v4026_v54 = vcvt.s32.f32 %v1722_v29  ;;  %v2130_v41 = vunpack.c.1.s8 %v450_v46  ;;  %v7074_v31 = vadd.f32 %v9868_v28, %v9882_v49  ;;  %v9896_v59 = vld [vmem:[#allocation6 + $0x8] sm:$0xff] }
 0x31e   :  { %7345 = vmatmul.bf16.vlgmr.msrb.gmra.mxu3 %v9198_v16  ;;  %v5610_v35 = vpack.c.bf16 %v3666_v27, %v3642_v34  ;;  %v4050_v32 = vcvt.s32.f32 %v1746_v13  ;;  %v4410_v62 = vcvt.s32.f32 %v2106_v52  ;;  %v906_v63 = vunpack.c.2.s8 %v138_v38  ;;  %v114_v20 = vld [vmem:[#allocation2 + $0x120] sm:$0xff] }
 0x31f   :  { %7351 = vmatpush.bf16.msra.mxu0 %v5418_v40  ;;  %v4434_v26 = vcvt.s32.f32 %v2130_v41  ;;  %v930_v42 = vunpack.c.3.s8 %v138_v38  ;;  %v1290_v51 = vunpack.c.2.s8 %v234_v30  ;;  %v1314_v57 = vunpack.c.3.s8 %v234_v30  ;;  %v210_v27 = vld [vmem:[#allocation2 + $0x420] sm:$0xff] }
 0x320   :  { %7364 = vmatpush.bf16.msra.mxu1 %v5610_v35  ;;  %v5802_v3 = vpack.c.bf16 %v4050_v32, %v4026_v54  ;;  %v3210_v17 = vcvt.s32.f32 %v906_v63  ;;  %v1674_v39 = vunpack.c.2.s8 %v330_v12  ;;  %v1698_v46 = vunpack.c.3.s8 %v330_v12  ;;  %v306_v54 = vld [vmem:[#allocation2 + $0x720] sm:$0xff] }
 0x321   :  { %v5994_v37 = vpack.c.bf16 %v4434_v26, %v4410_v62  ;;  %v3234_v28 = vcvt.s32.f32 %v930_v42  ;;  %v3594_v49 = vcvt.s32.f32 %v1290_v51  ;;  %v3618_v60 = vcvt.s32.f32 %v1314_v57  ;;  %v402_v32 = vld [vmem:[#allocation2 + $0xa20] sm:$0xff] }
 0x322   :  { %7377 = vmatpush.bf16.msra.mxu2 %v5802_v3  ;;  %v3978_v43 = vcvt.s32.f32 %v1674_v39  ;;  %v4002_v44 = vcvt.s32.f32 %v1698_v46  ;;  %v2058_v48 = vunpack.c.2.s8 %v426_v61  ;;  %v2082_v25 = vunpack.c.3.s8 %v426_v61  ;;  %v9901_v3 = vpop.f32.mrf.mxu2 }
 0x323   :  { %7390 = vmatpush.bf16.msra.mxu3 %v5994_v37  ;;  %v5394_v15 = vpack.c.bf16 %v3234_v28, %v3210_v17  ;;  %v5586_v1 = vpack.c.bf16 %v3618_v60, %v3594_v49  ;;  %v7087_v45 = vadd.f32 %v9872_v55, %v7074_v31  ;;  %v858_v21 = vunpack.c.0.s8 %v138_v38  ;;  %v9903_v28 = vpop.f32.mrf.mxu3 }
 0x324   :  { %v5778_v53 = vpack.c.bf16 %v4002_v44, %v3978_v43  ;;  %v4362_v56 = vcvt.s32.f32 %v2058_v48  ;;  %v4386_v7 = vcvt.s32.f32 %v2082_v25  ;;  %v882_v6 = vunpack.c.1.s8 %v138_v38 }
 0x325   :  { %7352 = vmatpush.bf16.msra.mxu0 %v5394_v15  ;;  %7365 = vmatpush.bf16.msra.mxu1 %v5586_v1  ;;  %v7100_v18 = vadd.f32 %v9874_v24, %v7087_v45  ;;  %v3162_v2 = vcvt.s32.f32 %v858_v21  ;;  %v1242_v9 = vunpack.c.0.s8 %v234_v30  ;;  %v1266_v50 = vunpack.c.1.s8 %v234_v30 }
 0x326   :  { %7378 = vmatpush.bf16.msra.mxu2 %v5778_v53  ;;  %v5970_v4 = vpack.c.bf16 %v4386_v7, %v4362_v56  ;;  %v3186_v10 = vcvt.s32.f32 %v882_v6  ;;  %v1626_v33 = vunpack.c.0.s8 %v330_v12  ;;  %v1650_v47 = vunpack.c.1.s8 %v330_v12 }
 0x327   :  { %v3546_v55 = vcvt.s32.f32 %v1242_v9  ;;  %v3570_v8 = vcvt.s32.f32 %v1266_v50  ;;  %v2010_v23 = vunpack.c.0.s8 %v426_v61  ;;  %v2034_v19 = vunpack.c.1.s8 %v426_v61  ;;  %v90_v9 = vld [vmem:[#allocation2 + $0x60] sm:$0xff] }
 0x328   :  { %7391 = vmatpush.bf16.msra.mxu3 %v5970_v4  ;;  %v5370_v29 = vpack.c.bf16 %v3186_v10, %v3162_v2  ;;  %v3930_v24 = vcvt.s32.f32 %v1626_v33  ;;  %v3954_v38 = vcvt.s32.f32 %v1650_v47  ;;  %v7113_v34 = vadd.f32 %v9878_v58, %v7100_v18  ;;  %v9905_v47 = vld [vmem:[#allocation2 + $0x360] sm:$0xff] }
 0x329   :  { %v5562_v13 = vpack.c.bf16 %v3570_v8, %v3546_v55  ;;  %v4314_v52 = vcvt.s32.f32 %v2010_v23  ;;  %v4338_v30 = vcvt.s32.f32 %v2034_v19  ;;  %v8300_v40 = vperm.slane %v9894_v22, 0 }
 0x32a   :  { %7353 = vmatpush.bf16.msra.mxu0 %v5370_v29  ;;  %v5754_v41 = vpack.c.bf16 %v3954_v38, %v3930_v24  ;;  %v8378_v31 = vperm.slane %v9896_v59, 0  ;;  %v810_v12 = vunpack.c.2.s8 %v114_v20  ;;  %v834_v35 = vunpack.c.3.s8 %v114_v20  ;;  %v282_v38 = vld [vmem:[#allocation2 + $0x660] sm:$0xff] }
 0x32b   :  { %7366 = vmatpush.bf16.msra.mxu1 %v5562_v13  ;;  %v5946_v62 = vpack.c.bf16 %v4338_v30, %v4314_v52  ;;  %v8348_v63 = vmul.f32 %v8300_v40, %v7113_v34  ;;  %v1194_v26 = vunpack.c.2.s8 %v210_v27  ;;  %v1218_v42 = vunpack.c.3.s8 %v210_v27  ;;  %v7127_v34 = vpop.f32.mrf.mxu2  ;;  %v378_v40 = vld [vmem:[#allocation2 + $0x960] sm:$0xff] }
 0x32c   :  { %7379 = vmatpush.bf16.msra.mxu2 %v5754_v41  ;;  %v3114_v58 = vcvt.s32.f32 %v810_v12  ;;  %v3138_v51 = vcvt.s32.f32 %v834_v35  ;;  %v1578_v57 = vunpack.c.2.s8 %v306_v54  ;;  %v1602_v61 = vunpack.c.3.s8 %v306_v54 }
 0x32d   :  { %7392 = vmatpush.bf16.msra.mxu3 %v5946_v62  ;;  %v8426_v17 = vadd.f32 %v8378_v31, %v8348_v63  ;;  %v3498_v39 = vcvt.s32.f32 %v1194_v26  ;;  %v3522_v46 = vcvt.s32.f32 %v1218_v42  ;;  %v1962_v37 = vunpack.c.2.s8 %v402_v32 }
 0x32e   :  { %v5346_v49 = vpack.c.bf16 %v3138_v51, %v3114_v58  ;;  %v3882_v60 = vcvt.s32.f32 %v1578_v57  ;;  %v3906_v43 = vcvt.s32.f32 %v1602_v61  ;;  %v1986_v44 = vunpack.c.3.s8 %v402_v32 }
 0x32f   :  { %v8450_v48 = vsub.f32 0.0, %v8426_v17  ;;  %v5538_v25 = vpack.c.bf16 %v3522_v46, %v3498_v39  ;;  %v4266_v15 = vcvt.s32.f32 %v1962_v37  ;;  %v762_v1 = vunpack.c.0.s8 %v114_v20 }
 0x330   :  { %7354 = vmatpush.bf16.msra.mxu0 %v5346_v49  ;;  %v5730_v45 = vpack.c.bf16 %v3906_v43, %v3882_v60  ;;  %v4290_v21 = vcvt.s32.f32 %v1986_v44  ;;  %v786_v53 = vunpack.c.1.s8 %v114_v20  ;;  %v1146_v56 = vunpack.c.0.s8 %v210_v27 }
 0x331   :  { %v8482_v7 = vmul.f32 1.442695, %v8450_v48  ;;  %7367 = vmatpush.bf16.msra.mxu1 %v5538_v25  ;;  %v3066_v6 = vcvt.s32.f32 %v762_v1  ;;  %v1170_v18 = vunpack.c.1.s8 %v210_v27  ;;  %v1530_v2 = vunpack.c.0.s8 %v306_v54 }
 0x332   :  { %7380 = vmatpush.bf16.msra.mxu2 %v5730_v45  ;;  %v5922_v50 = vpack.c.bf16 %v4290_v21, %v4266_v15  ;;  %v3090_v4 = vcvt.s32.f32 %v786_v53  ;;  %v3450_v10 = vcvt.s32.f32 %v1146_v56  ;;  %v1554_v33 = vunpack.c.1.s8 %v306_v54  ;;  %v7140_v54 = vpop.f32.mrf.mxu3  ;;  %v9912_v45 = vpop.f32.mrf.mxu0 }
 0x333   :  { %8965 = vpow2.f32 %v8482_v7  ;;  %v3474_v55 = vcvt.s32.f32 %v1170_v18  ;;  %v3834_v8 = vcvt.s32.f32 %v1530_v2  ;;  %v1914_v23 = vunpack.c.0.s8 %v402_v32  ;;  %v9914_v21 = vpop.f32.mrf.mxu1  ;;  %v9919_v2 = vld [vmem:[#allocation2 + $0xea0] sm:$0xff] }
 0x334   :  { %7393 = vmatpush.bf16.msra.mxu3 %v5922_v50  ;;  %v5322_v19 = vpack.c.bf16 %v3090_v4, %v3066_v6  ;;  %v3858_v20 = vcvt.s32.f32 %v1554_v33  ;;  %v1938_v29 = vunpack.c.1.s8 %v402_v32  ;;  %v714_v24 = vunpack.c.2.s8 %v90_v9  ;;  %v9924_v33 = vld [vmem:[#allocation2 + $0x11a0] sm:$0xff] }
 0x335   :  { %v5514_v27 = vpack.c.bf16 %v3474_v55, %v3450_v10  ;;  %v4218_v13 = vcvt.s32.f32 %v1914_v23  ;;  %v738_v52 = vunpack.c.3.s8 %v90_v9  ;;  %v1098_v30 = vunpack.c.2.s8 %v9905_v47 }
 0x336   :  { %7355 = vmatpush.bf16.msra.mxu0 %v5322_v19  ;;  %v5706_v41 = vpack.c.bf16 %v3858_v20, %v3834_v8  ;;  %v4242_v31 = vcvt.s32.f32 %v1938_v29  ;;  %v3018_v12 = vcvt.s32.f32 %v714_v24  ;;  %v1122_v35 = vunpack.c.3.s8 %v9905_v47 }
 0x337   :  { %7368 = vmatpush.bf16.msra.mxu1 %v5514_v27  ;;  %v3042_v62 = vcvt.s32.f32 %v738_v52  ;;  %v3402_v63 = vcvt.s32.f32 %v1098_v30  ;;  %v1482_v32 = vunpack.c.2.s8 %v282_v38  ;;  %v1506_v26 = vunpack.c.3.s8 %v282_v38  ;;  %v9930_v52 = vld [vmem:[#allocation2 + $0x2a8] sm:$0xff]  ;;  %v9932_v30 = vpop.f32.mrf.mxu2 }
 0x338   :  { %7381 = vmatpush.bf16.msra.mxu2 %v5706_v41  ;;  %v5898_v42 = vpack.c.bf16 %v4242_v31, %v4218_v13  ;;  %v3426_v58 = vcvt.s32.f32 %v1122_v35  ;;  %v1866_v51 = vunpack.c.2.s8 %v378_v40  ;;  %v1890_v57 = vunpack.c.3.s8 %v378_v40 }
 0x339   :  { %v8966_v61 = vpop.eup %8965  ;;  %v5298_v17 = vpack.c.bf16 %v3042_v62, %v3018_v12  ;;  %v3786_v39 = vcvt.s32.f32 %v1482_v32  ;;  %v3810_v46 = vcvt.s32.f32 %v1506_v26  ;;  %v666_v37 = vunpack.c.0.s8 %v90_v9  ;;  %v9939_v62 = vld [vmem:[#allocation2 + $0x5a8] sm:$0xff] }
 0x33a   :  { %v9909_v49 = vadd.f32 1.0, %v8966_v61  ;;  %7394 = vmatpush.bf16.msra.mxu3 %v5898_v42  ;;  %v5490_v60 = vpack.c.bf16 %v3426_v58, %v3402_v63  ;;  %v4170_v43 = vcvt.s32.f32 %v1866_v51  ;;  %v4194_v44 = vcvt.s32.f32 %v1890_v57  ;;  %v9934_v54 = vpop.f32.mrf.mxu3  ;;  %v7153_v58 = vpop.f32.mrf.mxu0 }
 0x33b   :  { %7356 = vmatpush.bf16.msra.mxu0 %v5298_v17  ;;  %v5682_v48 = vpack.c.bf16 %v3810_v46, %v3786_v39  ;;  %v690_v25 = vunpack.c.1.s8 %v90_v9  ;;  %v2970_v15 = vcvt.s32.f32 %v666_v37  ;;  %v1050_v1 = vunpack.c.0.s8 %v9905_v47  ;;  %v7166_v51 = vpop.f32.mrf.mxu1 }
 0x33c   :  { %8967 = vrcp.f32 %v9909_v49  ;;  %v8669_v53 = vand.u32 2147483648, %v9909_v49  ;;  %7369 = vmatpush.bf16.msra.mxu1 %v5490_v60  ;;  %v5874_v56 = vpack.c.bf16 %v4194_v44, %v4170_v43  ;;  %v1074_v6 = vunpack.c.1.s8 %v9905_v47 }
 0x33d   :  { %7382 = vmatpush.bf16.msra.mxu2 %v5682_v48  ;;  %v2994_v7 = vcvt.s32.f32 %v690_v25  ;;  %v3354_v18 = vcvt.s32.f32 %v1050_v1  ;;  %v8667_v9 = vand.u32 2147483647, %v9909_v49  ;;  %v1434_v4 = vunpack.c.0.s8 %v282_v38 }
 0x33e   :  { %v9922_v50 = vor.u32 1.1754944e-38, %v8669_v53  ;;  %v1458_v10 = vunpack.c.1.s8 %v282_v38  ;;  %vm8663_vm0 = vweird.f32 %v9909_v49  ;;  %7395 = vmatpush.bf16.msra.mxu3 %v5874_v56  ;;  %v3378_v8 = vcvt.s32.f32 %v1074_v6 }
 0x33f   :  { %v5274_v55 = vpack.c.bf16 %v2994_v7, %v2970_v15  ;;  %v1818_v23 = vunpack.c.0.s8 %v378_v40  ;;  %v1842_v19 = vunpack.c.1.s8 %v378_v40  ;;  %v3738_v20 = vcvt.s32.f32 %v1434_v4 }
 0x340   :  { %v3762_v47 = vcvt.s32.f32 %v1458_v10  ;;  %v2538_v29 = vunpack.c.2.s8 %v9919_v2  ;;  %v2562_v24 = vunpack.c.3.s8 %v9919_v2  ;;  %v5466_v34 = vpack.c.bf16 %v3378_v8, %v3354_v18  ;;  %v7179_v8 = vpop.f32.mrf.mxu2 }
 0x341   :  { %7357 = vmatpush.bf16.msra.mxu0 %v5274_v55  ;;  %v4122_v27 = vcvt.s32.f32 %v1818_v23  ;;  %v4146_v13 = vcvt.s32.f32 %v1842_v19  ;;  %v2922_v38 = vunpack.c.2.s8 %v9924_v33  ;;  %v2946_v35 = vunpack.c.3.s8 %v9924_v33 }
 0x342   :  { %v9936_v41 = vpop.eup %8967  ;;  %v5658_v40 = vpack.c.bf16 %v3762_v47, %v3738_v20  ;;  %v4842_v31 = vcvt.s32.f32 %v2538_v29  ;;  %v4866_v12 = vcvt.s32.f32 %v2562_v24  ;;  %vm9944_vm2 = vcmp.eq.f32.partialorder %v8667_v9, 8.507059e+37  ;;  %7370 = vmatpush.bf16.msra.mxu1 %v5466_v34  ;;  %v7192_v23 = vpop.f32.mrf.mxu3  ;;  %v522_v47 = vld [vmem:[#allocation2 + $0xde0] sm:$0xff] }
 0x343   :  { %v8659_v63 = vmul.f32 %v9936_v41, %v9909_v49  ;;  %vm8664_vm1 = vweird.f32 %v9936_v41  ;;  %v5850_v26 = vpack.c.bf16 %v4146_v13, %v4122_v27  ;;  %v5226_v42 = vcvt.s32.f32 %v2922_v38  ;;  %v618_v29 = vld [vmem:[#allocation2 + $0x10e0] sm:$0xff]  ;;  %v139_v38 = vld [vmem:[#allocation2 + $0x1e8] sm:$0xff] }
 0x344   :  { %7383 = vmatpush.bf16.msra.mxu2 %v5658_v40  ;;  %v6210_v57 = vpack.c.bf16 %v4866_v12, %v4842_v31  ;;  %v5250_v61 = vcvt.s32.f32 %v2946_v35  ;;  %v1003_v17 = vunpack.c.2.s8 %v9930_v52  ;;  %v1027_v39 = vunpack.c.3.s8 %v9930_v52  ;;  %7358 = vmatmul.bf16.vlgmr.msra.gmra.mxu0 %v9163_v14  ;;  %vm8665_vm3 = vmor %vm8663_vm0, %vm8664_vm1 }
 0x345   :  { %v8660_v46 = vsub.f32 1.0, %v8659_v63  ;;  %7396 = vmatpush.bf16.msra.mxu3 %v5850_v26  ;;  %v1387_v37 = vunpack.c.2.s8 %v9939_v62  ;;  %v1411_v60 = vunpack.c.3.s8 %v9939_v62  ;;  %v9955_v43 = vadd.f32 %v9903_v28, %v9901_v3  ;;  %7371 = vmatmul.bf16.vlgmr.msra.gmra.mxu1 %v9169_v36  ;;  %v235_v26 = vld [vmem:[#allocation2 + $0x4e8] sm:$0xff] }
 0x346   :  { %7402 = vmatpush.bf16.msrb.mxu0 %v6210_v57  ;;  %v6402_v44 = vpack.c.bf16 %v5250_v61, %v5226_v42  ;;  %v3307_v48 = vcvt.s32.f32 %v1003_v17  ;;  %v3331_v25 = vcvt.s32.f32 %v1027_v39  ;;  %v2490_v15 = vunpack.c.0.s8 %v9919_v2 }
 0x347   :  { %v8661_v1 = vmul.f32 %v9936_v41, %v8660_v46  ;;  %v3691_v53 = vcvt.s32.f32 %v1387_v37  ;;  %v3715_v56 = vcvt.s32.f32 %v1411_v60  ;;  %v2514_v7 = vunpack.c.1.s8 %v9919_v2  ;;  %7384 = vmatmul.bf16.vlgmr.msra.gmra.mxu2 %v9178_v0 }
 0x348   :  { %7415 = vmatpush.bf16.msrb.mxu1 %v6402_v44  ;;  %v5443_v6 = vpack.c.bf16 %v3331_v25, %v3307_v48  ;;  %v4794_v3 = vcvt.s32.f32 %v2490_v15  ;;  %v2874_v28 = vunpack.c.0.s8 %v9924_v33  ;;  %v2898_v18 = vunpack.c.1.s8 %v9924_v33  ;;  %7397 = vmatmul.bf16.vlgmr.msra.gmra.mxu3 %v9180_v5 }
 0x349   :  { %v8662_v9 = vadd.f32 %v9936_v41, %v8661_v1  ;;  %v5635_v4 = vpack.c.bf16 %v3715_v56, %v3691_v53  ;;  %v4818_v10 = vcvt.s32.f32 %v2514_v7  ;;  %v955_v55 = vunpack.c.0.s8 %v9930_v52 }
 0x34a   :  { %7428 = vmatpush.bf16.msrb.mxu2 %v5443_v6  ;;  %v5178_v2 = vcvt.s32.f32 %v2874_v28  ;;  %v5202_v19 = vcvt.s32.f32 %v2898_v18  ;;  %v979_v33 = vunpack.c.1.s8 %v9930_v52  ;;  %v1339_v20 = vunpack.c.0.s8 %v9939_v62 }
 0x34b   :  { %v8666_v24 = vsel %vm8665_vm3, %v9936_v41, %v8662_v9  ;;  %7441 = vmatpush.bf16.msrb.mxu3 %v5635_v4  ;;  %v6186_v34 = vpack.c.bf16 %v4818_v10, %v4794_v3  ;;  %v3259_v27 = vcvt.s32.f32 %v955_v55  ;;  %v1363_v13 = vunpack.c.1.s8 %v9939_v62  ;;  %v498_v55 = vld [vmem:[#allocation2 + $0xd20] sm:$0xff] }
 0x34c   :  { %v8671_v49 = vsel %vm9944_vm2, %v9922_v50, %v8666_v24  ;;  %v6378_v40 = vpack.c.bf16 %v5202_v19, %v5178_v2  ;;  %v3283_v31 = vcvt.s32.f32 %v979_v33  ;;  %v3643_v12 = vcvt.s32.f32 %v1339_v20  ;;  %v594_v33 = vld [vmem:[#allocation2 + $0x1020] sm:$0xff] }
 0x34d   :  { %8906 = vst [vmem:[%s10886_s4 + $0x40] sm:$0xff] %v8671_v49  ;;  %7403 = vmatpush.bf16.msrb.mxu0 %v6186_v34  ;;  %v3667_v52 = vcvt.s32.f32 %v1363_v13  ;;  %v2442_v41 = vunpack.c.2.s8 %v522_v47  ;;  %v2466_v35 = vunpack.c.3.s8 %v522_v47  ;;  %v2826_v63 = vunpack.c.2.s8 %v618_v29 }
 0x34e   :  { %7416 = vmatpush.bf16.msrb.mxu1 %v6378_v40  ;;  %v5419_v62 = vpack.c.bf16 %v3283_v31, %v3259_v27  ;;  %v2850_v42 = vunpack.c.3.s8 %v618_v29  ;;  %v907_v58 = vunpack.c.2.s8 %v139_v38  ;;  %v931_v51 = vunpack.c.3.s8 %v139_v38  ;;  %v115_v27 = vld [vmem:[#allocation2 + $0x128] sm:$0xff] }
 0x34f   :  { %v5611_v32 = vpack.c.bf16 %v3667_v52, %v3643_v12  ;;  %v4746_v50 = vcvt.s32.f32 %v2442_v41  ;;  %v4770_v57 = vcvt.s32.f32 %v2466_v35  ;;  %v5130_v61 = vcvt.s32.f32 %v2826_v63  ;;  %v211_v40 = vld [vmem:[#allocation2 + $0x428] sm:$0xff] }
 0x350   :  { %7429 = vmatpush.bf16.msrb.mxu2 %v5419_v62  ;;  %v5154_v17 = vcvt.s32.f32 %v2850_v42  ;;  %v3211_v39 = vcvt.s32.f32 %v907_v58  ;;  %v3235_v46 = vcvt.s32.f32 %v931_v51  ;;  %v1291_v37 = vunpack.c.2.s8 %v235_v26 }
 0x351   :  { %7442 = vmatpush.bf16.msrb.mxu3 %v5611_v32  ;;  %v6162_v60 = vpack.c.bf16 %v4770_v57, %v4746_v50  ;;  %v1315_v44 = vunpack.c.3.s8 %v235_v26  ;;  %v2394_v48 = vunpack.c.0.s8 %v522_v47  ;;  %v2418_v25 = vunpack.c.1.s8 %v522_v47 }
 0x352   :  { %v6354_v15 = vpack.c.bf16 %v5154_v17, %v5130_v61  ;;  %v5395_v1 = vpack.c.bf16 %v3235_v46, %v3211_v39  ;;  %v3595_v53 = vcvt.s32.f32 %v1291_v37  ;;  %v2778_v56 = vunpack.c.0.s8 %v618_v29 }
 0x353   :  { %7404 = vmatpush.bf16.msrb.mxu0 %v6162_v60  ;;  %v3619_v7 = vcvt.s32.f32 %v1315_v44  ;;  %v4698_v6 = vcvt.s32.f32 %v2394_v48  ;;  %v4722_v3 = vcvt.s32.f32 %v2418_v25  ;;  %v2802_v28 = vunpack.c.1.s8 %v618_v29 }
 0x354   :  { %7417 = vmatpush.bf16.msrb.mxu1 %v6354_v15  ;;  %7430 = vmatpush.bf16.msrb.mxu2 %v5395_v1  ;;  %v5082_v18 = vcvt.s32.f32 %v2778_v56  ;;  %v859_v9 = vunpack.c.0.s8 %v139_v38  ;;  %v883_v4 = vunpack.c.1.s8 %v139_v38  ;;  %v1243_v10 = vunpack.c.0.s8 %v235_v26 }
 0x355   :  { %v5587_v8 = vpack.c.bf16 %v3619_v7, %v3595_v53  ;;  %v6138_v23 = vpack.c.bf16 %v4722_v3, %v4698_v6  ;;  %v5106_v2 = vcvt.s32.f32 %v2802_v28  ;;  %v1267_v19 = vunpack.c.1.s8 %v235_v26  ;;  %v474_v6 = vld [vmem:[#allocation2 + $0xc60] sm:$0xff] }
 0x356   :  { %v3163_v20 = vcvt.s32.f32 %v859_v9  ;;  %v3187_v47 = vcvt.s32.f32 %v883_v4  ;;  %v3547_v24 = vcvt.s32.f32 %v1243_v10  ;;  %v7152_v34 = vadd.f32 %v9912_v45, %v9955_v43  ;;  %v570_v10 = vld [vmem:[#allocation2 + $0xf60] sm:$0xff] }
 0x357   :  { %7443 = vmatpush.bf16.msrb.mxu3 %v5587_v8  ;;  %7405 = vmatpush.bf16.msrb.mxu0 %v6138_v23  ;;  %v6330_v29 = vpack.c.bf16 %v5106_v2, %v5082_v18  ;;  %v3571_v13 = vcvt.s32.f32 %v1267_v19  ;;  %v2346_v49 = vunpack.c.2.s8 %v498_v55  ;;  %v2370_v38 = vunpack.c.3.s8 %v498_v55  ;;  %v91_v19 = vld [vmem:[#allocation2 + $0x68] sm:$0xff] }
 0x358   :  { %v5371_v31 = vpack.c.bf16 %v3187_v47, %v3163_v20  ;;  %v7165_v12 = vadd.f32 %v9914_v21, %v7152_v34  ;;  %v2730_v52 = vunpack.c.2.s8 %v594_v33  ;;  %v2754_v41 = vunpack.c.3.s8 %v594_v33  ;;  %v187_v34 = vld [vmem:[#allocation2 + $0x368] sm:$0xff] }
 0x359   :  { %7418 = vmatpush.bf16.msrb.mxu1 %v6330_v29  ;;  %v5563_v35 = vpack.c.bf16 %v3571_v13, %v3547_v24  ;;  %v4650_v63 = vcvt.s32.f32 %v2346_v49  ;;  %v4674_v26 = vcvt.s32.f32 %v2370_v38  ;;  %v811_v62 = vunpack.c.2.s8 %v115_v27 }
 0x35a   :  { %7431 = vmatpush.bf16.msrb.mxu2 %v5371_v31  ;;  %v5034_v45 = vcvt.s32.f32 %v2730_v52  ;;  %v5058_v43 = vcvt.s32.f32 %v2754_v41  ;;  %v835_v42 = vunpack.c.3.s8 %v115_v27  ;;  %v1195_v58 = vunpack.c.2.s8 %v211_v40 }
 0x35b   :  { %7444 = vmatpush.bf16.msrb.mxu3 %v5563_v35  ;;  %v6114_v51 = vpack.c.bf16 %v4674_v26, %v4650_v63  ;;  %v3115_v32 = vcvt.s32.f32 %v811_v62  ;;  %v1219_v50 = vunpack.c.3.s8 %v211_v40  ;;  %v7178_v57 = vadd.f32 %v9932_v30, %v7165_v12 }
 0x35c   :  { %v6306_v61 = vpack.c.bf16 %v5058_v43, %v5034_v45  ;;  %v3139_v21 = vcvt.s32.f32 %v835_v42  ;;  %v3499_v17 = vcvt.s32.f32 %v1195_v58  ;;  %v8301_v39 = vperm.slane %v9894_v22, 1 }
 0x35d   :  { %7406 = vmatpush.bf16.msrb.mxu0 %v6114_v51  ;;  %v3523_v46 = vcvt.s32.f32 %v1219_v50  ;;  %v7191_v37 = vadd.f32 %v9934_v54, %v7178_v57  ;;  %v8379_v60 = vperm.slane %v9896_v59, 1  ;;  %v2298_v44 = vunpack.c.0.s8 %v498_v55 }
 0x35e   :  { %7419 = vmatpush.bf16.msrb.mxu1 %v6306_v61  ;;  %v5347_v48 = vpack.c.bf16 %v3139_v21, %v3115_v32  ;;  %v2322_v25 = vunpack.c.1.s8 %v498_v55  ;;  %v2682_v15 = vunpack.c.0.s8 %v594_v33  ;;  %v2706_v1 = vunpack.c.1.s8 %v594_v33 }
 0x35f   :  { %v5539_v53 = vpack.c.bf16 %v3523_v46, %v3499_v17  ;;  %v8349_v56 = vmul.f32 %v8301_v39, %v7191_v37  ;;  %v4602_v30 = vcvt.s32.f32 %v2298_v44  ;;  %v763_v7 = vunpack.c.0.s8 %v115_v27  ;;  %v355_v37 = vld [vmem:[#allocation2 + $0x8a8] sm:$0xff] }
 0x360   :  { %7432 = vmatpush.bf16.msrb.mxu2 %v5347_v48  ;;  %v4626_v3 = vcvt.s32.f32 %v2322_v25  ;;  %v4986_v22 = vcvt.s32.f32 %v2682_v15  ;;  %v5010_v28 = vcvt.s32.f32 %v2706_v1  ;;  %v787_v18 = vunpack.c.1.s8 %v115_v27 }
 0x361   :  { %7445 = vmatpush.bf16.msrb.mxu3 %v5539_v53  ;;  %v8427_v54 = vadd.f32 %v8379_v60, %v8349_v56  ;;  %v3067_v9 = vcvt.s32.f32 %v763_v7  ;;  %v1147_v59 = vunpack.c.0.s8 %v211_v40  ;;  %v1171_v4 = vunpack.c.1.s8 %v211_v40 }
 0x362   :  { %v6090_v8 = vpack.c.bf16 %v4626_v3, %v4602_v30  ;;  %v6282_v55 = vpack.c.bf16 %v5010_v28, %v4986_v22  ;;  %v3091_v23 = vcvt.s32.f32 %v787_v18  ;;  %v2250_v2 = vunpack.c.2.s8 %v474_v6  ;;  %v451_v30 = vld [vmem:[#allocation2 + $0xba8] sm:$0xff] }
 0x363   :  { %v8451_v33 = vsub.f32 0.0, %v8427_v54  ;;  %v3451_v20 = vcvt.s32.f32 %v1147_v59  ;;  %v3475_v47 = vcvt.s32.f32 %v1171_v4  ;;  %v2274_v24 = vunpack.c.3.s8 %v474_v6 }
 0x364   :  { %7407 = vmatpush.bf16.msrb.mxu0 %v6090_v8  ;;  %7420 = vmatpush.bf16.msrb.mxu1 %v6282_v55  ;;  %v5323_v29 = vpack.c.bf16 %v3091_v23, %v3067_v9  ;;  %v4554_v27 = vcvt.s32.f32 %v2250_v2  ;;  %v2634_v13 = vunpack.c.2.s8 %v570_v10  ;;  %v2658_v49 = vunpack.c.3.s8 %v570_v10  ;;  %v547_v23 = vld [vmem:[#allocation2 + $0xea8] sm:$0xff] }
 0x365   :  { %v8484_v38 = vmul.f32 1.442695, %v8451_v33  ;;  %v5515_v31 = vpack.c.bf16 %v3475_v47, %v3451_v20  ;;  %v4578_v40 = vcvt.s32.f32 %v2274_v24  ;;  %v715_v12 = vunpack.c.2.s8 %v91_v19 }
 0x366   :  { %7433 = vmatpush.bf16.msrb.mxu2 %v5323_v29  ;;  %v4938_v52 = vcvt.s32.f32 %v2634_v13  ;;  %v4962_v41 = vcvt.s32.f32 %v2658_v49  ;;  %v739_v35 = vunpack.c.3.s8 %v91_v19  ;;  %v1099_v63 = vunpack.c.2.s8 %v187_v34 }
 0x367   :  { %8969 = vpow2.f32 %v8484_v38  ;;  %7446 = vmatpush.bf16.msrb.mxu3 %v5515_v31  ;;  %v6066_v26 = vpack.c.bf16 %v4578_v40, %v4554_v27  ;;  %v3019_v62 = vcvt.s32.f32 %v715_v12  ;;  %v1123_v45 = vunpack.c.3.s8 %v187_v34  ;;  %v9997_v12 = vpop.f32.mrf.mxu0 }
 0x368   :  { %v6258_v43 = vpack.c.bf16 %v4962_v41, %v4938_v52  ;;  %v3043_v42 = vcvt.s32.f32 %v739_v35  ;;  %v3403_v58 = vcvt.s32.f32 %v1099_v63  ;;  %v2202_v51 = vunpack.c.0.s8 %v474_v6 }
 0x369   :  { %7408 = vmatpush.bf16.msrb.mxu0 %v6066_v26  ;;  %v3427_v32 = vcvt.s32.f32 %v1123_v45  ;;  %v2226_v50 = vunpack.c.1.s8 %v474_v6  ;;  %v2586_v57 = vunpack.c.0.s8 %v570_v10  ;;  %v2610_v61 = vunpack.c.1.s8 %v570_v10 }
 0x36a   :  { %7421 = vmatpush.bf16.msrb.mxu1 %v6258_v43  ;;  %v5299_v21 = vpack.c.bf16 %v3043_v42, %v3019_v62  ;;  %v4506_v17 = vcvt.s32.f32 %v2202_v51  ;;  %v667_v39 = vunpack.c.0.s8 %v91_v19  ;;  %v691_v46 = vunpack.c.1.s8 %v91_v19  ;;  %v643_v19 = vld [vmem:[#allocation2 + $0x11a8] sm:$0xff] }
 0x36b   :  { %v5491_v60 = vpack.c.bf16 %v3427_v32, %v3403_v58  ;;  %v4530_v44 = vcvt.s32.f32 %v2226_v50  ;;  %v4890_v48 = vcvt.s32.f32 %v2586_v57  ;;  %v4914_v25 = vcvt.s32.f32 %v2610_v61  ;;  %v10001_v57 = vld [vmem:[#allocation2 + $0x7e8] sm:$0xff] }
 0x36c   :  { %7434 = vmatpush.bf16.msrb.mxu2 %v5299_v21  ;;  %v2971_v15 = vcvt.s32.f32 %v667_v39  ;;  %v2995_v1 = vcvt.s32.f32 %v691_v46  ;;  %v1051_v53 = vunpack.c.0.s8 %v187_v34  ;;  %v1075_v56 = vunpack.c.1.s8 %v187_v34  ;;  %v10009_v46 = vld [vmem:[#allocation2 + $0xae8] sm:$0xff] }
 0x36d   :  { %v8970_v7 = vpop.eup %8969  ;;  %7447 = vmatpush.bf16.msrb.mxu3 %v5491_v60  ;;  %v6042_v6 = vpack.c.bf16 %v4530_v44, %v4506_v17  ;;  %v6234_v3 = vpack.c.bf16 %v4914_v25, %v4890_v48  ;;  %v1771_v22 = vunpack.c.2.s8 %v355_v37  ;;  %v1795_v28 = vunpack.c.3.s8 %v355_v37  ;;  %v10011_v25 = vpop.f32.mrf.mxu1 }
 0x36e   :  { %v9988_v18 = vadd.f32 1.0, %v8970_v7  ;;  %v5275_v54 = vpack.c.bf16 %v2995_v1, %v2971_v15  ;;  %v3355_v9 = vcvt.s32.f32 %v1051_v53  ;;  %v3379_v59 = vcvt.s32.f32 %v1075_v56 }
 0x36f   :  { %7409 = vmatpush.bf16.msrb.mxu0 %v6042_v6  ;;  %7422 = vmatpush.bf16.msrb.mxu1 %v6234_v3  ;;  %v4075_v4 = vcvt.s32.f32 %v1771_v22  ;;  %v4099_v10 = vcvt.s32.f32 %v1795_v28  ;;  %v2155_v8 = vunpack.c.2.s8 %v451_v30  ;;  %v2179_v55 = vunpack.c.3.s8 %v451_v30 }
 0x370   :  { %8971 = vrcp.f32 %v9988_v18  ;;  %v8684_v2 = vand.u32 2147483648, %v9988_v18  ;;  %7435 = vmatpush.bf16.msrb.mxu2 %v5275_v54  ;;  %v5467_v33 = vpack.c.bf16 %v3379_v59, %v3355_v9  ;;  %v8682_v34 = vand.u32 2147483647, %v9988_v18 }
 0x371   :  { %v5827_v20 = vpack.c.bf16 %v4099_v10, %v4075_v4  ;;  %v4459_v47 = vcvt.s32.f32 %v2155_v8  ;;  %v4483_v24 = vcvt.s32.f32 %v2179_v55  ;;  %v2539_v27 = vunpack.c.2.s8 %v547_v23  ;;  %v619_v4 = vld [vmem:[#allocation2 + $0x10e8] sm:$0xff]  ;;  %v7205_v10 = vpop.f32.mrf.mxu0 }
 0x372   :  { %v9993_v29 = vor.u32 1.1754944e-38, %v8684_v2  ;;  %v2563_v13 = vunpack.c.3.s8 %v547_v23  ;;  %7410 = vmatmul.bf16.vlgmr.msrb.gmra.mxu0 %v9194_v11  ;;  %7423 = vmatmul.bf16.vlgmr.msrb.gmra.mxu1 %v9198_v16  ;;  %v2923_v38 = vunpack.c.2.s8 %v643_v19  ;;  %v2947_v31 = vunpack.c.3.s8 %v643_v19 }
 0x373   :  { %7448 = vmatpush.bf16.msrb.mxu3 %v5467_v33  ;;  %7454 = vmatpush.bf16.msra.mxu0 %v5827_v20  ;;  %v6019_v49 = vpack.c.bf16 %v4483_v24, %v4459_v47  ;;  %v1723_v40 = vunpack.c.0.s8 %v355_v37  ;;  %v4843_v52 = vcvt.s32.f32 %v2539_v27  ;;  %v1747_v35 = vunpack.c.1.s8 %v355_v37 }
 0x374   :  { %v4867_v41 = vcvt.s32.f32 %v2563_v13  ;;  %v2107_v63 = vunpack.c.0.s8 %v451_v30  ;;  %7436 = vmatmul.bf16.vlgmr.msrb.gmra.mxu2 %v9163_v14  ;;  %vm8678_vm4 = vweird.f32 %v9988_v18  ;;  %v5227_v26 = vcvt.s32.f32 %v2923_v38 }
 0x375   :  { %7467 = vmatpush.bf16.msra.mxu1 %v6019_v49  ;;  %v5251_v62 = vcvt.s32.f32 %v2947_v31  ;;  %v4027_v45 = vcvt.s32.f32 %v1723_v40  ;;  %v2131_v43 = vunpack.c.1.s8 %v451_v30  ;;  %v4051_v51 = vcvt.s32.f32 %v1747_v35  ;;  %v523_v30 = vld [vmem:[#allocation2 + $0xde8] sm:$0xff] }
 0x376   :  { %v8972_v42 = vpop.eup %8971  ;;  %v6211_v58 = vpack.c.bf16 %v4867_v41, %v4843_v52  ;;  %v4411_v32 = vcvt.s32.f32 %v2107_v63  ;;  %v2491_v50 = vunpack.c.0.s8 %v547_v23  ;;  %7449 = vmatmul.bf16.vlgmr.msrb.gmra.mxu3 %v9169_v36  ;;  %vm10005_vm6 = vcmp.eq.f32.partialorder %v8682_v34, 8.507059e+37  ;;  %v7218_v63 = vpop.f32.mrf.mxu1 }
 0x377   :  { %v8674_v61 = vmul.f32 %v8972_v42, %v9988_v18  ;;  %vm8679_vm5 = vweird.f32 %v8972_v42  ;;  %v6403_v17 = vpack.c.bf16 %v5251_v62, %v5227_v26  ;;  %v4435_v39 = vcvt.s32.f32 %v2131_v43 }
 0x378   :  { %7480 = vmatpush.bf16.msra.mxu2 %v6211_v58  ;;  %v5803_v37 = vpack.c.bf16 %v4051_v51, %v4027_v45  ;;  %v2515_v60 = vunpack.c.1.s8 %v547_v23  ;;  %v4795_v44 = vcvt.s32.f32 %v2491_v50  ;;  %v2875_v48 = vunpack.c.0.s8 %v643_v19  ;;  %vm8680_vm7 = vmor %vm8678_vm4, %vm8679_vm5 }
 0x379   :  { %v8675_v15 = vsub.f32 1.0, %v8674_v61  ;;  %7493 = vmatpush.bf16.msra.mxu3 %v6403_v17  ;;  %v5995_v1 = vpack.c.bf16 %v4435_v39, %v4411_v32  ;;  %v2899_v53 = vunpack.c.1.s8 %v643_v19  ;;  %v1675_v56 = vunpack.c.2.s8 %v10001_v57  ;;  %v403_v17 = vld [vmem:[#allocation2 + $0xa28] sm:$0xff] }
 0x37a   :  { %7455 = vmatpush.bf16.msra.mxu0 %v5803_v37  ;;  %v4819_v7 = vcvt.s32.f32 %v2515_v60  ;;  %v5179_v6 = vcvt.s32.f32 %v2875_v48  ;;  %v1699_v3 = vunpack.c.3.s8 %v10001_v57  ;;  %v2059_v22 = vunpack.c.2.s8 %v10009_v46  ;;  %v499_v48 = vld [vmem:[#allocation2 + $0xd28] sm:$0xff] }
 0x37b   :  { %v8676_v28 = vmul.f32 %v8972_v42, %v8675_v15  ;;  %7468 = vmatpush.bf16.msra.mxu1 %v5995_v1  ;;  %v5203_v54 = vcvt.s32.f32 %v2899_v53  ;;  %v3979_v9 = vcvt.s32.f32 %v1675_v56  ;;  %v2083_v59 = vunpack.c.3.s8 %v10009_v46  ;;  %v595_v56 = vld [vmem:[#allocation2 + $0x1028] sm:$0xff] }
 0x37c   :  { %v6187_v8 = vpack.c.bf16 %v4819_v7, %v4795_v44  ;;  %v4003_v55 = vcvt.s32.f32 %v1699_v3  ;;  %v4363_v23 = vcvt.s32.f32 %v2059_v22  ;;  %v2443_v2 = vunpack.c.2.s8 %v523_v30 }
 0x37d   :  { %v8677_v19 = vadd.f32 %v8972_v42, %v8676_v28  ;;  %v6379_v33 = vpack.c.bf16 %v5203_v54, %v5179_v6  ;;  %v4387_v20 = vcvt.s32.f32 %v2083_v59  ;;  %v2467_v47 = vunpack.c.3.s8 %v523_v30 }
 0x37e   :  { %7481 = vmatpush.bf16.msra.mxu2 %v6187_v8  ;;  %v5779_v24 = vpack.c.bf16 %v4003_v55, %v3979_v9  ;;  %v4747_v34 = vcvt.s32.f32 %v2443_v2  ;;  %v2827_v27 = vunpack.c.2.s8 %v619_v4  ;;  %v2851_v13 = vunpack.c.3.s8 %v619_v4  ;;  %v10030_v55 = vpop.f32.mrf.mxu2 }
 0x37f   :  { %v8681_v49 = vsel %vm8680_vm7, %v8972_v42, %v8677_v19  ;;  %7494 = vmatpush.bf16.msra.mxu3 %v6379_v33  ;;  %v5971_v38 = vpack.c.bf16 %v4387_v20, %v4363_v23  ;;  %v4771_v31 = vcvt.s32.f32 %v2467_v47  ;;  %v1627_v40 = vunpack.c.0.s8 %v10001_v57  ;;  %v307_v42 = vld [vmem:[#allocation2 + $0x728] sm:$0xff] }
 0x380   :  { %v8686_v52 = vsel %vm10005_vm6, %v9993_v29, %v8681_v49  ;;  %7456 = vmatpush.bf16.msra.mxu0 %v5779_v24  ;;  %v5131_v41 = vcvt.s32.f32 %v2827_v27  ;;  %v5155_v35 = vcvt.s32.f32 %v2851_v13  ;;  %v1651_v18 = vunpack.c.1.s8 %v10001_v57 }
 0x381   :  { %8907 = vst [vmem:[%s10886_s4 + $0x48] sm:$0xff] %v8686_v52  ;;  %7469 = vmatpush.bf16.msra.mxu1 %v5971_v38  ;;  %v6163_v26 = vpack.c.bf16 %v4771_v31, %v4747_v34  ;;  %v3931_v62 = vcvt.s32.f32 %v1627_v40  ;;  %v2011_v45 = vunpack.c.0.s8 %v10009_v46  ;;  %v2035_v43 = vunpack.c.1.s8 %v10009_v46  ;;  %v10032_v31 = vld [vmem:[#allocation2 + $0x668] sm:$0xff] }
 0x382   :  { %v6355_v58 = vpack.c.bf16 %v5155_v35, %v5131_v41  ;;  %v3955_v29 = vcvt.s32.f32 %v1651_v18  ;;  %v2395_v51 = vunpack.c.0.s8 %v523_v30  ;;  %v2419_v32 = vunpack.c.1.s8 %v523_v30 }
 0x383   :  { %7482 = vmatpush.bf16.msra.mxu2 %v6163_v26  ;;  %v4315_v50 = vcvt.s32.f32 %v2011_v45  ;;  %v4339_v57 = vcvt.s32.f32 %v2035_v43  ;;  %v2779_v61 = vunpack.c.0.s8 %v619_v4  ;;  %v2803_v21 = vunpack.c.1.s8 %v619_v4  ;;  %v379_v45 = vld [vmem:[#allocation2 + $0x968] sm:$0xff]  ;;  %v10034_v43 = vpop.f32.mrf.mxu3 }
 0x384   :  { %7495 = vmatpush.bf16.msra.mxu3 %v6355_v58  ;;  %v5755_v39 = vpack.c.bf16 %v3955_v29, %v3931_v62  ;;  %v4699_v37 = vcvt.s32.f32 %v2395_v51  ;;  %v4723_v60 = vcvt.s32.f32 %v2419_v32  ;;  %v1579_v44 = vunpack.c.2.s8 %v307_v42 }
 0x385   :  { %v5947_v15 = vpack.c.bf16 %v4339_v57, %v4315_v50  ;;  %v5083_v1 = vcvt.s32.f32 %v2779_v61  ;;  %v5107_v46 = vcvt.s32.f32 %v2803_v21  ;;  %v1603_v53 = vunpack.c.3.s8 %v307_v42  ;;  %v475_v50 = vld [vmem:[#allocation2 + $0xc68] sm:$0xff] }
 0x386   :  { %7457 = vmatpush.bf16.msra.mxu0 %v5755_v39  ;;  %v6139_v7 = vpack.c.bf16 %v4723_v60, %v4699_v37  ;;  %v3883_v30 = vcvt.s32.f32 %v1579_v44  ;;  %v1963_v6 = vunpack.c.2.s8 %v403_v17  ;;  %v1987_v3 = vunpack.c.3.s8 %v403_v17  ;;  %v571_v39 = vld [vmem:[#allocation2 + $0xf68] sm:$0xff] }
 0x387   :  { %7470 = vmatpush.bf16.msra.mxu1 %v5947_v15  ;;  %v6331_v22 = vpack.c.bf16 %v5107_v46, %v5083_v1  ;;  %v3907_v28 = vcvt.s32.f32 %v1603_v53  ;;  %v2347_v54 = vunpack.c.2.s8 %v499_v48  ;;  %v2371_v9 = vunpack.c.3.s8 %v499_v48  ;;  %v7231_v15 = vpop.f32.mrf.mxu2 }
 0x388   :  { %7483 = vmatpush.bf16.msra.mxu2 %v6139_v7  ;;  %v4267_v59 = vcvt.s32.f32 %v1963_v6  ;;  %v4291_v4 = vcvt.s32.f32 %v1987_v3  ;;  %v2731_v10 = vunpack.c.2.s8 %v595_v56  ;;  %v2755_v8 = vunpack.c.3.s8 %v595_v56 }
 0x389   :  { %7496 = vmatpush.bf16.msra.mxu3 %v6331_v22  ;;  %v5731_v23 = vpack.c.bf16 %v3907_v28, %v3883_v30  ;;  %v4651_v2 = vcvt.s32.f32 %v2347_v54  ;;  %v4675_v19 = vcvt.s32.f32 %v2371_v9  ;;  %v1531_v33 = vunpack.c.0.s8 %v307_v42  ;;  %v10040_v22 = vpop.f32.mrf.mxu1 }
 0x38a   :  { %v5923_v20 = vpack.c.bf16 %v4291_v4, %v4267_v59  ;;  %v5035_v47 = vcvt.s32.f32 %v2731_v10  ;;  %v5059_v24 = vcvt.s32.f32 %v2755_v8  ;;  %v1555_v34 = vunpack.c.1.s8 %v307_v42  ;;  %v10036_v42 = vpop.f32.mrf.mxu0 }
 0x38b   :  { %7458 = vmatpush.bf16.msra.mxu0 %v5731_v23  ;;  %v6115_v27 = vpack.c.bf16 %v4675_v19, %v4651_v2  ;;  %v3835_v13 = vcvt.s32.f32 %v1531_v33  ;;  %v1915_v49 = vunpack.c.0.s8 %v403_v17  ;;  %v1939_v38 = vunpack.c.1.s8 %v403_v17 }
 0x38c   :  { %7471 = vmatpush.bf16.msra.mxu1 %v5923_v20  ;;  %v6307_v40 = vpack.c.bf16 %v5059_v24, %v5035_v47  ;;  %v3859_v52 = vcvt.s32.f32 %v1555_v34  ;;  %v2299_v41 = vunpack.c.0.s8 %v499_v48  ;;  %v2323_v35 = vunpack.c.1.s8 %v499_v48  ;;  %v164_v47 = vld [vmem:[#allocation2 + $0x2b0] sm:$0xff]  ;;  %v7244_v24 = vpop.f32.mrf.mxu3 }
 0x38d   :  { %7484 = vmatpush.bf16.msra.mxu2 %v6115_v27  ;;  %v4219_v18 = vcvt.s32.f32 %v1915_v49  ;;  %v4243_v63 = vcvt.s32.f32 %v1939_v38  ;;  %v2683_v26 = vunpack.c.0.s8 %v595_v56  ;;  %v2707_v62 = vunpack.c.1.s8 %v595_v56 }
 0x38e   :  { %7497 = vmatpush.bf16.msra.mxu3 %v6307_v40  ;;  %v5707_v58 = vpack.c.bf16 %v3859_v52, %v3835_v13  ;;  %v4603_v29 = vcvt.s32.f32 %v2299_v41  ;;  %v4627_v51 = vcvt.s32.f32 %v2323_v35  ;;  %v1483_v32 = vunpack.c.2.s8 %v10032_v31  ;;  %v260_v41 = vld [vmem:[#allocation2 + $0x5b0] sm:$0xff] }
 0x38f   :  { %v5899_v57 = vpack.c.bf16 %v4243_v63, %v4219_v18  ;;  %v4987_v61 = vcvt.s32.f32 %v2683_v26  ;;  %v5011_v21 = vcvt.s32.f32 %v2707_v62  ;;  %v1507_v17 = vunpack.c.3.s8 %v10032_v31  ;;  %v356_v26 = vld [vmem:[#allocation2 + $0x8b0] sm:$0xff] }
 0x390   :  { %7459 = vmatpush.bf16.msra.mxu0 %v5707_v58  ;;  %v6091_v37 = vpack.c.bf16 %v4627_v51, %v4603_v29  ;;  %v3787_v60 = vcvt.s32.f32 %v1483_v32  ;;  %v1867_v44 = vunpack.c.2.s8 %v379_v45  ;;  %v1891_v48 = vunpack.c.3.s8 %v379_v45  ;;  %v452_v51 = vld [vmem:[#allocation2 + $0xbb0] sm:$0xff] }
 0x391   :  { %7472 = vmatpush.bf16.msra.mxu1 %v5899_v57  ;;  %v6283_v1 = vpack.c.bf16 %v5011_v21, %v4987_v61  ;;  %v3811_v46 = vcvt.s32.f32 %v1507_v17  ;;  %v2251_v53 = vunpack.c.2.s8 %v475_v50  ;;  %v2275_v56 = vunpack.c.3.s8 %v475_v50  ;;  %v7270_v21 = vpop.f32.mrf.mxu1 }
 0x392   :  { %7485 = vmatpush.bf16.msra.mxu2 %v6091_v37  ;;  %v4171_v7 = vcvt.s32.f32 %v1867_v44  ;;  %v4195_v30 = vcvt.s32.f32 %v1891_v48  ;;  %v2635_v6 = vunpack.c.2.s8 %v571_v39  ;;  %v2659_v3 = vunpack.c.3.s8 %v571_v39  ;;  %v7257_v34 = vpop.f32.mrf.mxu0 }
 0x393   :  { %7498 = vmatpush.bf16.msra.mxu3 %v6283_v1  ;;  %v5683_v28 = vpack.c.bf16 %v3811_v46, %v3787_v60  ;;  %v4555_v54 = vcvt.s32.f32 %v2251_v53  ;;  %v4579_v9 = vcvt.s32.f32 %v2275_v56  ;;  %v10044_v59 = vadd.f32 %v10011_v25, %v9997_v12 }
 0x394   :  { %v5875_v4 = vpack.c.bf16 %v4195_v30, %v4171_v7  ;;  %v4939_v10 = vcvt.s32.f32 %v2635_v6  ;;  %v4963_v8 = vcvt.s32.f32 %v2659_v3  ;;  %v1435_v23 = vunpack.c.0.s8 %v10032_v31 }
 0x395   :  { %7460 = vmatpush.bf16.msra.mxu0 %v5683_v28  ;;  %v6067_v2 = vpack.c.bf16 %v4579_v9, %v4555_v54  ;;  %v1459_v19 = vunpack.c.1.s8 %v10032_v31  ;;  %v1819_v33 = vunpack.c.0.s8 %v379_v45  ;;  %v1843_v20 = vunpack.c.1.s8 %v379_v45 }
 0x396   :  { %7473 = vmatpush.bf16.msra.mxu1 %v5875_v4  ;;  %v6259_v27 = vpack.c.bf16 %v4963_v8, %v4939_v10  ;;  %v3739_v13 = vcvt.s32.f32 %v1435_v23  ;;  %v2203_v49 = vunpack.c.0.s8 %v475_v50  ;;  %v2227_v12 = vunpack.c.1.s8 %v475_v50 }
 0x397   :  { %7486 = vmatpush.bf16.msra.mxu2 %v6067_v2  ;;  %v3763_v25 = vcvt.s32.f32 %v1459_v19  ;;  %v4123_v38 = vcvt.s32.f32 %v1819_v33  ;;  %v4147_v40 = vcvt.s32.f32 %v1843_v20  ;;  %v2587_v52 = vunpack.c.0.s8 %v571_v39  ;;  %v140_v33 = vld [vmem:[#allocation2 + $0x1f0] sm:$0xff] }
 0x398   :  { %7499 = vmatpush.bf16.msra.mxu3 %v6259_v27  ;;  %v4507_v35 = vcvt.s32.f32 %v2203_v49  ;;  %v4531_v18 = vcvt.s32.f32 %v2227_v12  ;;  %v2611_v31 = vunpack.c.1.s8 %v571_v39  ;;  %v1004_v63 = vunpack.c.2.s8 %v164_v47  ;;  %v236_v27 = vld [vmem:[#allocation2 + $0x4f0] sm:$0xff] }
 0x399   :  { %v5659_v62 = vpack.c.bf16 %v3763_v25, %v3739_v13  ;;  %v5851_v45 = vpack.c.bf16 %v4147_v40, %v4123_v38  ;;  %v4891_v58 = vcvt.s32.f32 %v2587_v52  ;;  %v1028_v29 = vunpack.c.3.s8 %v164_v47  ;;  %v332_v38 = vld [vmem:[#allocation2 + $0x7f0] sm:$0xff] }
 0x39a   :  { %v6043_v32 = vpack.c.bf16 %v4531_v18, %v4507_v35  ;;  %v4915_v57 = vcvt.s32.f32 %v2611_v31  ;;  %v3308_v50 = vcvt.s32.f32 %v1004_v63  ;;  %v1388_v61 = vunpack.c.2.s8 %v260_v41 }
 0x39b   :  { %7461 = vmatpush.bf16.msra.mxu0 %v5659_v62  ;;  %7474 = vmatpush.bf16.msra.mxu1 %v5851_v45  ;;  %v3332_v17 = vcvt.s32.f32 %v1028_v29  ;;  %v1412_v37 = vunpack.c.3.s8 %v260_v41  ;;  %v1772_v60 = vunpack.c.2.s8 %v356_v26  ;;  %v1796_v44 = vunpack.c.3.s8 %v356_v26  ;;  %v428_v62 = vld [vmem:[#allocation2 + $0xaf0] sm:$0xff] }
 0x39c   :  { %7487 = vmatpush.bf16.msra.mxu2 %v6043_v32  ;;  %v6235_v39 = vpack.c.bf16 %v4915_v57, %v4891_v58  ;;  %v3692_v48 = vcvt.s32.f32 %v1388_v61  ;;  %v2156_v15 = vunpack.c.2.s8 %v452_v51  ;;  %v2180_v1 = vunpack.c.3.s8 %v452_v51 }
 0x39d   :  { %v5444_v46 = vpack.c.bf16 %v3332_v17, %v3308_v50  ;;  %v3716_v53 = vcvt.s32.f32 %v1412_v37  ;;  %v4076_v56 = vcvt.s32.f32 %v1772_v60  ;;  %v4100_v7 = vcvt.s32.f32 %v1796_v44 }
 0x39e   :  { %7500 = vmatpush.bf16.msra.mxu3 %v6235_v39  ;;  %v4460_v30 = vcvt.s32.f32 %v2156_v15  ;;  %v4484_v6 = vcvt.s32.f32 %v2180_v1  ;;  %7462 = vmatmul.bf16.vlgmr.msra.gmra.mxu0 %v9178_v0  ;;  %v956_v3 = vunpack.c.0.s8 %v164_v47  ;;  %v980_v28 = vunpack.c.1.s8 %v164_v47 }
 0x39f   :  { %7506 = vmatpush.bf16.msrb.mxu0 %v5444_v46  ;;  %v5636_v54 = vpack.c.bf16 %v3716_v53, %v3692_v48  ;;  %v5828_v9 = vpack.c.bf16 %v4100_v7, %v4076_v56  ;;  %7488 = vmatmul.bf16.vlgmr.msra.gmra.mxu2 %v9194_v11  ;;  %v1340_v4 = vunpack.c.0.s8 %v260_v41  ;;  %v1364_v10 = vunpack.c.1.s8 %v260_v41 }
 0x3a0   :  { %v6020_v8 = vpack.c.bf16 %v4484_v6, %v4460_v30  ;;  %v3260_v23 = vcvt.s32.f32 %v956_v3  ;;  %v3284_v2 = vcvt.s32.f32 %v980_v28  ;;  %v1724_v19 = vunpack.c.0.s8 %v356_v26  ;;  %7475 = vmatmul.bf16.vlgmr.msra.gmra.mxu1 %v9180_v5 }
 0x3a1   :  { %7519 = vmatpush.bf16.msrb.mxu1 %v5636_v54  ;;  %7532 = vmatpush.bf16.msrb.mxu2 %v5828_v9  ;;  %v3644_v20 = vcvt.s32.f32 %v1340_v4  ;;  %v3668_v24 = vcvt.s32.f32 %v1364_v10  ;;  %v1748_v34 = vunpack.c.1.s8 %v356_v26  ;;  %v2108_v47 = vunpack.c.0.s8 %v452_v51 }
 0x3a2   :  { %7545 = vmatpush.bf16.msrb.mxu3 %v6020_v8  ;;  %v5420_v13 = vpack.c.bf16 %v3284_v2, %v3260_v23  ;;  %v4028_v49 = vcvt.s32.f32 %v1724_v19  ;;  %v2132_v12 = vunpack.c.1.s8 %v452_v51  ;;  %v7230_v25 = vadd.f32 %v10030_v55, %v10044_v59  ;;  %v116_v8 = vld [vmem:[#allocation2 + $0x130] sm:$0xff] }
 0x3a3   :  { %7501 = vmatmul.bf16.vlgmr.msra.gmra.mxu3 %v9198_v16  ;;  %v5612_v40 = vpack.c.bf16 %v3668_v24, %v3644_v20  ;;  %v4052_v52 = vcvt.s32.f32 %v1748_v34  ;;  %v4412_v41 = vcvt.s32.f32 %v2108_v47  ;;  %v908_v35 = vunpack.c.2.s8 %v140_v33  ;;  %v10057_v47 = vld [vmem:[#allocation4 + $0x8] sm:$0xff] }
 0x3a4   :  { %7507 = vmatpush.bf16.msrb.mxu0 %v5420_v13  ;;  %v4436_v18 = vcvt.s32.f32 %v2132_v12  ;;  %v932_v31 = vunpack.c.3.s8 %v140_v33  ;;  %v1292_v63 = vunpack.c.2.s8 %v236_v27  ;;  %v1316_v26 = vunpack.c.3.s8 %v236_v27  ;;  %v308_v13 = vld [vmem:[#allocation2 + $0x730] sm:$0xff]  ;;  %v10060_v12 = vld [vmem:[#allocation6 + $0x8] sm:$0xff] }
 0x3a5   :  { %7520 = vmatpush.bf16.msrb.mxu1 %v5612_v40  ;;  %v5804_v45 = vpack.c.bf16 %v4052_v52, %v4028_v49  ;;  %v3212_v58 = vcvt.s32.f32 %v908_v35  ;;  %v1676_v29 = vunpack.c.2.s8 %v332_v38  ;;  %v1700_v51 = vunpack.c.3.s8 %v332_v38  ;;  %v404_v52 = vld [vmem:[#allocation2 + $0xa30] sm:$0xff] }
 0x3a6   :  { %v5996_v32 = vpack.c.bf16 %v4436_v18, %v4412_v41  ;;  %v3236_v55 = vcvt.s32.f32 %v932_v31  ;;  %v3596_v59 = vcvt.s32.f32 %v1292_v63  ;;  %v3620_v57 = vcvt.s32.f32 %v1316_v26 }
 0x3a7   :  { %7533 = vmatpush.bf16.msrb.mxu2 %v5804_v45  ;;  %v3980_v50 = vcvt.s32.f32 %v1676_v29  ;;  %v4004_v61 = vcvt.s32.f32 %v1700_v51  ;;  %v2060_v21 = vunpack.c.2.s8 %v428_v62  ;;  %v2084_v17 = vunpack.c.3.s8 %v428_v62  ;;  %v10063_v45 = vpop.f32.mrf.mxu2 }
 0x3a8   :  { %7546 = vmatpush.bf16.msrb.mxu3 %v5996_v32  ;;  %v5396_v37 = vpack.c.bf16 %v3236_v55, %v3212_v58  ;;  %v5588_v60 = vpack.c.bf16 %v3620_v57, %v3596_v59  ;;  %v7243_v44 = vadd.f32 %v10034_v43, %v7230_v25  ;;  %v860_v39 = vunpack.c.0.s8 %v140_v33  ;;  %v10065_v55 = vpop.f32.mrf.mxu3 }
 0x3a9   :  { %v5780_v48 = vpack.c.bf16 %v4004_v61, %v3980_v50  ;;  %v4364_v15 = vcvt.s32.f32 %v2060_v21  ;;  %v4388_v1 = vcvt.s32.f32 %v2084_v17  ;;  %v884_v46 = vunpack.c.1.s8 %v140_v33 }
 0x3aa   :  { %7508 = vmatpush.bf16.msrb.mxu0 %v5396_v37  ;;  %7521 = vmatpush.bf16.msrb.mxu1 %v5588_v60  ;;  %v7256_v53 = vadd.f32 %v10036_v42, %v7243_v44  ;;  %v3164_v56 = vcvt.s32.f32 %v860_v39  ;;  %v1244_v7 = vunpack.c.0.s8 %v236_v27  ;;  %v1268_v30 = vunpack.c.1.s8 %v236_v27  ;;  %v212_v42 = vld [vmem:[#allocation2 + $0x430] sm:$0xff] }
 0x3ab   :  { %7534 = vmatpush.bf16.msrb.mxu2 %v5780_v48  ;;  %v5972_v6 = vpack.c.bf16 %v4388_v1, %v4364_v15  ;;  %v3188_v3 = vcvt.s32.f32 %v884_v46  ;;  %v1628_v28 = vunpack.c.0.s8 %v332_v38  ;;  %v1652_v54 = vunpack.c.1.s8 %v332_v38 }
 0x3ac   :  { %v3548_v9 = vcvt.s32.f32 %v1244_v7  ;;  %v3572_v4 = vcvt.s32.f32 %v1268_v30  ;;  %v2012_v43 = vunpack.c.0.s8 %v428_v62  ;;  %v2036_v10 = vunpack.c.1.s8 %v428_v62  ;;  %v92_v7 = vld [vmem:[#allocation2 + $0x70] sm:$0xff] }
 0x3ad   :  { %7547 = vmatpush.bf16.msrb.mxu3 %v5972_v6  ;;  %v5372_v23 = vpack.c.bf16 %v3188_v3, %v3164_v56  ;;  %v3932_v2 = vcvt.s32.f32 %v1628_v28  ;;  %v3956_v19 = vcvt.s32.f32 %v1652_v54  ;;  %v7269_v33 = vadd.f32 %v10040_v22, %v7256_v53  ;;  %v10067_v54 = vld [vmem:[#allocation2 + $0x370] sm:$0xff] }
 0x3ae   :  { %v5564_v20 = vpack.c.bf16 %v3572_v4, %v3548_v9  ;;  %v4316_v24 = vcvt.s32.f32 %v2012_v43  ;;  %v4340_v34 = vcvt.s32.f32 %v2036_v10  ;;  %v8302_v27 = vperm.slane %v10057_v47, 2 }
 0x3af   :  { %7509 = vmatpush.bf16.msrb.mxu0 %v5372_v23  ;;  %v5756_v49 = vpack.c.bf16 %v3956_v19, %v3932_v2  ;;  %v8380_v25 = vperm.slane %v10060_v12, 2  ;;  %v812_v38 = vunpack.c.2.s8 %v116_v8  ;;  %v836_v40 = vunpack.c.3.s8 %v116_v8  ;;  %v284_v19 = vld [vmem:[#allocation2 + $0x670] sm:$0xff] }
 0x3b0   :  { %7522 = vmatpush.bf16.msrb.mxu1 %v5564_v20  ;;  %v5948_v22 = vpack.c.bf16 %v4340_v34, %v4316_v24  ;;  %v8350_v41 = vmul.f32 %v8302_v27, %v7269_v33  ;;  %v1196_v35 = vunpack.c.2.s8 %v212_v42  ;;  %v1220_v18 = vunpack.c.3.s8 %v212_v42  ;;  %v7283_v33 = vpop.f32.mrf.mxu2  ;;  %v380_v27 = vld [vmem:[#allocation2 + $0x970] sm:$0xff] }
 0x3b1   :  { %7535 = vmatpush.bf16.msrb.mxu2 %v5756_v49  ;;  %v3116_v31 = vcvt.s32.f32 %v812_v38  ;;  %v3140_v63 = vcvt.s32.f32 %v836_v40  ;;  %v1580_v26 = vunpack.c.2.s8 %v308_v13  ;;  %v1604_v62 = vunpack.c.3.s8 %v308_v13 }
 0x3b2   :  { %7548 = vmatpush.bf16.msrb.mxu3 %v5948_v22  ;;  %v8428_v58 = vadd.f32 %v8380_v25, %v8350_v41  ;;  %v3500_v29 = vcvt.s32.f32 %v1196_v35  ;;  %v3524_v51 = vcvt.s32.f32 %v1220_v18  ;;  %v1964_v32 = vunpack.c.2.s8 %v404_v52 }
 0x3b3   :  { %v5348_v59 = vpack.c.bf16 %v3140_v63, %v3116_v31  ;;  %v3884_v57 = vcvt.s32.f32 %v1580_v26  ;;  %v3908_v50 = vcvt.s32.f32 %v1604_v62  ;;  %v1988_v61 = vunpack.c.3.s8 %v404_v52 }
 0x3b4   :  { %v8452_v21 = vsub.f32 0.0, %v8428_v58  ;;  %v5540_v17 = vpack.c.bf16 %v3524_v51, %v3500_v29  ;;  %v4268_v37 = vcvt.s32.f32 %v1964_v32  ;;  %v764_v60 = vunpack.c.0.s8 %v116_v8 }
 0x3b5   :  { %7510 = vmatpush.bf16.msrb.mxu0 %v5348_v59  ;;  %v5732_v44 = vpack.c.bf16 %v3908_v50, %v3884_v57  ;;  %v4292_v39 = vcvt.s32.f32 %v1988_v61  ;;  %v788_v48 = vunpack.c.1.s8 %v116_v8  ;;  %v1148_v15 = vunpack.c.0.s8 %v212_v42 }
 0x3b6   :  { %v8486_v1 = vmul.f32 1.442695, %v8452_v21  ;;  %7523 = vmatpush.bf16.msrb.mxu1 %v5540_v17  ;;  %v3068_v46 = vcvt.s32.f32 %v764_v60  ;;  %v1172_v53 = vunpack.c.1.s8 %v212_v42  ;;  %v1532_v56 = vunpack.c.0.s8 %v308_v13 }
 0x3b7   :  { %7536 = vmatpush.bf16.msrb.mxu2 %v5732_v44  ;;  %v5924_v30 = vpack.c.bf16 %v4292_v39, %v4268_v37  ;;  %v3092_v6 = vcvt.s32.f32 %v788_v48  ;;  %v3452_v3 = vcvt.s32.f32 %v1148_v15  ;;  %v1556_v28 = vunpack.c.1.s8 %v308_v13  ;;  %v7296_v13 = vpop.f32.mrf.mxu3  ;;  %v10074_v44 = vpop.f32.mrf.mxu0 }
 0x3b8   :  { %8973 = vpow2.f32 %v8486_v1  ;;  %v3476_v9 = vcvt.s32.f32 %v1172_v53  ;;  %v3836_v4 = vcvt.s32.f32 %v1532_v56  ;;  %v1916_v43 = vunpack.c.0.s8 %v404_v52  ;;  %v10076_v39 = vpop.f32.mrf.mxu1  ;;  %v10081_v56 = vld [vmem:[#allocation2 + $0xeb0] sm:$0xff] }
 0x3b9   :  { %7549 = vmatpush.bf16.msrb.mxu3 %v5924_v30  ;;  %v5324_v10 = vpack.c.bf16 %v3092_v6, %v3068_v46  ;;  %v3860_v8 = vcvt.s32.f32 %v1556_v28  ;;  %v1940_v23 = vunpack.c.1.s8 %v404_v52  ;;  %v716_v2 = vunpack.c.2.s8 %v92_v7  ;;  %v10086_v28 = vld [vmem:[#allocation2 + $0x11b0] sm:$0xff] }
 0x3ba   :  { %v5516_v42 = vpack.c.bf16 %v3476_v9, %v3452_v3  ;;  %v4220_v20 = vcvt.s32.f32 %v1916_v43  ;;  %v740_v24 = vunpack.c.3.s8 %v92_v7  ;;  %v1100_v34 = vunpack.c.2.s8 %v10067_v54 }
 0x3bb   :  { %7511 = vmatpush.bf16.msrb.mxu0 %v5324_v10  ;;  %v5708_v49 = vpack.c.bf16 %v3860_v8, %v3836_v4  ;;  %v4244_v25 = vcvt.s32.f32 %v1940_v23  ;;  %v3020_v38 = vcvt.s32.f32 %v716_v2  ;;  %v1124_v40 = vunpack.c.3.s8 %v10067_v54 }
 0x3bc   :  { %7524 = vmatpush.bf16.msrb.mxu1 %v5516_v42  ;;  %v3044_v22 = vcvt.s32.f32 %v740_v24  ;;  %v3404_v41 = vcvt.s32.f32 %v1100_v34  ;;  %v1484_v52 = vunpack.c.2.s8 %v284_v19  ;;  %v1508_v35 = vunpack.c.3.s8 %v284_v19  ;;  %v10092_v24 = vld [vmem:[#allocation2 + $0x2b8] sm:$0xff]  ;;  %v10094_v34 = vpop.f32.mrf.mxu2 }
 0x3bd   :  { %7537 = vmatpush.bf16.msrb.mxu2 %v5708_v49  ;;  %v5900_v18 = vpack.c.bf16 %v4244_v25, %v4220_v20  ;;  %v3428_v31 = vcvt.s32.f32 %v1124_v40  ;;  %v1868_v63 = vunpack.c.2.s8 %v380_v27  ;;  %v1892_v26 = vunpack.c.3.s8 %v380_v27 }
 0x3be   :  { %v8974_v62 = vpop.eup %8973  ;;  %v5300_v58 = vpack.c.bf16 %v3044_v22, %v3020_v38  ;;  %v3788_v29 = vcvt.s32.f32 %v1484_v52  ;;  %v3812_v51 = vcvt.s32.f32 %v1508_v35  ;;  %v668_v32 = vunpack.c.0.s8 %v92_v7  ;;  %v10101_v22 = vld [vmem:[#allocation2 + $0x5b8] sm:$0xff] }
 0x3bf   :  { %v10071_v59 = vadd.f32 1.0, %v8974_v62  ;;  %7550 = vmatpush.bf16.msrb.mxu3 %v5900_v18  ;;  %v5492_v57 = vpack.c.bf16 %v3428_v31, %v3404_v41  ;;  %v4172_v50 = vcvt.s32.f32 %v1868_v63  ;;  %v4196_v61 = vcvt.s32.f32 %v1892_v26  ;;  %v10096_v13 = vpop.f32.mrf.mxu3  ;;  %v7309_v31 = vpop.f32.mrf.mxu0 }
 0x3c0   :  { %7512 = vmatpush.bf16.msrb.mxu0 %v5300_v58  ;;  %v5684_v21 = vpack.c.bf16 %v3812_v51, %v3788_v29  ;;  %v692_v17 = vunpack.c.1.s8 %v92_v7  ;;  %v2972_v37 = vcvt.s32.f32 %v668_v32  ;;  %v1052_v60 = vunpack.c.0.s8 %v10067_v54  ;;  %v7322_v63 = vpop.f32.mrf.mxu1 }
 0x3c1   :  { %8975 = vrcp.f32 %v10071_v59  ;;  %v8699_v48 = vand.u32 2147483648, %v10071_v59  ;;  %7525 = vmatpush.bf16.msrb.mxu1 %v5492_v57  ;;  %v5876_v15 = vpack.c.bf16 %v4196_v61, %v4172_v50  ;;  %v1076_v46 = vunpack.c.1.s8 %v10067_v54 }
 0x3c2   :  { %7538 = vmatpush.bf16.msrb.mxu2 %v5684_v21  ;;  %v2996_v1 = vcvt.s32.f32 %v692_v17  ;;  %v3356_v53 = vcvt.s32.f32 %v1052_v60  ;;  %v8697_v7 = vand.u32 2147483647, %v10071_v59  ;;  %v1436_v6 = vunpack.c.0.s8 %v284_v19 }
 0x3c3   :  { %v10084_v30 = vor.u32 1.1754944e-38, %v8699_v48  ;;  %v1460_v3 = vunpack.c.1.s8 %v284_v19  ;;  %vm8693_vm8 = vweird.f32 %v10071_v59  ;;  %7551 = vmatpush.bf16.msrb.mxu3 %v5876_v15  ;;  %v3380_v4 = vcvt.s32.f32 %v1076_v46 }
 0x3c4   :  { %v5276_v9 = vpack.c.bf16 %v2996_v1, %v2972_v37  ;;  %v1820_v43 = vunpack.c.0.s8 %v380_v27  ;;  %v1844_v10 = vunpack.c.1.s8 %v380_v27  ;;  %v3740_v8 = vcvt.s32.f32 %v1436_v6 }
 0x3c5   :  { %v3764_v54 = vcvt.s32.f32 %v1460_v3  ;;  %v2540_v23 = vunpack.c.2.s8 %v10081_v56  ;;  %v2564_v2 = vunpack.c.3.s8 %v10081_v56  ;;  %v5468_v33 = vpack.c.bf16 %v3380_v4, %v3356_v53  ;;  %v7335_v4 = vpop.f32.mrf.mxu2 }
 0x3c6   :  { %7513 = vmatpush.bf16.msrb.mxu0 %v5276_v9  ;;  %v4124_v42 = vcvt.s32.f32 %v1820_v43  ;;  %v4148_v20 = vcvt.s32.f32 %v1844_v10  ;;  %v2924_v19 = vunpack.c.2.s8 %v10086_v28  ;;  %v2948_v40 = vunpack.c.3.s8 %v10086_v28 }
 0x3c7   :  { %v10098_v49 = vpop.eup %8975  ;;  %v5660_v27 = vpack.c.bf16 %v3764_v54, %v3740_v8  ;;  %v4844_v25 = vcvt.s32.f32 %v2540_v23  ;;  %v4868_v38 = vcvt.s32.f32 %v2564_v2  ;;  %vm10106_vm10 = vcmp.eq.f32.partialorder %v8697_v7, 8.507059e+37  ;;  %7526 = vmatpush.bf16.msrb.mxu1 %v5468_v33  ;;  %v7348_v43 = vpop.f32.mrf.mxu3  ;;  %v524_v54 = vld [vmem:[#allocation2 + $0xdf0] sm:$0xff] }
 0x3c8   :  { %v8689_v41 = vmul.f32 %v10098_v49, %v10071_v59  ;;  %vm8694_vm9 = vweird.f32 %v10098_v49  ;;  %v5852_v35 = vpack.c.bf16 %v4148_v20, %v4124_v42  ;;  %v5228_v18 = vcvt.s32.f32 %v2924_v19  ;;  %v620_v23 = vld [vmem:[#allocation2 + $0x10f0] sm:$0xff]  ;;  %v141_v19 = vld [vmem:[#allocation2 + $0x1f8] sm:$0xff] }
 0x3c9   :  { %7539 = vmatpush.bf16.msrb.mxu2 %v5660_v27  ;;  %v6212_v26 = vpack.c.bf16 %v4868_v38, %v4844_v25  ;;  %v5252_v62 = vcvt.s32.f32 %v2948_v40  ;;  %v1005_v58 = vunpack.c.2.s8 %v10092_v24  ;;  %v1029_v29 = vunpack.c.3.s8 %v10092_v24  ;;  %7514 = vmatmul.bf16.vlgmr.msrb.gmra.mxu0 %v9163_v14  ;;  %vm8695_vm11 = vmor %vm8693_vm8, %vm8694_vm9 }
 0x3ca   :  { %v8690_v51 = vsub.f32 1.0, %v8689_v41  ;;  %7552 = vmatpush.bf16.msrb.mxu3 %v5852_v35  ;;  %v1389_v32 = vunpack.c.2.s8 %v10101_v22  ;;  %v1413_v57 = vunpack.c.3.s8 %v10101_v22  ;;  %v10117_v50 = vadd.f32 %v10065_v55, %v10063_v45  ;;  %7527 = vmatmul.bf16.vlgmr.msrb.gmra.mxu1 %v9169_v36  ;;  %v237_v35 = vld [vmem:[#allocation2 + $0x4f8] sm:$0xff] }
 0x3cb   :  { %7558 = vmatpush.bf16.msra.mxu0 %v6212_v26  ;;  %v6404_v61 = vpack.c.bf16 %v5252_v62, %v5228_v18  ;;  %v3309_v21 = vcvt.s32.f32 %v1005_v58  ;;  %v3333_v17 = vcvt.s32.f32 %v1029_v29  ;;  %v2492_v37 = vunpack.c.0.s8 %v10081_v56 }
 0x3cc   :  { %v8691_v60 = vmul.f32 %v10098_v49, %v8690_v51  ;;  %v3693_v48 = vcvt.s32.f32 %v1389_v32  ;;  %v3717_v15 = vcvt.s32.f32 %v1413_v57  ;;  %v2516_v1 = vunpack.c.1.s8 %v10081_v56  ;;  %7540 = vmatmul.bf16.vlgmr.msrb.gmra.mxu2 %v9178_v0 }
 0x3cd   :  { %7571 = vmatpush.bf16.msra.mxu1 %v6404_v61  ;;  %v5445_v46 = vpack.c.bf16 %v3333_v17, %v3309_v21  ;;  %v4796_v45 = vcvt.s32.f32 %v2492_v37  ;;  %v2876_v55 = vunpack.c.0.s8 %v10086_v28  ;;  %v2900_v53 = vunpack.c.1.s8 %v10086_v28  ;;  %7553 = vmatmul.bf16.vlgmr.msrb.gmra.mxu3 %v9180_v5 }
 0x3ce   :  { %v8692_v7 = vadd.f32 %v10098_v49, %v8691_v60  ;;  %v5637_v6 = vpack.c.bf16 %v3717_v15, %v3693_v48  ;;  %v4820_v3 = vcvt.s32.f32 %v2516_v1  ;;  %v957_v9 = vunpack.c.0.s8 %v10092_v24 }
 0x3cf   :  { %7584 = vmatpush.bf16.msra.mxu2 %v5445_v46  ;;  %v5180_v56 = vcvt.s32.f32 %v2876_v55  ;;  %v5204_v10 = vcvt.s32.f32 %v2900_v53  ;;  %v981_v28 = vunpack.c.1.s8 %v10092_v24  ;;  %v1341_v8 = vunpack.c.0.s8 %v10101_v22 }
 0x3d0   :  { %v8696_v2 = vsel %vm8695_vm11, %v10098_v49, %v8692_v7  ;;  %7597 = vmatpush.bf16.msra.mxu3 %v5637_v6  ;;  %v6188_v33 = vpack.c.bf16 %v4820_v3, %v4796_v45  ;;  %v3261_v42 = vcvt.s32.f32 %v957_v9  ;;  %v1365_v20 = vunpack.c.1.s8 %v10101_v22  ;;  %v500_v9 = vld [vmem:[#allocation2 + $0xd30] sm:$0xff] }
 0x3d1   :  { %v8701_v59 = vsel %vm10106_vm10, %v10084_v30, %v8696_v2  ;;  %v6380_v27 = vpack.c.bf16 %v5204_v10, %v5180_v56  ;;  %v3285_v25 = vcvt.s32.f32 %v981_v28  ;;  %v3645_v38 = vcvt.s32.f32 %v1341_v8  ;;  %v596_v28 = vld [vmem:[#allocation2 + $0x1030] sm:$0xff] }
 0x3d2   :  { %8908 = vst [vmem:[%s10886_s4 + $0x50] sm:$0xff] %v8701_v59  ;;  %7559 = vmatpush.bf16.msra.mxu0 %v6188_v33  ;;  %v3669_v24 = vcvt.s32.f32 %v1365_v20  ;;  %v2444_v49 = vunpack.c.2.s8 %v524_v54  ;;  %v2468_v40 = vunpack.c.3.s8 %v524_v54  ;;  %v2828_v41 = vunpack.c.2.s8 %v620_v23 }
 0x3d3   :  { %7572 = vmatpush.bf16.msra.mxu1 %v6380_v27  ;;  %v5421_v22 = vpack.c.bf16 %v3285_v25, %v3261_v42  ;;  %v2852_v18 = vunpack.c.3.s8 %v620_v23  ;;  %v909_v31 = vunpack.c.2.s8 %v141_v19  ;;  %v933_v63 = vunpack.c.3.s8 %v141_v19  ;;  %v117_v42 = vld [vmem:[#allocation2 + $0x138] sm:$0xff] }
 0x3d4   :  { %v5613_v52 = vpack.c.bf16 %v3669_v24, %v3645_v38  ;;  %v4748_v30 = vcvt.s32.f32 %v2444_v49  ;;  %v4772_v26 = vcvt.s32.f32 %v2468_v40  ;;  %v5132_v62 = vcvt.s32.f32 %v2828_v41  ;;  %v213_v27 = vld [vmem:[#allocation2 + $0x438] sm:$0xff] }
 0x3d5   :  { %7585 = vmatpush.bf16.msra.mxu2 %v5421_v22  ;;  %v5156_v58 = vcvt.s32.f32 %v2852_v18  ;;  %v3213_v29 = vcvt.s32.f32 %v909_v31  ;;  %v3237_v51 = vcvt.s32.f32 %v933_v63  ;;  %v1293_v32 = vunpack.c.2.s8 %v237_v35 }
 0x3d6   :  { %7598 = vmatpush.bf16.msra.mxu3 %v5613_v52  ;;  %v6164_v57 = vpack.c.bf16 %v4772_v26, %v4748_v30  ;;  %v1317_v61 = vunpack.c.3.s8 %v237_v35  ;;  %v2396_v21 = vunpack.c.0.s8 %v524_v54  ;;  %v2420_v17 = vunpack.c.1.s8 %v524_v54 }
 0x3d7   :  { %v6356_v37 = vpack.c.bf16 %v5156_v58, %v5132_v62  ;;  %v5397_v60 = vpack.c.bf16 %v3237_v51, %v3213_v29  ;;  %v3597_v48 = vcvt.s32.f32 %v1293_v32  ;;  %v2780_v15 = vunpack.c.0.s8 %v620_v23 }
 0x3d8   :  { %7560 = vmatpush.bf16.msra.mxu0 %v6164_v57  ;;  %v3621_v1 = vcvt.s32.f32 %v1317_v61  ;;  %v4700_v46 = vcvt.s32.f32 %v2396_v21  ;;  %v4724_v45 = vcvt.s32.f32 %v2420_v17  ;;  %v2804_v55 = vunpack.c.1.s8 %v620_v23 }
 0x3d9   :  { %7573 = vmatpush.bf16.msra.mxu1 %v6356_v37  ;;  %7586 = vmatpush.bf16.msra.mxu2 %v5397_v60  ;;  %v5084_v53 = vcvt.s32.f32 %v2780_v15  ;;  %v861_v7 = vunpack.c.0.s8 %v141_v19  ;;  %v885_v6 = vunpack.c.1.s8 %v141_v19  ;;  %v1245_v3 = vunpack.c.0.s8 %v237_v35 }
 0x3da   :  { %v5589_v4 = vpack.c.bf16 %v3621_v1, %v3597_v48  ;;  %v6140_v43 = vpack.c.bf16 %v4724_v45, %v4700_v46  ;;  %v5108_v56 = vcvt.s32.f32 %v2804_v55  ;;  %v1269_v10 = vunpack.c.1.s8 %v237_v35  ;;  %v476_v46 = vld [vmem:[#allocation2 + $0xc70] sm:$0xff] }
 0x3db   :  { %v3165_v8 = vcvt.s32.f32 %v861_v7  ;;  %v3189_v54 = vcvt.s32.f32 %v885_v6  ;;  %v3549_v2 = vcvt.s32.f32 %v1245_v3  ;;  %v7308_v33 = vadd.f32 %v10074_v44, %v10117_v50  ;;  %v572_v3 = vld [vmem:[#allocation2 + $0xf70] sm:$0xff] }
 0x3dc   :  { %7599 = vmatpush.bf16.msra.mxu3 %v5589_v4  ;;  %7561 = vmatpush.bf16.msra.mxu0 %v6140_v43  ;;  %v6332_v23 = vpack.c.bf16 %v5108_v56, %v5084_v53  ;;  %v3573_v20 = vcvt.s32.f32 %v1269_v10  ;;  %v2348_v59 = vunpack.c.2.s8 %v500_v9  ;;  %v2372_v19 = vunpack.c.3.s8 %v500_v9  ;;  %v93_v10 = vld [vmem:[#allocation2 + $0x78] sm:$0xff] }
 0x3dd   :  { %v5373_v25 = vpack.c.bf16 %v3189_v54, %v3165_v8  ;;  %v7321_v38 = vadd.f32 %v10076_v39, %v7308_v33  ;;  %v2732_v24 = vunpack.c.2.s8 %v596_v28  ;;  %v2756_v49 = vunpack.c.3.s8 %v596_v28  ;;  %v189_v33 = vld [vmem:[#allocation2 + $0x378] sm:$0xff] }
 0x3de   :  { %7574 = vmatpush.bf16.msra.mxu1 %v6332_v23  ;;  %v5565_v40 = vpack.c.bf16 %v3573_v20, %v3549_v2  ;;  %v4652_v41 = vcvt.s32.f32 %v2348_v59  ;;  %v4676_v35 = vcvt.s32.f32 %v2372_v19  ;;  %v813_v22 = vunpack.c.2.s8 %v117_v42 }
 0x3df   :  { %7587 = vmatpush.bf16.msra.mxu2 %v5373_v25  ;;  %v5036_v44 = vcvt.s32.f32 %v2732_v24  ;;  %v5060_v50 = vcvt.s32.f32 %v2756_v49  ;;  %v837_v18 = vunpack.c.3.s8 %v117_v42  ;;  %v1197_v31 = vunpack.c.2.s8 %v213_v27 }
 0x3e0   :  { %7600 = vmatpush.bf16.msra.mxu3 %v5565_v40  ;;  %v6116_v63 = vpack.c.bf16 %v4676_v35, %v4652_v41  ;;  %v3117_v52 = vcvt.s32.f32 %v813_v22  ;;  %v1221_v30 = vunpack.c.3.s8 %v213_v27  ;;  %v7334_v26 = vadd.f32 %v10094_v34, %v7321_v38 }
 0x3e1   :  { %v6308_v62 = vpack.c.bf16 %v5060_v50, %v5036_v44  ;;  %v3141_v39 = vcvt.s32.f32 %v837_v18  ;;  %v3501_v58 = vcvt.s32.f32 %v1197_v31  ;;  %v8303_v29 = vperm.slane %v10057_v47, 3 }
 0x3e2   :  { %7562 = vmatpush.bf16.msra.mxu0 %v6116_v63  ;;  %v3525_v51 = vcvt.s32.f32 %v1221_v30  ;;  %v7347_v32 = vadd.f32 %v10096_v13, %v7334_v26  ;;  %v8381_v57 = vperm.slane %v10060_v12, 3  ;;  %v2300_v61 = vunpack.c.0.s8 %v500_v9 }
 0x3e3   :  { %7575 = vmatpush.bf16.msra.mxu1 %v6308_v62  ;;  %v5349_v21 = vpack.c.bf16 %v3141_v39, %v3117_v52  ;;  %v2324_v17 = vunpack.c.1.s8 %v500_v9  ;;  %v2684_v37 = vunpack.c.0.s8 %v596_v28  ;;  %v2708_v60 = vunpack.c.1.s8 %v596_v28 }
 0x3e4   :  { %v5541_v48 = vpack.c.bf16 %v3525_v51, %v3501_v58  ;;  %v8351_v15 = vmul.f32 %v8303_v29, %v7347_v32  ;;  %v4604_v34 = vcvt.s32.f32 %v2300_v61  ;;  %v765_v1 = vunpack.c.0.s8 %v117_v42  ;;  %v357_v32 = vld [vmem:[#allocation2 + $0x8b8] sm:$0xff] }
 0x3e5   :  { %7588 = vmatpush.bf16.msra.mxu2 %v5349_v21  ;;  %v4628_v45 = vcvt.s32.f32 %v2324_v17  ;;  %v4988_v47 = vcvt.s32.f32 %v2684_v37  ;;  %v5012_v55 = vcvt.s32.f32 %v2708_v60  ;;  %v789_v53 = vunpack.c.1.s8 %v117_v42 }
 0x3e6   :  { %7601 = vmatpush.bf16.msra.mxu3 %v5541_v48  ;;  %v8429_v13 = vadd.f32 %v8381_v57, %v8351_v15  ;;  %v3069_v7 = vcvt.s32.f32 %v765_v1  ;;  %v1149_v12 = vunpack.c.0.s8 %v213_v27  ;;  %v1173_v6 = vunpack.c.1.s8 %v213_v27 }
 0x3e7   :  { %v6092_v4 = vpack.c.bf16 %v4628_v45, %v4604_v34  ;;  %v6284_v9 = vpack.c.bf16 %v5012_v55, %v4988_v47  ;;  %v3093_v43 = vcvt.s32.f32 %v789_v53  ;;  %v2252_v56 = vunpack.c.2.s8 %v476_v46  ;;  %v453_v34 = vld [vmem:[#allocation2 + $0xbb8] sm:$0xff] }
 0x3e8   :  { %v8453_v28 = vsub.f32 0.0, %v8429_v13  ;;  %v3453_v8 = vcvt.s32.f32 %v1149_v12  ;;  %v3477_v54 = vcvt.s32.f32 %v1173_v6  ;;  %v2276_v2 = vunpack.c.3.s8 %v476_v46 }
 0x3e9   :  { %7563 = vmatpush.bf16.msra.mxu0 %v6092_v4  ;;  %7576 = vmatpush.bf16.msra.mxu1 %v6284_v9  ;;  %v5325_v23 = vpack.c.bf16 %v3093_v43, %v3069_v7  ;;  %v4556_v42 = vcvt.s32.f32 %v2252_v56  ;;  %v2636_v20 = vunpack.c.2.s8 %v572_v3  ;;  %v2660_v59 = vunpack.c.3.s8 %v572_v3  ;;  %v549_v43 = vld [vmem:[#allocation2 + $0xeb8] sm:$0xff] }
 0x3ea   :  { %v8488_v19 = vmul.f32 1.442695, %v8453_v28  ;;  %v5517_v25 = vpack.c.bf16 %v3477_v54, %v3453_v8  ;;  %v4580_v27 = vcvt.s32.f32 %v2276_v2  ;;  %v717_v38 = vunpack.c.2.s8 %v93_v10 }
 0x3eb   :  { %7589 = vmatpush.bf16.msra.mxu2 %v5325_v23  ;;  %v4940_v24 = vcvt.s32.f32 %v2636_v20  ;;  %v4964_v49 = vcvt.s32.f32 %v2660_v59  ;;  %v741_v40 = vunpack.c.3.s8 %v93_v10  ;;  %v1101_v41 = vunpack.c.2.s8 %v189_v33 }
 0x3ec   :  { %8977 = vpow2.f32 %v8488_v19  ;;  %7602 = vmatpush.bf16.msra.mxu3 %v5517_v25  ;;  %v6068_v35 = vpack.c.bf16 %v4580_v27, %v4556_v42  ;;  %v3021_v22 = vcvt.s32.f32 %v717_v38  ;;  %v1125_v44 = vunpack.c.3.s8 %v189_v33  ;;  %v10159_v38 = vpop.f32.mrf.mxu0 }
 0x3ed   :  { %v6260_v50 = vpack.c.bf16 %v4964_v49, %v4940_v24  ;;  %v3045_v18 = vcvt.s32.f32 %v741_v40  ;;  %v3405_v31 = vcvt.s32.f32 %v1101_v41  ;;  %v2204_v63 = vunpack.c.0.s8 %v476_v46 }
 0x3ee   :  { %7564 = vmatpush.bf16.msra.mxu0 %v6068_v35  ;;  %v3429_v52 = vcvt.s32.f32 %v1125_v44  ;;  %v2228_v30 = vunpack.c.1.s8 %v476_v46  ;;  %v2588_v26 = vunpack.c.0.s8 %v572_v3  ;;  %v2612_v62 = vunpack.c.1.s8 %v572_v3 }
 0x3ef   :  { %7577 = vmatpush.bf16.msra.mxu1 %v6260_v50  ;;  %v5301_v39 = vpack.c.bf16 %v3045_v18, %v3021_v22  ;;  %v4508_v58 = vcvt.s32.f32 %v2204_v63  ;;  %v669_v29 = vunpack.c.0.s8 %v93_v10  ;;  %v693_v51 = vunpack.c.1.s8 %v93_v10  ;;  %v645_v10 = vld [vmem:[#allocation2 + $0x11b8] sm:$0xff] }
 0x3f0   :  { %v5493_v57 = vpack.c.bf16 %v3429_v52, %v3405_v31  ;;  %v4532_v61 = vcvt.s32.f32 %v2228_v30  ;;  %v4892_v21 = vcvt.s32.f32 %v2588_v26  ;;  %v4916_v17 = vcvt.s32.f32 %v2612_v62  ;;  %v10163_v26 = vld [vmem:[#allocation2 + $0x7f8] sm:$0xff] }
 0x3f1   :  { %7590 = vmatpush.bf16.msra.mxu2 %v5301_v39  ;;  %v2973_v37 = vcvt.s32.f32 %v669_v29  ;;  %v2997_v60 = vcvt.s32.f32 %v693_v51  ;;  %v1053_v48 = vunpack.c.0.s8 %v189_v33  ;;  %v1077_v15 = vunpack.c.1.s8 %v189_v33  ;;  %v10171_v51 = vld [vmem:[#allocation2 + $0xaf8] sm:$0xff] }
 0x3f2   :  { %v8978_v1 = vpop.eup %8977  ;;  %7603 = vmatpush.bf16.msra.mxu3 %v5493_v57  ;;  %v6044_v46 = vpack.c.bf16 %v4532_v61, %v4508_v58  ;;  %v6236_v45 = vpack.c.bf16 %v4916_v17, %v4892_v21  ;;  %v1773_v47 = vunpack.c.2.s8 %v357_v32  ;;  %v1797_v55 = vunpack.c.3.s8 %v357_v32  ;;  %v10173_v17 = vpop.f32.mrf.mxu1 }
 0x3f3   :  { %v10150_v53 = vadd.f32 1.0, %v8978_v1  ;;  %v5277_v13 = vpack.c.bf16 %v2997_v60, %v2973_v37  ;;  %v3357_v7 = vcvt.s32.f32 %v1053_v48  ;;  %v3381_v12 = vcvt.s32.f32 %v1077_v15 }
 0x3f4   :  { %7565 = vmatpush.bf16.msra.mxu0 %v6044_v46  ;;  %7578 = vmatpush.bf16.msra.mxu1 %v6236_v45  ;;  %v4077_v6 = vcvt.s32.f32 %v1773_v47  ;;  %v4101_v3 = vcvt.s32.f32 %v1797_v55  ;;  %v2157_v4 = vunpack.c.2.s8 %v453_v34  ;;  %v2181_v9 = vunpack.c.3.s8 %v453_v34 }
 0x3f5   :  { %8979 = vrcp.f32 %v10150_v53  ;;  %v8714_v56 = vand.u32 2147483648, %v10150_v53  ;;  %7591 = vmatpush.bf16.msra.mxu2 %v5277_v13  ;;  %v5469_v28 = vpack.c.bf16 %v3381_v12, %v3357_v7  ;;  %v8712_v33 = vand.u32 2147483647, %v10150_v53 }
 0x3f6   :  { %v5829_v8 = vpack.c.bf16 %v4101_v3, %v4077_v6  ;;  %v4461_v54 = vcvt.s32.f32 %v2157_v4  ;;  %v4485_v2 = vcvt.s32.f32 %v2181_v9  ;;  %v2541_v42 = vunpack.c.2.s8 %v549_v43  ;;  %v621_v6 = vld [vmem:[#allocation2 + $0x10f8] sm:$0xff]  ;;  %v7361_v3 = vpop.f32.mrf.mxu0 }
 0x3f7   :  { %v10155_v23 = vor.u32 1.1754944e-38, %v8714_v56  ;;  %v2565_v20 = vunpack.c.3.s8 %v549_v43  ;;  %7566 = vmatmul.bf16.vlgmr.msra.gmra.mxu0 %v9194_v11  ;;  %7579 = vmatmul.bf16.vlgmr.msra.gmra.mxu1 %v9198_v16  ;;  %v2925_v19 = vunpack.c.2.s8 %v645_v10  ;;  %v2949_v25 = vunpack.c.3.s8 %v645_v10 }
 0x3f8   :  { %7604 = vmatpush.bf16.msra.mxu3 %v5469_v28  ;;  %7610 = vmatpush.bf16.msrb.mxu0 %v5829_v8  ;;  %v6021_v59 = vpack.c.bf16 %v4485_v2, %v4461_v54  ;;  %v1725_v27 = vunpack.c.0.s8 %v357_v32  ;;  %v4845_v24 = vcvt.s32.f32 %v2541_v42  ;;  %v1749_v40 = vunpack.c.1.s8 %v357_v32 }
 0x3f9   :  { %v4869_v49 = vcvt.s32.f32 %v2565_v20  ;;  %v2109_v41 = vunpack.c.0.s8 %v453_v34  ;;  %7592 = vmatmul.bf16.vlgmr.msra.gmra.mxu2 %v9163_v14  ;;  %vm8708_vm12 = vweird.f32 %v10150_v53  ;;  %v5229_v35 = vcvt.s32.f32 %v2925_v19 }
 0x3fa   :  { %7623 = vmatpush.bf16.msrb.mxu1 %v6021_v59  ;;  %v5253_v22 = vcvt.s32.f32 %v2949_v25  ;;  %v4029_v44 = vcvt.s32.f32 %v1725_v27  ;;  %v2133_v50 = vunpack.c.1.s8 %v453_v34  ;;  %v4053_v63 = vcvt.s32.f32 %v1749_v40  ;;  %v525_v34 = vld [vmem:[#allocation2 + $0xdf8] sm:$0xff] }
 0x3fb   :  { %v8980_v18 = vpop.eup %8979  ;;  %v6213_v31 = vpack.c.bf16 %v4869_v49, %v4845_v24  ;;  %v4413_v52 = vcvt.s32.f32 %v2109_v41  ;;  %v2493_v30 = vunpack.c.0.s8 %v549_v43  ;;  %7605 = vmatmul.bf16.vlgmr.msra.gmra.mxu3 %v9169_v36  ;;  %vm10167_vm14 = vcmp.eq.f32.partialorder %v8712_v33, 8.507059e+37  ;;  %v7374_v41 = vpop.f32.mrf.mxu1 }
 0x3fc   :  { %v8704_v62 = vmul.f32 %v8980_v18, %v10150_v53  ;;  %vm8709_vm13 = vweird.f32 %v8980_v18  ;;  %v6405_v58 = vpack.c.bf16 %v5253_v22, %v5229_v35  ;;  %v4437_v29 = vcvt.s32.f32 %v2133_v50 }
 0x3fd   :  { %7636 = vmatpush.bf16.msrb.mxu2 %v6213_v31  ;;  %v5805_v32 = vpack.c.bf16 %v4053_v63, %v4029_v44  ;;  %v2517_v57 = vunpack.c.1.s8 %v549_v43  ;;  %v4797_v61 = vcvt.s32.f32 %v2493_v30  ;;  %v2877_v21 = vunpack.c.0.s8 %v645_v10  ;;  %vm8710_vm15 = vmor %vm8708_vm12, %vm8709_vm13 }
 0x3fe   :  { %v8705_v37 = vsub.f32 1.0, %v8704_v62  ;;  %7649 = vmatpush.bf16.msrb.mxu3 %v6405_v58  ;;  %v5997_v60 = vpack.c.bf16 %v4437_v29, %v4413_v52  ;;  %v2901_v48 = vunpack.c.1.s8 %v645_v10  ;;  %v1677_v15 = vunpack.c.2.s8 %v10163_v26  ;;  %v405_v58 = vld [vmem:[#allocation2 + $0xa38] sm:$0xff] }
 0x3ff   :  { %7611 = vmatpush.bf16.msrb.mxu0 %v5805_v32  ;;  %v4821_v1 = vcvt.s32.f32 %v2517_v57  ;;  %v5181_v46 = vcvt.s32.f32 %v2877_v21  ;;  %v1701_v45 = vunpack.c.3.s8 %v10163_v26  ;;  %v2061_v47 = vunpack.c.2.s8 %v10171_v51  ;;  %v501_v21 = vld [vmem:[#allocation2 + $0xd38] sm:$0xff] }
 0x400   :  { %v8706_v55 = vmul.f32 %v8980_v18, %v8705_v37  ;;  %7624 = vmatpush.bf16.msrb.mxu1 %v5997_v60  ;;  %v5205_v13 = vcvt.s32.f32 %v2901_v48  ;;  %v3981_v7 = vcvt.s32.f32 %v1677_v15  ;;  %v2085_v12 = vunpack.c.3.s8 %v10171_v51  ;;  %v597_v15 = vld [vmem:[#allocation2 + $0x1038] sm:$0xff] }
 0x401   :  { %v6189_v4 = vpack.c.bf16 %v4821_v1, %v4797_v61  ;;  %v4005_v9 = vcvt.s32.f32 %v1701_v45  ;;  %v4365_v43 = vcvt.s32.f32 %v2061_v47  ;;  %v2445_v56 = vunpack.c.2.s8 %v525_v34 }
 0x402   :  { %v8707_v10 = vadd.f32 %v8980_v18, %v8706_v55  ;;  %v6381_v28 = vpack.c.bf16 %v5205_v13, %v5181_v46  ;;  %v4389_v8 = vcvt.s32.f32 %v2085_v12  ;;  %v2469_v54 = vunpack.c.3.s8 %v525_v34 }
 0x403   :  { %7637 = vmatpush.bf16.msrb.mxu2 %v6189_v4  ;;  %v5781_v2 = vpack.c.bf16 %v4005_v9, %v3981_v7  ;;  %v4749_v33 = vcvt.s32.f32 %v2445_v56  ;;  %v2829_v42 = vunpack.c.2.s8 %v621_v6  ;;  %v2853_v20 = vunpack.c.3.s8 %v621_v6  ;;  %v10192_v9 = vpop.f32.mrf.mxu2 }
 0x404   :  { %v8711_v59 = vsel %vm8710_vm15, %v8980_v18, %v8707_v10  ;;  %7650 = vmatpush.bf16.msrb.mxu3 %v6381_v28  ;;  %v5973_v19 = vpack.c.bf16 %v4389_v8, %v4365_v43  ;;  %v4773_v25 = vcvt.s32.f32 %v2469_v54  ;;  %v1629_v27 = vunpack.c.0.s8 %v10163_v26  ;;  %v309_v18 = vld [vmem:[#allocation2 + $0x738] sm:$0xff] }
 0x405   :  { %v8716_v24 = vsel %vm10167_vm14, %v10155_v23, %v8711_v59  ;;  %7612 = vmatpush.bf16.msrb.mxu0 %v5781_v2  ;;  %v5133_v49 = vcvt.s32.f32 %v2829_v42  ;;  %v5157_v40 = vcvt.s32.f32 %v2853_v20  ;;  %v1653_v53 = vunpack.c.1.s8 %v10163_v26 }
 0x406   :  { %8909 = vst [vmem:[%s10886_s4 + $0x58] sm:$0xff] %v8716_v24  ;;  %7625 = vmatpush.bf16.msrb.mxu1 %v5973_v19  ;;  %v6165_v35 = vpack.c.bf16 %v4773_v25, %v4749_v33  ;;  %v3933_v22 = vcvt.s32.f32 %v1629_v27  ;;  %v2013_v44 = vunpack.c.0.s8 %v10171_v51  ;;  %v2037_v50 = vunpack.c.1.s8 %v10171_v51  ;;  %v10194_v25 = vld [vmem:[#allocation2 + $0x678] sm:$0xff] }
 0x407   :  { %v6357_v31 = vpack.c.bf16 %v5157_v40, %v5133_v49  ;;  %v3957_v23 = vcvt.s32.f32 %v1653_v53  ;;  %v2397_v63 = vunpack.c.0.s8 %v525_v34  ;;  %v2421_v52 = vunpack.c.1.s8 %v525_v34 }
 0x408   :  { %7638 = vmatpush.bf16.msrb.mxu2 %v6165_v35  ;;  %v4317_v30 = vcvt.s32.f32 %v2013_v44  ;;  %v4341_v26 = vcvt.s32.f32 %v2037_v50  ;;  %v2781_v62 = vunpack.c.0.s8 %v621_v6  ;;  %v2805_v39 = vunpack.c.1.s8 %v621_v6  ;;  %v381_v44 = vld [vmem:[#allocation2 + $0x978] sm:$0xff]  ;;  %v10196_v50 = vpop.f32.mrf.mxu3 }
 0x409   :  { %7651 = vmatpush.bf16.msrb.mxu3 %v6357_v31  ;;  %v5757_v29 = vpack.c.bf16 %v3957_v23, %v3933_v22  ;;  %v4701_v32 = vcvt.s32.f32 %v2397_v63  ;;  %v4725_v57 = vcvt.s32.f32 %v2421_v52  ;;  %v1581_v61 = vunpack.c.2.s8 %v309_v18 }
 0x40a   :  { %v5949_v37 = vpack.c.bf16 %v4341_v26, %v4317_v30  ;;  %v5085_v60 = vcvt.s32.f32 %v2781_v62  ;;  %v5109_v51 = vcvt.s32.f32 %v2805_v39  ;;  %v1605_v48 = vunpack.c.3.s8 %v309_v18  ;;  %v477_v30 = vld [vmem:[#allocation2 + $0xc78] sm:$0xff] }
 0x40b   :  { %7613 = vmatpush.bf16.msrb.mxu0 %v5757_v29  ;;  %v6141_v1 = vpack.c.bf16 %v4725_v57, %v4701_v32  ;;  %v3885_v34 = vcvt.s32.f32 %v1581_v61  ;;  %v1965_v46 = vunpack.c.2.s8 %v405_v58  ;;  %v1989_v45 = vunpack.c.3.s8 %v405_v58  ;;  %v573_v29 = vld [vmem:[#allocation2 + $0xf78] sm:$0xff] }
 0x40c   :  { %7626 = vmatpush.bf16.msrb.mxu1 %v5949_v37  ;;  %v6333_v47 = vpack.c.bf16 %v5109_v51, %v5085_v60  ;;  %v3909_v55 = vcvt.s32.f32 %v1605_v48  ;;  %v2349_v13 = vunpack.c.2.s8 %v501_v21  ;;  %v2373_v7 = vunpack.c.3.s8 %v501_v21  ;;  %v7387_v37 = vpop.f32.mrf.mxu2 }
 0x40d   :  { %7639 = vmatpush.bf16.msrb.mxu2 %v6141_v1  ;;  %v4269_v12 = vcvt.s32.f32 %v1965_v46  ;;  %v4293_v6 = vcvt.s32.f32 %v1989_v45  ;;  %v2733_v3 = vunpack.c.2.s8 %v597_v15  ;;  %v2757_v4 = vunpack.c.3.s8 %v597_v15 }
 0x40e   :  { %7652 = vmatpush.bf16.msrb.mxu3 %v6333_v47  ;;  %v5733_v43 = vpack.c.bf16 %v3909_v55, %v3885_v34  ;;  %v4653_v56 = vcvt.s32.f32 %v2349_v13  ;;  %v4677_v10 = vcvt.s32.f32 %v2373_v7  ;;  %v1533_v28 = vunpack.c.0.s8 %v309_v18  ;;  %v10202_v47 = vpop.f32.mrf.mxu1 }
 0x40f   :  { %v5925_v8 = vpack.c.bf16 %v4293_v6, %v4269_v12  ;;  %v5037_v54 = vcvt.s32.f32 %v2733_v3  ;;  %v5061_v2 = vcvt.s32.f32 %v2757_v4  ;;  %v1557_v33 = vunpack.c.1.s8 %v309_v18  ;;  %v10198_v18 = vpop.f32.mrf.mxu0 }
 0x410   :  { %7614 = vmatpush.bf16.msrb.mxu0 %v5733_v43  ;;  %v6117_v42 = vpack.c.bf16 %v4677_v10, %v4653_v56  ;;  %v3837_v20 = vcvt.s32.f32 %v1533_v28  ;;  %v1917_v59 = vunpack.c.0.s8 %v405_v58  ;;  %v1941_v19 = vunpack.c.1.s8 %v405_v58 }
 0x411   :  { %7627 = vmatpush.bf16.msrb.mxu1 %v5925_v8  ;;  %v6309_v27 = vpack.c.bf16 %v5061_v2, %v5037_v54  ;;  %v3861_v24 = vcvt.s32.f32 %v1557_v33  ;;  %v2301_v49 = vunpack.c.0.s8 %v501_v21  ;;  %v2325_v40 = vunpack.c.1.s8 %v501_v21  ;;  %v166_v54 = vld [vmem:[#allocation2 + $0x2c0] sm:$0xff]  ;;  %v7400_v2 = vpop.f32.mrf.mxu3 }
 0x412   :  { %7640 = vmatpush.bf16.msrb.mxu2 %v6117_v42  ;;  %v4221_v53 = vcvt.s32.f32 %v1917_v59  ;;  %v4245_v41 = vcvt.s32.f32 %v1941_v19  ;;  %v2685_v35 = vunpack.c.0.s8 %v597_v15  ;;  %v2709_v22 = vunpack.c.1.s8 %v597_v15 }
 0x413   :  { %7653 = vmatpush.bf16.msrb.mxu3 %v6309_v27  ;;  %v5709_v31 = vpack.c.bf16 %v3861_v24, %v3837_v20  ;;  %v4605_v23 = vcvt.s32.f32 %v2301_v49  ;;  %v4629_v63 = vcvt.s32.f32 %v2325_v40  ;;  %v1485_v52 = vunpack.c.2.s8 %v10194_v25  ;;  %v262_v49 = vld [vmem:[#allocation2 + $0x5c0] sm:$0xff] }
 0x414   :  { %v5901_v26 = vpack.c.bf16 %v4245_v41, %v4221_v53  ;;  %v4989_v62 = vcvt.s32.f32 %v2685_v35  ;;  %v5013_v39 = vcvt.s32.f32 %v2709_v22  ;;  %v1509_v58 = vunpack.c.3.s8 %v10194_v25  ;;  %v358_v35 = vld [vmem:[#allocation2 + $0x8c0] sm:$0xff] }
 0x415   :  { %7615 = vmatpush.bf16.msrb.mxu0 %v5709_v31  ;;  %v6093_v32 = vpack.c.bf16 %v4629_v63, %v4605_v23  ;;  %v3789_v57 = vcvt.s32.f32 %v1485_v52  ;;  %v1869_v61 = vunpack.c.2.s8 %v381_v44  ;;  %v1893_v21 = vunpack.c.3.s8 %v381_v44  ;;  %v454_v63 = vld [vmem:[#allocation2 + $0xbc0] sm:$0xff] }
 0x416   :  { %7628 = vmatpush.bf16.msrb.mxu1 %v5901_v26  ;;  %v6285_v60 = vpack.c.bf16 %v5013_v39, %v4989_v62  ;;  %v3813_v51 = vcvt.s32.f32 %v1509_v58  ;;  %v2253_v48 = vunpack.c.2.s8 %v477_v30  ;;  %v2277_v15 = vunpack.c.3.s8 %v477_v30  ;;  %v7426_v39 = vpop.f32.mrf.mxu1 }
 0x417   :  { %7641 = vmatpush.bf16.msrb.mxu2 %v6093_v32  ;;  %v4173_v1 = vcvt.s32.f32 %v1869_v61  ;;  %v4197_v34 = vcvt.s32.f32 %v1893_v21  ;;  %v2637_v46 = vunpack.c.2.s8 %v573_v29  ;;  %v2661_v45 = vunpack.c.3.s8 %v573_v29  ;;  %v7413_v33 = vpop.f32.mrf.mxu0 }
 0x418   :  { %7654 = vmatpush.bf16.msrb.mxu3 %v6285_v60  ;;  %v5685_v55 = vpack.c.bf16 %v3813_v51, %v3789_v57  ;;  %v4557_v13 = vcvt.s32.f32 %v2253_v48  ;;  %v4581_v7 = vcvt.s32.f32 %v2277_v15  ;;  %v10206_v12 = vadd.f32 %v10173_v17, %v10159_v38 }
 0x419   :  { %v5877_v6 = vpack.c.bf16 %v4197_v34, %v4173_v1  ;;  %v4941_v3 = vcvt.s32.f32 %v2637_v46  ;;  %v4965_v4 = vcvt.s32.f32 %v2661_v45  ;;  %v1437_v43 = vunpack.c.0.s8 %v10194_v25 }
 0x41a   :  { %7616 = vmatpush.bf16.msrb.mxu0 %v5685_v55  ;;  %v6069_v56 = vpack.c.bf16 %v4581_v7, %v4557_v13  ;;  %v1461_v10 = vunpack.c.1.s8 %v10194_v25  ;;  %v1821_v28 = vunpack.c.0.s8 %v381_v44  ;;  %v1845_v8 = vunpack.c.1.s8 %v381_v44 }
 0x41b   :  { %7629 = vmatpush.bf16.msrb.mxu1 %v5877_v6  ;;  %v6261_v42 = vpack.c.bf16 %v4965_v4, %v4941_v3  ;;  %v3741_v20 = vcvt.s32.f32 %v1437_v43  ;;  %v2205_v59 = vunpack.c.0.s8 %v477_v30  ;;  %v2229_v38 = vunpack.c.1.s8 %v477_v30 }
 0x41c   :  { %7642 = vmatpush.bf16.msrb.mxu2 %v6069_v56  ;;  %v3765_v17 = vcvt.s32.f32 %v1461_v10  ;;  %v4125_v19 = vcvt.s32.f32 %v1821_v28  ;;  %v4149_v27 = vcvt.s32.f32 %v1845_v8  ;;  %v2589_v24 = vunpack.c.0.s8 %v573_v29  ;;  %v142_v28 = vld [vmem:[#allocation2 + $0x200] sm:$0xff] }
 0x41d   :  { %7655 = vmatpush.bf16.msrb.mxu3 %v6261_v42  ;;  %v4509_v40 = vcvt.s32.f32 %v2205_v59  ;;  %v4533_v53 = vcvt.s32.f32 %v2229_v38  ;;  %v2613_v25 = vunpack.c.1.s8 %v573_v29  ;;  %v1006_v41 = vunpack.c.2.s8 %v166_v54  ;;  %v238_v42 = vld [vmem:[#allocation2 + $0x500] sm:$0xff] }
 0x41e   :  { %v5661_v22 = vpack.c.bf16 %v3765_v17, %v3741_v20  ;;  %v5853_v44 = vpack.c.bf16 %v4149_v27, %v4125_v19  ;;  %v4893_v31 = vcvt.s32.f32 %v2589_v24  ;;  %v1030_v23 = vunpack.c.3.s8 %v166_v54  ;;  %v334_v19 = vld [vmem:[#allocation2 + $0x800] sm:$0xff] }
 0x41f   :  { %v6045_v52 = vpack.c.bf16 %v4533_v53, %v4509_v40  ;;  %v4917_v26 = vcvt.s32.f32 %v2613_v25  ;;  %v3310_v30 = vcvt.s32.f32 %v1006_v41  ;;  %v1390_v62 = vunpack.c.2.s8 %v262_v49 }
 0x420   :  { %7617 = vmatpush.bf16.msrb.mxu0 %v5661_v22  ;;  %7630 = vmatpush.bf16.msrb.mxu1 %v5853_v44  ;;  %v3334_v58 = vcvt.s32.f32 %v1030_v23  ;;  %v1414_v32 = vunpack.c.3.s8 %v262_v49  ;;  %v1774_v57 = vunpack.c.2.s8 %v358_v35  ;;  %v1798_v61 = vunpack.c.3.s8 %v358_v35  ;;  %v430_v22 = vld [vmem:[#allocation2 + $0xb00] sm:$0xff] }
 0x421   :  { %7643 = vmatpush.bf16.msrb.mxu2 %v6045_v52  ;;  %v6237_v29 = vpack.c.bf16 %v4917_v26, %v4893_v31  ;;  %v3694_v21 = vcvt.s32.f32 %v1390_v62  ;;  %v2158_v37 = vunpack.c.2.s8 %v454_v63  ;;  %v2182_v60 = vunpack.c.3.s8 %v454_v63 }
 0x422   :  { %v5446_v51 = vpack.c.bf16 %v3334_v58, %v3310_v30  ;;  %v3718_v48 = vcvt.s32.f32 %v1414_v32  ;;  %v4078_v15 = vcvt.s32.f32 %v1774_v57  ;;  %v4102_v1 = vcvt.s32.f32 %v1798_v61 }
 0x423   :  { %7656 = vmatpush.bf16.msrb.mxu3 %v6237_v29  ;;  %v4462_v34 = vcvt.s32.f32 %v2158_v37  ;;  %v4486_v46 = vcvt.s32.f32 %v2182_v60  ;;  %7618 = vmatmul.bf16.vlgmr.msrb.gmra.mxu0 %v9178_v0  ;;  %v958_v45 = vunpack.c.0.s8 %v166_v54  ;;  %v982_v55 = vunpack.c.1.s8 %v166_v54 }
 0x424   :  { %7662 = vmatpush.bf16.msra.mxu0 %v5446_v51  ;;  %v5638_v13 = vpack.c.bf16 %v3718_v48, %v3694_v21  ;;  %v5830_v7 = vpack.c.bf16 %v4102_v1, %v4078_v15  ;;  %7644 = vmatmul.bf16.vlgmr.msrb.gmra.mxu2 %v9194_v11  ;;  %v1342_v6 = vunpack.c.0.s8 %v262_v49  ;;  %v1366_v3 = vunpack.c.1.s8 %v262_v49 }
 0x425   :  { %v6022_v4 = vpack.c.bf16 %v4486_v46, %v4462_v34  ;;  %v3262_v43 = vcvt.s32.f32 %v958_v45  ;;  %v3286_v56 = vcvt.s32.f32 %v982_v55  ;;  %v1726_v10 = vunpack.c.0.s8 %v358_v35  ;;  %7631 = vmatmul.bf16.vlgmr.msrb.gmra.mxu1 %v9180_v5 }
 0x426   :  { %7675 = vmatpush.bf16.msra.mxu1 %v5638_v13  ;;  %7688 = vmatpush.bf16.msra.mxu2 %v5830_v7  ;;  %v3646_v8 = vcvt.s32.f32 %v1342_v6  ;;  %v3670_v2 = vcvt.s32.f32 %v1366_v3  ;;  %v1750_v33 = vunpack.c.1.s8 %v358_v35  ;;  %v2110_v54 = vunpack.c.0.s8 %v454_v63 }
 0x427   :  { %7701 = vmatpush.bf16.msra.mxu3 %v6022_v4  ;;  %v5422_v20 = vpack.c.bf16 %v3286_v56, %v3262_v43  ;;  %v4030_v59 = vcvt.s32.f32 %v1726_v10  ;;  %v2134_v38 = vunpack.c.1.s8 %v454_v63  ;;  %v7386_v17 = vadd.f32 %v10192_v9, %v10206_v12  ;;  %v118_v4 = vld [vmem:[#allocation2 + $0x140] sm:$0xff] }
 0x428   :  { %7657 = vmatmul.bf16.vlgmr.msrb.gmra.mxu3 %v9198_v16  ;;  %v5614_v27 = vpack.c.bf16 %v3670_v2, %v3646_v8  ;;  %v4054_v24 = vcvt.s32.f32 %v1750_v33  ;;  %v4414_v49 = vcvt.s32.f32 %v2110_v54  ;;  %v910_v40 = vunpack.c.2.s8 %v142_v28  ;;  %v10219_v54 = vld [vmem:[#allocation4 + $0x8] sm:$0xff] }
 0x429   :  { %7663 = vmatpush.bf16.msra.mxu0 %v5422_v20  ;;  %v4438_v53 = vcvt.s32.f32 %v2134_v38  ;;  %v934_v25 = vunpack.c.3.s8 %v142_v28  ;;  %v1294_v41 = vunpack.c.2.s8 %v238_v42  ;;  %v1318_v35 = vunpack.c.3.s8 %v238_v42  ;;  %v310_v20 = vld [vmem:[#allocation2 + $0x740] sm:$0xff] }
 0x42a   :  { %7676 = vmatpush.bf16.msra.mxu1 %v5614_v27  ;;  %v5806_v44 = vpack.c.bf16 %v4054_v24, %v4030_v59  ;;  %v3214_v31 = vcvt.s32.f32 %v910_v40  ;;  %v1678_v23 = vunpack.c.2.s8 %v334_v19  ;;  %v1702_v63 = vunpack.c.3.s8 %v334_v19  ;;  %v10222_v38 = vld [vmem:[#allocation6 + $0x8] sm:$0xff] }
 0x42b   :  { %v5998_v52 = vpack.c.bf16 %v4438_v53, %v4414_v49  ;;  %v3238_v9 = vcvt.s32.f32 %v934_v25  ;;  %v3598_v12 = vcvt.s32.f32 %v1294_v41  ;;  %v3622_v26 = vcvt.s32.f32 %v1318_v35  ;;  %v406_v24 = vld [vmem:[#allocation2 + $0xa40] sm:$0xff] }
 0x42c   :  { %7689 = vmatpush.bf16.msra.mxu2 %v5806_v44  ;;  %v3982_v30 = vcvt.s32.f32 %v1678_v23  ;;  %v4006_v62 = vcvt.s32.f32 %v1702_v63  ;;  %v2062_v39 = vunpack.c.2.s8 %v430_v22  ;;  %v2086_v58 = vunpack.c.3.s8 %v430_v22  ;;  %v10225_v44 = vpop.f32.mrf.mxu2 }
 0x42d   :  { %7702 = vmatpush.bf16.msra.mxu3 %v5998_v52  ;;  %v5398_v32 = vpack.c.bf16 %v3238_v9, %v3214_v31  ;;  %v5590_v57 = vpack.c.bf16 %v3622_v26, %v3598_v12  ;;  %v7399_v61 = vadd.f32 %v10196_v50, %v7386_v17  ;;  %v862_v29 = vunpack.c.0.s8 %v142_v28  ;;  %v10227_v9 = vpop.f32.mrf.mxu3 }
 0x42e   :  { %v5782_v21 = vpack.c.bf16 %v4006_v62, %v3982_v30  ;;  %v4366_v37 = vcvt.s32.f32 %v2062_v39  ;;  %v4390_v60 = vcvt.s32.f32 %v2086_v58  ;;  %v886_v51 = vunpack.c.1.s8 %v142_v28 }
 0x42f   :  { %7664 = vmatpush.bf16.msra.mxu0 %v5398_v32  ;;  %7677 = vmatpush.bf16.msra.mxu1 %v5590_v57  ;;  %v7412_v48 = vadd.f32 %v10198_v18, %v7399_v61  ;;  %v3166_v15 = vcvt.s32.f32 %v862_v29  ;;  %v1246_v1 = vunpack.c.0.s8 %v238_v42  ;;  %v1270_v34 = vunpack.c.1.s8 %v238_v42  ;;  %v214_v18 = vld [vmem:[#allocation2 + $0x440] sm:$0xff] }
 0x430   :  { %7690 = vmatpush.bf16.msra.mxu2 %v5782_v21  ;;  %v5974_v46 = vpack.c.bf16 %v4390_v60, %v4366_v37  ;;  %v3190_v45 = vcvt.s32.f32 %v886_v51  ;;  %v1630_v55 = vunpack.c.0.s8 %v334_v19  ;;  %v1654_v13 = vunpack.c.1.s8 %v334_v19 }
 0x431   :  { %v3550_v7 = vcvt.s32.f32 %v1246_v1  ;;  %v3574_v6 = vcvt.s32.f32 %v1270_v34  ;;  %v2014_v50 = vunpack.c.0.s8 %v430_v22  ;;  %v2038_v3 = vunpack.c.1.s8 %v430_v22  ;;  %v94_v1 = vld [vmem:[#allocation2 + $0x80] sm:$0xff] }
 0x432   :  { %7703 = vmatpush.bf16.msra.mxu3 %v5974_v46  ;;  %v5374_v43 = vpack.c.bf16 %v3190_v45, %v3166_v15  ;;  %v3934_v56 = vcvt.s32.f32 %v1630_v55  ;;  %v3958_v10 = vcvt.s32.f32 %v1654_v13  ;;  %v7425_v28 = vadd.f32 %v10202_v47, %v7412_v48  ;;  %v10229_v13 = vld [vmem:[#allocation2 + $0x380] sm:$0xff] }
 0x433   :  { %v5566_v8 = vpack.c.bf16 %v3574_v6, %v3550_v7  ;;  %v4318_v2 = vcvt.s32.f32 %v2014_v50  ;;  %v4342_v33 = vcvt.s32.f32 %v2038_v3  ;;  %v8304_v42 = vperm.slane %v10219_v54, 4 }
 0x434   :  { %7665 = vmatpush.bf16.msra.mxu0 %v5374_v43  ;;  %v5758_v59 = vpack.c.bf16 %v3958_v10, %v3934_v56  ;;  %v8382_v17 = vperm.slane %v10222_v38, 4  ;;  %v814_v19 = vunpack.c.2.s8 %v118_v4  ;;  %v838_v27 = vunpack.c.3.s8 %v118_v4  ;;  %v286_v10 = vld [vmem:[#allocation2 + $0x680] sm:$0xff] }
 0x435   :  { %7678 = vmatpush.bf16.msra.mxu1 %v5566_v8  ;;  %v5950_v47 = vpack.c.bf16 %v4342_v33, %v4318_v2  ;;  %v8352_v49 = vmul.f32 %v8304_v42, %v7425_v28  ;;  %v1198_v40 = vunpack.c.2.s8 %v214_v18  ;;  %v1222_v53 = vunpack.c.3.s8 %v214_v18  ;;  %v7439_v28 = vpop.f32.mrf.mxu2  ;;  %v382_v42 = vld [vmem:[#allocation2 + $0x980] sm:$0xff] }
 0x436   :  { %7691 = vmatpush.bf16.msra.mxu2 %v5758_v59  ;;  %v3118_v25 = vcvt.s32.f32 %v814_v19  ;;  %v3142_v41 = vcvt.s32.f32 %v838_v27  ;;  %v1582_v35 = vunpack.c.2.s8 %v310_v20  ;;  %v1606_v22 = vunpack.c.3.s8 %v310_v20 }
 0x437   :  { %7704 = vmatpush.bf16.msra.mxu3 %v5950_v47  ;;  %v8430_v31 = vadd.f32 %v8382_v17, %v8352_v49  ;;  %v3502_v23 = vcvt.s32.f32 %v1198_v40  ;;  %v3526_v63 = vcvt.s32.f32 %v1222_v53  ;;  %v1966_v52 = vunpack.c.2.s8 %v406_v24 }
 0x438   :  { %v5350_v12 = vpack.c.bf16 %v3142_v41, %v3118_v25  ;;  %v3886_v26 = vcvt.s32.f32 %v1582_v35  ;;  %v3910_v30 = vcvt.s32.f32 %v1606_v22  ;;  %v1990_v62 = vunpack.c.3.s8 %v406_v24 }
 0x439   :  { %v8454_v39 = vsub.f32 0.0, %v8430_v31  ;;  %v5542_v58 = vpack.c.bf16 %v3526_v63, %v3502_v23  ;;  %v4270_v32 = vcvt.s32.f32 %v1966_v52  ;;  %v766_v57 = vunpack.c.0.s8 %v118_v4 }
 0x43a   :  { %7666 = vmatpush.bf16.msra.mxu0 %v5350_v12  ;;  %v5734_v61 = vpack.c.bf16 %v3910_v30, %v3886_v26  ;;  %v4294_v29 = vcvt.s32.f32 %v1990_v62  ;;  %v790_v21 = vunpack.c.1.s8 %v118_v4  ;;  %v1150_v37 = vunpack.c.0.s8 %v214_v18 }
 0x43b   :  { %v8490_v60 = vmul.f32 1.442695, %v8454_v39  ;;  %7679 = vmatpush.bf16.msra.mxu1 %v5542_v58  ;;  %v3070_v51 = vcvt.s32.f32 %v766_v57  ;;  %v1174_v48 = vunpack.c.1.s8 %v214_v18  ;;  %v1534_v15 = vunpack.c.0.s8 %v310_v20 }
 0x43c   :  { %7692 = vmatpush.bf16.msra.mxu2 %v5734_v61  ;;  %v5926_v34 = vpack.c.bf16 %v4294_v29, %v4270_v32  ;;  %v3094_v46 = vcvt.s32.f32 %v790_v21  ;;  %v3454_v45 = vcvt.s32.f32 %v1150_v37  ;;  %v1558_v55 = vunpack.c.1.s8 %v310_v20  ;;  %v7452_v20 = vpop.f32.mrf.mxu3  ;;  %v10236_v61 = vpop.f32.mrf.mxu0 }
 0x43d   :  { %8981 = vpow2.f32 %v8490_v60  ;;  %v3478_v7 = vcvt.s32.f32 %v1174_v48  ;;  %v3838_v6 = vcvt.s32.f32 %v1534_v15  ;;  %v1918_v50 = vunpack.c.0.s8 %v406_v24  ;;  %v10238_v29 = vpop.f32.mrf.mxu1  ;;  %v10243_v15 = vld [vmem:[#allocation2 + $0xec0] sm:$0xff] }
 0x43e   :  { %7705 = vmatpush.bf16.msra.mxu3 %v5926_v34  ;;  %v5326_v3 = vpack.c.bf16 %v3094_v46, %v3070_v51  ;;  %v3862_v4 = vcvt.s32.f32 %v1558_v55  ;;  %v1942_v43 = vunpack.c.1.s8 %v406_v24  ;;  %v718_v56 = vunpack.c.2.s8 %v94_v1  ;;  %v10248_v55 = vld [vmem:[#allocation2 + $0x11c0] sm:$0xff] }
 0x43f   :  { %v5518_v18 = vpack.c.bf16 %v3478_v7, %v3454_v45  ;;  %v4222_v8 = vcvt.s32.f32 %v1918_v50  ;;  %v742_v2 = vunpack.c.3.s8 %v94_v1  ;;  %v1102_v33 = vunpack.c.2.s8 %v10229_v13 }
 0x440   :  { %7667 = vmatpush.bf16.msra.mxu0 %v5326_v3  ;;  %v5710_v59 = vpack.c.bf16 %v3862_v4, %v3838_v6  ;;  %v4246_v17 = vcvt.s32.f32 %v1942_v43  ;;  %v3022_v19 = vcvt.s32.f32 %v718_v56  ;;  %v1126_v27 = vunpack.c.3.s8 %v10229_v13 }
 0x441   :  { %7680 = vmatpush.bf16.msra.mxu1 %v5518_v18  ;;  %v3046_v47 = vcvt.s32.f32 %v742_v2  ;;  %v3406_v49 = vcvt.s32.f32 %v1102_v33  ;;  %v1486_v24 = vunpack.c.2.s8 %v286_v10  ;;  %v1510_v40 = vunpack.c.3.s8 %v286_v10  ;;  %v10254_v2 = vld [vmem:[#allocation2 + $0x2c8] sm:$0xff]  ;;  %v10256_v33 = vpop.f32.mrf.mxu2 }
 0x442   :  { %7693 = vmatpush.bf16.msra.mxu2 %v5710_v59  ;;  %v5902_v53 = vpack.c.bf16 %v4246_v17, %v4222_v8  ;;  %v3430_v25 = vcvt.s32.f32 %v1126_v27  ;;  %v1870_v41 = vunpack.c.2.s8 %v382_v42  ;;  %v1894_v35 = vunpack.c.3.s8 %v382_v42 }
 0x443   :  { %v8982_v22 = vpop.eup %8981  ;;  %v5302_v31 = vpack.c.bf16 %v3046_v47, %v3022_v19  ;;  %v3790_v23 = vcvt.s32.f32 %v1486_v24  ;;  %v3814_v63 = vcvt.s32.f32 %v1510_v40  ;;  %v670_v52 = vunpack.c.0.s8 %v94_v1  ;;  %v10263_v47 = vld [vmem:[#allocation2 + $0x5c8] sm:$0xff] }
 0x444   :  { %v10233_v12 = vadd.f32 1.0, %v8982_v22  ;;  %7706 = vmatpush.bf16.msra.mxu3 %v5902_v53  ;;  %v5494_v26 = vpack.c.bf16 %v3430_v25, %v3406_v49  ;;  %v4174_v30 = vcvt.s32.f32 %v1870_v41  ;;  %v4198_v62 = vcvt.s32.f32 %v1894_v35  ;;  %v10258_v20 = vpop.f32.mrf.mxu3  ;;  %v7465_v25 = vpop.f32.mrf.mxu0 }
 0x445   :  { %7668 = vmatpush.bf16.msra.mxu0 %v5302_v31  ;;  %v5686_v39 = vpack.c.bf16 %v3814_v63, %v3790_v23  ;;  %v694_v58 = vunpack.c.1.s8 %v94_v1  ;;  %v2974_v32 = vcvt.s32.f32 %v670_v52  ;;  %v1054_v57 = vunpack.c.0.s8 %v10229_v13  ;;  %v7478_v41 = vpop.f32.mrf.mxu1 }
 0x446   :  { %8983 = vrcp.f32 %v10233_v12  ;;  %v8729_v21 = vand.u32 2147483648, %v10233_v12  ;;  %7681 = vmatpush.bf16.msra.mxu1 %v5494_v26  ;;  %v5878_v37 = vpack.c.bf16 %v4198_v62, %v4174_v30  ;;  %v1078_v51 = vunpack.c.1.s8 %v10229_v13 }
 0x447   :  { %7694 = vmatpush.bf16.msra.mxu2 %v5686_v39  ;;  %v2998_v60 = vcvt.s32.f32 %v694_v58  ;;  %v3358_v48 = vcvt.s32.f32 %v1054_v57  ;;  %v8727_v1 = vand.u32 2147483647, %v10233_v12  ;;  %v1438_v46 = vunpack.c.0.s8 %v286_v10 }
 0x448   :  { %v10246_v34 = vor.u32 1.1754944e-38, %v8729_v21  ;;  %v1462_v45 = vunpack.c.1.s8 %v286_v10  ;;  %vm8723_vm0 = vweird.f32 %v10233_v12  ;;  %7707 = vmatpush.bf16.msra.mxu3 %v5878_v37  ;;  %v3382_v6 = vcvt.s32.f32 %v1078_v51 }
 0x449   :  { %v5278_v7 = vpack.c.bf16 %v2998_v60, %v2974_v32  ;;  %v1822_v50 = vunpack.c.0.s8 %v382_v42  ;;  %v1846_v3 = vunpack.c.1.s8 %v382_v42  ;;  %v3742_v4 = vcvt.s32.f32 %v1438_v46 }
 0x44a   :  { %v3766_v13 = vcvt.s32.f32 %v1462_v45  ;;  %v2542_v43 = vunpack.c.2.s8 %v10243_v15  ;;  %v2566_v56 = vunpack.c.3.s8 %v10243_v15  ;;  %v5470_v28 = vpack.c.bf16 %v3382_v6, %v3358_v48  ;;  %v7491_v6 = vpop.f32.mrf.mxu2 }
 0x44b   :  { %7669 = vmatpush.bf16.msra.mxu0 %v5278_v7  ;;  %v4126_v18 = vcvt.s32.f32 %v1822_v50  ;;  %v4150_v8 = vcvt.s32.f32 %v1846_v3  ;;  %v2926_v10 = vunpack.c.2.s8 %v10248_v55  ;;  %v2950_v27 = vunpack.c.3.s8 %v10248_v55 }
 0x44c   :  { %v10260_v59 = vpop.eup %8983  ;;  %v5662_v42 = vpack.c.bf16 %v3766_v13, %v3742_v4  ;;  %v4846_v17 = vcvt.s32.f32 %v2542_v43  ;;  %v4870_v19 = vcvt.s32.f32 %v2566_v56  ;;  %vm10268_vm2 = vcmp.eq.f32.partialorder %v8727_v1, 8.507059e+37  ;;  %7682 = vmatpush.bf16.msra.mxu1 %v5470_v28  ;;  %v7504_v50 = vpop.f32.mrf.mxu3  ;;  %v526_v13 = vld [vmem:[#allocation2 + $0xe00] sm:$0xff] }
 0x44d   :  { %v8719_v49 = vmul.f32 %v10260_v59, %v10233_v12  ;;  %vm8724_vm1 = vweird.f32 %v10260_v59  ;;  %v5854_v40 = vpack.c.bf16 %v4150_v8, %v4126_v18  ;;  %v5230_v53 = vcvt.s32.f32 %v2926_v10  ;;  %v622_v43 = vld [vmem:[#allocation2 + $0x1100] sm:$0xff]  ;;  %v143_v10 = vld [vmem:[#allocation2 + $0x208] sm:$0xff] }
 0x44e   :  { %7695 = vmatpush.bf16.msra.mxu2 %v5662_v42  ;;  %v6214_v35 = vpack.c.bf16 %v4870_v19, %v4846_v17  ;;  %v5254_v22 = vcvt.s32.f32 %v2950_v27  ;;  %v1007_v31 = vunpack.c.2.s8 %v10254_v2  ;;  %v1031_v23 = vunpack.c.3.s8 %v10254_v2  ;;  %7670 = vmatmul.bf16.vlgmr.msra.gmra.mxu0 %v9163_v14  ;;  %vm8725_vm3 = vmor %vm8723_vm0, %vm8724_vm1 }
 0x44f   :  { %v8720_v63 = vsub.f32 1.0, %v8719_v49  ;;  %7708 = vmatpush.bf16.msra.mxu3 %v5854_v40  ;;  %v1391_v52 = vunpack.c.2.s8 %v10263_v47  ;;  %v1415_v26 = vunpack.c.3.s8 %v10263_v47  ;;  %v10279_v30 = vadd.f32 %v10227_v9, %v10225_v44  ;;  %7683 = vmatmul.bf16.vlgmr.msra.gmra.mxu1 %v9169_v36  ;;  %v239_v40 = vld [vmem:[#allocation2 + $0x508] sm:$0xff] }
 0x450   :  { %7714 = vmatpush.bf16.msrb.mxu0 %v6214_v35  ;;  %v6406_v62 = vpack.c.bf16 %v5254_v22, %v5230_v53  ;;  %v3311_v39 = vcvt.s32.f32 %v1007_v31  ;;  %v3335_v58 = vcvt.s32.f32 %v1031_v23  ;;  %v2494_v32 = vunpack.c.0.s8 %v10243_v15 }
 0x451   :  { %v8721_v57 = vmul.f32 %v10260_v59, %v8720_v63  ;;  %v3695_v21 = vcvt.s32.f32 %v1391_v52  ;;  %v3719_v37 = vcvt.s32.f32 %v1415_v26  ;;  %v2518_v60 = vunpack.c.1.s8 %v10243_v15  ;;  %7696 = vmatmul.bf16.vlgmr.msra.gmra.mxu2 %v9178_v0 }
 0x452   :  { %7727 = vmatpush.bf16.msrb.mxu1 %v6406_v62  ;;  %v5447_v51 = vpack.c.bf16 %v3335_v58, %v3311_v39  ;;  %v4798_v44 = vcvt.s32.f32 %v2494_v32  ;;  %v2878_v9 = vunpack.c.0.s8 %v10248_v55  ;;  %v2902_v48 = vunpack.c.1.s8 %v10248_v55  ;;  %7709 = vmatmul.bf16.vlgmr.msra.gmra.mxu3 %v9180_v5 }
 0x453   :  { %v8722_v1 = vadd.f32 %v10260_v59, %v8721_v57  ;;  %v5639_v46 = vpack.c.bf16 %v3719_v37, %v3695_v21  ;;  %v4822_v45 = vcvt.s32.f32 %v2518_v60  ;;  %v959_v7 = vunpack.c.0.s8 %v10254_v2 }
 0x454   :  { %7740 = vmatpush.bf16.msrb.mxu2 %v5447_v51  ;;  %v5182_v15 = vcvt.s32.f32 %v2878_v9  ;;  %v5206_v3 = vcvt.s32.f32 %v2902_v48  ;;  %v983_v55 = vunpack.c.1.s8 %v10254_v2  ;;  %v1343_v4 = vunpack.c.0.s8 %v10263_v47 }
 0x455   :  { %v8726_v56 = vsel %vm8725_vm3, %v10260_v59, %v8722_v1  ;;  %7753 = vmatpush.bf16.msrb.mxu3 %v5639_v46  ;;  %v6190_v28 = vpack.c.bf16 %v4822_v45, %v4798_v44  ;;  %v3263_v18 = vcvt.s32.f32 %v959_v7  ;;  %v1367_v8 = vunpack.c.1.s8 %v10263_v47  ;;  %v502_v7 = vld [vmem:[#allocation2 + $0xd40] sm:$0xff] }
 0x456   :  { %v8731_v12 = vsel %vm10268_vm2, %v10246_v34, %v8726_v56  ;;  %v6382_v42 = vpack.c.bf16 %v5206_v3, %v5182_v15  ;;  %v3287_v17 = vcvt.s32.f32 %v983_v55  ;;  %v3647_v19 = vcvt.s32.f32 %v1343_v4  ;;  %v598_v55 = vld [vmem:[#allocation2 + $0x1040] sm:$0xff] }
 0x457   :  { %8910 = vst [vmem:[%s10886_s4 + $0x60] sm:$0xff] %v8731_v12  ;;  %7715 = vmatpush.bf16.msrb.mxu0 %v6190_v28  ;;  %v3671_v2 = vcvt.s32.f32 %v1367_v8  ;;  %v2446_v59 = vunpack.c.2.s8 %v526_v13  ;;  %v2470_v27 = vunpack.c.3.s8 %v526_v13  ;;  %v2830_v49 = vunpack.c.2.s8 %v622_v43 }
 0x458   :  { %7728 = vmatpush.bf16.msrb.mxu1 %v6382_v42  ;;  %v5423_v47 = vpack.c.bf16 %v3287_v17, %v3263_v18  ;;  %v2854_v53 = vunpack.c.3.s8 %v622_v43  ;;  %v911_v25 = vunpack.c.2.s8 %v143_v10  ;;  %v935_v41 = vunpack.c.3.s8 %v143_v10  ;;  %v119_v18 = vld [vmem:[#allocation2 + $0x148] sm:$0xff] }
 0x459   :  { %v5615_v24 = vpack.c.bf16 %v3671_v2, %v3647_v19  ;;  %v4750_v34 = vcvt.s32.f32 %v2446_v59  ;;  %v4774_v35 = vcvt.s32.f32 %v2470_v27  ;;  %v5134_v22 = vcvt.s32.f32 %v2830_v49  ;;  %v215_v42 = vld [vmem:[#allocation2 + $0x448] sm:$0xff] }
 0x45a   :  { %7741 = vmatpush.bf16.msrb.mxu2 %v5423_v47  ;;  %v5158_v31 = vcvt.s32.f32 %v2854_v53  ;;  %v3215_v23 = vcvt.s32.f32 %v911_v25  ;;  %v3239_v63 = vcvt.s32.f32 %v935_v41  ;;  %v1295_v52 = vunpack.c.2.s8 %v239_v40 }
 0x45b   :  { %7754 = vmatpush.bf16.msrb.mxu3 %v5615_v24  ;;  %v6166_v26 = vpack.c.bf16 %v4774_v35, %v4750_v34  ;;  %v1319_v62 = vunpack.c.3.s8 %v239_v40  ;;  %v2398_v39 = vunpack.c.0.s8 %v526_v13  ;;  %v2422_v58 = vunpack.c.1.s8 %v526_v13 }
 0x45c   :  { %v6358_v32 = vpack.c.bf16 %v5158_v31, %v5134_v22  ;;  %v5399_v57 = vpack.c.bf16 %v3239_v63, %v3215_v23  ;;  %v3599_v21 = vcvt.s32.f32 %v1295_v52  ;;  %v2782_v37 = vunpack.c.0.s8 %v622_v43 }
 0x45d   :  { %7716 = vmatpush.bf16.msrb.mxu0 %v6166_v26  ;;  %v3623_v60 = vcvt.s32.f32 %v1319_v62  ;;  %v4702_v51 = vcvt.s32.f32 %v2398_v39  ;;  %v4726_v44 = vcvt.s32.f32 %v2422_v58  ;;  %v2806_v9 = vunpack.c.1.s8 %v622_v43 }
 0x45e   :  { %7729 = vmatpush.bf16.msrb.mxu1 %v6358_v32  ;;  %7742 = vmatpush.bf16.msrb.mxu2 %v5399_v57  ;;  %v5086_v48 = vcvt.s32.f32 %v2782_v37  ;;  %v863_v1 = vunpack.c.0.s8 %v143_v10  ;;  %v887_v46 = vunpack.c.1.s8 %v143_v10  ;;  %v1247_v45 = vunpack.c.0.s8 %v239_v40 }
 0x45f   :  { %v5591_v6 = vpack.c.bf16 %v3623_v60, %v3599_v21  ;;  %v6142_v50 = vpack.c.bf16 %v4726_v44, %v4702_v51  ;;  %v5110_v15 = vcvt.s32.f32 %v2806_v9  ;;  %v1271_v3 = vunpack.c.1.s8 %v239_v40  ;;  %v478_v51 = vld [vmem:[#allocation2 + $0xc80] sm:$0xff] }
 0x460   :  { %v3167_v4 = vcvt.s32.f32 %v863_v1  ;;  %v3191_v13 = vcvt.s32.f32 %v887_v46  ;;  %v3551_v56 = vcvt.s32.f32 %v1247_v45  ;;  %v7464_v28 = vadd.f32 %v10236_v61, %v10279_v30  ;;  %v574_v45 = vld [vmem:[#allocation2 + $0xf80] sm:$0xff] }
 0x461   :  { %7755 = vmatpush.bf16.msrb.mxu3 %v5591_v6  ;;  %7717 = vmatpush.bf16.msrb.mxu0 %v6142_v50  ;;  %v6334_v43 = vpack.c.bf16 %v5110_v15, %v5086_v48  ;;  %v3575_v8 = vcvt.s32.f32 %v1271_v3  ;;  %v2350_v12 = vunpack.c.2.s8 %v502_v7  ;;  %v2374_v10 = vunpack.c.3.s8 %v502_v7  ;;  %v95_v3 = vld [vmem:[#allocation2 + $0x88] sm:$0xff] }
 0x462   :  { %v5375_v17 = vpack.c.bf16 %v3191_v13, %v3167_v4  ;;  %v7477_v19 = vadd.f32 %v10238_v29, %v7464_v28  ;;  %v2734_v2 = vunpack.c.2.s8 %v598_v55  ;;  %v2758_v59 = vunpack.c.3.s8 %v598_v55  ;;  %v191_v28 = vld [vmem:[#allocation2 + $0x388] sm:$0xff] }
 0x463   :  { %7730 = vmatpush.bf16.msrb.mxu1 %v6334_v43  ;;  %v5567_v27 = vpack.c.bf16 %v3575_v8, %v3551_v56  ;;  %v4654_v49 = vcvt.s32.f32 %v2350_v12  ;;  %v4678_v40 = vcvt.s32.f32 %v2374_v10  ;;  %v815_v47 = vunpack.c.2.s8 %v119_v18 }
 0x464   :  { %7743 = vmatpush.bf16.msrb.mxu2 %v5375_v17  ;;  %v5038_v61 = vcvt.s32.f32 %v2734_v2  ;;  %v5062_v30 = vcvt.s32.f32 %v2758_v59  ;;  %v839_v53 = vunpack.c.3.s8 %v119_v18  ;;  %v1199_v25 = vunpack.c.2.s8 %v215_v42 }
 0x465   :  { %7756 = vmatpush.bf16.msrb.mxu3 %v5567_v27  ;;  %v6118_v41 = vpack.c.bf16 %v4678_v40, %v4654_v49  ;;  %v3119_v24 = vcvt.s32.f32 %v815_v47  ;;  %v1223_v34 = vunpack.c.3.s8 %v215_v42  ;;  %v7490_v35 = vadd.f32 %v10256_v33, %v7477_v19 }
 0x466   :  { %v6310_v22 = vpack.c.bf16 %v5062_v30, %v5038_v61  ;;  %v3143_v29 = vcvt.s32.f32 %v839_v53  ;;  %v3503_v31 = vcvt.s32.f32 %v1199_v25  ;;  %v8305_v23 = vperm.slane %v10219_v54, 5 }
 0x467   :  { %7718 = vmatpush.bf16.msrb.mxu0 %v6118_v41  ;;  %v3527_v63 = vcvt.s32.f32 %v1223_v34  ;;  %v7503_v52 = vadd.f32 %v10258_v20, %v7490_v35  ;;  %v8383_v26 = vperm.slane %v10222_v38, 5  ;;  %v2302_v62 = vunpack.c.0.s8 %v502_v7 }
 0x468   :  { %7731 = vmatpush.bf16.msrb.mxu1 %v6310_v22  ;;  %v5351_v39 = vpack.c.bf16 %v3143_v29, %v3119_v24  ;;  %v2326_v58 = vunpack.c.1.s8 %v502_v7  ;;  %v2686_v32 = vunpack.c.0.s8 %v598_v55  ;;  %v2710_v57 = vunpack.c.1.s8 %v598_v55 }
 0x469   :  { %v5543_v21 = vpack.c.bf16 %v3527_v63, %v3503_v31  ;;  %v8353_v37 = vmul.f32 %v8305_v23, %v7503_v52  ;;  %v4606_v33 = vcvt.s32.f32 %v2302_v62  ;;  %v767_v60 = vunpack.c.0.s8 %v119_v18  ;;  %v359_v52 = vld [vmem:[#allocation2 + $0x8c8] sm:$0xff] }
 0x46a   :  { %7744 = vmatpush.bf16.msrb.mxu2 %v5351_v39  ;;  %v4630_v44 = vcvt.s32.f32 %v2326_v58  ;;  %v4990_v54 = vcvt.s32.f32 %v2686_v32  ;;  %v5014_v9 = vcvt.s32.f32 %v2710_v57  ;;  %v791_v48 = vunpack.c.1.s8 %v119_v18 }
 0x46b   :  { %7757 = vmatpush.bf16.msrb.mxu3 %v5543_v21  ;;  %v8431_v20 = vadd.f32 %v8383_v26, %v8353_v37  ;;  %v3071_v1 = vcvt.s32.f32 %v767_v60  ;;  %v1151_v38 = vunpack.c.0.s8 %v215_v42  ;;  %v1175_v46 = vunpack.c.1.s8 %v215_v42 }
 0x46c   :  { %v6094_v6 = vpack.c.bf16 %v4630_v44, %v4606_v33  ;;  %v6286_v7 = vpack.c.bf16 %v5014_v9, %v4990_v54  ;;  %v3095_v50 = vcvt.s32.f32 %v791_v48  ;;  %v2254_v15 = vunpack.c.2.s8 %v478_v51  ;;  %v455_v33 = vld [vmem:[#allocation2 + $0xbc8] sm:$0xff] }
 0x46d   :  { %v8455_v55 = vsub.f32 0.0, %v8431_v20  ;;  %v3455_v4 = vcvt.s32.f32 %v1151_v38  ;;  %v3479_v13 = vcvt.s32.f32 %v1175_v46  ;;  %v2278_v56 = vunpack.c.3.s8 %v478_v51 }
 0x46e   :  { %7719 = vmatpush.bf16.msrb.mxu0 %v6094_v6  ;;  %7732 = vmatpush.bf16.msrb.mxu1 %v6286_v7  ;;  %v5327_v43 = vpack.c.bf16 %v3095_v50, %v3071_v1  ;;  %v4558_v18 = vcvt.s32.f32 %v2254_v15  ;;  %v2638_v8 = vunpack.c.2.s8 %v574_v45  ;;  %v2662_v12 = vunpack.c.3.s8 %v574_v45  ;;  %v551_v50 = vld [vmem:[#allocation2 + $0xec8] sm:$0xff] }
 0x46f   :  { %v8492_v10 = vmul.f32 1.442695, %v8455_v55  ;;  %v5519_v17 = vpack.c.bf16 %v3479_v13, %v3455_v4  ;;  %v4582_v42 = vcvt.s32.f32 %v2278_v56  ;;  %v719_v19 = vunpack.c.2.s8 %v95_v3 }
 0x470   :  { %7745 = vmatpush.bf16.msrb.mxu2 %v5327_v43  ;;  %v4942_v2 = vcvt.s32.f32 %v2638_v8  ;;  %v4966_v59 = vcvt.s32.f32 %v2662_v12  ;;  %v743_v27 = vunpack.c.3.s8 %v95_v3  ;;  %v1103_v49 = vunpack.c.2.s8 %v191_v28 }
 0x471   :  { %8985 = vpow2.f32 %v8492_v10  ;;  %7758 = vmatpush.bf16.msrb.mxu3 %v5519_v17  ;;  %v6070_v40 = vpack.c.bf16 %v4582_v42, %v4558_v18  ;;  %v3023_v47 = vcvt.s32.f32 %v719_v19  ;;  %v1127_v61 = vunpack.c.3.s8 %v191_v28  ;;  %v10321_v19 = vpop.f32.mrf.mxu0 }
 0x472   :  { %v6262_v30 = vpack.c.bf16 %v4966_v59, %v4942_v2  ;;  %v3047_v53 = vcvt.s32.f32 %v743_v27  ;;  %v3407_v25 = vcvt.s32.f32 %v1103_v49  ;;  %v2206_v41 = vunpack.c.0.s8 %v478_v51 }
 0x473   :  { %7720 = vmatpush.bf16.msrb.mxu0 %v6070_v40  ;;  %v3431_v24 = vcvt.s32.f32 %v1127_v61  ;;  %v2230_v34 = vunpack.c.1.s8 %v478_v51  ;;  %v2590_v35 = vunpack.c.0.s8 %v574_v45  ;;  %v2614_v22 = vunpack.c.1.s8 %v574_v45 }
 0x474   :  { %7733 = vmatpush.bf16.msrb.mxu1 %v6262_v30  ;;  %v5303_v29 = vpack.c.bf16 %v3047_v53, %v3023_v47  ;;  %v4510_v31 = vcvt.s32.f32 %v2206_v41  ;;  %v671_v23 = vunpack.c.0.s8 %v95_v3  ;;  %v695_v63 = vunpack.c.1.s8 %v95_v3  ;;  %v647_v3 = vld [vmem:[#allocation2 + $0x11c8] sm:$0xff] }
 0x475   :  { %v5495_v26 = vpack.c.bf16 %v3431_v24, %v3407_v25  ;;  %v4534_v62 = vcvt.s32.f32 %v2230_v34  ;;  %v4894_v39 = vcvt.s32.f32 %v2590_v35  ;;  %v4918_v58 = vcvt.s32.f32 %v2614_v22  ;;  %v10325_v35 = vld [vmem:[#allocation2 + $0x808] sm:$0xff] }
 0x476   :  { %7746 = vmatpush.bf16.msrb.mxu2 %v5303_v29  ;;  %v2975_v32 = vcvt.s32.f32 %v671_v23  ;;  %v2999_v57 = vcvt.s32.f32 %v695_v63  ;;  %v1055_v21 = vunpack.c.0.s8 %v191_v28  ;;  %v1079_v37 = vunpack.c.1.s8 %v191_v28  ;;  %v10333_v63 = vld [vmem:[#allocation2 + $0xb08] sm:$0xff] }
 0x477   :  { %v8986_v60 = vpop.eup %8985  ;;  %7759 = vmatpush.bf16.msrb.mxu3 %v5495_v26  ;;  %v6046_v51 = vpack.c.bf16 %v4534_v62, %v4510_v31  ;;  %v6238_v44 = vpack.c.bf16 %v4918_v58, %v4894_v39  ;;  %v1775_v54 = vunpack.c.2.s8 %v359_v52  ;;  %v1799_v9 = vunpack.c.3.s8 %v359_v52  ;;  %v10335_v58 = vpop.f32.mrf.mxu1 }
 0x478   :  { %v10312_v48 = vadd.f32 1.0, %v8986_v60  ;;  %v5279_v20 = vpack.c.bf16 %v2999_v57, %v2975_v32  ;;  %v3359_v1 = vcvt.s32.f32 %v1055_v21  ;;  %v3383_v38 = vcvt.s32.f32 %v1079_v37 }
 0x479   :  { %7721 = vmatpush.bf16.msrb.mxu0 %v6046_v51  ;;  %7734 = vmatpush.bf16.msrb.mxu1 %v6238_v44  ;;  %v4079_v46 = vcvt.s32.f32 %v1775_v54  ;;  %v4103_v45 = vcvt.s32.f32 %v1799_v9  ;;  %v2159_v6 = vunpack.c.2.s8 %v455_v33  ;;  %v2183_v7 = vunpack.c.3.s8 %v455_v33 }
 0x47a   :  { %8987 = vrcp.f32 %v10312_v48  ;;  %v8744_v15 = vand.u32 2147483648, %v10312_v48  ;;  %7747 = vmatpush.bf16.msrb.mxu2 %v5279_v20  ;;  %v5471_v55 = vpack.c.bf16 %v3383_v38, %v3359_v1  ;;  %v8742_v28 = vand.u32 2147483647, %v10312_v48 }
 0x47b   :  { %v5831_v4 = vpack.c.bf16 %v4103_v45, %v4079_v46  ;;  %v4463_v13 = vcvt.s32.f32 %v2159_v6  ;;  %v4487_v56 = vcvt.s32.f32 %v2183_v7  ;;  %v2543_v18 = vunpack.c.2.s8 %v551_v50  ;;  %v623_v46 = vld [vmem:[#allocation2 + $0x1108] sm:$0xff]  ;;  %v7517_v45 = vpop.f32.mrf.mxu0 }
 0x47c   :  { %v10317_v43 = vor.u32 1.1754944e-38, %v8744_v15  ;;  %v2567_v8 = vunpack.c.3.s8 %v551_v50  ;;  %7722 = vmatmul.bf16.vlgmr.msrb.gmra.mxu0 %v9194_v11  ;;  %7735 = vmatmul.bf16.vlgmr.msrb.gmra.mxu1 %v9198_v16  ;;  %v2927_v10 = vunpack.c.2.s8 %v647_v3  ;;  %v2951_v17 = vunpack.c.3.s8 %v647_v3 }
 0x47d   :  { %7760 = vmatpush.bf16.msrb.mxu3 %v5471_v55  ;;  %7766 = vmatpush.bf16.msra.mxu0 %v5831_v4  ;;  %v6023_v12 = vpack.c.bf16 %v4487_v56, %v4463_v13  ;;  %v1727_v42 = vunpack.c.0.s8 %v359_v52  ;;  %v4847_v2 = vcvt.s32.f32 %v2543_v18  ;;  %v1751_v27 = vunpack.c.1.s8 %v359_v52 }
 0x47e   :  { %v4871_v59 = vcvt.s32.f32 %v2567_v8  ;;  %v2111_v49 = vunpack.c.0.s8 %v455_v33  ;;  %7748 = vmatmul.bf16.vlgmr.msrb.gmra.mxu2 %v9163_v14  ;;  %vm8738_vm4 = vweird.f32 %v10312_v48  ;;  %v5231_v40 = vcvt.s32.f32 %v2927_v10 }
 0x47f   :  { %7779 = vmatpush.bf16.msra.mxu1 %v6023_v12  ;;  %v5255_v47 = vcvt.s32.f32 %v2951_v17  ;;  %v4031_v61 = vcvt.s32.f32 %v1727_v42  ;;  %v2135_v30 = vunpack.c.1.s8 %v455_v33  ;;  %v4055_v41 = vcvt.s32.f32 %v1751_v27  ;;  %v527_v33 = vld [vmem:[#allocation2 + $0xe08] sm:$0xff] }
 0x480   :  { %v8988_v53 = vpop.eup %8987  ;;  %v6215_v25 = vpack.c.bf16 %v4871_v59, %v4847_v2  ;;  %v4415_v24 = vcvt.s32.f32 %v2111_v49  ;;  %v2495_v34 = vunpack.c.0.s8 %v551_v50  ;;  %7761 = vmatmul.bf16.vlgmr.msrb.gmra.mxu3 %v9169_v36  ;;  %vm10329_vm6 = vcmp.eq.f32.partialorder %v8742_v28, 8.507059e+37  ;;  %v7530_v49 = vpop.f32.mrf.mxu1 }
 0x481   :  { %v8734_v22 = vmul.f32 %v8988_v53, %v10312_v48  ;;  %vm8739_vm5 = vweird.f32 %v8988_v53  ;;  %v6407_v31 = vpack.c.bf16 %v5255_v47, %v5231_v40  ;;  %v4439_v23 = vcvt.s32.f32 %v2135_v30 }
 0x482   :  { %7792 = vmatpush.bf16.msra.mxu2 %v6215_v25  ;;  %v5807_v52 = vpack.c.bf16 %v4055_v41, %v4031_v61  ;;  %v2519_v26 = vunpack.c.1.s8 %v551_v50  ;;  %v4799_v62 = vcvt.s32.f32 %v2495_v34  ;;  %v2879_v39 = vunpack.c.0.s8 %v647_v3  ;;  %vm8740_vm7 = vmor %vm8738_vm4, %vm8739_vm5 }
 0x483   :  { %v8735_v32 = vsub.f32 1.0, %v8734_v22  ;;  %7805 = vmatpush.bf16.msra.mxu3 %v6407_v31  ;;  %v5999_v57 = vpack.c.bf16 %v4439_v23, %v4415_v24  ;;  %v2903_v21 = vunpack.c.1.s8 %v647_v3  ;;  %v1679_v37 = vunpack.c.2.s8 %v10325_v35  ;;  %v407_v31 = vld [vmem:[#allocation2 + $0xa48] sm:$0xff] }
 0x484   :  { %7767 = vmatpush.bf16.msra.mxu0 %v5807_v52  ;;  %v4823_v60 = vcvt.s32.f32 %v2519_v26  ;;  %v5183_v51 = vcvt.s32.f32 %v2879_v39  ;;  %v1703_v44 = vunpack.c.3.s8 %v10325_v35  ;;  %v2063_v54 = vunpack.c.2.s8 %v10333_v63  ;;  %v503_v39 = vld [vmem:[#allocation2 + $0xd48] sm:$0xff] }
 0x485   :  { %v8736_v9 = vmul.f32 %v8988_v53, %v8735_v32  ;;  %7780 = vmatpush.bf16.msra.mxu1 %v5999_v57  ;;  %v5207_v20 = vcvt.s32.f32 %v2903_v21  ;;  %v3983_v1 = vcvt.s32.f32 %v1679_v37  ;;  %v2087_v38 = vunpack.c.3.s8 %v10333_v63  ;;  %v599_v37 = vld [vmem:[#allocation2 + $0x1048] sm:$0xff] }
 0x486   :  { %v6191_v6 = vpack.c.bf16 %v4823_v60, %v4799_v62  ;;  %v4007_v7 = vcvt.s32.f32 %v1703_v44  ;;  %v4367_v50 = vcvt.s32.f32 %v2063_v54  ;;  %v2447_v15 = vunpack.c.2.s8 %v527_v33 }
 0x487   :  { %v8737_v3 = vadd.f32 %v8988_v53, %v8736_v9  ;;  %v6383_v55 = vpack.c.bf16 %v5207_v20, %v5183_v51  ;;  %v4391_v4 = vcvt.s32.f32 %v2087_v38  ;;  %v2471_v13 = vunpack.c.3.s8 %v527_v33 }
 0x488   :  { %7793 = vmatpush.bf16.msra.mxu2 %v6191_v6  ;;  %v5783_v56 = vpack.c.bf16 %v4007_v7, %v3983_v1  ;;  %v4751_v28 = vcvt.s32.f32 %v2447_v15  ;;  %v2831_v18 = vunpack.c.2.s8 %v623_v46  ;;  %v2855_v8 = vunpack.c.3.s8 %v623_v46  ;;  %v10354_v7 = vpop.f32.mrf.mxu2 }
 0x489   :  { %v8741_v12 = vsel %vm8740_vm7, %v8988_v53, %v8737_v3  ;;  %7806 = vmatpush.bf16.msra.mxu3 %v6383_v55  ;;  %v5975_v10 = vpack.c.bf16 %v4391_v4, %v4367_v50  ;;  %v4775_v17 = vcvt.s32.f32 %v2471_v13  ;;  %v1631_v42 = vunpack.c.0.s8 %v10325_v35  ;;  %v311_v53 = vld [vmem:[#allocation2 + $0x748] sm:$0xff] }
 0x48a   :  { %v8746_v2 = vsel %vm10329_vm6, %v10317_v43, %v8741_v12  ;;  %7768 = vmatpush.bf16.msra.mxu0 %v5783_v56  ;;  %v5135_v59 = vcvt.s32.f32 %v2831_v18  ;;  %v5159_v27 = vcvt.s32.f32 %v2855_v8  ;;  %v1655_v48 = vunpack.c.1.s8 %v10325_v35 }
 0x48b   :  { %8911 = vst [vmem:[%s10886_s4 + $0x68] sm:$0xff] %v8746_v2  ;;  %7781 = vmatpush.bf16.msra.mxu1 %v5975_v10  ;;  %v6167_v40 = vpack.c.bf16 %v4775_v17, %v4751_v28  ;;  %v3935_v47 = vcvt.s32.f32 %v1631_v42  ;;  %v2015_v61 = vunpack.c.0.s8 %v10333_v63  ;;  %v2039_v30 = vunpack.c.1.s8 %v10333_v63  ;;  %v10356_v17 = vld [vmem:[#allocation2 + $0x688] sm:$0xff] }
 0x48c   :  { %v6359_v25 = vpack.c.bf16 %v5159_v27, %v5135_v59  ;;  %v3959_v43 = vcvt.s32.f32 %v1655_v48  ;;  %v2399_v41 = vunpack.c.0.s8 %v527_v33  ;;  %v2423_v24 = vunpack.c.1.s8 %v527_v33 }
 0x48d   :  { %7794 = vmatpush.bf16.msra.mxu2 %v6167_v40  ;;  %v4319_v34 = vcvt.s32.f32 %v2015_v61  ;;  %v4343_v35 = vcvt.s32.f32 %v2039_v30  ;;  %v2783_v22 = vunpack.c.0.s8 %v623_v46  ;;  %v2807_v29 = vunpack.c.1.s8 %v623_v46  ;;  %v383_v61 = vld [vmem:[#allocation2 + $0x988] sm:$0xff]  ;;  %v10358_v30 = vpop.f32.mrf.mxu3 }
 0x48e   :  { %7807 = vmatpush.bf16.msra.mxu3 %v6359_v25  ;;  %v5759_v23 = vpack.c.bf16 %v3959_v43, %v3935_v47  ;;  %v4703_v52 = vcvt.s32.f32 %v2399_v41  ;;  %v4727_v26 = vcvt.s32.f32 %v2423_v24  ;;  %v1583_v62 = vunpack.c.2.s8 %v311_v53 }
 0x48f   :  { %v5951_v32 = vpack.c.bf16 %v4343_v35, %v4319_v34  ;;  %v5087_v57 = vcvt.s32.f32 %v2783_v22  ;;  %v5111_v63 = vcvt.s32.f32 %v2807_v29  ;;  %v1607_v21 = vunpack.c.3.s8 %v311_v53  ;;  %v479_v34 = vld [vmem:[#allocation2 + $0xc88] sm:$0xff] }
 0x490   :  { %7769 = vmatpush.bf16.msra.mxu0 %v5759_v23  ;;  %v6143_v60 = vpack.c.bf16 %v4727_v26, %v4703_v52  ;;  %v3887_v33 = vcvt.s32.f32 %v1583_v62  ;;  %v1967_v51 = vunpack.c.2.s8 %v407_v31  ;;  %v1991_v44 = vunpack.c.3.s8 %v407_v31  ;;  %v575_v23 = vld [vmem:[#allocation2 + $0xf88] sm:$0xff] }
 0x491   :  { %7782 = vmatpush.bf16.msra.mxu1 %v5951_v32  ;;  %v6335_v54 = vpack.c.bf16 %v5111_v63, %v5087_v57  ;;  %v3911_v9 = vcvt.s32.f32 %v1607_v21  ;;  %v2351_v20 = vunpack.c.2.s8 %v503_v39  ;;  %v2375_v1 = vunpack.c.3.s8 %v503_v39  ;;  %v7543_v32 = vpop.f32.mrf.mxu2 }
 0x492   :  { %7795 = vmatpush.bf16.msra.mxu2 %v6143_v60  ;;  %v4271_v38 = vcvt.s32.f32 %v1967_v51  ;;  %v4295_v46 = vcvt.s32.f32 %v1991_v44  ;;  %v2735_v45 = vunpack.c.2.s8 %v599_v37  ;;  %v2759_v6 = vunpack.c.3.s8 %v599_v37 }
 0x493   :  { %7808 = vmatpush.bf16.msra.mxu3 %v6335_v54  ;;  %v5735_v50 = vpack.c.bf16 %v3911_v9, %v3887_v33  ;;  %v4655_v15 = vcvt.s32.f32 %v2351_v20  ;;  %v4679_v3 = vcvt.s32.f32 %v2375_v1  ;;  %v1535_v55 = vunpack.c.0.s8 %v311_v53  ;;  %v10364_v54 = vpop.f32.mrf.mxu1 }
 0x494   :  { %v5927_v4 = vpack.c.bf16 %v4295_v46, %v4271_v38  ;;  %v5039_v13 = vcvt.s32.f32 %v2735_v45  ;;  %v5063_v56 = vcvt.s32.f32 %v2759_v6  ;;  %v1559_v28 = vunpack.c.1.s8 %v311_v53  ;;  %v10360_v53 = vpop.f32.mrf.mxu0 }
 0x495   :  { %7770 = vmatpush.bf16.msra.mxu0 %v5735_v50  ;;  %v6119_v18 = vpack.c.bf16 %v4679_v3, %v4655_v15  ;;  %v3839_v8 = vcvt.s32.f32 %v1535_v55  ;;  %v1919_v12 = vunpack.c.0.s8 %v407_v31  ;;  %v1943_v10 = vunpack.c.1.s8 %v407_v31 }
 0x496   :  { %7783 = vmatpush.bf16.msra.mxu1 %v5927_v4  ;;  %v6311_v42 = vpack.c.bf16 %v5063_v56, %v5039_v13  ;;  %v3863_v2 = vcvt.s32.f32 %v1559_v28  ;;  %v2303_v59 = vunpack.c.0.s8 %v503_v39  ;;  %v2327_v27 = vunpack.c.1.s8 %v503_v39  ;;  %v168_v13 = vld [vmem:[#allocation2 + $0x2d0] sm:$0xff]  ;;  %v7556_v56 = vpop.f32.mrf.mxu3 }
 0x497   :  { %7796 = vmatpush.bf16.msra.mxu2 %v6119_v18  ;;  %v4223_v48 = vcvt.s32.f32 %v1919_v12  ;;  %v4247_v49 = vcvt.s32.f32 %v1943_v10  ;;  %v2687_v40 = vunpack.c.0.s8 %v599_v37  ;;  %v2711_v47 = vunpack.c.1.s8 %v599_v37 }
 0x498   :  { %7809 = vmatpush.bf16.msra.mxu3 %v6311_v42  ;;  %v5711_v25 = vpack.c.bf16 %v3863_v2, %v3839_v8  ;;  %v4607_v43 = vcvt.s32.f32 %v2303_v59  ;;  %v4631_v41 = vcvt.s32.f32 %v2327_v27  ;;  %v1487_v24 = vunpack.c.2.s8 %v10356_v17  ;;  %v264_v59 = vld [vmem:[#allocation2 + $0x5d0] sm:$0xff] }
 0x499   :  { %v5903_v35 = vpack.c.bf16 %v4247_v49, %v4223_v48  ;;  %v4991_v22 = vcvt.s32.f32 %v2687_v40  ;;  %v5015_v29 = vcvt.s32.f32 %v2711_v47  ;;  %v1511_v31 = vunpack.c.3.s8 %v10356_v17  ;;  %v360_v40 = vld [vmem:[#allocation2 + $0x8d0] sm:$0xff] }
 0x49a   :  { %7771 = vmatpush.bf16.msra.mxu0 %v5711_v25  ;;  %v6095_v52 = vpack.c.bf16 %v4631_v41, %v4607_v43  ;;  %v3791_v26 = vcvt.s32.f32 %v1487_v24  ;;  %v1871_v62 = vunpack.c.2.s8 %v383_v61  ;;  %v1895_v39 = vunpack.c.3.s8 %v383_v61  ;;  %v456_v41 = vld [vmem:[#allocation2 + $0xbd0] sm:$0xff] }
 0x49b   :  { %7784 = vmatpush.bf16.msra.mxu1 %v5903_v35  ;;  %v6287_v57 = vpack.c.bf16 %v5015_v29, %v4991_v22  ;;  %v3815_v63 = vcvt.s32.f32 %v1511_v31  ;;  %v2255_v21 = vunpack.c.2.s8 %v479_v34  ;;  %v2279_v37 = vunpack.c.3.s8 %v479_v34  ;;  %v7582_v29 = vpop.f32.mrf.mxu1 }
 0x49c   :  { %7797 = vmatpush.bf16.msra.mxu2 %v6095_v52  ;;  %v4175_v60 = vcvt.s32.f32 %v1871_v62  ;;  %v4199_v33 = vcvt.s32.f32 %v1895_v39  ;;  %v2639_v51 = vunpack.c.2.s8 %v575_v23  ;;  %v2663_v44 = vunpack.c.3.s8 %v575_v23  ;;  %v7569_v28 = vpop.f32.mrf.mxu0 }
 0x49d   :  { %7810 = vmatpush.bf16.msra.mxu3 %v6287_v57  ;;  %v5687_v9 = vpack.c.bf16 %v3815_v63, %v3791_v26  ;;  %v4559_v20 = vcvt.s32.f32 %v2255_v21  ;;  %v4583_v1 = vcvt.s32.f32 %v2279_v37  ;;  %v10368_v38 = vadd.f32 %v10335_v58, %v10321_v19 }
 0x49e   :  { %v5879_v46 = vpack.c.bf16 %v4199_v33, %v4175_v60  ;;  %v4943_v45 = vcvt.s32.f32 %v2639_v51  ;;  %v4967_v6 = vcvt.s32.f32 %v2663_v44  ;;  %v1439_v50 = vunpack.c.0.s8 %v10356_v17 }
 0x49f   :  { %7772 = vmatpush.bf16.msra.mxu0 %v5687_v9  ;;  %v6071_v15 = vpack.c.bf16 %v4583_v1, %v4559_v20  ;;  %v1463_v3 = vunpack.c.1.s8 %v10356_v17  ;;  %v1823_v55 = vunpack.c.0.s8 %v383_v61  ;;  %v1847_v4 = vunpack.c.1.s8 %v383_v61 }
 0x4a0   :  { %7785 = vmatpush.bf16.msra.mxu1 %v5879_v46  ;;  %v6263_v18 = vpack.c.bf16 %v4967_v6, %v4943_v45  ;;  %v3743_v8 = vcvt.s32.f32 %v1439_v50  ;;  %v2207_v12 = vunpack.c.0.s8 %v479_v34  ;;  %v2231_v19 = vunpack.c.1.s8 %v479_v34 }
 0x4a1   :  { %7798 = vmatpush.bf16.msra.mxu2 %v6071_v15  ;;  %v3767_v58 = vcvt.s32.f32 %v1463_v3  ;;  %v4127_v10 = vcvt.s32.f32 %v1823_v55  ;;  %v4151_v42 = vcvt.s32.f32 %v1847_v4  ;;  %v2591_v2 = vunpack.c.0.s8 %v575_v23  ;;  %v144_v55 = vld [vmem:[#allocation2 + $0x210] sm:$0xff] }
 0x4a2   :  { %7811 = vmatpush.bf16.msra.mxu3 %v6263_v18  ;;  %v4511_v27 = vcvt.s32.f32 %v2207_v12  ;;  %v4535_v48 = vcvt.s32.f32 %v2231_v19  ;;  %v2615_v17 = vunpack.c.1.s8 %v575_v23  ;;  %v1008_v49 = vunpack.c.2.s8 %v168_v13  ;;  %v240_v18 = vld [vmem:[#allocation2 + $0x510] sm:$0xff] }
 0x4a3   :  { %v5663_v47 = vpack.c.bf16 %v3767_v58, %v3743_v8  ;;  %v5855_v61 = vpack.c.bf16 %v4151_v42, %v4127_v10  ;;  %v4895_v25 = vcvt.s32.f32 %v2591_v2  ;;  %v1032_v43 = vunpack.c.3.s8 %v168_v13  ;;  %v336_v10 = vld [vmem:[#allocation2 + $0x810] sm:$0xff] }
 0x4a4   :  { %v6047_v24 = vpack.c.bf16 %v4535_v48, %v4511_v27  ;;  %v4919_v35 = vcvt.s32.f32 %v2615_v17  ;;  %v3312_v34 = vcvt.s32.f32 %v1008_v49  ;;  %v1392_v22 = vunpack.c.2.s8 %v264_v59 }
 0x4a5   :  { %7773 = vmatpush.bf16.msra.mxu0 %v5663_v47  ;;  %7786 = vmatpush.bf16.msra.mxu1 %v5855_v61  ;;  %v3336_v31 = vcvt.s32.f32 %v1032_v43  ;;  %v1416_v52 = vunpack.c.3.s8 %v264_v59  ;;  %v1776_v26 = vunpack.c.2.s8 %v360_v40  ;;  %v1800_v62 = vunpack.c.3.s8 %v360_v40  ;;  %v432_v47 = vld [vmem:[#allocation2 + $0xb10] sm:$0xff] }
 0x4a6   :  { %7799 = vmatpush.bf16.msra.mxu2 %v6047_v24  ;;  %v6239_v23 = vpack.c.bf16 %v4919_v35, %v4895_v25  ;;  %v3696_v39 = vcvt.s32.f32 %v1392_v22  ;;  %v2160_v32 = vunpack.c.2.s8 %v456_v41  ;;  %v2184_v57 = vunpack.c.3.s8 %v456_v41 }
 0x4a7   :  { %v5448_v63 = vpack.c.bf16 %v3336_v31, %v3312_v34  ;;  %v3720_v21 = vcvt.s32.f32 %v1416_v52  ;;  %v4080_v37 = vcvt.s32.f32 %v1776_v26  ;;  %v4104_v60 = vcvt.s32.f32 %v1800_v62 }
 0x4a8   :  { %7812 = vmatpush.bf16.msra.mxu3 %v6239_v23  ;;  %v4464_v33 = vcvt.s32.f32 %v2160_v32  ;;  %v4488_v51 = vcvt.s32.f32 %v2184_v57  ;;  %7774 = vmatmul.bf16.vlgmr.msra.gmra.mxu0 %v9178_v0  ;;  %v960_v44 = vunpack.c.0.s8 %v168_v13  ;;  %v984_v9 = vunpack.c.1.s8 %v168_v13 }
 0x4a9   :  { %7818 = vmatpush.bf16.msrb.mxu0 %v5448_v63  ;;  %v5640_v20 = vpack.c.bf16 %v3720_v21, %v3696_v39  ;;  %v5832_v1 = vpack.c.bf16 %v4104_v60, %v4080_v37  ;;  %7800 = vmatmul.bf16.vlgmr.msra.gmra.mxu2 %v9194_v11  ;;  %v1344_v46 = vunpack.c.0.s8 %v264_v59  ;;  %v1368_v45 = vunpack.c.1.s8 %v264_v59 }
 0x4aa   :  { %v6024_v6 = vpack.c.bf16 %v4488_v51, %v4464_v33  ;;  %v3264_v50 = vcvt.s32.f32 %v960_v44  ;;  %v3288_v15 = vcvt.s32.f32 %v984_v9  ;;  %v1728_v3 = vunpack.c.0.s8 %v360_v40  ;;  %7787 = vmatmul.bf16.vlgmr.msra.gmra.mxu1 %v9180_v5 }
 0x4ab   :  { %7831 = vmatpush.bf16.msrb.mxu1 %v5640_v20  ;;  %7844 = vmatpush.bf16.msrb.mxu2 %v5832_v1  ;;  %v3648_v4 = vcvt.s32.f32 %v1344_v46  ;;  %v3672_v56 = vcvt.s32.f32 %v1368_v45  ;;  %v1752_v28 = vunpack.c.1.s8 %v360_v40  ;;  %v2112_v13 = vunpack.c.0.s8 %v456_v41 }
 0x4ac   :  { %7857 = vmatpush.bf16.msrb.mxu3 %v6024_v6  ;;  %v5424_v8 = vpack.c.bf16 %v3288_v15, %v3264_v50  ;;  %v4032_v12 = vcvt.s32.f32 %v1728_v3  ;;  %v2136_v19 = vunpack.c.1.s8 %v456_v41  ;;  %v7542_v58 = vadd.f32 %v10354_v7, %v10368_v38  ;;  %v120_v6 = vld [vmem:[#allocation2 + $0x150] sm:$0xff] }
 0x4ad   :  { %7813 = vmatmul.bf16.vlgmr.msra.gmra.mxu3 %v9198_v16  ;;  %v5616_v42 = vpack.c.bf16 %v3672_v56, %v3648_v4  ;;  %v4056_v2 = vcvt.s32.f32 %v1752_v28  ;;  %v4416_v59 = vcvt.s32.f32 %v2112_v13  ;;  %v912_v27 = vunpack.c.2.s8 %v144_v55  ;;  %v10381_v13 = vld [vmem:[#allocation4 + $0x8] sm:$0xff] }
 0x4ae   :  { %7819 = vmatpush.bf16.msrb.mxu0 %v5424_v8  ;;  %v4440_v48 = vcvt.s32.f32 %v2136_v19  ;;  %v936_v17 = vunpack.c.3.s8 %v144_v55  ;;  %v1296_v49 = vunpack.c.2.s8 %v240_v18  ;;  %v1320_v40 = vunpack.c.3.s8 %v240_v18  ;;  %v312_v8 = vld [vmem:[#allocation2 + $0x750] sm:$0xff]  ;;  %v10384_v19 = vld [vmem:[#allocation6 + $0x8] sm:$0xff] }
 0x4af   :  { %7832 = vmatpush.bf16.msrb.mxu1 %v5616_v42  ;;  %v5808_v61 = vpack.c.bf16 %v4056_v2, %v4032_v12  ;;  %v3216_v25 = vcvt.s32.f32 %v912_v27  ;;  %v1680_v43 = vunpack.c.2.s8 %v336_v10  ;;  %v1704_v41 = vunpack.c.3.s8 %v336_v10  ;;  %v408_v2 = vld [vmem:[#allocation2 + $0xa50] sm:$0xff] }
 0x4b0   :  { %v6000_v24 = vpack.c.bf16 %v4440_v48, %v4416_v59  ;;  %v3240_v7 = vcvt.s32.f32 %v936_v17  ;;  %v3600_v38 = vcvt.s32.f32 %v1296_v49  ;;  %v3624_v35 = vcvt.s32.f32 %v1320_v40 }
 0x4b1   :  { %7845 = vmatpush.bf16.msrb.mxu2 %v5808_v61  ;;  %v3984_v34 = vcvt.s32.f32 %v1680_v43  ;;  %v4008_v22 = vcvt.s32.f32 %v1704_v41  ;;  %v2064_v29 = vunpack.c.2.s8 %v432_v47  ;;  %v2088_v31 = vunpack.c.3.s8 %v432_v47  ;;  %v10387_v61 = vpop.f32.mrf.mxu2 }
 0x4b2   :  { %7858 = vmatpush.bf16.msrb.mxu3 %v6000_v24  ;;  %v5400_v52 = vpack.c.bf16 %v3240_v7, %v3216_v25  ;;  %v5592_v26 = vpack.c.bf16 %v3624_v35, %v3600_v38  ;;  %v7555_v62 = vadd.f32 %v10358_v30, %v7542_v58  ;;  %v864_v23 = vunpack.c.0.s8 %v144_v55  ;;  %v10389_v7 = vpop.f32.mrf.mxu3 }
 0x4b3   :  { %v5784_v39 = vpack.c.bf16 %v4008_v22, %v3984_v34  ;;  %v4368_v32 = vcvt.s32.f32 %v2064_v29  ;;  %v4392_v57 = vcvt.s32.f32 %v2088_v31  ;;  %v888_v63 = vunpack.c.1.s8 %v144_v55 }
 0x4b4   :  { %7820 = vmatpush.bf16.msrb.mxu0 %v5400_v52  ;;  %7833 = vmatpush.bf16.msrb.mxu1 %v5592_v26  ;;  %v7568_v21 = vadd.f32 %v10360_v53, %v7555_v62  ;;  %v3168_v37 = vcvt.s32.f32 %v864_v23  ;;  %v1248_v60 = vunpack.c.0.s8 %v240_v18  ;;  %v1272_v33 = vunpack.c.1.s8 %v240_v18  ;;  %v216_v53 = vld [vmem:[#allocation2 + $0x450] sm:$0xff] }
 0x4b5   :  { %7846 = vmatpush.bf16.msrb.mxu2 %v5784_v39  ;;  %v5976_v51 = vpack.c.bf16 %v4392_v57, %v4368_v32  ;;  %v3192_v44 = vcvt.s32.f32 %v888_v63  ;;  %v1632_v9 = vunpack.c.0.s8 %v336_v10  ;;  %v1656_v20 = vunpack.c.1.s8 %v336_v10 }
 0x4b6   :  { %v3552_v1 = vcvt.s32.f32 %v1248_v60  ;;  %v3576_v46 = vcvt.s32.f32 %v1272_v33  ;;  %v2016_v30 = vunpack.c.0.s8 %v432_v47  ;;  %v2040_v45 = vunpack.c.1.s8 %v432_v47  ;;  %v96_v60 = vld [vmem:[#allocation2 + $0x90] sm:$0xff] }
 0x4b7   :  { %7859 = vmatpush.bf16.msrb.mxu3 %v5976_v51  ;;  %v5376_v50 = vpack.c.bf16 %v3192_v44, %v3168_v37  ;;  %v3936_v15 = vcvt.s32.f32 %v1632_v9  ;;  %v3960_v3 = vcvt.s32.f32 %v1656_v20  ;;  %v7581_v55 = vadd.f32 %v10364_v54, %v7568_v21  ;;  %v10391_v20 = vld [vmem:[#allocation2 + $0x390] sm:$0xff] }
 0x4b8   :  { %v5568_v4 = vpack.c.bf16 %v3576_v46, %v3552_v1  ;;  %v4320_v56 = vcvt.s32.f32 %v2016_v30  ;;  %v4344_v28 = vcvt.s32.f32 %v2040_v45  ;;  %v8306_v18 = vperm.slane %v10381_v13, 6 }
 0x4b9   :  { %7821 = vmatpush.bf16.msrb.mxu0 %v5376_v50  ;;  %v5760_v12 = vpack.c.bf16 %v3960_v3, %v3936_v15  ;;  %v8384_v58 = vperm.slane %v10384_v19, 6  ;;  %v816_v10 = vunpack.c.2.s8 %v120_v6  ;;  %v840_v42 = vunpack.c.3.s8 %v120_v6  ;;  %v288_v3 = vld [vmem:[#allocation2 + $0x690] sm:$0xff] }
 0x4ba   :  { %7834 = vmatpush.bf16.msrb.mxu1 %v5568_v4  ;;  %v5952_v54 = vpack.c.bf16 %v4344_v28, %v4320_v56  ;;  %v8354_v59 = vmul.f32 %v8306_v18, %v7581_v55  ;;  %v1200_v27 = vunpack.c.2.s8 %v216_v53  ;;  %v1224_v48 = vunpack.c.3.s8 %v216_v53  ;;  %v7595_v55 = vpop.f32.mrf.mxu2  ;;  %v384_v18 = vld [vmem:[#allocation2 + $0x990] sm:$0xff] }
 0x4bb   :  { %7847 = vmatpush.bf16.msrb.mxu2 %v5760_v12  ;;  %v3120_v17 = vcvt.s32.f32 %v816_v10  ;;  %v3144_v49 = vcvt.s32.f32 %v840_v42  ;;  %v1584_v40 = vunpack.c.2.s8 %v312_v8  ;;  %v1608_v47 = vunpack.c.3.s8 %v312_v8 }
 0x4bc   :  { %7860 = vmatpush.bf16.msrb.mxu3 %v5952_v54  ;;  %v8432_v25 = vadd.f32 %v8384_v58, %v8354_v59  ;;  %v3504_v43 = vcvt.s32.f32 %v1200_v27  ;;  %v3528_v41 = vcvt.s32.f32 %v1224_v48  ;;  %v1968_v24 = vunpack.c.2.s8 %v408_v2 }
 0x4bd   :  { %v5352_v38 = vpack.c.bf16 %v3144_v49, %v3120_v17  ;;  %v3888_v35 = vcvt.s32.f32 %v1584_v40  ;;  %v3912_v34 = vcvt.s32.f32 %v1608_v47  ;;  %v1992_v22 = vunpack.c.3.s8 %v408_v2 }
 0x4be   :  { %v8456_v29 = vsub.f32 0.0, %v8432_v25  ;;  %v5544_v31 = vpack.c.bf16 %v3528_v41, %v3504_v43  ;;  %v4272_v52 = vcvt.s32.f32 %v1968_v24  ;;  %v768_v26 = vunpack.c.0.s8 %v120_v6 }
 0x4bf   :  { %7822 = vmatpush.bf16.msrb.mxu0 %v5352_v38  ;;  %v5736_v62 = vpack.c.bf16 %v3912_v34, %v3888_v35  ;;  %v4296_v23 = vcvt.s32.f32 %v1992_v22  ;;  %v792_v39 = vunpack.c.1.s8 %v120_v6  ;;  %v1152_v32 = vunpack.c.0.s8 %v216_v53 }
 0x4c0   :  { %v8494_v57 = vmul.f32 1.442695, %v8456_v29  ;;  %7835 = vmatpush.bf16.msrb.mxu1 %v5544_v31  ;;  %v3072_v63 = vcvt.s32.f32 %v768_v26  ;;  %v1176_v21 = vunpack.c.1.s8 %v216_v53  ;;  %v1536_v37 = vunpack.c.0.s8 %v312_v8 }
 0x4c1   :  { %7848 = vmatpush.bf16.msrb.mxu2 %v5736_v62  ;;  %v5928_v33 = vpack.c.bf16 %v4296_v23, %v4272_v52  ;;  %v3096_v51 = vcvt.s32.f32 %v792_v39  ;;  %v3456_v44 = vcvt.s32.f32 %v1152_v32  ;;  %v1560_v9 = vunpack.c.1.s8 %v312_v8  ;;  %v7608_v8 = vpop.f32.mrf.mxu3  ;;  %v10398_v62 = vpop.f32.mrf.mxu0 }
 0x4c2   :  { %8989 = vpow2.f32 %v8494_v57  ;;  %v3480_v1 = vcvt.s32.f32 %v1176_v21  ;;  %v3840_v46 = vcvt.s32.f32 %v1536_v37  ;;  %v1920_v30 = vunpack.c.0.s8 %v408_v2  ;;  %v10400_v23 = vpop.f32.mrf.mxu1  ;;  %v10405_v37 = vld [vmem:[#allocation2 + $0xed0] sm:$0xff] }
 0x4c3   :  { %7861 = vmatpush.bf16.msrb.mxu3 %v5928_v33  ;;  %v5328_v45 = vpack.c.bf16 %v3096_v51, %v3072_v63  ;;  %v3864_v6 = vcvt.s32.f32 %v1560_v9  ;;  %v1944_v50 = vunpack.c.1.s8 %v408_v2  ;;  %v720_v15 = vunpack.c.2.s8 %v96_v60  ;;  %v10410_v9 = vld [vmem:[#allocation2 + $0x11d0] sm:$0xff] }
 0x4c4   :  { %v5520_v53 = vpack.c.bf16 %v3480_v1, %v3456_v44  ;;  %v4224_v4 = vcvt.s32.f32 %v1920_v30  ;;  %v744_v56 = vunpack.c.3.s8 %v96_v60  ;;  %v1104_v28 = vunpack.c.2.s8 %v10391_v20 }
 0x4c5   :  { %7823 = vmatpush.bf16.msrb.mxu0 %v5328_v45  ;;  %v5712_v12 = vpack.c.bf16 %v3864_v6, %v3840_v46  ;;  %v4248_v58 = vcvt.s32.f32 %v1944_v50  ;;  %v3024_v10 = vcvt.s32.f32 %v720_v15  ;;  %v1128_v42 = vunpack.c.3.s8 %v10391_v20 }
 0x4c6   :  { %7836 = vmatpush.bf16.msrb.mxu1 %v5520_v53  ;;  %v3048_v54 = vcvt.s32.f32 %v744_v56  ;;  %v3408_v59 = vcvt.s32.f32 %v1104_v28  ;;  %v1488_v2 = vunpack.c.2.s8 %v288_v3  ;;  %v1512_v27 = vunpack.c.3.s8 %v288_v3  ;;  %v10416_v56 = vld [vmem:[#allocation2 + $0x2d8] sm:$0xff]  ;;  %v10418_v28 = vpop.f32.mrf.mxu2 }
 0x4c7   :  { %7849 = vmatpush.bf16.msrb.mxu2 %v5712_v12  ;;  %v5904_v48 = vpack.c.bf16 %v4248_v58, %v4224_v4  ;;  %v3432_v17 = vcvt.s32.f32 %v1128_v42  ;;  %v1872_v49 = vunpack.c.2.s8 %v384_v18  ;;  %v1896_v40 = vunpack.c.3.s8 %v384_v18 }
 0x4c8   :  { %v8990_v47 = vpop.eup %8989  ;;  %v5304_v25 = vpack.c.bf16 %v3048_v54, %v3024_v10  ;;  %v3792_v43 = vcvt.s32.f32 %v1488_v2  ;;  %v3816_v41 = vcvt.s32.f32 %v1512_v27  ;;  %v672_v24 = vunpack.c.0.s8 %v96_v60  ;;  %v10425_v54 = vld [vmem:[#allocation2 + $0x5d8] sm:$0xff] }
 0x4c9   :  { %v10395_v38 = vadd.f32 1.0, %v8990_v47  ;;  %7862 = vmatpush.bf16.msrb.mxu3 %v5904_v48  ;;  %v5496_v35 = vpack.c.bf16 %v3432_v17, %v3408_v59  ;;  %v4176_v34 = vcvt.s32.f32 %v1872_v49  ;;  %v4200_v22 = vcvt.s32.f32 %v1896_v40  ;;  %v10420_v8 = vpop.f32.mrf.mxu3  ;;  %v7621_v17 = vpop.f32.mrf.mxu0 }
 0x4ca   :  { %7824 = vmatpush.bf16.msrb.mxu0 %v5304_v25  ;;  %v5688_v29 = vpack.c.bf16 %v3816_v41, %v3792_v43  ;;  %v696_v31 = vunpack.c.1.s8 %v96_v60  ;;  %v2976_v52 = vcvt.s32.f32 %v672_v24  ;;  %v1056_v26 = vunpack.c.0.s8 %v10391_v20  ;;  %v7634_v49 = vpop.f32.mrf.mxu1 }
 0x4cb   :  { %8991 = vrcp.f32 %v10395_v38  ;;  %v8759_v39 = vand.u32 2147483648, %v10395_v38  ;;  %7837 = vmatpush.bf16.msrb.mxu1 %v5496_v35  ;;  %v5880_v32 = vpack.c.bf16 %v4200_v22, %v4176_v34  ;;  %v1080_v63 = vunpack.c.1.s8 %v10391_v20 }
 0x4cc   :  { %7850 = vmatpush.bf16.msrb.mxu2 %v5688_v29  ;;  %v3000_v57 = vcvt.s32.f32 %v696_v31  ;;  %v3360_v21 = vcvt.s32.f32 %v1056_v26  ;;  %v8757_v60 = vand.u32 2147483647, %v10395_v38  ;;  %v1440_v51 = vunpack.c.0.s8 %v288_v3 }
 0x4cd   :  { %v10408_v33 = vor.u32 1.1754944e-38, %v8759_v39  ;;  %v1464_v44 = vunpack.c.1.s8 %v288_v3  ;;  %vm8753_vm8 = vweird.f32 %v10395_v38  ;;  %7863 = vmatpush.bf16.msrb.mxu3 %v5880_v32  ;;  %v3384_v46 = vcvt.s32.f32 %v1080_v63 }
 0x4ce   :  { %v5280_v1 = vpack.c.bf16 %v3000_v57, %v2976_v52  ;;  %v1824_v30 = vunpack.c.0.s8 %v384_v18  ;;  %v1848_v45 = vunpack.c.1.s8 %v384_v18  ;;  %v3744_v6 = vcvt.s32.f32 %v1440_v51 }
 0x4cf   :  { %v3768_v20 = vcvt.s32.f32 %v1464_v44  ;;  %v2544_v50 = vunpack.c.2.s8 %v10405_v37  ;;  %v2568_v15 = vunpack.c.3.s8 %v10405_v37  ;;  %v5472_v55 = vpack.c.bf16 %v3384_v46, %v3360_v21  ;;  %v7647_v46 = vpop.f32.mrf.mxu2 }
 0x4d0   :  { %7825 = vmatpush.bf16.msrb.mxu0 %v5280_v1  ;;  %v4128_v53 = vcvt.s32.f32 %v1824_v30  ;;  %v4152_v4 = vcvt.s32.f32 %v1848_v45  ;;  %v2928_v3 = vunpack.c.2.s8 %v10410_v9  ;;  %v2952_v42 = vunpack.c.3.s8 %v10410_v9 }
 0x4d1   :  { %v10422_v12 = vpop.eup %8991  ;;  %v5664_v18 = vpack.c.bf16 %v3768_v20, %v3744_v6  ;;  %v4848_v58 = vcvt.s32.f32 %v2544_v50  ;;  %v4872_v10 = vcvt.s32.f32 %v2568_v15  ;;  %vm10430_vm10 = vcmp.eq.f32.partialorder %v8757_v60, 8.507059e+37  ;;  %7838 = vmatpush.bf16.msrb.mxu1 %v5472_v55  ;;  %v7660_v30 = vpop.f32.mrf.mxu3  ;;  %v528_v20 = vld [vmem:[#allocation2 + $0xe10] sm:$0xff] }
 0x4d2   :  { %v8749_v59 = vmul.f32 %v10422_v12, %v10395_v38  ;;  %vm8754_vm9 = vweird.f32 %v10422_v12  ;;  %v5856_v27 = vpack.c.bf16 %v4152_v4, %v4128_v53  ;;  %v5232_v48 = vcvt.s32.f32 %v2928_v3  ;;  %v624_v50 = vld [vmem:[#allocation2 + $0x1110] sm:$0xff]  ;;  %v145_v3 = vld [vmem:[#allocation2 + $0x218] sm:$0xff] }
 0x4d3   :  { %7851 = vmatpush.bf16.msrb.mxu2 %v5664_v18  ;;  %v6216_v40 = vpack.c.bf16 %v4872_v10, %v4848_v58  ;;  %v5256_v47 = vcvt.s32.f32 %v2952_v42  ;;  %v1009_v25 = vunpack.c.2.s8 %v10416_v56  ;;  %v1033_v43 = vunpack.c.3.s8 %v10416_v56  ;;  %7826 = vmatmul.bf16.vlgmr.msrb.gmra.mxu0 %v9163_v14  ;;  %vm8755_vm11 = vmor %vm8753_vm8, %vm8754_vm9 }
 0x4d4   :  { %v8750_v41 = vsub.f32 1.0, %v8749_v59  ;;  %7864 = vmatpush.bf16.msrb.mxu3 %v5856_v27  ;;  %v1393_v24 = vunpack.c.2.s8 %v10425_v54  ;;  %v1417_v35 = vunpack.c.3.s8 %v10425_v54  ;;  %v10441_v34 = vadd.f32 %v10389_v7, %v10387_v61  ;;  %7839 = vmatmul.bf16.vlgmr.msrb.gmra.mxu1 %v9169_v36  ;;  %v241_v27 = vld [vmem:[#allocation2 + $0x518] sm:$0xff] }
 0x4d5   :  { %7870 = vmatpush.bf16.msra.mxu0 %v6216_v40  ;;  %v6408_v22 = vpack.c.bf16 %v5256_v47, %v5232_v48  ;;  %v3313_v29 = vcvt.s32.f32 %v1009_v25  ;;  %v3337_v31 = vcvt.s32.f32 %v1033_v43  ;;  %v2496_v52 = vunpack.c.0.s8 %v10405_v37 }
 0x4d6   :  { %v8751_v26 = vmul.f32 %v10422_v12, %v8750_v41  ;;  %v3697_v39 = vcvt.s32.f32 %v1393_v24  ;;  %v3721_v32 = vcvt.s32.f32 %v1417_v35  ;;  %v2520_v57 = vunpack.c.1.s8 %v10405_v37  ;;  %7852 = vmatmul.bf16.vlgmr.msrb.gmra.mxu2 %v9178_v0 }
 0x4d7   :  { %7883 = vmatpush.bf16.msra.mxu1 %v6408_v22  ;;  %v5449_v63 = vpack.c.bf16 %v3337_v31, %v3313_v29  ;;  %v4800_v61 = vcvt.s32.f32 %v2496_v52  ;;  %v2880_v7 = vunpack.c.0.s8 %v10410_v9  ;;  %v2904_v21 = vunpack.c.1.s8 %v10410_v9  ;;  %7865 = vmatmul.bf16.vlgmr.msrb.gmra.mxu3 %v9180_v5 }
 0x4d8   :  { %v8752_v60 = vadd.f32 %v10422_v12, %v8751_v26  ;;  %v5641_v51 = vpack.c.bf16 %v3721_v32, %v3697_v39  ;;  %v4824_v44 = vcvt.s32.f32 %v2520_v57  ;;  %v961_v1 = vunpack.c.0.s8 %v10416_v56 }
 0x4d9   :  { %7896 = vmatpush.bf16.msra.mxu2 %v5449_v63  ;;  %v5184_v37 = vcvt.s32.f32 %v2880_v7  ;;  %v5208_v45 = vcvt.s32.f32 %v2904_v21  ;;  %v985_v9 = vunpack.c.1.s8 %v10416_v56  ;;  %v1345_v6 = vunpack.c.0.s8 %v10425_v54 }
 0x4da   :  { %v8756_v15 = vsel %vm8755_vm11, %v10422_v12, %v8752_v60  ;;  %7909 = vmatpush.bf16.msra.mxu3 %v5641_v51  ;;  %v6192_v55 = vpack.c.bf16 %v4824_v44, %v4800_v61  ;;  %v3265_v53 = vcvt.s32.f32 %v961_v1  ;;  %v1369_v4 = vunpack.c.1.s8 %v10425_v54  ;;  %v504_v1 = vld [vmem:[#allocation2 + $0xd50] sm:$0xff] }
 0x4db   :  { %v8761_v38 = vsel %vm10430_vm10, %v10408_v33, %v8756_v15  ;;  %v6384_v18 = vpack.c.bf16 %v5208_v45, %v5184_v37  ;;  %v3289_v58 = vcvt.s32.f32 %v985_v9  ;;  %v3649_v10 = vcvt.s32.f32 %v1345_v6  ;;  %v600_v9 = vld [vmem:[#allocation2 + $0x1050] sm:$0xff] }
 0x4dc   :  { %8912 = vst [vmem:[%s10886_s4 + $0x70] sm:$0xff] %v8761_v38  ;;  %7871 = vmatpush.bf16.msra.mxu0 %v6192_v55  ;;  %v3673_v56 = vcvt.s32.f32 %v1369_v4  ;;  %v2448_v12 = vunpack.c.2.s8 %v528_v20  ;;  %v2472_v42 = vunpack.c.3.s8 %v528_v20  ;;  %v2832_v59 = vunpack.c.2.s8 %v624_v50 }
 0x4dd   :  { %7884 = vmatpush.bf16.msra.mxu1 %v6384_v18  ;;  %v5425_v54 = vpack.c.bf16 %v3289_v58, %v3265_v53  ;;  %v2856_v48 = vunpack.c.3.s8 %v624_v50  ;;  %v913_v17 = vunpack.c.2.s8 %v145_v3  ;;  %v937_v49 = vunpack.c.3.s8 %v145_v3  ;;  %v121_v53 = vld [vmem:[#allocation2 + $0x158] sm:$0xff] }
 0x4de   :  { %v5617_v2 = vpack.c.bf16 %v3673_v56, %v3649_v10  ;;  %v4752_v33 = vcvt.s32.f32 %v2448_v12  ;;  %v4776_v40 = vcvt.s32.f32 %v2472_v42  ;;  %v5136_v47 = vcvt.s32.f32 %v2832_v59  ;;  %v217_v18 = vld [vmem:[#allocation2 + $0x458] sm:$0xff] }
 0x4df   :  { %7897 = vmatpush.bf16.msra.mxu2 %v5425_v54  ;;  %v5160_v25 = vcvt.s32.f32 %v2856_v48  ;;  %v3217_v43 = vcvt.s32.f32 %v913_v17  ;;  %v3241_v41 = vcvt.s32.f32 %v937_v49  ;;  %v1297_v24 = vunpack.c.2.s8 %v241_v27 }
 0x4e0   :  { %7910 = vmatpush.bf16.msra.mxu3 %v5617_v2  ;;  %v6168_v35 = vpack.c.bf16 %v4776_v40, %v4752_v33  ;;  %v1321_v22 = vunpack.c.3.s8 %v241_v27  ;;  %v2400_v29 = vunpack.c.0.s8 %v528_v20  ;;  %v2424_v31 = vunpack.c.1.s8 %v528_v20 }
 0x4e1   :  { %v6360_v52 = vpack.c.bf16 %v5160_v25, %v5136_v47  ;;  %v5401_v26 = vpack.c.bf16 %v3241_v41, %v3217_v43  ;;  %v3601_v39 = vcvt.s32.f32 %v1297_v24  ;;  %v2784_v32 = vunpack.c.0.s8 %v624_v50 }
 0x4e2   :  { %7872 = vmatpush.bf16.msra.mxu0 %v6168_v35  ;;  %v3625_v57 = vcvt.s32.f32 %v1321_v22  ;;  %v4704_v63 = vcvt.s32.f32 %v2400_v29  ;;  %v4728_v61 = vcvt.s32.f32 %v2424_v31  ;;  %v2808_v7 = vunpack.c.1.s8 %v624_v50 }
 0x4e3   :  { %7885 = vmatpush.bf16.msra.mxu1 %v6360_v52  ;;  %7898 = vmatpush.bf16.msra.mxu2 %v5401_v26  ;;  %v5088_v21 = vcvt.s32.f32 %v2784_v32  ;;  %v865_v60 = vunpack.c.0.s8 %v145_v3  ;;  %v889_v51 = vunpack.c.1.s8 %v145_v3  ;;  %v1249_v44 = vunpack.c.0.s8 %v241_v27 }
 0x4e4   :  { %v5593_v46 = vpack.c.bf16 %v3625_v57, %v3601_v39  ;;  %v6144_v30 = vpack.c.bf16 %v4728_v61, %v4704_v63  ;;  %v5112_v37 = vcvt.s32.f32 %v2808_v7  ;;  %v1273_v45 = vunpack.c.1.s8 %v241_v27  ;;  %v480_v63 = vld [vmem:[#allocation2 + $0xc90] sm:$0xff] }
 0x4e5   :  { %v3169_v6 = vcvt.s32.f32 %v865_v60  ;;  %v3193_v20 = vcvt.s32.f32 %v889_v51  ;;  %v3553_v15 = vcvt.s32.f32 %v1249_v44  ;;  %v7620_v55 = vadd.f32 %v10398_v62, %v10441_v34  ;;  %v576_v44 = vld [vmem:[#allocation2 + $0xf90] sm:$0xff] }
 0x4e6   :  { %7911 = vmatpush.bf16.msra.mxu3 %v5593_v46  ;;  %7873 = vmatpush.bf16.msra.mxu0 %v6144_v30  ;;  %v6336_v50 = vpack.c.bf16 %v5112_v37, %v5088_v21  ;;  %v3577_v4 = vcvt.s32.f32 %v1273_v45  ;;  %v2352_v38 = vunpack.c.2.s8 %v504_v1  ;;  %v2376_v3 = vunpack.c.3.s8 %v504_v1  ;;  %v97_v45 = vld [vmem:[#allocation2 + $0x98] sm:$0xff] }
 0x4e7   :  { %v5377_v58 = vpack.c.bf16 %v3193_v20, %v3169_v6  ;;  %v7633_v10 = vadd.f32 %v10400_v23, %v7620_v55  ;;  %v2736_v56 = vunpack.c.2.s8 %v600_v9  ;;  %v2760_v12 = vunpack.c.3.s8 %v600_v9  ;;  %v193_v55 = vld [vmem:[#allocation2 + $0x398] sm:$0xff] }
 0x4e8   :  { %7886 = vmatpush.bf16.msra.mxu1 %v6336_v50  ;;  %v5569_v42 = vpack.c.bf16 %v3577_v4, %v3553_v15  ;;  %v4656_v59 = vcvt.s32.f32 %v2352_v38  ;;  %v4680_v27 = vcvt.s32.f32 %v2376_v3  ;;  %v817_v54 = vunpack.c.2.s8 %v121_v53 }
 0x4e9   :  { %7899 = vmatpush.bf16.msra.mxu2 %v5377_v58  ;;  %v5040_v62 = vcvt.s32.f32 %v2736_v56  ;;  %v5064_v34 = vcvt.s32.f32 %v2760_v12  ;;  %v841_v48 = vunpack.c.3.s8 %v121_v53  ;;  %v1201_v17 = vunpack.c.2.s8 %v217_v18 }
 0x4ea   :  { %7912 = vmatpush.bf16.msra.mxu3 %v5569_v42  ;;  %v6120_v49 = vpack.c.bf16 %v4680_v27, %v4656_v59  ;;  %v3121_v2 = vcvt.s32.f32 %v817_v54  ;;  %v1225_v33 = vunpack.c.3.s8 %v217_v18  ;;  %v7646_v40 = vadd.f32 %v10418_v28, %v7633_v10 }
 0x4eb   :  { %v6312_v47 = vpack.c.bf16 %v5064_v34, %v5040_v62  ;;  %v3145_v23 = vcvt.s32.f32 %v841_v48  ;;  %v3505_v25 = vcvt.s32.f32 %v1201_v17  ;;  %v8307_v43 = vperm.slane %v10381_v13, 7 }
 0x4ec   :  { %7874 = vmatpush.bf16.msra.mxu0 %v6120_v49  ;;  %v3529_v41 = vcvt.s32.f32 %v1225_v33  ;;  %v7659_v24 = vadd.f32 %v10420_v8, %v7646_v40  ;;  %v8385_v35 = vperm.slane %v10384_v19, 7  ;;  %v2304_v22 = vunpack.c.0.s8 %v504_v1 }
 0x4ed   :  { %7887 = vmatpush.bf16.msra.mxu1 %v6312_v47  ;;  %v5353_v29 = vpack.c.bf16 %v3145_v23, %v3121_v2  ;;  %v2328_v31 = vunpack.c.1.s8 %v504_v1  ;;  %v2688_v52 = vunpack.c.0.s8 %v600_v9  ;;  %v2712_v26 = vunpack.c.1.s8 %v600_v9 }
 0x4ee   :  { %v5545_v39 = vpack.c.bf16 %v3529_v41, %v3505_v25  ;;  %v8355_v32 = vmul.f32 %v8307_v43, %v7659_v24  ;;  %v4608_v28 = vcvt.s32.f32 %v2304_v22  ;;  %v769_v57 = vunpack.c.0.s8 %v121_v53  ;;  %v361_v24 = vld [vmem:[#allocation2 + $0x8d8] sm:$0xff] }
 0x4ef   :  { %7900 = vmatpush.bf16.msra.mxu2 %v5353_v29  ;;  %v4632_v61 = vcvt.s32.f32 %v2328_v31  ;;  %v4992_v13 = vcvt.s32.f32 %v2688_v52  ;;  %v5016_v7 = vcvt.s32.f32 %v2712_v26  ;;  %v793_v21 = vunpack.c.1.s8 %v121_v53 }
 0x4f0   :  { %7913 = vmatpush.bf16.msra.mxu3 %v5545_v39  ;;  %v8433_v8 = vadd.f32 %v8385_v35, %v8355_v32  ;;  %v3073_v60 = vcvt.s32.f32 %v769_v57  ;;  %v1153_v19 = vunpack.c.0.s8 %v217_v18  ;;  %v1177_v51 = vunpack.c.1.s8 %v217_v18 }
 0x4f1   :  { %v6096_v46 = vpack.c.bf16 %v4632_v61, %v4608_v28  ;;  %v6288_v1 = vpack.c.bf16 %v5016_v7, %v4992_v13  ;;  %v3097_v30 = vcvt.s32.f32 %v793_v21  ;;  %v2256_v37 = vunpack.c.2.s8 %v480_v63  ;;  %v457_v28 = vld [vmem:[#allocation2 + $0xbd8] sm:$0xff] }
 0x4f2   :  { %v8457_v9 = vsub.f32 0.0, %v8433_v8  ;;  %v3457_v6 = vcvt.s32.f32 %v1153_v19  ;;  %v3481_v20 = vcvt.s32.f32 %v1177_v51  ;;  %v2280_v15 = vunpack.c.3.s8 %v480_v63 }
 0x4f3   :  { %7875 = vmatpush.bf16.msra.mxu0 %v6096_v46  ;;  %7888 = vmatpush.bf16.msra.mxu1 %v6288_v1  ;;  %v5329_v50 = vpack.c.bf16 %v3097_v30, %v3073_v60  ;;  %v4560_v53 = vcvt.s32.f32 %v2256_v37  ;;  %v2640_v4 = vunpack.c.2.s8 %v576_v44  ;;  %v2664_v38 = vunpack.c.3.s8 %v576_v44  ;;  %v553_v30 = vld [vmem:[#allocation2 + $0xed8] sm:$0xff] }
 0x4f4   :  { %v8496_v3 = vmul.f32 1.442695, %v8457_v9  ;;  %v5521_v58 = vpack.c.bf16 %v3481_v20, %v3457_v6  ;;  %v4584_v18 = vcvt.s32.f32 %v2280_v15  ;;  %v721_v10 = vunpack.c.2.s8 %v97_v45 }
 0x4f5   :  { %7901 = vmatpush.bf16.msra.mxu2 %v5329_v50  ;;  %v4944_v56 = vcvt.s32.f32 %v2640_v4  ;;  %v4968_v12 = vcvt.s32.f32 %v2664_v38  ;;  %v745_v42 = vunpack.c.3.s8 %v97_v45  ;;  %v1105_v59 = vunpack.c.2.s8 %v193_v55 }
 0x4f6   :  { %8993 = vpow2.f32 %v8496_v3  ;;  %7914 = vmatpush.bf16.msra.mxu3 %v5521_v58  ;;  %v6072_v27 = vpack.c.bf16 %v4584_v18, %v4560_v53  ;;  %v3025_v54 = vcvt.s32.f32 %v721_v10  ;;  %v1129_v62 = vunpack.c.3.s8 %v193_v55  ;;  %v10483_v10 = vpop.f32.mrf.mxu0 }
 0x4f7   :  { %v6264_v34 = vpack.c.bf16 %v4968_v12, %v4944_v56  ;;  %v3049_v48 = vcvt.s32.f32 %v745_v42  ;;  %v3409_v17 = vcvt.s32.f32 %v1105_v59  ;;  %v2208_v49 = vunpack.c.0.s8 %v480_v63 }
 0x4f8   :  { %7876 = vmatpush.bf16.msra.mxu0 %v6072_v27  ;;  %v3433_v2 = vcvt.s32.f32 %v1129_v62  ;;  %v2232_v33 = vunpack.c.1.s8 %v480_v63  ;;  %v2592_v40 = vunpack.c.0.s8 %v576_v44  ;;  %v2616_v47 = vunpack.c.1.s8 %v576_v44 }
 0x4f9   :  { %7889 = vmatpush.bf16.msra.mxu1 %v6264_v34  ;;  %v5305_v23 = vpack.c.bf16 %v3049_v48, %v3025_v54  ;;  %v4512_v25 = vcvt.s32.f32 %v2208_v49  ;;  %v673_v43 = vunpack.c.0.s8 %v97_v45  ;;  %v697_v41 = vunpack.c.1.s8 %v97_v45  ;;  %v649_v45 = vld [vmem:[#allocation2 + $0x11d8] sm:$0xff] }
 0x4fa   :  { %v5497_v35 = vpack.c.bf16 %v3433_v2, %v3409_v17  ;;  %v4536_v22 = vcvt.s32.f32 %v2232_v33  ;;  %v4896_v29 = vcvt.s32.f32 %v2592_v40  ;;  %v4920_v31 = vcvt.s32.f32 %v2616_v47  ;;  %v10487_v40 = vld [vmem:[#allocation2 + $0x818] sm:$0xff] }
 0x4fb   :  { %7902 = vmatpush.bf16.msra.mxu2 %v5305_v23  ;;  %v2977_v52 = vcvt.s32.f32 %v673_v43  ;;  %v3001_v26 = vcvt.s32.f32 %v697_v41  ;;  %v1057_v39 = vunpack.c.0.s8 %v193_v55  ;;  %v1081_v32 = vunpack.c.1.s8 %v193_v55  ;;  %v10495_v41 = vld [vmem:[#allocation2 + $0xb18] sm:$0xff] }
 0x4fc   :  { %v8994_v57 = vpop.eup %8993  ;;  %7915 = vmatpush.bf16.msra.mxu3 %v5497_v35  ;;  %v6048_v63 = vpack.c.bf16 %v4536_v22, %v4512_v25  ;;  %v6240_v61 = vpack.c.bf16 %v4920_v31, %v4896_v29  ;;  %v1777_v13 = vunpack.c.2.s8 %v361_v24  ;;  %v1801_v7 = vunpack.c.3.s8 %v361_v24  ;;  %v10497_v31 = vpop.f32.mrf.mxu1 }
 0x4fd   :  { %v10474_v21 = vadd.f32 1.0, %v8994_v57  ;;  %v5281_v8 = vpack.c.bf16 %v3001_v26, %v2977_v52  ;;  %v3361_v60 = vcvt.s32.f32 %v1057_v39  ;;  %v3385_v19 = vcvt.s32.f32 %v1081_v32 }
 0x4fe   :  { %7877 = vmatpush.bf16.msra.mxu0 %v6048_v63  ;;  %7890 = vmatpush.bf16.msra.mxu1 %v6240_v61  ;;  %v4081_v51 = vcvt.s32.f32 %v1777_v13  ;;  %v4105_v44 = vcvt.s32.f32 %v1801_v7  ;;  %v2161_v46 = vunpack.c.2.s8 %v457_v28  ;;  %v2185_v1 = vunpack.c.3.s8 %v457_v28 }
 0x4ff   :  { %8995 = vrcp.f32 %v10474_v21  ;;  %v8774_v37 = vand.u32 2147483648, %v10474_v21  ;;  %7903 = vmatpush.bf16.msra.mxu2 %v5281_v8  ;;  %v5473_v9 = vpack.c.bf16 %v3385_v19, %v3361_v60  ;;  %v8772_v55 = vand.u32 2147483647, %v10474_v21 }
 0x500   :  { %v5833_v6 = vpack.c.bf16 %v4105_v44, %v4081_v51  ;;  %v4465_v20 = vcvt.s32.f32 %v2161_v46  ;;  %v4489_v15 = vcvt.s32.f32 %v2185_v1  ;;  %v2545_v53 = vunpack.c.2.s8 %v553_v30  ;;  %v625_v51 = vld [vmem:[#allocation2 + $0x1118] sm:$0xff]  ;;  %v7673_v44 = vpop.f32.mrf.mxu0 }
 0x501   :  { %v10479_v50 = vor.u32 1.1754944e-38, %v8774_v37  ;;  %v2569_v4 = vunpack.c.3.s8 %v553_v30  ;;  %7878 = vmatmul.bf16.vlgmr.msra.gmra.mxu0 %v9194_v11  ;;  %7891 = vmatmul.bf16.vlgmr.msra.gmra.mxu1 %v9198_v16  ;;  %v2929_v3 = vunpack.c.2.s8 %v649_v45  ;;  %v2953_v58 = vunpack.c.3.s8 %v649_v45 }
 0x502   :  { %7916 = vmatpush.bf16.msra.mxu3 %v5473_v9  ;;  %7922 = vmatpush.bf16.msrb.mxu0 %v5833_v6  ;;  %v6025_v38 = vpack.c.bf16 %v4489_v15, %v4465_v20  ;;  %v1729_v18 = vunpack.c.0.s8 %v361_v24  ;;  %v4849_v56 = vcvt.s32.f32 %v2545_v53  ;;  %v1753_v42 = vunpack.c.1.s8 %v361_v24 }
 0x503   :  { %v4873_v12 = vcvt.s32.f32 %v2569_v4  ;;  %v2113_v59 = vunpack.c.0.s8 %v457_v28  ;;  %7904 = vmatmul.bf16.vlgmr.msra.gmra.mxu2 %v9163_v14  ;;  %vm8768_vm12 = vweird.f32 %v10474_v21  ;;  %v5233_v27 = vcvt.s32.f32 %v2929_v3 }
 0x504   :  { %7935 = vmatpush.bf16.msrb.mxu1 %v6025_v38  ;;  %v5257_v54 = vcvt.s32.f32 %v2953_v58  ;;  %v4033_v62 = vcvt.s32.f32 %v1729_v18  ;;  %v2137_v34 = vunpack.c.1.s8 %v457_v28  ;;  %v4057_v49 = vcvt.s32.f32 %v1753_v42  ;;  %v529_v28 = vld [vmem:[#allocation2 + $0xe18] sm:$0xff] }
 0x505   :  { %v8996_v48 = vpop.eup %8995  ;;  %v6217_v17 = vpack.c.bf16 %v4873_v12, %v4849_v56  ;;  %v4417_v2 = vcvt.s32.f32 %v2113_v59  ;;  %v2497_v33 = vunpack.c.0.s8 %v553_v30  ;;  %7917 = vmatmul.bf16.vlgmr.msra.gmra.mxu3 %v9169_v36  ;;  %vm10491_vm14 = vcmp.eq.f32.partialorder %v8772_v55, 8.507059e+37  ;;  %v7686_v59 = vpop.f32.mrf.mxu1 }
 0x506   :  { %v8764_v47 = vmul.f32 %v8996_v48, %v10474_v21  ;;  %vm8769_vm13 = vweird.f32 %v8996_v48  ;;  %v6409_v25 = vpack.c.bf16 %v5257_v54, %v5233_v27  ;;  %v4441_v43 = vcvt.s32.f32 %v2137_v34 }
 0x507   :  { %7948 = vmatpush.bf16.msrb.mxu2 %v6217_v17  ;;  %v5809_v24 = vpack.c.bf16 %v4057_v49, %v4033_v62  ;;  %v2521_v35 = vunpack.c.1.s8 %v553_v30  ;;  %v4801_v22 = vcvt.s32.f32 %v2497_v33  ;;  %v2881_v29 = vunpack.c.0.s8 %v649_v45  ;;  %vm8770_vm15 = vmor %vm8768_vm12, %vm8769_vm13 }
 0x508   :  { %v8765_v52 = vsub.f32 1.0, %v8764_v47  ;;  %7961 = vmatpush.bf16.msrb.mxu3 %v6409_v25  ;;  %v6001_v26 = vpack.c.bf16 %v4441_v43, %v4417_v2  ;;  %v2905_v39 = vunpack.c.1.s8 %v649_v45  ;;  %v1681_v32 = vunpack.c.2.s8 %v10487_v40  ;;  %v409_v25 = vld [vmem:[#allocation2 + $0xa58] sm:$0xff] }
 0x509   :  { %7923 = vmatpush.bf16.msrb.mxu0 %v5809_v24  ;;  %v4825_v57 = vcvt.s32.f32 %v2521_v35  ;;  %v5185_v63 = vcvt.s32.f32 %v2881_v29  ;;  %v1705_v61 = vunpack.c.3.s8 %v10487_v40  ;;  %v2065_v13 = vunpack.c.2.s8 %v10495_v41  ;;  %v505_v29 = vld [vmem:[#allocation2 + $0xd58] sm:$0xff] }
 0x50a   :  { %v8766_v7 = vmul.f32 %v8996_v48, %v8765_v52  ;;  %7936 = vmatpush.bf16.msrb.mxu1 %v6001_v26  ;;  %v5209_v8 = vcvt.s32.f32 %v2905_v39  ;;  %v3985_v60 = vcvt.s32.f32 %v1681_v32  ;;  %v2089_v19 = vunpack.c.3.s8 %v10495_v41  ;;  %v601_v32 = vld [vmem:[#allocation2 + $0x1058] sm:$0xff] }
 0x50b   :  { %v6193_v46 = vpack.c.bf16 %v4825_v57, %v4801_v22  ;;  %v4009_v1 = vcvt.s32.f32 %v1705_v61  ;;  %v4369_v30 = vcvt.s32.f32 %v2065_v13  ;;  %v2449_v37 = vunpack.c.2.s8 %v529_v28 }
 0x50c   :  { %v8767_v45 = vadd.f32 %v8996_v48, %v8766_v7  ;;  %v6385_v9 = vpack.c.bf16 %v5209_v8, %v5185_v63  ;;  %v4393_v6 = vcvt.s32.f32 %v2089_v19  ;;  %v2473_v20 = vunpack.c.3.s8 %v529_v28 }
 0x50d   :  { %7949 = vmatpush.bf16.msrb.mxu2 %v6193_v46  ;;  %v5785_v15 = vpack.c.bf16 %v4009_v1, %v3985_v60  ;;  %v4753_v55 = vcvt.s32.f32 %v2449_v37  ;;  %v2833_v53 = vunpack.c.2.s8 %v625_v51  ;;  %v2857_v4 = vunpack.c.3.s8 %v625_v51  ;;  %v10516_v1 = vpop.f32.mrf.mxu2 }
 0x50e   :  { %v8771_v38 = vsel %vm8770_vm15, %v8996_v48, %v8767_v45  ;;  %7962 = vmatpush.bf16.msrb.mxu3 %v6385_v9  ;;  %v5977_v3 = vpack.c.bf16 %v4393_v6, %v4369_v30  ;;  %v4777_v58 = vcvt.s32.f32 %v2473_v20  ;;  %v1633_v18 = vunpack.c.0.s8 %v10487_v40  ;;  %v313_v48 = vld [vmem:[#allocation2 + $0x758] sm:$0xff] }
 0x50f   :  { %v8776_v56 = vsel %vm10491_vm14, %v10479_v50, %v8771_v38  ;;  %7924 = vmatpush.bf16.msrb.mxu0 %v5785_v15  ;;  %v5137_v12 = vcvt.s32.f32 %v2833_v53  ;;  %v5161_v42 = vcvt.s32.f32 %v2857_v4  ;;  %v1657_v21 = vunpack.c.1.s8 %v10487_v40 }
 0x510   :  { %8913 = vst [vmem:[%s10886_s4 + $0x78] sm:$0xff] %v8776_v56  ;;  %7937 = vmatpush.bf16.msrb.mxu1 %v5977_v3  ;;  %v6169_v27 = vpack.c.bf16 %v4777_v58, %v4753_v55  ;;  %v3937_v54 = vcvt.s32.f32 %v1633_v18  ;;  %v2017_v62 = vunpack.c.0.s8 %v10495_v41  ;;  %v2041_v34 = vunpack.c.1.s8 %v10495_v41  ;;  %v10518_v58 = vld [vmem:[#allocation2 + $0x698] sm:$0xff] }
 0x511   :  { %v6361_v17 = vpack.c.bf16 %v5161_v42, %v5137_v12  ;;  %v3961_v50 = vcvt.s32.f32 %v1657_v21  ;;  %v2401_v49 = vunpack.c.0.s8 %v529_v28  ;;  %v2425_v2 = vunpack.c.1.s8 %v529_v28 }
 0x512   :  { %7950 = vmatpush.bf16.msrb.mxu2 %v6169_v27  ;;  %v4321_v33 = vcvt.s32.f32 %v2017_v62  ;;  %v4345_v40 = vcvt.s32.f32 %v2041_v34  ;;  %v2785_v47 = vunpack.c.0.s8 %v625_v51  ;;  %v2809_v23 = vunpack.c.1.s8 %v625_v51  ;;  %v385_v62 = vld [vmem:[#allocation2 + $0x998] sm:$0xff]  ;;  %v10520_v34 = vpop.f32.mrf.mxu3 }
 0x513   :  { %7963 = vmatpush.bf16.msrb.mxu3 %v6361_v17  ;;  %v5761_v43 = vpack.c.bf16 %v3961_v50, %v3937_v54  ;;  %v4705_v24 = vcvt.s32.f32 %v2401_v49  ;;  %v4729_v35 = vcvt.s32.f32 %v2425_v2  ;;  %v1585_v22 = vunpack.c.2.s8 %v313_v48 }
 0x514   :  { %v5953_v52 = vpack.c.bf16 %v4345_v40, %v4321_v33  ;;  %v5089_v26 = vcvt.s32.f32 %v2785_v47  ;;  %v5113_v41 = vcvt.s32.f32 %v2809_v23  ;;  %v1609_v39 = vunpack.c.3.s8 %v313_v48  ;;  %v481_v33 = vld [vmem:[#allocation2 + $0xc98] sm:$0xff] }
 0x515   :  { %7925 = vmatpush.bf16.msrb.mxu0 %v5761_v43  ;;  %v6145_v57 = vpack.c.bf16 %v4729_v35, %v4705_v24  ;;  %v3889_v28 = vcvt.s32.f32 %v1585_v22  ;;  %v1969_v63 = vunpack.c.2.s8 %v409_v25  ;;  %v1993_v61 = vunpack.c.3.s8 %v409_v25  ;;  %v577_v43 = vld [vmem:[#allocation2 + $0xf98] sm:$0xff] }
 0x516   :  { %7938 = vmatpush.bf16.msrb.mxu1 %v5953_v52  ;;  %v6337_v13 = vpack.c.bf16 %v5113_v41, %v5089_v26  ;;  %v3913_v7 = vcvt.s32.f32 %v1609_v39  ;;  %v2353_v8 = vunpack.c.2.s8 %v505_v29  ;;  %v2377_v60 = vunpack.c.3.s8 %v505_v29  ;;  %v7699_v52 = vpop.f32.mrf.mxu2 }
 0x517   :  { %7951 = vmatpush.bf16.msrb.mxu2 %v6145_v57  ;;  %v4273_v19 = vcvt.s32.f32 %v1969_v63  ;;  %v4297_v51 = vcvt.s32.f32 %v1993_v61  ;;  %v2737_v44 = vunpack.c.2.s8 %v601_v32  ;;  %v2761_v46 = vunpack.c.3.s8 %v601_v32 }
 0x518   :  { %7964 = vmatpush.bf16.msrb.mxu3 %v6337_v13  ;;  %v5737_v30 = vpack.c.bf16 %v3913_v7, %v3889_v28  ;;  %v4657_v37 = vcvt.s32.f32 %v2353_v8  ;;  %v4681_v45 = vcvt.s32.f32 %v2377_v60  ;;  %v1537_v9 = vunpack.c.0.s8 %v313_v48  ;;  %v10526_v13 = vpop.f32.mrf.mxu1 }
 0x519   :  { %v5929_v6 = vpack.c.bf16 %v4297_v51, %v4273_v19  ;;  %v5041_v20 = vcvt.s32.f32 %v2737_v44  ;;  %v5065_v15 = vcvt.s32.f32 %v2761_v46  ;;  %v1561_v55 = vunpack.c.1.s8 %v313_v48  ;;  %v10522_v48 = vpop.f32.mrf.mxu0 }
 0x51a   :  { %7926 = vmatpush.bf16.msrb.mxu0 %v5737_v30  ;;  %v6121_v53 = vpack.c.bf16 %v4681_v45, %v4657_v37  ;;  %v3841_v4 = vcvt.s32.f32 %v1537_v9  ;;  %v1921_v38 = vunpack.c.0.s8 %v409_v25  ;;  %v1945_v3 = vunpack.c.1.s8 %v409_v25 }
 0x51b   :  { %7939 = vmatpush.bf16.msrb.mxu1 %v5929_v6  ;;  %v6313_v18 = vpack.c.bf16 %v5065_v15, %v5041_v20  ;;  %v3865_v56 = vcvt.s32.f32 %v1561_v55  ;;  %v2305_v12 = vunpack.c.0.s8 %v505_v29  ;;  %v2329_v42 = vunpack.c.1.s8 %v505_v29  ;;  %v170_v20 = vld [vmem:[#allocation2 + $0x2e0] sm:$0xff]  ;;  %v7712_v15 = vpop.f32.mrf.mxu3 }
 0x51c   :  { %7952 = vmatpush.bf16.msrb.mxu2 %v6121_v53  ;;  %v4225_v21 = vcvt.s32.f32 %v1921_v38  ;;  %v4249_v59 = vcvt.s32.f32 %v1945_v3  ;;  %v2689_v27 = vunpack.c.0.s8 %v601_v32  ;;  %v2713_v54 = vunpack.c.1.s8 %v601_v32 }
 0x51d   :  { %7965 = vmatpush.bf16.msrb.mxu3 %v6313_v18  ;;  %v5713_v17 = vpack.c.bf16 %v3865_v56, %v3841_v4  ;;  %v4609_v50 = vcvt.s32.f32 %v2305_v12  ;;  %v4633_v49 = vcvt.s32.f32 %v2329_v42  ;;  %v1489_v2 = vunpack.c.2.s8 %v10518_v58  ;;  %v266_v12 = vld [vmem:[#allocation2 + $0x5e0] sm:$0xff] }
 0x51e   :  { %v5905_v40 = vpack.c.bf16 %v4249_v59, %v4225_v21  ;;  %v4993_v47 = vcvt.s32.f32 %v2689_v27  ;;  %v5017_v23 = vcvt.s32.f32 %v2713_v54  ;;  %v1513_v25 = vunpack.c.3.s8 %v10518_v58  ;;  %v362_v27 = vld [vmem:[#allocation2 + $0x8e0] sm:$0xff] }
 0x51f   :  { %7927 = vmatpush.bf16.msrb.mxu0 %v5713_v17  ;;  %v6097_v24 = vpack.c.bf16 %v4633_v49, %v4609_v50  ;;  %v3793_v35 = vcvt.s32.f32 %v1489_v2  ;;  %v1873_v22 = vunpack.c.2.s8 %v385_v62  ;;  %v1897_v29 = vunpack.c.3.s8 %v385_v62  ;;  %v458_v49 = vld [vmem:[#allocation2 + $0xbe0] sm:$0xff] }
 0x520   :  { %7940 = vmatpush.bf16.msrb.mxu1 %v5905_v40  ;;  %v6289_v26 = vpack.c.bf16 %v5017_v23, %v4993_v47  ;;  %v3817_v41 = vcvt.s32.f32 %v1513_v25  ;;  %v2257_v39 = vunpack.c.2.s8 %v481_v33  ;;  %v2281_v32 = vunpack.c.3.s8 %v481_v33  ;;  %v7738_v23 = vpop.f32.mrf.mxu1 }
 0x521   :  { %7953 = vmatpush.bf16.msrb.mxu2 %v6097_v24  ;;  %v4177_v57 = vcvt.s32.f32 %v1873_v22  ;;  %v4201_v28 = vcvt.s32.f32 %v1897_v29  ;;  %v2641_v63 = vunpack.c.2.s8 %v577_v43  ;;  %v2665_v61 = vunpack.c.3.s8 %v577_v43  ;;  %v7725_v55 = vpop.f32.mrf.mxu0 }
 0x522   :  { %7966 = vmatpush.bf16.msrb.mxu3 %v6289_v26  ;;  %v5689_v7 = vpack.c.bf16 %v3817_v41, %v3793_v35  ;;  %v4561_v8 = vcvt.s32.f32 %v2257_v39  ;;  %v4585_v60 = vcvt.s32.f32 %v2281_v32  ;;  %v10530_v19 = vadd.f32 %v10497_v31, %v10483_v10 }
 0x523   :  { %v5881_v51 = vpack.c.bf16 %v4201_v28, %v4177_v57  ;;  %v4945_v44 = vcvt.s32.f32 %v2641_v63  ;;  %v4969_v46 = vcvt.s32.f32 %v2665_v61  ;;  %v1441_v30 = vunpack.c.0.s8 %v10518_v58 }
 0x524   :  { %7928 = vmatpush.bf16.msrb.mxu0 %v5689_v7  ;;  %v6073_v37 = vpack.c.bf16 %v4585_v60, %v4561_v8  ;;  %v1465_v45 = vunpack.c.1.s8 %v10518_v58  ;;  %v1825_v9 = vunpack.c.0.s8 %v385_v62  ;;  %v1849_v6 = vunpack.c.1.s8 %v385_v62 }
 0x525   :  { %7941 = vmatpush.bf16.msrb.mxu1 %v5881_v51  ;;  %v6265_v53 = vpack.c.bf16 %v4969_v46, %v4945_v44  ;;  %v3745_v4 = vcvt.s32.f32 %v1441_v30  ;;  %v2209_v38 = vunpack.c.0.s8 %v481_v33  ;;  %v2233_v10 = vunpack.c.1.s8 %v481_v33 }
 0x526   :  { %7954 = vmatpush.bf16.msrb.mxu2 %v6073_v37  ;;  %v3769_v31 = vcvt.s32.f32 %v1465_v45  ;;  %v4129_v3 = vcvt.s32.f32 %v1825_v9  ;;  %v4153_v18 = vcvt.s32.f32 %v1849_v6  ;;  %v2593_v56 = vunpack.c.0.s8 %v577_v43  ;;  %v146_v9 = vld [vmem:[#allocation2 + $0x220] sm:$0xff] }
 0x527   :  { %7967 = vmatpush.bf16.msrb.mxu3 %v6265_v53  ;;  %v4513_v42 = vcvt.s32.f32 %v2209_v38  ;;  %v4537_v21 = vcvt.s32.f32 %v2233_v10  ;;  %v2617_v58 = vunpack.c.1.s8 %v577_v43  ;;  %v1010_v59 = vunpack.c.2.s8 %v170_v20  ;;  %v242_v53 = vld [vmem:[#allocation2 + $0x520] sm:$0xff] }
 0x528   :  { %v5665_v54 = vpack.c.bf16 %v3769_v31, %v3745_v4  ;;  %v5857_v62 = vpack.c.bf16 %v4153_v18, %v4129_v3  ;;  %v4897_v17 = vcvt.s32.f32 %v2593_v56  ;;  %v1034_v50 = vunpack.c.3.s8 %v170_v20  ;;  %v338_v3 = vld [vmem:[#allocation2 + $0x820] sm:$0xff] }
 0x529   :  { %v6049_v2 = vpack.c.bf16 %v4537_v21, %v4513_v42  ;;  %v4921_v40 = vcvt.s32.f32 %v2617_v58  ;;  %v3314_v33 = vcvt.s32.f32 %v1010_v59  ;;  %v1394_v47 = vunpack.c.2.s8 %v266_v12 }
 0x52a   :  { %7929 = vmatpush.bf16.msrb.mxu0 %v5665_v54  ;;  %7942 = vmatpush.bf16.msrb.mxu1 %v5857_v62  ;;  %v3338_v25 = vcvt.s32.f32 %v1034_v50  ;;  %v1418_v24 = vunpack.c.3.s8 %v266_v12  ;;  %v1778_v35 = vunpack.c.2.s8 %v362_v27  ;;  %v1802_v22 = vunpack.c.3.s8 %v362_v27  ;;  %v434_v54 = vld [vmem:[#allocation2 + $0xb20] sm:$0xff] }
 0x52b   :  { %7955 = vmatpush.bf16.msrb.mxu2 %v6049_v2  ;;  %v6241_v43 = vpack.c.bf16 %v4921_v40, %v4897_v17  ;;  %v3698_v29 = vcvt.s32.f32 %v1394_v47  ;;  %v2162_v52 = vunpack.c.2.s8 %v458_v49  ;;  %v2186_v26 = vunpack.c.3.s8 %v458_v49 }
 0x52c   :  { %v5450_v41 = vpack.c.bf16 %v3338_v25, %v3314_v33  ;;  %v3722_v39 = vcvt.s32.f32 %v1418_v24  ;;  %v4082_v32 = vcvt.s32.f32 %v1778_v35  ;;  %v4106_v57 = vcvt.s32.f32 %v1802_v22 }
 0x52d   :  { %7968 = vmatpush.bf16.msrb.mxu3 %v6241_v43  ;;  %v4466_v28 = vcvt.s32.f32 %v2162_v52  ;;  %v4490_v63 = vcvt.s32.f32 %v2186_v26  ;;  %7930 = vmatmul.bf16.vlgmr.msrb.gmra.mxu0 %v9178_v0  ;;  %v962_v61 = vunpack.c.0.s8 %v170_v20  ;;  %v986_v7 = vunpack.c.1.s8 %v170_v20 }
 0x52e   :  { %7974 = vmatpush.bf16.msra.mxu0 %v5450_v41  ;;  %v5642_v8 = vpack.c.bf16 %v3722_v39, %v3698_v29  ;;  %v5834_v60 = vpack.c.bf16 %v4106_v57, %v4082_v32  ;;  %7956 = vmatmul.bf16.vlgmr.msrb.gmra.mxu2 %v9194_v11  ;;  %v1346_v51 = vunpack.c.0.s8 %v266_v12  ;;  %v1370_v44 = vunpack.c.1.s8 %v266_v12 }
 0x52f   :  { %v6026_v46 = vpack.c.bf16 %v4490_v63, %v4466_v28  ;;  %v3266_v30 = vcvt.s32.f32 %v962_v61  ;;  %v3290_v37 = vcvt.s32.f32 %v986_v7  ;;  %v1730_v45 = vunpack.c.0.s8 %v362_v27  ;;  %7943 = vmatmul.bf16.vlgmr.msrb.gmra.mxu1 %v9180_v5 }
 0x530   :  { %7987 = vmatpush.bf16.msra.mxu1 %v5642_v8  ;;  %8000 = vmatpush.bf16.msra.mxu2 %v5834_v60  ;;  %v3650_v6 = vcvt.s32.f32 %v1346_v51  ;;  %v3674_v15 = vcvt.s32.f32 %v1370_v44  ;;  %v1754_v55 = vunpack.c.1.s8 %v362_v27  ;;  %v2114_v20 = vunpack.c.0.s8 %v458_v49  ;;  %v10542_v60 = vld [vmem:[#allocation4 + $0x10] sm:$0xff] }
 0x531   :  { %8013 = vmatpush.bf16.msra.mxu3 %v6026_v46  ;;  %v5426_v4 = vpack.c.bf16 %v3290_v37, %v3266_v30  ;;  %v4034_v38 = vcvt.s32.f32 %v1730_v45  ;;  %v2138_v10 = vunpack.c.1.s8 %v458_v49  ;;  %v7698_v31 = vadd.f32 %v10516_v1, %v10530_v19  ;;  %v10544_v30 = vld [vmem:[#allocation6 + $0x10] sm:$0xff]  ;;  %v122_v37 = vld [vmem:[#allocation2 + $0x160] sm:$0xff] }
 0x532   :  { %7969 = vmatmul.bf16.vlgmr.msrb.gmra.mxu3 %v9198_v16  ;;  %v5618_v18 = vpack.c.bf16 %v3674_v15, %v3650_v6  ;;  %v4058_v56 = vcvt.s32.f32 %v1754_v55  ;;  %v4418_v12 = vcvt.s32.f32 %v2114_v20  ;;  %v914_v42 = vunpack.c.2.s8 %v146_v9  ;;  %v218_v15 = vld [vmem:[#allocation2 + $0x460] sm:$0xff] }
 0x533   :  { %7975 = vmatpush.bf16.msra.mxu0 %v5426_v4  ;;  %v4442_v21 = vcvt.s32.f32 %v2138_v10  ;;  %v938_v58 = vunpack.c.3.s8 %v146_v9  ;;  %v1298_v59 = vunpack.c.2.s8 %v242_v53  ;;  %v1322_v27 = vunpack.c.3.s8 %v242_v53 }
 0x534   :  { %7988 = vmatpush.bf16.msra.mxu1 %v5618_v18  ;;  %v5810_v62 = vpack.c.bf16 %v4058_v56, %v4034_v38  ;;  %v3218_v17 = vcvt.s32.f32 %v914_v42  ;;  %v1682_v50 = vunpack.c.2.s8 %v338_v3  ;;  %v1706_v49 = vunpack.c.3.s8 %v338_v3  ;;  %v314_v38 = vld [vmem:[#allocation2 + $0x760] sm:$0xff] }
 0x535   :  { %v6002_v2 = vpack.c.bf16 %v4442_v21, %v4418_v12  ;;  %v3242_v1 = vcvt.s32.f32 %v938_v58  ;;  %v3602_v19 = vcvt.s32.f32 %v1298_v59  ;;  %v3626_v40 = vcvt.s32.f32 %v1322_v27  ;;  %v410_v56 = vld [vmem:[#allocation2 + $0xa60] sm:$0xff] }
 0x536   :  { %8001 = vmatpush.bf16.msra.mxu2 %v5810_v62  ;;  %v3986_v33 = vcvt.s32.f32 %v1682_v50  ;;  %v4010_v47 = vcvt.s32.f32 %v1706_v49  ;;  %v2066_v23 = vunpack.c.2.s8 %v434_v54  ;;  %v2090_v25 = vunpack.c.3.s8 %v434_v54  ;;  %v10549_v62 = vpop.f32.mrf.mxu2 }
 0x537   :  { %8014 = vmatpush.bf16.msra.mxu3 %v6002_v2  ;;  %v5402_v24 = vpack.c.bf16 %v3242_v1, %v3218_v17  ;;  %v5594_v35 = vpack.c.bf16 %v3626_v40, %v3602_v19  ;;  %v7711_v22 = vadd.f32 %v10520_v34, %v7698_v31  ;;  %v866_v43 = vunpack.c.0.s8 %v146_v9  ;;  %v10551_v1 = vpop.f32.mrf.mxu3 }
 0x538   :  { %v5786_v29 = vpack.c.bf16 %v4010_v47, %v3986_v33  ;;  %v4370_v52 = vcvt.s32.f32 %v2066_v23  ;;  %v4394_v26 = vcvt.s32.f32 %v2090_v25  ;;  %v890_v41 = vunpack.c.1.s8 %v146_v9 }
 0x539   :  { %7976 = vmatpush.bf16.msra.mxu0 %v5402_v24  ;;  %7989 = vmatpush.bf16.msra.mxu1 %v5594_v35  ;;  %v7724_v39 = vadd.f32 %v10522_v48, %v7711_v22  ;;  %v3170_v32 = vcvt.s32.f32 %v866_v43  ;;  %v1250_v57 = vunpack.c.0.s8 %v242_v53  ;;  %v1274_v28 = vunpack.c.1.s8 %v242_v53 }
 0x53a   :  { %8002 = vmatpush.bf16.msra.mxu2 %v5786_v29  ;;  %v5978_v63 = vpack.c.bf16 %v4394_v26, %v4370_v52  ;;  %v3194_v61 = vcvt.s32.f32 %v890_v41  ;;  %v1634_v7 = vunpack.c.0.s8 %v338_v3  ;;  %v1658_v8 = vunpack.c.1.s8 %v338_v3 }
 0x53b   :  { %v3554_v34 = vcvt.s32.f32 %v1250_v57  ;;  %v3578_v51 = vcvt.s32.f32 %v1274_v28  ;;  %v2018_v44 = vunpack.c.0.s8 %v434_v54  ;;  %v2042_v46 = vunpack.c.1.s8 %v434_v54  ;;  %v98_v57 = vld [vmem:[#allocation2 + $0xa0] sm:$0xff] }
 0x53c   :  { %8015 = vmatpush.bf16.msra.mxu3 %v5978_v63  ;;  %v5378_v45 = vpack.c.bf16 %v3194_v61, %v3170_v32  ;;  %v3938_v48 = vcvt.s32.f32 %v1634_v7  ;;  %v3962_v9 = vcvt.s32.f32 %v1658_v8  ;;  %v7737_v6 = vadd.f32 %v10526_v13, %v7724_v39  ;;  %v10553_v8 = vld [vmem:[#allocation2 + $0x3a0] sm:$0xff] }
 0x53d   :  { %v5570_v55 = vpack.c.bf16 %v3578_v51, %v3554_v34  ;;  %v4322_v20 = vcvt.s32.f32 %v2018_v44  ;;  %v4346_v53 = vcvt.s32.f32 %v2042_v46  ;;  %v8308_v4 = vperm.slane %v10542_v60, 0 }
 0x53e   :  { %7977 = vmatpush.bf16.msra.mxu0 %v5378_v45  ;;  %v5762_v10 = vpack.c.bf16 %v3962_v9, %v3938_v48  ;;  %v8386_v31 = vperm.slane %v10544_v30, 0  ;;  %v818_v3 = vunpack.c.2.s8 %v122_v37  ;;  %v842_v18 = vunpack.c.3.s8 %v122_v37  ;;  %v290_v9 = vld [vmem:[#allocation2 + $0x6a0] sm:$0xff] }
 0x53f   :  { %7990 = vmatpush.bf16.msra.mxu1 %v5570_v55  ;;  %v5954_v12 = vpack.c.bf16 %v4346_v53, %v4322_v20  ;;  %v8356_v42 = vmul.f32 %v8308_v4, %v7737_v6  ;;  %v1202_v21 = vunpack.c.2.s8 %v218_v15  ;;  %v1226_v58 = vunpack.c.3.s8 %v218_v15  ;;  %v7751_v6 = vpop.f32.mrf.mxu2  ;;  %v386_v4 = vld [vmem:[#allocation2 + $0x9a0] sm:$0xff] }
 0x540   :  { %8003 = vmatpush.bf16.msra.mxu2 %v5762_v10  ;;  %v3122_v13 = vcvt.s32.f32 %v818_v3  ;;  %v3146_v59 = vcvt.s32.f32 %v842_v18  ;;  %v1586_v27 = vunpack.c.2.s8 %v314_v38  ;;  %v1610_v54 = vunpack.c.3.s8 %v314_v38 }
 0x541   :  { %8016 = vmatpush.bf16.msra.mxu3 %v5954_v12  ;;  %v8434_v17 = vadd.f32 %v8386_v31, %v8356_v42  ;;  %v3506_v50 = vcvt.s32.f32 %v1202_v21  ;;  %v3530_v49 = vcvt.s32.f32 %v1226_v58  ;;  %v1970_v2 = vunpack.c.2.s8 %v410_v56 }
 0x542   :  { %v5354_v19 = vpack.c.bf16 %v3146_v59, %v3122_v13  ;;  %v3890_v40 = vcvt.s32.f32 %v1586_v27  ;;  %v3914_v33 = vcvt.s32.f32 %v1610_v54  ;;  %v1994_v47 = vunpack.c.3.s8 %v410_v56 }
 0x543   :  { %v8458_v23 = vsub.f32 0.0, %v8434_v17  ;;  %v5546_v25 = vpack.c.bf16 %v3530_v49, %v3506_v50  ;;  %v4274_v24 = vcvt.s32.f32 %v1970_v2  ;;  %v770_v35 = vunpack.c.0.s8 %v122_v37 }
 0x544   :  { %7978 = vmatpush.bf16.msra.mxu0 %v5354_v19  ;;  %v5738_v22 = vpack.c.bf16 %v3914_v33, %v3890_v40  ;;  %v4298_v43 = vcvt.s32.f32 %v1994_v47  ;;  %v794_v29 = vunpack.c.1.s8 %v122_v37  ;;  %v1154_v52 = vunpack.c.0.s8 %v218_v15 }
 0x545   :  { %v8498_v26 = vmul.f32 1.442695, %v8458_v23  ;;  %7991 = vmatpush.bf16.msra.mxu1 %v5546_v25  ;;  %v3074_v41 = vcvt.s32.f32 %v770_v35  ;;  %v1178_v39 = vunpack.c.1.s8 %v218_v15  ;;  %v1538_v32 = vunpack.c.0.s8 %v314_v38 }
 0x546   :  { %8004 = vmatpush.bf16.msra.mxu2 %v5738_v22  ;;  %v5930_v28 = vpack.c.bf16 %v4298_v43, %v4274_v24  ;;  %v3098_v63 = vcvt.s32.f32 %v794_v29  ;;  %v3458_v61 = vcvt.s32.f32 %v1154_v52  ;;  %v1562_v7 = vunpack.c.1.s8 %v314_v38  ;;  %v7764_v38 = vpop.f32.mrf.mxu3  ;;  %v10560_v22 = vpop.f32.mrf.mxu0 }
 0x547   :  { %8997 = vpow2.f32 %v8498_v26  ;;  %v3482_v34 = vcvt.s32.f32 %v1178_v39  ;;  %v3842_v51 = vcvt.s32.f32 %v1538_v32  ;;  %v1922_v44 = vunpack.c.0.s8 %v410_v56  ;;  %v10562_v43 = vpop.f32.mrf.mxu1  ;;  %v10567_v32 = vld [vmem:[#allocation2 + $0xee0] sm:$0xff] }
 0x548   :  { %8017 = vmatpush.bf16.msra.mxu3 %v5930_v28  ;;  %v5330_v46 = vpack.c.bf16 %v3098_v63, %v3074_v41  ;;  %v3866_v37 = vcvt.s32.f32 %v1562_v7  ;;  %v1946_v45 = vunpack.c.1.s8 %v410_v56  ;;  %v722_v48 = vunpack.c.2.s8 %v98_v57  ;;  %v10572_v7 = vld [vmem:[#allocation2 + $0x11e0] sm:$0xff] }
 0x549   :  { %v5522_v15 = vpack.c.bf16 %v3482_v34, %v3458_v61  ;;  %v4226_v55 = vcvt.s32.f32 %v1922_v44  ;;  %v746_v20 = vunpack.c.3.s8 %v98_v57  ;;  %v1106_v53 = vunpack.c.2.s8 %v10553_v8 }
 0x54a   :  { %7979 = vmatpush.bf16.msra.mxu0 %v5330_v46  ;;  %v5714_v10 = vpack.c.bf16 %v3866_v37, %v3842_v51  ;;  %v4250_v31 = vcvt.s32.f32 %v1946_v45  ;;  %v3026_v3 = vcvt.s32.f32 %v722_v48  ;;  %v1130_v18 = vunpack.c.3.s8 %v10553_v8 }
 0x54b   :  { %7992 = vmatpush.bf16.msra.mxu1 %v5522_v15  ;;  %v3050_v12 = vcvt.s32.f32 %v746_v20  ;;  %v3410_v42 = vcvt.s32.f32 %v1106_v53  ;;  %v1490_v56 = vunpack.c.2.s8 %v290_v9  ;;  %v1514_v21 = vunpack.c.3.s8 %v290_v9  ;;  %v10578_v20 = vld [vmem:[#allocation2 + $0x2e8] sm:$0xff]  ;;  %v10580_v53 = vpop.f32.mrf.mxu2 }
 0x54c   :  { %8005 = vmatpush.bf16.msra.mxu2 %v5714_v10  ;;  %v5906_v58 = vpack.c.bf16 %v4250_v31, %v4226_v55  ;;  %v3434_v13 = vcvt.s32.f32 %v1130_v18  ;;  %v1874_v59 = vunpack.c.2.s8 %v386_v4  ;;  %v1898_v27 = vunpack.c.3.s8 %v386_v4 }
 0x54d   :  { %v8998_v54 = vpop.eup %8997  ;;  %v5306_v17 = vpack.c.bf16 %v3050_v12, %v3026_v3  ;;  %v3794_v50 = vcvt.s32.f32 %v1490_v56  ;;  %v3818_v49 = vcvt.s32.f32 %v1514_v21  ;;  %v674_v2 = vunpack.c.0.s8 %v98_v57  ;;  %v10587_v12 = vld [vmem:[#allocation2 + $0x5e8] sm:$0xff] }
 0x54e   :  { %v10557_v19 = vadd.f32 1.0, %v8998_v54  ;;  %8018 = vmatpush.bf16.msra.mxu3 %v5906_v58  ;;  %v5498_v40 = vpack.c.bf16 %v3434_v13, %v3410_v42  ;;  %v4178_v33 = vcvt.s32.f32 %v1874_v59  ;;  %v4202_v47 = vcvt.s32.f32 %v1898_v27  ;;  %v10582_v38 = vpop.f32.mrf.mxu3  ;;  %v7777_v13 = vpop.f32.mrf.mxu0 }
 0x54f   :  { %7980 = vmatpush.bf16.msra.mxu0 %v5306_v17  ;;  %v5690_v23 = vpack.c.bf16 %v3818_v49, %v3794_v50  ;;  %v698_v25 = vunpack.c.1.s8 %v98_v57  ;;  %v2978_v24 = vcvt.s32.f32 %v674_v2  ;;  %v1058_v35 = vunpack.c.0.s8 %v10553_v8  ;;  %v7790_v59 = vpop.f32.mrf.mxu1 }
 0x550   :  { %8999 = vrcp.f32 %v10557_v19  ;;  %v8789_v29 = vand.u32 2147483648, %v10557_v19  ;;  %7993 = vmatpush.bf16.msra.mxu1 %v5498_v40  ;;  %v5882_v52 = vpack.c.bf16 %v4202_v47, %v4178_v33  ;;  %v1082_v41 = vunpack.c.1.s8 %v10553_v8 }
 0x551   :  { %8006 = vmatpush.bf16.msra.mxu2 %v5690_v23  ;;  %v3002_v26 = vcvt.s32.f32 %v698_v25  ;;  %v3362_v39 = vcvt.s32.f32 %v1058_v35  ;;  %v8787_v57 = vand.u32 2147483647, %v10557_v19  ;;  %v1442_v63 = vunpack.c.0.s8 %v290_v9 }
 0x552   :  { %v10570_v28 = vor.u32 1.1754944e-38, %v8789_v29  ;;  %v1466_v61 = vunpack.c.1.s8 %v290_v9  ;;  %vm8783_vm0 = vweird.f32 %v10557_v19  ;;  %8019 = vmatpush.bf16.msra.mxu3 %v5882_v52  ;;  %v3386_v51 = vcvt.s32.f32 %v1082_v41 }
 0x553   :  { %v5282_v34 = vpack.c.bf16 %v3002_v26, %v2978_v24  ;;  %v1826_v44 = vunpack.c.0.s8 %v386_v4  ;;  %v1850_v46 = vunpack.c.1.s8 %v386_v4  ;;  %v3746_v37 = vcvt.s32.f32 %v1442_v63 }
 0x554   :  { %v3770_v8 = vcvt.s32.f32 %v1466_v61  ;;  %v2546_v45 = vunpack.c.2.s8 %v10567_v32  ;;  %v2570_v48 = vunpack.c.3.s8 %v10567_v32  ;;  %v5474_v6 = vpack.c.bf16 %v3386_v51, %v3362_v39  ;;  %v7803_v51 = vpop.f32.mrf.mxu2 }
 0x555   :  { %7981 = vmatpush.bf16.msra.mxu0 %v5282_v34  ;;  %v4130_v15 = vcvt.s32.f32 %v1826_v44  ;;  %v4154_v55 = vcvt.s32.f32 %v1850_v46  ;;  %v2930_v9 = vunpack.c.2.s8 %v10572_v7  ;;  %v2954_v18 = vunpack.c.3.s8 %v10572_v7 }
 0x556   :  { %v10584_v10 = vpop.eup %8999  ;;  %v5666_v4 = vpack.c.bf16 %v3770_v8, %v3746_v37  ;;  %v4850_v31 = vcvt.s32.f32 %v2546_v45  ;;  %v4874_v3 = vcvt.s32.f32 %v2570_v48  ;;  %vm10592_vm2 = vcmp.eq.f32.partialorder %v8787_v57, 8.507059e+37  ;;  %7994 = vmatpush.bf16.msra.mxu1 %v5474_v6  ;;  %v7816_v44 = vpop.f32.mrf.mxu3  ;;  %v530_v8 = vld [vmem:[#allocation2 + $0xe20] sm:$0xff] }
 0x557   :  { %v8779_v42 = vmul.f32 %v10584_v10, %v10557_v19  ;;  %vm8784_vm1 = vweird.f32 %v10584_v10  ;;  %v5858_v21 = vpack.c.bf16 %v4154_v55, %v4130_v15  ;;  %v5234_v58 = vcvt.s32.f32 %v2930_v9  ;;  %v626_v45 = vld [vmem:[#allocation2 + $0x1120] sm:$0xff]  ;;  %v147_v9 = vld [vmem:[#allocation2 + $0x228] sm:$0xff] }
 0x558   :  { %8007 = vmatpush.bf16.msra.mxu2 %v5666_v4  ;;  %v6218_v27 = vpack.c.bf16 %v4874_v3, %v4850_v31  ;;  %v5258_v54 = vcvt.s32.f32 %v2954_v18  ;;  %v1011_v17 = vunpack.c.2.s8 %v10578_v20  ;;  %v1035_v50 = vunpack.c.3.s8 %v10578_v20  ;;  %7982 = vmatmul.bf16.vlgmr.msra.gmra.mxu0 %v9163_v14  ;;  %vm8785_vm3 = vmor %vm8783_vm0, %vm8784_vm1 }
 0x559   :  { %v8780_v49 = vsub.f32 1.0, %v8779_v42  ;;  %8020 = vmatpush.bf16.msra.mxu3 %v5858_v21  ;;  %v1395_v2 = vunpack.c.2.s8 %v10587_v12  ;;  %v1419_v40 = vunpack.c.3.s8 %v10587_v12  ;;  %v10603_v33 = vadd.f32 %v10551_v1, %v10549_v62  ;;  %7995 = vmatmul.bf16.vlgmr.msra.gmra.mxu1 %v9169_v36  ;;  %v243_v21 = vld [vmem:[#allocation2 + $0x528] sm:$0xff] }
 0x55a   :  { %8026 = vmatpush.bf16.msrb.mxu0 %v6218_v27  ;;  %v6410_v47 = vpack.c.bf16 %v5258_v54, %v5234_v58  ;;  %v3315_v23 = vcvt.s32.f32 %v1011_v17  ;;  %v3339_v25 = vcvt.s32.f32 %v1035_v50  ;;  %v2498_v24 = vunpack.c.0.s8 %v10567_v32 }
 0x55b   :  { %v8781_v35 = vmul.f32 %v10584_v10, %v8780_v49  ;;  %v3699_v29 = vcvt.s32.f32 %v1395_v2  ;;  %v3723_v52 = vcvt.s32.f32 %v1419_v40  ;;  %v2522_v26 = vunpack.c.1.s8 %v10567_v32  ;;  %8008 = vmatmul.bf16.vlgmr.msra.gmra.mxu2 %v9178_v0 }
 0x55c   :  { %8039 = vmatpush.bf16.msrb.mxu1 %v6410_v47  ;;  %v5451_v41 = vpack.c.bf16 %v3339_v25, %v3315_v23  ;;  %v4802_v62 = vcvt.s32.f32 %v2498_v24  ;;  %v2882_v1 = vunpack.c.0.s8 %v10572_v7  ;;  %v2906_v39 = vunpack.c.1.s8 %v10572_v7  ;;  %8021 = vmatmul.bf16.vlgmr.msra.gmra.mxu3 %v9180_v5 }
 0x55d   :  { %v8782_v57 = vadd.f32 %v10584_v10, %v8781_v35  ;;  %v5643_v63 = vpack.c.bf16 %v3723_v52, %v3699_v29  ;;  %v4826_v61 = vcvt.s32.f32 %v2522_v26  ;;  %v963_v34 = vunpack.c.0.s8 %v10578_v20 }
 0x55e   :  { %8052 = vmatpush.bf16.msrb.mxu2 %v5451_v41  ;;  %v5186_v32 = vcvt.s32.f32 %v2882_v1  ;;  %v5210_v46 = vcvt.s32.f32 %v2906_v39  ;;  %v987_v7 = vunpack.c.1.s8 %v10578_v20  ;;  %v1347_v37 = vunpack.c.0.s8 %v10587_v12 }
 0x55f   :  { %v8786_v48 = vsel %vm8785_vm3, %v10584_v10, %v8782_v57  ;;  %8065 = vmatpush.bf16.msrb.mxu3 %v5643_v63  ;;  %v6194_v6 = vpack.c.bf16 %v4826_v61, %v4802_v62  ;;  %v3267_v15 = vcvt.s32.f32 %v963_v34  ;;  %v1371_v55 = vunpack.c.1.s8 %v10587_v12  ;;  %v506_v34 = vld [vmem:[#allocation2 + $0xd60] sm:$0xff] }
 0x560   :  { %v8791_v19 = vsel %vm10592_vm2, %v10570_v28, %v8786_v48  ;;  %v6386_v4 = vpack.c.bf16 %v5210_v46, %v5186_v32  ;;  %v3291_v31 = vcvt.s32.f32 %v987_v7  ;;  %v3651_v3 = vcvt.s32.f32 %v1347_v37  ;;  %v602_v7 = vld [vmem:[#allocation2 + $0x1060] sm:$0xff] }
 0x561   :  { %8914 = vst [vmem:[%s10886_s4 + $0x80] sm:$0xff] %v8791_v19  ;;  %8027 = vmatpush.bf16.msrb.mxu0 %v6194_v6  ;;  %v3675_v20 = vcvt.s32.f32 %v1371_v55  ;;  %v2450_v10 = vunpack.c.2.s8 %v530_v8  ;;  %v2474_v18 = vunpack.c.3.s8 %v530_v8  ;;  %v2834_v42 = vunpack.c.2.s8 %v626_v45 }
 0x562   :  { %8040 = vmatpush.bf16.msrb.mxu1 %v6386_v4  ;;  %v5427_v12 = vpack.c.bf16 %v3291_v31, %v3267_v15  ;;  %v2858_v58 = vunpack.c.3.s8 %v626_v45  ;;  %v915_v13 = vunpack.c.2.s8 %v147_v9  ;;  %v939_v59 = vunpack.c.3.s8 %v147_v9  ;;  %v123_v15 = vld [vmem:[#allocation2 + $0x168] sm:$0xff] }
 0x563   :  { %v5619_v56 = vpack.c.bf16 %v3675_v20, %v3651_v3  ;;  %v4754_v28 = vcvt.s32.f32 %v2450_v10  ;;  %v4778_v27 = vcvt.s32.f32 %v2474_v18  ;;  %v5138_v54 = vcvt.s32.f32 %v2834_v42  ;;  %v219_v4 = vld [vmem:[#allocation2 + $0x468] sm:$0xff] }
 0x564   :  { %8053 = vmatpush.bf16.msrb.mxu2 %v5427_v12  ;;  %v5162_v17 = vcvt.s32.f32 %v2858_v58  ;;  %v3219_v50 = vcvt.s32.f32 %v915_v13  ;;  %v3243_v49 = vcvt.s32.f32 %v939_v59  ;;  %v1299_v2 = vunpack.c.2.s8 %v243_v21 }
 0x565   :  { %8066 = vmatpush.bf16.msrb.mxu3 %v5619_v56  ;;  %v6170_v40 = vpack.c.bf16 %v4778_v27, %v4754_v28  ;;  %v1323_v47 = vunpack.c.3.s8 %v243_v21  ;;  %v2402_v23 = vunpack.c.0.s8 %v530_v8  ;;  %v2426_v25 = vunpack.c.1.s8 %v530_v8 }
 0x566   :  { %v6362_v24 = vpack.c.bf16 %v5162_v17, %v5138_v54  ;;  %v5403_v35 = vpack.c.bf16 %v3243_v49, %v3219_v50  ;;  %v3603_v29 = vcvt.s32.f32 %v1299_v2  ;;  %v2786_v52 = vunpack.c.0.s8 %v626_v45 }
 0x567   :  { %8028 = vmatpush.bf16.msrb.mxu0 %v6170_v40  ;;  %v3627_v26 = vcvt.s32.f32 %v1323_v47  ;;  %v4706_v41 = vcvt.s32.f32 %v2402_v23  ;;  %v4730_v62 = vcvt.s32.f32 %v2426_v25  ;;  %v2810_v1 = vunpack.c.1.s8 %v626_v45 }
 0x568   :  { %8041 = vmatpush.bf16.msrb.mxu1 %v6362_v24  ;;  %8054 = vmatpush.bf16.msrb.mxu2 %v5403_v35  ;;  %v5090_v39 = vcvt.s32.f32 %v2786_v52  ;;  %v867_v57 = vunpack.c.0.s8 %v147_v9  ;;  %v891_v63 = vunpack.c.1.s8 %v147_v9  ;;  %v1251_v61 = vunpack.c.0.s8 %v243_v21 }
 0x569   :  { %v5595_v51 = vpack.c.bf16 %v3627_v26, %v3603_v29  ;;  %v6146_v44 = vpack.c.bf16 %v4730_v62, %v4706_v41  ;;  %v5114_v32 = vcvt.s32.f32 %v2810_v1  ;;  %v1275_v46 = vunpack.c.1.s8 %v243_v21  ;;  %v482_v41 = vld [vmem:[#allocation2 + $0xca0] sm:$0xff] }
 0x56a   :  { %v3171_v37 = vcvt.s32.f32 %v867_v57  ;;  %v3195_v8 = vcvt.s32.f32 %v891_v63  ;;  %v3555_v48 = vcvt.s32.f32 %v1251_v61  ;;  %v7776_v6 = vadd.f32 %v10560_v22, %v10603_v33  ;;  %v578_v61 = vld [vmem:[#allocation2 + $0xfa0] sm:$0xff] }
 0x56b   :  { %8067 = vmatpush.bf16.msrb.mxu3 %v5595_v51  ;;  %8029 = vmatpush.bf16.msrb.mxu0 %v6146_v44  ;;  %v6338_v45 = vpack.c.bf16 %v5114_v32, %v5090_v39  ;;  %v3579_v55 = vcvt.s32.f32 %v1275_v46  ;;  %v2354_v19 = vunpack.c.2.s8 %v506_v34  ;;  %v2378_v9 = vunpack.c.3.s8 %v506_v34  ;;  %v99_v46 = vld [vmem:[#allocation2 + $0xa8] sm:$0xff] }
 0x56c   :  { %v5379_v31 = vpack.c.bf16 %v3195_v8, %v3171_v37  ;;  %v7789_v3 = vadd.f32 %v10562_v43, %v7776_v6  ;;  %v2738_v20 = vunpack.c.2.s8 %v602_v7  ;;  %v2762_v10 = vunpack.c.3.s8 %v602_v7  ;;  %v195_v6 = vld [vmem:[#allocation2 + $0x3a8] sm:$0xff] }
 0x56d   :  { %8042 = vmatpush.bf16.msrb.mxu1 %v6338_v45  ;;  %v5571_v18 = vpack.c.bf16 %v3579_v55, %v3555_v48  ;;  %v4658_v42 = vcvt.s32.f32 %v2354_v19  ;;  %v4682_v21 = vcvt.s32.f32 %v2378_v9  ;;  %v819_v12 = vunpack.c.2.s8 %v123_v15 }
 0x56e   :  { %8055 = vmatpush.bf16.msrb.mxu2 %v5379_v31  ;;  %v5042_v22 = vcvt.s32.f32 %v2738_v20  ;;  %v5066_v33 = vcvt.s32.f32 %v2762_v10  ;;  %v843_v58 = vunpack.c.3.s8 %v123_v15  ;;  %v1203_v13 = vunpack.c.2.s8 %v219_v4 }
 0x56f   :  { %8068 = vmatpush.bf16.msrb.mxu3 %v5571_v18  ;;  %v6122_v59 = vpack.c.bf16 %v4682_v21, %v4658_v42  ;;  %v3123_v56 = vcvt.s32.f32 %v819_v12  ;;  %v1227_v28 = vunpack.c.3.s8 %v219_v4  ;;  %v7802_v27 = vadd.f32 %v10580_v53, %v7789_v3 }
 0x570   :  { %v6314_v54 = vpack.c.bf16 %v5066_v33, %v5042_v22  ;;  %v3147_v43 = vcvt.s32.f32 %v843_v58  ;;  %v3507_v17 = vcvt.s32.f32 %v1203_v13  ;;  %v8309_v50 = vperm.slane %v10542_v60, 1 }
 0x571   :  { %8030 = vmatpush.bf16.msrb.mxu0 %v6122_v59  ;;  %v3531_v49 = vcvt.s32.f32 %v1227_v28  ;;  %v7815_v2 = vadd.f32 %v10582_v38, %v7802_v27  ;;  %v8387_v40 = vperm.slane %v10544_v30, 1  ;;  %v2306_v47 = vunpack.c.0.s8 %v506_v34 }
 0x572   :  { %8043 = vmatpush.bf16.msrb.mxu1 %v6314_v54  ;;  %v5355_v23 = vpack.c.bf16 %v3147_v43, %v3123_v56  ;;  %v2330_v25 = vunpack.c.1.s8 %v506_v34  ;;  %v2690_v24 = vunpack.c.0.s8 %v602_v7  ;;  %v2714_v35 = vunpack.c.1.s8 %v602_v7 }
 0x573   :  { %v5547_v29 = vpack.c.bf16 %v3531_v49, %v3507_v17  ;;  %v8357_v52 = vmul.f32 %v8309_v50, %v7815_v2  ;;  %v4610_v53 = vcvt.s32.f32 %v2306_v47  ;;  %v771_v26 = vunpack.c.0.s8 %v123_v15  ;;  %v363_v2 = vld [vmem:[#allocation2 + $0x8e8] sm:$0xff] }
 0x574   :  { %8056 = vmatpush.bf16.msrb.mxu2 %v5355_v23  ;;  %v4634_v62 = vcvt.s32.f32 %v2330_v25  ;;  %v4994_v60 = vcvt.s32.f32 %v2690_v24  ;;  %v5018_v1 = vcvt.s32.f32 %v2714_v35  ;;  %v795_v39 = vunpack.c.1.s8 %v123_v15 }
 0x575   :  { %8069 = vmatpush.bf16.msrb.mxu3 %v5547_v29  ;;  %v8435_v38 = vadd.f32 %v8387_v40, %v8357_v52  ;;  %v3075_v57 = vcvt.s32.f32 %v771_v26  ;;  %v1155_v30 = vunpack.c.0.s8 %v219_v4  ;;  %v1179_v63 = vunpack.c.1.s8 %v219_v4 }
 0x576   :  { %v6098_v51 = vpack.c.bf16 %v4634_v62, %v4610_v53  ;;  %v6290_v34 = vpack.c.bf16 %v5018_v1, %v4994_v60  ;;  %v3099_v44 = vcvt.s32.f32 %v795_v39  ;;  %v2258_v32 = vunpack.c.2.s8 %v482_v41  ;;  %v459_v53 = vld [vmem:[#allocation2 + $0xbe8] sm:$0xff] }
 0x577   :  { %v8459_v7 = vsub.f32 0.0, %v8435_v38  ;;  %v3459_v37 = vcvt.s32.f32 %v1155_v30  ;;  %v3483_v8 = vcvt.s32.f32 %v1179_v63  ;;  %v2282_v48 = vunpack.c.3.s8 %v482_v41 }
 0x578   :  { %8031 = vmatpush.bf16.msrb.mxu0 %v6098_v51  ;;  %8044 = vmatpush.bf16.msrb.mxu1 %v6290_v34  ;;  %v5331_v45 = vpack.c.bf16 %v3099_v44, %v3075_v57  ;;  %v4562_v15 = vcvt.s32.f32 %v2258_v32  ;;  %v2642_v55 = vunpack.c.2.s8 %v578_v61  ;;  %v2666_v19 = vunpack.c.3.s8 %v578_v61  ;;  %v555_v44 = vld [vmem:[#allocation2 + $0xee8] sm:$0xff] }
 0x579   :  { %v8500_v9 = vmul.f32 1.442695, %v8459_v7  ;;  %v5523_v31 = vpack.c.bf16 %v3483_v8, %v3459_v37  ;;  %v4586_v4 = vcvt.s32.f32 %v2282_v48  ;;  %v723_v3 = vunpack.c.2.s8 %v99_v46 }
 0x57a   :  { %8057 = vmatpush.bf16.msrb.mxu2 %v5331_v45  ;;  %v4946_v20 = vcvt.s32.f32 %v2642_v55  ;;  %v4970_v10 = vcvt.s32.f32 %v2666_v19  ;;  %v747_v18 = vunpack.c.3.s8 %v99_v46  ;;  %v1107_v42 = vunpack.c.2.s8 %v195_v6 }
 0x57b   :  { %9001 = vpow2.f32 %v8500_v9  ;;  %8070 = vmatpush.bf16.msrb.mxu3 %v5523_v31  ;;  %v6074_v21 = vpack.c.bf16 %v4586_v4, %v4562_v15  ;;  %v3027_v12 = vcvt.s32.f32 %v723_v3  ;;  %v1131_v22 = vunpack.c.3.s8 %v195_v6  ;;  %v10645_v3 = vpop.f32.mrf.mxu0 }
 0x57c   :  { %v6266_v33 = vpack.c.bf16 %v4970_v10, %v4946_v20  ;;  %v3051_v58 = vcvt.s32.f32 %v747_v18  ;;  %v3411_v13 = vcvt.s32.f32 %v1107_v42  ;;  %v2210_v59 = vunpack.c.0.s8 %v482_v41 }
 0x57d   :  { %8032 = vmatpush.bf16.msrb.mxu0 %v6074_v21  ;;  %v3435_v56 = vcvt.s32.f32 %v1131_v22  ;;  %v2234_v28 = vunpack.c.1.s8 %v482_v41  ;;  %v2594_v27 = vunpack.c.0.s8 %v578_v61  ;;  %v2618_v54 = vunpack.c.1.s8 %v578_v61 }
 0x57e   :  { %8045 = vmatpush.bf16.msrb.mxu1 %v6266_v33  ;;  %v5307_v43 = vpack.c.bf16 %v3051_v58, %v3027_v12  ;;  %v4514_v17 = vcvt.s32.f32 %v2210_v59  ;;  %v675_v50 = vunpack.c.0.s8 %v99_v46  ;;  %v699_v49 = vunpack.c.1.s8 %v99_v46  ;;  %v651_v46 = vld [vmem:[#allocation2 + $0x11e8] sm:$0xff] }
 0x57f   :  { %v5499_v40 = vpack.c.bf16 %v3435_v56, %v3411_v13  ;;  %v4538_v47 = vcvt.s32.f32 %v2234_v28  ;;  %v4898_v23 = vcvt.s32.f32 %v2594_v27  ;;  %v4922_v25 = vcvt.s32.f32 %v2618_v54  ;;  %v10649_v27 = vld [vmem:[#allocation2 + $0x828] sm:$0xff] }
 0x580   :  { %8058 = vmatpush.bf16.msrb.mxu2 %v5307_v43  ;;  %v2979_v24 = vcvt.s32.f32 %v675_v50  ;;  %v3003_v35 = vcvt.s32.f32 %v699_v49  ;;  %v1059_v29 = vunpack.c.0.s8 %v195_v6  ;;  %v1083_v52 = vunpack.c.1.s8 %v195_v6  ;;  %v10657_v49 = vld [vmem:[#allocation2 + $0xb28] sm:$0xff] }
 0x581   :  { %v9002_v26 = vpop.eup %9001  ;;  %8071 = vmatpush.bf16.msrb.mxu3 %v5499_v40  ;;  %v6050_v41 = vpack.c.bf16 %v4538_v47, %v4514_v17  ;;  %v6242_v62 = vpack.c.bf16 %v4922_v25, %v4898_v23  ;;  %v1779_v60 = vunpack.c.2.s8 %v363_v2  ;;  %v1803_v1 = vunpack.c.3.s8 %v363_v2  ;;  %v10659_v25 = vpop.f32.mrf.mxu1 }
 0x582   :  { %v10636_v39 = vadd.f32 1.0, %v9002_v26  ;;  %v5283_v38 = vpack.c.bf16 %v3003_v35, %v2979_v24  ;;  %v3363_v57 = vcvt.s32.f32 %v1059_v29  ;;  %v3387_v30 = vcvt.s32.f32 %v1083_v52 }
 0x583   :  { %8033 = vmatpush.bf16.msrb.mxu0 %v6050_v41  ;;  %8046 = vmatpush.bf16.msrb.mxu1 %v6242_v62  ;;  %v4083_v63 = vcvt.s32.f32 %v1779_v60  ;;  %v4107_v61 = vcvt.s32.f32 %v1803_v1  ;;  %v2163_v51 = vunpack.c.2.s8 %v459_v53  ;;  %v2187_v34 = vunpack.c.3.s8 %v459_v53 }
 0x584   :  { %9003 = vrcp.f32 %v10636_v39  ;;  %v8804_v32 = vand.u32 2147483648, %v10636_v39  ;;  %8059 = vmatpush.bf16.msrb.mxu2 %v5283_v38  ;;  %v5475_v7 = vpack.c.bf16 %v3387_v30, %v3363_v57  ;;  %v8802_v6 = vand.u32 2147483647, %v10636_v39 }
 0x585   :  { %v5835_v37 = vpack.c.bf16 %v4107_v61, %v4083_v63  ;;  %v4467_v8 = vcvt.s32.f32 %v2163_v51  ;;  %v4491_v48 = vcvt.s32.f32 %v2187_v34  ;;  %v2547_v15 = vunpack.c.2.s8 %v555_v44  ;;  %v627_v63 = vld [vmem:[#allocation2 + $0x1128] sm:$0xff]  ;;  %v7829_v61 = vpop.f32.mrf.mxu0 }
 0x586   :  { %v10641_v45 = vor.u32 1.1754944e-38, %v8804_v32  ;;  %v2571_v55 = vunpack.c.3.s8 %v555_v44  ;;  %8034 = vmatmul.bf16.vlgmr.msrb.gmra.mxu0 %v9194_v11  ;;  %8047 = vmatmul.bf16.vlgmr.msrb.gmra.mxu1 %v9198_v16  ;;  %v2931_v9 = vunpack.c.2.s8 %v651_v46  ;;  %v2955_v31 = vunpack.c.3.s8 %v651_v46 }
 0x587   :  { %8072 = vmatpush.bf16.msrb.mxu3 %v5475_v7  ;;  %8078 = vmatpush.bf16.msra.mxu0 %v5835_v37  ;;  %v6027_v19 = vpack.c.bf16 %v4491_v48, %v4467_v8  ;;  %v1731_v4 = vunpack.c.0.s8 %v363_v2  ;;  %v4851_v20 = vcvt.s32.f32 %v2547_v15  ;;  %v1755_v18 = vunpack.c.1.s8 %v363_v2 }
 0x588   :  { %v4875_v10 = vcvt.s32.f32 %v2571_v55  ;;  %v2115_v42 = vunpack.c.0.s8 %v459_v53  ;;  %8060 = vmatmul.bf16.vlgmr.msrb.gmra.mxu2 %v9163_v14  ;;  %vm8798_vm4 = vweird.f32 %v10636_v39  ;;  %v5235_v21 = vcvt.s32.f32 %v2931_v9 }
 0x589   :  { %8091 = vmatpush.bf16.msra.mxu1 %v6027_v19  ;;  %v5259_v12 = vcvt.s32.f32 %v2955_v31  ;;  %v4035_v22 = vcvt.s32.f32 %v1731_v4  ;;  %v2139_v33 = vunpack.c.1.s8 %v459_v53  ;;  %v4059_v59 = vcvt.s32.f32 %v1755_v18  ;;  %v531_v53 = vld [vmem:[#allocation2 + $0xe28] sm:$0xff] }
 0x58a   :  { %v9004_v58 = vpop.eup %9003  ;;  %v6219_v13 = vpack.c.bf16 %v4875_v10, %v4851_v20  ;;  %v4419_v56 = vcvt.s32.f32 %v2115_v42  ;;  %v2499_v28 = vunpack.c.0.s8 %v555_v44  ;;  %8073 = vmatmul.bf16.vlgmr.msrb.gmra.mxu3 %v9169_v36  ;;  %vm10653_vm6 = vcmp.eq.f32.partialorder %v8802_v6, 8.507059e+37  ;;  %v7842_v42 = vpop.f32.mrf.mxu1 }
 0x58b   :  { %v8794_v54 = vmul.f32 %v9004_v58, %v10636_v39  ;;  %vm8799_vm5 = vweird.f32 %v9004_v58  ;;  %v6411_v17 = vpack.c.bf16 %v5259_v12, %v5235_v21  ;;  %v4443_v50 = vcvt.s32.f32 %v2139_v33 }
 0x58c   :  { %8104 = vmatpush.bf16.msra.mxu2 %v6219_v13  ;;  %v5811_v2 = vpack.c.bf16 %v4059_v59, %v4035_v22  ;;  %v2523_v40 = vunpack.c.1.s8 %v555_v44  ;;  %v4803_v47 = vcvt.s32.f32 %v2499_v28  ;;  %v2883_v23 = vunpack.c.0.s8 %v651_v46  ;;  %vm8800_vm7 = vmor %vm8798_vm4, %vm8799_vm5 }
 0x58d   :  { %v8795_v24 = vsub.f32 1.0, %v8794_v54  ;;  %8117 = vmatpush.bf16.msra.mxu3 %v6411_v17  ;;  %v6003_v35 = vpack.c.bf16 %v4443_v50, %v4419_v56  ;;  %v2907_v29 = vunpack.c.1.s8 %v651_v46  ;;  %v1683_v52 = vunpack.c.2.s8 %v10649_v27  ;;  %v411_v17 = vld [vmem:[#allocation2 + $0xa68] sm:$0xff] }
 0x58e   :  { %8079 = vmatpush.bf16.msra.mxu0 %v5811_v2  ;;  %v4827_v26 = vcvt.s32.f32 %v2523_v40  ;;  %v5187_v41 = vcvt.s32.f32 %v2883_v23  ;;  %v1707_v62 = vunpack.c.3.s8 %v10649_v27  ;;  %v2067_v60 = vunpack.c.2.s8 %v10657_v49  ;;  %v507_v23 = vld [vmem:[#allocation2 + $0xd68] sm:$0xff] }
 0x58f   :  { %v8796_v1 = vmul.f32 %v9004_v58, %v8795_v24  ;;  %8092 = vmatpush.bf16.msra.mxu1 %v6003_v35  ;;  %v5211_v38 = vcvt.s32.f32 %v2907_v29  ;;  %v3987_v57 = vcvt.s32.f32 %v1683_v52  ;;  %v2091_v30 = vunpack.c.3.s8 %v10657_v49  ;;  %v603_v52 = vld [vmem:[#allocation2 + $0x1068] sm:$0xff] }
 0x590   :  { %v6195_v51 = vpack.c.bf16 %v4827_v26, %v4803_v47  ;;  %v4011_v34 = vcvt.s32.f32 %v1707_v62  ;;  %v4371_v44 = vcvt.s32.f32 %v2067_v60  ;;  %v2451_v32 = vunpack.c.2.s8 %v531_v53 }
 0x591   :  { %v8797_v46 = vadd.f32 %v9004_v58, %v8796_v1  ;;  %v6387_v7 = vpack.c.bf16 %v5211_v38, %v5187_v41  ;;  %v4395_v37 = vcvt.s32.f32 %v2091_v30  ;;  %v2475_v8 = vunpack.c.3.s8 %v531_v53 }
 0x592   :  { %8105 = vmatpush.bf16.msra.mxu2 %v6195_v51  ;;  %v5787_v48 = vpack.c.bf16 %v4011_v34, %v3987_v57  ;;  %v4755_v6 = vcvt.s32.f32 %v2451_v32  ;;  %v2835_v15 = vunpack.c.2.s8 %v627_v63  ;;  %v2859_v55 = vunpack.c.3.s8 %v627_v63  ;;  %v10678_v34 = vpop.f32.mrf.mxu2 }
 0x593   :  { %v8801_v19 = vsel %vm8800_vm7, %v9004_v58, %v8797_v46  ;;  %8118 = vmatpush.bf16.msra.mxu3 %v6387_v7  ;;  %v5979_v9 = vpack.c.bf16 %v4395_v37, %v4371_v44  ;;  %v4779_v31 = vcvt.s32.f32 %v2475_v8  ;;  %v1635_v4 = vunpack.c.0.s8 %v10649_v27  ;;  %v315_v58 = vld [vmem:[#allocation2 + $0x768] sm:$0xff] }
 0x594   :  { %v8806_v20 = vsel %vm10653_vm6, %v10641_v45, %v8801_v19  ;;  %8080 = vmatpush.bf16.msra.mxu0 %v5787_v48  ;;  %v5139_v10 = vcvt.s32.f32 %v2835_v15  ;;  %v5163_v18 = vcvt.s32.f32 %v2859_v55  ;;  %v1659_v39 = vunpack.c.1.s8 %v10649_v27 }
 0x595   :  { %8915 = vst [vmem:[%s10886_s4 + $0x88] sm:$0xff] %v8806_v20  ;;  %8093 = vmatpush.bf16.msra.mxu1 %v5979_v9  ;;  %v6171_v21 = vpack.c.bf16 %v4779_v31, %v4755_v6  ;;  %v3939_v12 = vcvt.s32.f32 %v1635_v4  ;;  %v2019_v22 = vunpack.c.0.s8 %v10657_v49  ;;  %v2043_v33 = vunpack.c.1.s8 %v10657_v49  ;;  %v10680_v31 = vld [vmem:[#allocation2 + $0x6a8] sm:$0xff] }
 0x596   :  { %v6363_v13 = vpack.c.bf16 %v5163_v18, %v5139_v10  ;;  %v3963_v45 = vcvt.s32.f32 %v1659_v39  ;;  %v2403_v59 = vunpack.c.0.s8 %v531_v53  ;;  %v2427_v56 = vunpack.c.1.s8 %v531_v53 }
 0x597   :  { %8106 = vmatpush.bf16.msra.mxu2 %v6171_v21  ;;  %v4323_v28 = vcvt.s32.f32 %v2019_v22  ;;  %v4347_v27 = vcvt.s32.f32 %v2043_v33  ;;  %v2787_v54 = vunpack.c.0.s8 %v627_v63  ;;  %v2811_v43 = vunpack.c.1.s8 %v627_v63  ;;  %v387_v22 = vld [vmem:[#allocation2 + $0x9a8] sm:$0xff]  ;;  %v10682_v33 = vpop.f32.mrf.mxu3 }
 0x598   :  { %8119 = vmatpush.bf16.msra.mxu3 %v6363_v13  ;;  %v5763_v50 = vpack.c.bf16 %v3963_v45, %v3939_v12  ;;  %v4707_v2 = vcvt.s32.f32 %v2403_v59  ;;  %v4731_v40 = vcvt.s32.f32 %v2427_v56  ;;  %v1587_v47 = vunpack.c.2.s8 %v315_v58 }
 0x599   :  { %v5955_v24 = vpack.c.bf16 %v4347_v27, %v4323_v28  ;;  %v5091_v35 = vcvt.s32.f32 %v2787_v54  ;;  %v5115_v49 = vcvt.s32.f32 %v2811_v43  ;;  %v1611_v29 = vunpack.c.3.s8 %v315_v58  ;;  %v483_v28 = vld [vmem:[#allocation2 + $0xca8] sm:$0xff] }
 0x59a   :  { %8081 = vmatpush.bf16.msra.mxu0 %v5763_v50  ;;  %v6147_v26 = vpack.c.bf16 %v4731_v40, %v4707_v2  ;;  %v3891_v53 = vcvt.s32.f32 %v1587_v47  ;;  %v1971_v41 = vunpack.c.2.s8 %v411_v17  ;;  %v1995_v62 = vunpack.c.3.s8 %v411_v17  ;;  %v579_v50 = vld [vmem:[#allocation2 + $0xfa8] sm:$0xff] }
 0x59b   :  { %8094 = vmatpush.bf16.msra.mxu1 %v5955_v24  ;;  %v6339_v60 = vpack.c.bf16 %v5115_v49, %v5091_v35  ;;  %v3915_v1 = vcvt.s32.f32 %v1611_v29  ;;  %v2355_v38 = vunpack.c.2.s8 %v507_v23  ;;  %v2379_v57 = vunpack.c.3.s8 %v507_v23  ;;  %v7855_v24 = vpop.f32.mrf.mxu2 }
 0x59c   :  { %8107 = vmatpush.bf16.msra.mxu2 %v6147_v26  ;;  %v4275_v30 = vcvt.s32.f32 %v1971_v41  ;;  %v4299_v63 = vcvt.s32.f32 %v1995_v62  ;;  %v2739_v61 = vunpack.c.2.s8 %v603_v52  ;;  %v2763_v51 = vunpack.c.3.s8 %v603_v52 }
 0x59d   :  { %8120 = vmatpush.bf16.msra.mxu3 %v6339_v60  ;;  %v5739_v44 = vpack.c.bf16 %v3915_v1, %v3891_v53  ;;  %v4659_v32 = vcvt.s32.f32 %v2355_v38  ;;  %v4683_v46 = vcvt.s32.f32 %v2379_v57  ;;  %v1539_v7 = vunpack.c.0.s8 %v315_v58  ;;  %v10688_v60 = vpop.f32.mrf.mxu1 }
 0x59e   :  { %v5931_v37 = vpack.c.bf16 %v4299_v63, %v4275_v30  ;;  %v5043_v8 = vcvt.s32.f32 %v2739_v61  ;;  %v5067_v48 = vcvt.s32.f32 %v2763_v51  ;;  %v1563_v6 = vunpack.c.1.s8 %v315_v58  ;;  %v10684_v58 = vpop.f32.mrf.mxu0 }
 0x59f   :  { %8082 = vmatpush.bf16.msra.mxu0 %v5739_v44  ;;  %v6123_v15 = vpack.c.bf16 %v4683_v46, %v4659_v32  ;;  %v3843_v55 = vcvt.s32.f32 %v1539_v7  ;;  %v1923_v19 = vunpack.c.0.s8 %v411_v17  ;;  %v1947_v9 = vunpack.c.1.s8 %v411_v17 }
 0x5a0   :  { %8095 = vmatpush.bf16.msra.mxu1 %v5931_v37  ;;  %v6315_v4 = vpack.c.bf16 %v5067_v48, %v5043_v8  ;;  %v3867_v20 = vcvt.s32.f32 %v1563_v6  ;;  %v2307_v10 = vunpack.c.0.s8 %v507_v23  ;;  %v2331_v18 = vunpack.c.1.s8 %v507_v23  ;;  %v172_v8 = vld [vmem:[#allocation2 + $0x2f0] sm:$0xff]  ;;  %v7868_v48 = vpop.f32.mrf.mxu3 }
 0x5a1   :  { %8108 = vmatpush.bf16.msra.mxu2 %v6123_v15  ;;  %v4227_v39 = vcvt.s32.f32 %v1923_v19  ;;  %v4251_v42 = vcvt.s32.f32 %v1947_v9  ;;  %v2691_v21 = vunpack.c.0.s8 %v603_v52  ;;  %v2715_v12 = vunpack.c.1.s8 %v603_v52 }
 0x5a2   :  { %8121 = vmatpush.bf16.msra.mxu3 %v6315_v4  ;;  %v5715_v13 = vpack.c.bf16 %v3867_v20, %v3843_v55  ;;  %v4611_v45 = vcvt.s32.f32 %v2307_v10  ;;  %v4635_v59 = vcvt.s32.f32 %v2331_v18  ;;  %v1491_v56 = vunpack.c.2.s8 %v10680_v31  ;;  %v268_v10 = vld [vmem:[#allocation2 + $0x5f0] sm:$0xff] }
 0x5a3   :  { %v5907_v27 = vpack.c.bf16 %v4251_v42, %v4227_v39  ;;  %v4995_v54 = vcvt.s32.f32 %v2691_v21  ;;  %v5019_v43 = vcvt.s32.f32 %v2715_v12  ;;  %v1515_v17 = vunpack.c.3.s8 %v10680_v31  ;;  %v364_v21 = vld [vmem:[#allocation2 + $0x8f0] sm:$0xff] }
 0x5a4   :  { %8083 = vmatpush.bf16.msra.mxu0 %v5715_v13  ;;  %v6099_v2 = vpack.c.bf16 %v4635_v59, %v4611_v45  ;;  %v3795_v40 = vcvt.s32.f32 %v1491_v56  ;;  %v1875_v47 = vunpack.c.2.s8 %v387_v22  ;;  %v1899_v23 = vunpack.c.3.s8 %v387_v22  ;;  %v460_v59 = vld [vmem:[#allocation2 + $0xbf0] sm:$0xff] }
 0x5a5   :  { %8096 = vmatpush.bf16.msra.mxu1 %v5907_v27  ;;  %v6291_v35 = vpack.c.bf16 %v5019_v43, %v4995_v54  ;;  %v3819_v49 = vcvt.s32.f32 %v1515_v17  ;;  %v2259_v29 = vunpack.c.2.s8 %v483_v28  ;;  %v2283_v52 = vunpack.c.3.s8 %v483_v28  ;;  %v7894_v43 = vpop.f32.mrf.mxu1 }
 0x5a6   :  { %8109 = vmatpush.bf16.msra.mxu2 %v6099_v2  ;;  %v4179_v26 = vcvt.s32.f32 %v1875_v47  ;;  %v4203_v53 = vcvt.s32.f32 %v1899_v23  ;;  %v2643_v41 = vunpack.c.2.s8 %v579_v50  ;;  %v2667_v62 = vunpack.c.3.s8 %v579_v50  ;;  %v7881_v6 = vpop.f32.mrf.mxu0 }
 0x5a7   :  { %8122 = vmatpush.bf16.msra.mxu3 %v6291_v35  ;;  %v5691_v1 = vpack.c.bf16 %v3819_v49, %v3795_v40  ;;  %v4563_v38 = vcvt.s32.f32 %v2259_v29  ;;  %v4587_v57 = vcvt.s32.f32 %v2283_v52  ;;  %v10692_v30 = vadd.f32 %v10659_v25, %v10645_v3 }
 0x5a8   :  { %v5883_v63 = vpack.c.bf16 %v4203_v53, %v4179_v26  ;;  %v4947_v61 = vcvt.s32.f32 %v2643_v41  ;;  %v4971_v51 = vcvt.s32.f32 %v2667_v62  ;;  %v1443_v44 = vunpack.c.0.s8 %v10680_v31 }
 0x5a9   :  { %8084 = vmatpush.bf16.msra.mxu0 %v5691_v1  ;;  %v6075_v32 = vpack.c.bf16 %v4587_v57, %v4563_v38  ;;  %v1467_v46 = vunpack.c.1.s8 %v10680_v31  ;;  %v1827_v7 = vunpack.c.0.s8 %v387_v22  ;;  %v1851_v37 = vunpack.c.1.s8 %v387_v22 }
 0x5aa   :  { %8097 = vmatpush.bf16.msra.mxu1 %v5883_v63  ;;  %v6267_v15 = vpack.c.bf16 %v4971_v51, %v4947_v61  ;;  %v3747_v55 = vcvt.s32.f32 %v1443_v44  ;;  %v2211_v19 = vunpack.c.0.s8 %v483_v28  ;;  %v2235_v3 = vunpack.c.1.s8 %v483_v28 }
 0x5ab   :  { %8110 = vmatpush.bf16.msra.mxu2 %v6075_v32  ;;  %v3771_v25 = vcvt.s32.f32 %v1467_v46  ;;  %v4131_v9 = vcvt.s32.f32 %v1827_v7  ;;  %v4155_v4 = vcvt.s32.f32 %v1851_v37  ;;  %v2595_v20 = vunpack.c.0.s8 %v579_v50  ;;  %v148_v7 = vld [vmem:[#allocation2 + $0x230] sm:$0xff] }
 0x5ac   :  { %8123 = vmatpush.bf16.msra.mxu3 %v6267_v15  ;;  %v4515_v18 = vcvt.s32.f32 %v2211_v19  ;;  %v4539_v39 = vcvt.s32.f32 %v2235_v3  ;;  %v2619_v31 = vunpack.c.1.s8 %v579_v50  ;;  %v1012_v42 = vunpack.c.2.s8 %v172_v8  ;;  %v244_v15 = vld [vmem:[#allocation2 + $0x530] sm:$0xff] }
 0x5ad   :  { %v5667_v12 = vpack.c.bf16 %v3771_v25, %v3747_v55  ;;  %v5859_v22 = vpack.c.bf16 %v4155_v4, %v4131_v9  ;;  %v4899_v13 = vcvt.s32.f32 %v2595_v20  ;;  %v1036_v45 = vunpack.c.3.s8 %v172_v8  ;;  %v340_v9 = vld [vmem:[#allocation2 + $0x830] sm:$0xff] }
 0x5ae   :  { %v6051_v56 = vpack.c.bf16 %v4539_v39, %v4515_v18  ;;  %v4923_v27 = vcvt.s32.f32 %v2619_v31  ;;  %v3316_v28 = vcvt.s32.f32 %v1012_v42  ;;  %v1396_v54 = vunpack.c.2.s8 %v268_v10 }
 0x5af   :  { %8085 = vmatpush.bf16.msra.mxu0 %v5667_v12  ;;  %8098 = vmatpush.bf16.msra.mxu1 %v5859_v22  ;;  %v3340_v17 = vcvt.s32.f32 %v1036_v45  ;;  %v1420_v2 = vunpack.c.3.s8 %v268_v10  ;;  %v1780_v40 = vunpack.c.2.s8 %v364_v21  ;;  %v1804_v47 = vunpack.c.3.s8 %v364_v21  ;;  %v436_v12 = vld [vmem:[#allocation2 + $0xb30] sm:$0xff] }
 0x5b0   :  { %8111 = vmatpush.bf16.msra.mxu2 %v6051_v56  ;;  %v6243_v50 = vpack.c.bf16 %v4923_v27, %v4899_v13  ;;  %v3700_v23 = vcvt.s32.f32 %v1396_v54  ;;  %v2164_v24 = vunpack.c.2.s8 %v460_v59  ;;  %v2188_v35 = vunpack.c.3.s8 %v460_v59 }
 0x5b1   :  { %v5452_v49 = vpack.c.bf16 %v3340_v17, %v3316_v28  ;;  %v3724_v29 = vcvt.s32.f32 %v1420_v2  ;;  %v4084_v52 = vcvt.s32.f32 %v1780_v40  ;;  %v4108_v26 = vcvt.s32.f32 %v1804_v47 }
 0x5b2   :  { %8124 = vmatpush.bf16.msra.mxu3 %v6243_v50  ;;  %v4468_v53 = vcvt.s32.f32 %v2164_v24  ;;  %v4492_v41 = vcvt.s32.f32 %v2188_v35  ;;  %8086 = vmatmul.bf16.vlgmr.msra.gmra.mxu0 %v9178_v0  ;;  %v964_v62 = vunpack.c.0.s8 %v172_v8  ;;  %v988_v1 = vunpack.c.1.s8 %v172_v8 }
 0x5b3   :  { %8130 = vmatpush.bf16.msrb.mxu0 %v5452_v49  ;;  %v5644_v38 = vpack.c.bf16 %v3724_v29, %v3700_v23  ;;  %v5836_v57 = vpack.c.bf16 %v4108_v26, %v4084_v52  ;;  %8112 = vmatmul.bf16.vlgmr.msra.gmra.mxu2 %v9194_v11  ;;  %v1348_v63 = vunpack.c.0.s8 %v268_v10  ;;  %v1372_v61 = vunpack.c.1.s8 %v268_v10 }
 0x5b4   :  { %v6028_v51 = vpack.c.bf16 %v4492_v41, %v4468_v53  ;;  %v3268_v44 = vcvt.s32.f32 %v964_v62  ;;  %v3292_v32 = vcvt.s32.f32 %v988_v1  ;;  %v1732_v46 = vunpack.c.0.s8 %v364_v21  ;;  %8099 = vmatmul.bf16.vlgmr.msra.gmra.mxu1 %v9180_v5 }
 0x5b5   :  { %8143 = vmatpush.bf16.msrb.mxu1 %v5644_v38  ;;  %8156 = vmatpush.bf16.msrb.mxu2 %v5836_v57  ;;  %v3652_v37 = vcvt.s32.f32 %v1348_v63  ;;  %v3676_v48 = vcvt.s32.f32 %v1372_v61  ;;  %v1756_v6 = vunpack.c.1.s8 %v364_v21  ;;  %v2116_v8 = vunpack.c.0.s8 %v460_v59 }
 0x5b6   :  { %8169 = vmatpush.bf16.msrb.mxu3 %v6028_v51  ;;  %v5428_v55 = vpack.c.bf16 %v3292_v32, %v3268_v44  ;;  %v4036_v19 = vcvt.s32.f32 %v1732_v46  ;;  %v2140_v3 = vunpack.c.1.s8 %v460_v59  ;;  %v7854_v25 = vadd.f32 %v10678_v34, %v10692_v30  ;;  %v124_v51 = vld [vmem:[#allocation2 + $0x170] sm:$0xff] }
 0x5b7   :  { %8125 = vmatmul.bf16.vlgmr.msra.gmra.mxu3 %v9198_v16  ;;  %v5620_v4 = vpack.c.bf16 %v3676_v48, %v3652_v37  ;;  %v4060_v20 = vcvt.s32.f32 %v1756_v6  ;;  %v4420_v10 = vcvt.s32.f32 %v2116_v8  ;;  %v916_v18 = vunpack.c.2.s8 %v148_v7  ;;  %v10705_v8 = vld [vmem:[#allocation4 + $0x10] sm:$0xff] }
 0x5b8   :  { %8131 = vmatpush.bf16.msrb.mxu0 %v5428_v55  ;;  %v4444_v39 = vcvt.s32.f32 %v2140_v3  ;;  %v940_v31 = vunpack.c.3.s8 %v148_v7  ;;  %v1300_v42 = vunpack.c.2.s8 %v244_v15  ;;  %v1324_v21 = vunpack.c.3.s8 %v244_v15  ;;  %v316_v55 = vld [vmem:[#allocation2 + $0x770] sm:$0xff]  ;;  %v10708_v3 = vld [vmem:[#allocation6 + $0x10] sm:$0xff] }
 0x5b9   :  { %8144 = vmatpush.bf16.msrb.mxu1 %v5620_v4  ;;  %v5812_v22 = vpack.c.bf16 %v4060_v20, %v4036_v19  ;;  %v3220_v13 = vcvt.s32.f32 %v916_v18  ;;  %v1684_v45 = vunpack.c.2.s8 %v340_v9  ;;  %v1708_v59 = vunpack.c.3.s8 %v340_v9  ;;  %v412_v20 = vld [vmem:[#allocation2 + $0xa70] sm:$0xff] }
 0x5ba   :  { %v6004_v56 = vpack.c.bf16 %v4444_v39, %v4420_v10  ;;  %v3244_v34 = vcvt.s32.f32 %v940_v31  ;;  %v3604_v30 = vcvt.s32.f32 %v1300_v42  ;;  %v3628_v27 = vcvt.s32.f32 %v1324_v21 }
 0x5bb   :  { %8157 = vmatpush.bf16.msrb.mxu2 %v5812_v22  ;;  %v3988_v28 = vcvt.s32.f32 %v1684_v45  ;;  %v4012_v54 = vcvt.s32.f32 %v1708_v59  ;;  %v2068_v43 = vunpack.c.2.s8 %v436_v12  ;;  %v2092_v17 = vunpack.c.3.s8 %v436_v12  ;;  %v10711_v22 = vpop.f32.mrf.mxu2 }
 0x5bc   :  { %8170 = vmatpush.bf16.msrb.mxu3 %v6004_v56  ;;  %v5404_v2 = vpack.c.bf16 %v3244_v34, %v3220_v13  ;;  %v5596_v40 = vpack.c.bf16 %v3628_v27, %v3604_v30  ;;  %v7867_v47 = vadd.f32 %v10682_v33, %v7854_v25  ;;  %v868_v50 = vunpack.c.0.s8 %v148_v7  ;;  %v10713_v34 = vpop.f32.mrf.mxu3 }
 0x5bd   :  { %v5788_v23 = vpack.c.bf16 %v4012_v54, %v3988_v28  ;;  %v4372_v24 = vcvt.s32.f32 %v2068_v43  ;;  %v4396_v35 = vcvt.s32.f32 %v2092_v17  ;;  %v892_v49 = vunpack.c.1.s8 %v148_v7 }
 0x5be   :  { %8132 = vmatpush.bf16.msrb.mxu0 %v5404_v2  ;;  %8145 = vmatpush.bf16.msrb.mxu1 %v5596_v40  ;;  %v7880_v29 = vadd.f32 %v10684_v58, %v7867_v47  ;;  %v3172_v52 = vcvt.s32.f32 %v868_v50  ;;  %v1252_v26 = vunpack.c.0.s8 %v244_v15  ;;  %v1276_v53 = vunpack.c.1.s8 %v244_v15  ;;  %v220_v58 = vld [vmem:[#allocation2 + $0x470] sm:$0xff] }
 0x5bf   :  { %8158 = vmatpush.bf16.msrb.mxu2 %v5788_v23  ;;  %v5980_v41 = vpack.c.bf16 %v4396_v35, %v4372_v24  ;;  %v3196_v62 = vcvt.s32.f32 %v892_v49  ;;  %v1636_v1 = vunpack.c.0.s8 %v340_v9  ;;  %v1660_v38 = vunpack.c.1.s8 %v340_v9 }
 0x5c0   :  { %v3556_v57 = vcvt.s32.f32 %v1252_v26  ;;  %v3580_v63 = vcvt.s32.f32 %v1276_v53  ;;  %v2020_v33 = vunpack.c.0.s8 %v436_v12  ;;  %v2044_v61 = vunpack.c.1.s8 %v436_v12  ;;  %v100_v26 = vld [vmem:[#allocation2 + $0xb0] sm:$0xff] }
 0x5c1   :  { %8171 = vmatpush.bf16.msrb.mxu3 %v5980_v41  ;;  %v5380_v44 = vpack.c.bf16 %v3196_v62, %v3172_v52  ;;  %v3940_v32 = vcvt.s32.f32 %v1636_v1  ;;  %v3964_v46 = vcvt.s32.f32 %v1660_v38  ;;  %v7893_v7 = vadd.f32 %v10688_v60, %v7880_v29  ;;  %v10715_v38 = vld [vmem:[#allocation2 + $0x3b0] sm:$0xff] }
 0x5c2   :  { %v5572_v37 = vpack.c.bf16 %v3580_v63, %v3556_v57  ;;  %v4324_v48 = vcvt.s32.f32 %v2020_v33  ;;  %v4348_v6 = vcvt.s32.f32 %v2044_v61  ;;  %v8310_v15 = vperm.slane %v10705_v8, 2 }
 0x5c3   :  { %8133 = vmatpush.bf16.msrb.mxu0 %v5380_v44  ;;  %v5764_v19 = vpack.c.bf16 %v3964_v46, %v3940_v32  ;;  %v8388_v25 = vperm.slane %v10708_v3, 2  ;;  %v820_v9 = vunpack.c.2.s8 %v124_v51  ;;  %v844_v4 = vunpack.c.3.s8 %v124_v51  ;;  %v292_v46 = vld [vmem:[#allocation2 + $0x6b0] sm:$0xff] }
 0x5c4   :  { %8146 = vmatpush.bf16.msrb.mxu1 %v5572_v37  ;;  %v5956_v60 = vpack.c.bf16 %v4348_v6, %v4324_v48  ;;  %v8358_v10 = vmul.f32 %v8310_v15, %v7893_v7  ;;  %v1204_v18 = vunpack.c.2.s8 %v220_v58  ;;  %v1228_v39 = vunpack.c.3.s8 %v220_v58  ;;  %v7907_v7 = vpop.f32.mrf.mxu2  ;;  %v388_v15 = vld [vmem:[#allocation2 + $0x9b0] sm:$0xff] }
 0x5c5   :  { %8159 = vmatpush.bf16.msrb.mxu2 %v5764_v19  ;;  %v3124_v31 = vcvt.s32.f32 %v820_v9  ;;  %v3148_v42 = vcvt.s32.f32 %v844_v4  ;;  %v1588_v21 = vunpack.c.2.s8 %v316_v55  ;;  %v1612_v12 = vunpack.c.3.s8 %v316_v55 }
 0x5c6   :  { %8172 = vmatpush.bf16.msrb.mxu3 %v5956_v60  ;;  %v8436_v13 = vadd.f32 %v8388_v25, %v8358_v10  ;;  %v3508_v45 = vcvt.s32.f32 %v1204_v18  ;;  %v3532_v59 = vcvt.s32.f32 %v1228_v39  ;;  %v1972_v56 = vunpack.c.2.s8 %v412_v20 }
 0x5c7   :  { %v5356_v30 = vpack.c.bf16 %v3148_v42, %v3124_v31  ;;  %v3892_v27 = vcvt.s32.f32 %v1588_v21  ;;  %v3916_v28 = vcvt.s32.f32 %v1612_v12  ;;  %v1996_v54 = vunpack.c.3.s8 %v412_v20 }
 0x5c8   :  { %v8460_v43 = vsub.f32 0.0, %v8436_v13  ;;  %v5548_v17 = vpack.c.bf16 %v3532_v59, %v3508_v45  ;;  %v4276_v2 = vcvt.s32.f32 %v1972_v56  ;;  %v772_v40 = vunpack.c.0.s8 %v124_v51 }
 0x5c9   :  { %8134 = vmatpush.bf16.msrb.mxu0 %v5356_v30  ;;  %v5740_v47 = vpack.c.bf16 %v3916_v28, %v3892_v27  ;;  %v4300_v50 = vcvt.s32.f32 %v1996_v54  ;;  %v796_v23 = vunpack.c.1.s8 %v124_v51  ;;  %v1156_v24 = vunpack.c.0.s8 %v220_v58 }
 0x5ca   :  { %v8502_v35 = vmul.f32 1.442695, %v8460_v43  ;;  %8147 = vmatpush.bf16.msrb.mxu1 %v5548_v17  ;;  %v3076_v49 = vcvt.s32.f32 %v772_v40  ;;  %v1180_v29 = vunpack.c.1.s8 %v220_v58  ;;  %v1540_v52 = vunpack.c.0.s8 %v316_v55 }
 0x5cb   :  { %8160 = vmatpush.bf16.msrb.mxu2 %v5740_v47  ;;  %v5932_v53 = vpack.c.bf16 %v4300_v50, %v4276_v2  ;;  %v3100_v41 = vcvt.s32.f32 %v796_v23  ;;  %v3460_v62 = vcvt.s32.f32 %v1156_v24  ;;  %v1564_v1 = vunpack.c.1.s8 %v316_v55  ;;  %v7920_v55 = vpop.f32.mrf.mxu3  ;;  %v10722_v47 = vpop.f32.mrf.mxu0 }
 0x5cc   :  { %9005 = vpow2.f32 %v8502_v35  ;;  %v3484_v57 = vcvt.s32.f32 %v1180_v29  ;;  %v3844_v63 = vcvt.s32.f32 %v1540_v52  ;;  %v1924_v33 = vunpack.c.0.s8 %v412_v20  ;;  %v10724_v50 = vpop.f32.mrf.mxu1  ;;  %v10729_v52 = vld [vmem:[#allocation2 + $0xef0] sm:$0xff] }
 0x5cd   :  { %8173 = vmatpush.bf16.msrb.mxu3 %v5932_v53  ;;  %v5332_v61 = vpack.c.bf16 %v3100_v41, %v3076_v49  ;;  %v3868_v51 = vcvt.s32.f32 %v1564_v1  ;;  %v1948_v44 = vunpack.c.1.s8 %v412_v20  ;;  %v724_v32 = vunpack.c.2.s8 %v100_v26  ;;  %v10734_v1 = vld [vmem:[#allocation2 + $0x11f0] sm:$0xff] }
 0x5ce   :  { %v5524_v58 = vpack.c.bf16 %v3484_v57, %v3460_v62  ;;  %v4228_v37 = vcvt.s32.f32 %v1924_v33  ;;  %v748_v48 = vunpack.c.3.s8 %v100_v26  ;;  %v1108_v6 = vunpack.c.2.s8 %v10715_v38 }
 0x5cf   :  { %8135 = vmatpush.bf16.msrb.mxu0 %v5332_v61  ;;  %v5716_v19 = vpack.c.bf16 %v3868_v51, %v3844_v63  ;;  %v4252_v25 = vcvt.s32.f32 %v1948_v44  ;;  %v3028_v9 = vcvt.s32.f32 %v724_v32  ;;  %v1132_v4 = vunpack.c.3.s8 %v10715_v38 }
 0x5d0   :  { %8148 = vmatpush.bf16.msrb.mxu1 %v5524_v58  ;;  %v3052_v60 = vcvt.s32.f32 %v748_v48  ;;  %v3412_v10 = vcvt.s32.f32 %v1108_v6  ;;  %v1492_v20 = vunpack.c.2.s8 %v292_v46  ;;  %v1516_v18 = vunpack.c.3.s8 %v292_v46  ;;  %v10740_v48 = vld [vmem:[#allocation2 + $0x2f8] sm:$0xff]  ;;  %v10742_v6 = vpop.f32.mrf.mxu2 }
 0x5d1   :  { %8161 = vmatpush.bf16.msrb.mxu2 %v5716_v19  ;;  %v5908_v39 = vpack.c.bf16 %v4252_v25, %v4228_v37  ;;  %v3436_v31 = vcvt.s32.f32 %v1132_v4  ;;  %v1876_v42 = vunpack.c.2.s8 %v388_v15  ;;  %v1900_v21 = vunpack.c.3.s8 %v388_v15 }
 0x5d2   :  { %v9006_v12 = vpop.eup %9005  ;;  %v5308_v13 = vpack.c.bf16 %v3052_v60, %v3028_v9  ;;  %v3796_v45 = vcvt.s32.f32 %v1492_v20  ;;  %v3820_v59 = vcvt.s32.f32 %v1516_v18  ;;  %v676_v56 = vunpack.c.0.s8 %v100_v26  ;;  %v10749_v60 = vld [vmem:[#allocation2 + $0x5f8] sm:$0xff] }
 0x5d3   :  { %v10719_v30 = vadd.f32 1.0, %v9006_v12  ;;  %8174 = vmatpush.bf16.msrb.mxu3 %v5908_v39  ;;  %v5500_v27 = vpack.c.bf16 %v3436_v31, %v3412_v10  ;;  %v4180_v28 = vcvt.s32.f32 %v1876_v42  ;;  %v4204_v54 = vcvt.s32.f32 %v1900_v21  ;;  %v10744_v55 = vpop.f32.mrf.mxu3  ;;  %v7933_v31 = vpop.f32.mrf.mxu0 }
 0x5d4   :  { %8136 = vmatpush.bf16.msrb.mxu0 %v5308_v13  ;;  %v5692_v43 = vpack.c.bf16 %v3820_v59, %v3796_v45  ;;  %v700_v17 = vunpack.c.1.s8 %v100_v26  ;;  %v2980_v2 = vcvt.s32.f32 %v676_v56  ;;  %v1060_v40 = vunpack.c.0.s8 %v10715_v38  ;;  %v7946_v42 = vpop.f32.mrf.mxu1 }
 0x5d5   :  { %9007 = vrcp.f32 %v10719_v30  ;;  %v8819_v23 = vand.u32 2147483648, %v10719_v30  ;;  %8149 = vmatpush.bf16.msrb.mxu1 %v5500_v27  ;;  %v5884_v24 = vpack.c.bf16 %v4204_v54, %v4180_v28  ;;  %v1084_v49 = vunpack.c.1.s8 %v10715_v38 }
 0x5d6   :  { %8162 = vmatpush.bf16.msrb.mxu2 %v5692_v43  ;;  %v3004_v35 = vcvt.s32.f32 %v700_v17  ;;  %v3364_v29 = vcvt.s32.f32 %v1060_v40  ;;  %v8817_v26 = vand.u32 2147483647, %v10719_v30  ;;  %v1444_v41 = vunpack.c.0.s8 %v292_v46 }
 0x5d7   :  { %v10732_v53 = vor.u32 1.1754944e-38, %v8819_v23  ;;  %v1468_v62 = vunpack.c.1.s8 %v292_v46  ;;  %vm8813_vm8 = vweird.f32 %v10719_v30  ;;  %8175 = vmatpush.bf16.msrb.mxu3 %v5884_v24  ;;  %v3388_v63 = vcvt.s32.f32 %v1084_v49 }
 0x5d8   :  { %v5284_v57 = vpack.c.bf16 %v3004_v35, %v2980_v2  ;;  %v1828_v33 = vunpack.c.0.s8 %v388_v15  ;;  %v1852_v61 = vunpack.c.1.s8 %v388_v15  ;;  %v3748_v51 = vcvt.s32.f32 %v1444_v41 }
 0x5d9   :  { %v3772_v38 = vcvt.s32.f32 %v1468_v62  ;;  %v2548_v44 = vunpack.c.2.s8 %v10729_v52  ;;  %v2572_v32 = vunpack.c.3.s8 %v10729_v52  ;;  %v5476_v7 = vpack.c.bf16 %v3388_v63, %v3364_v29  ;;  %v7959_v63 = vpop.f32.mrf.mxu2 }
 0x5da   :  { %8137 = vmatpush.bf16.msrb.mxu0 %v5284_v57  ;;  %v4132_v58 = vcvt.s32.f32 %v1828_v33  ;;  %v4156_v37 = vcvt.s32.f32 %v1852_v61  ;;  %v2932_v46 = vunpack.c.2.s8 %v10734_v1  ;;  %v2956_v4 = vunpack.c.3.s8 %v10734_v1 }
 0x5db   :  { %v10746_v19 = vpop.eup %9007  ;;  %v5668_v15 = vpack.c.bf16 %v3772_v38, %v3748_v51  ;;  %v4852_v25 = vcvt.s32.f32 %v2548_v44  ;;  %v4876_v9 = vcvt.s32.f32 %v2572_v32  ;;  %vm10754_vm10 = vcmp.eq.f32.partialorder %v8817_v26, 8.507059e+37  ;;  %8150 = vmatpush.bf16.msrb.mxu1 %v5476_v7  ;;  %v7972_v33 = vpop.f32.mrf.mxu3  ;;  %v532_v38 = vld [vmem:[#allocation2 + $0xe30] sm:$0xff] }
 0x5dc   :  { %v8809_v10 = vmul.f32 %v10746_v19, %v10719_v30  ;;  %vm8814_vm9 = vweird.f32 %v10746_v19  ;;  %v5860_v18 = vpack.c.bf16 %v4156_v37, %v4132_v58  ;;  %v5236_v39 = vcvt.s32.f32 %v2932_v46  ;;  %v628_v44 = vld [vmem:[#allocation2 + $0x1130] sm:$0xff]  ;;  %v149_v46 = vld [vmem:[#allocation2 + $0x238] sm:$0xff] }
 0x5dd   :  { %8163 = vmatpush.bf16.msrb.mxu2 %v5668_v15  ;;  %v6220_v21 = vpack.c.bf16 %v4876_v9, %v4852_v25  ;;  %v5260_v12 = vcvt.s32.f32 %v2956_v4  ;;  %v1013_v13 = vunpack.c.2.s8 %v10740_v48  ;;  %v1037_v45 = vunpack.c.3.s8 %v10740_v48  ;;  %8138 = vmatmul.bf16.vlgmr.msrb.gmra.mxu0 %v9163_v14  ;;  %vm8815_vm11 = vmor %vm8813_vm8, %vm8814_vm9 }
 0x5de   :  { %v8810_v59 = vsub.f32 1.0, %v8809_v10  ;;  %8176 = vmatpush.bf16.msrb.mxu3 %v5860_v18  ;;  %v1397_v56 = vunpack.c.2.s8 %v10749_v60  ;;  %v1421_v27 = vunpack.c.3.s8 %v10749_v60  ;;  %v10765_v28 = vadd.f32 %v10713_v34, %v10711_v22  ;;  %8151 = vmatmul.bf16.vlgmr.msrb.gmra.mxu1 %v9169_v36  ;;  %v245_v18 = vld [vmem:[#allocation2 + $0x538] sm:$0xff] }
 0x5df   :  { %8182 = vmatpush.bf16.msra.mxu0 %v6220_v21  ;;  %v6412_v54 = vpack.c.bf16 %v5260_v12, %v5236_v39  ;;  %v3317_v43 = vcvt.s32.f32 %v1013_v13  ;;  %v3341_v17 = vcvt.s32.f32 %v1037_v45  ;;  %v2500_v2 = vunpack.c.0.s8 %v10729_v52 }
 0x5e0   :  { %v8811_v40 = vmul.f32 %v10746_v19, %v8810_v59  ;;  %v3701_v23 = vcvt.s32.f32 %v1397_v56  ;;  %v3725_v24 = vcvt.s32.f32 %v1421_v27  ;;  %v2524_v35 = vunpack.c.1.s8 %v10729_v52  ;;  %8164 = vmatmul.bf16.vlgmr.msrb.gmra.mxu2 %v9178_v0 }
 0x5e1   :  { %8195 = vmatpush.bf16.msra.mxu1 %v6412_v54  ;;  %v5453_v49 = vpack.c.bf16 %v3341_v17, %v3317_v43  ;;  %v4804_v22 = vcvt.s32.f32 %v2500_v2  ;;  %v2884_v34 = vunpack.c.0.s8 %v10734_v1  ;;  %v2908_v29 = vunpack.c.1.s8 %v10734_v1  ;;  %8177 = vmatmul.bf16.vlgmr.msrb.gmra.mxu3 %v9180_v5 }
 0x5e2   :  { %v8812_v26 = vadd.f32 %v10746_v19, %v8811_v40  ;;  %v5645_v41 = vpack.c.bf16 %v3725_v24, %v3701_v23  ;;  %v4828_v62 = vcvt.s32.f32 %v2524_v35  ;;  %v965_v57 = vunpack.c.0.s8 %v10740_v48 }
 0x5e3   :  { %8208 = vmatpush.bf16.msra.mxu2 %v5453_v49  ;;  %v5188_v52 = vcvt.s32.f32 %v2884_v34  ;;  %v5212_v61 = vcvt.s32.f32 %v2908_v29  ;;  %v989_v1 = vunpack.c.1.s8 %v10740_v48  ;;  %v1349_v51 = vunpack.c.0.s8 %v10749_v60 }
 0x5e4   :  { %v8816_v32 = vsel %vm8815_vm11, %v10746_v19, %v8812_v26  ;;  %8221 = vmatpush.bf16.msra.mxu3 %v5645_v41  ;;  %v6196_v7 = vpack.c.bf16 %v4828_v62, %v4804_v22  ;;  %v3269_v58 = vcvt.s32.f32 %v965_v57  ;;  %v1373_v37 = vunpack.c.1.s8 %v10749_v60  ;;  %v508_v57 = vld [vmem:[#allocation2 + $0xd70] sm:$0xff] }
 0x5e5   :  { %v8821_v30 = vsel %vm10754_vm10, %v10732_v53, %v8816_v32  ;;  %v6388_v15 = vpack.c.bf16 %v5212_v61, %v5188_v52  ;;  %v3293_v25 = vcvt.s32.f32 %v989_v1  ;;  %v3653_v9 = vcvt.s32.f32 %v1349_v51  ;;  %v604_v1 = vld [vmem:[#allocation2 + $0x1070] sm:$0xff] }
 0x5e6   :  { %8916 = vst [vmem:[%s10886_s4 + $0x90] sm:$0xff] %v8821_v30  ;;  %8183 = vmatpush.bf16.msra.mxu0 %v6196_v7  ;;  %v3677_v48 = vcvt.s32.f32 %v1373_v37  ;;  %v2452_v19 = vunpack.c.2.s8 %v532_v38  ;;  %v2476_v4 = vunpack.c.3.s8 %v532_v38  ;;  %v2836_v10 = vunpack.c.2.s8 %v628_v44 }
 0x5e7   :  { %8196 = vmatpush.bf16.msra.mxu1 %v6388_v15  ;;  %v5429_v60 = vpack.c.bf16 %v3293_v25, %v3269_v58  ;;  %v2860_v39 = vunpack.c.3.s8 %v628_v44  ;;  %v917_v31 = vunpack.c.2.s8 %v149_v46  ;;  %v941_v42 = vunpack.c.3.s8 %v149_v46  ;;  %v125_v58 = vld [vmem:[#allocation2 + $0x178] sm:$0xff] }
 0x5e8   :  { %v5621_v20 = vpack.c.bf16 %v3677_v48, %v3653_v9  ;;  %v4756_v53 = vcvt.s32.f32 %v2452_v19  ;;  %v4780_v21 = vcvt.s32.f32 %v2476_v4  ;;  %v5140_v12 = vcvt.s32.f32 %v2836_v10  ;;  %v221_v15 = vld [vmem:[#allocation2 + $0x478] sm:$0xff] }
 0x5e9   :  { %8209 = vmatpush.bf16.msra.mxu2 %v5429_v60  ;;  %v5164_v13 = vcvt.s32.f32 %v2860_v39  ;;  %v3221_v45 = vcvt.s32.f32 %v917_v31  ;;  %v3245_v59 = vcvt.s32.f32 %v941_v42  ;;  %v1301_v56 = vunpack.c.2.s8 %v245_v18 }
 0x5ea   :  { %8222 = vmatpush.bf16.msra.mxu3 %v5621_v20  ;;  %v6172_v27 = vpack.c.bf16 %v4780_v21, %v4756_v53  ;;  %v1325_v54 = vunpack.c.3.s8 %v245_v18  ;;  %v2404_v43 = vunpack.c.0.s8 %v532_v38  ;;  %v2428_v17 = vunpack.c.1.s8 %v532_v38 }
 0x5eb   :  { %v6364_v2 = vpack.c.bf16 %v5164_v13, %v5140_v12  ;;  %v5405_v40 = vpack.c.bf16 %v3245_v59, %v3221_v45  ;;  %v3605_v23 = vcvt.s32.f32 %v1301_v56  ;;  %v2788_v24 = vunpack.c.0.s8 %v628_v44 }
 0x5ec   :  { %8184 = vmatpush.bf16.msra.mxu0 %v6172_v27  ;;  %v3629_v35 = vcvt.s32.f32 %v1325_v54  ;;  %v4708_v49 = vcvt.s32.f32 %v2404_v43  ;;  %v4732_v22 = vcvt.s32.f32 %v2428_v17  ;;  %v2812_v34 = vunpack.c.1.s8 %v628_v44 }
 0x5ed   :  { %8197 = vmatpush.bf16.msra.mxu1 %v6364_v2  ;;  %8210 = vmatpush.bf16.msra.mxu2 %v5405_v40  ;;  %v5092_v29 = vcvt.s32.f32 %v2788_v24  ;;  %v869_v26 = vunpack.c.0.s8 %v149_v46  ;;  %v893_v41 = vunpack.c.1.s8 %v149_v46  ;;  %v1253_v62 = vunpack.c.0.s8 %v245_v18 }
 0x5ee   :  { %v5597_v63 = vpack.c.bf16 %v3629_v35, %v3605_v23  ;;  %v6148_v33 = vpack.c.bf16 %v4732_v22, %v4708_v49  ;;  %v5116_v52 = vcvt.s32.f32 %v2812_v34  ;;  %v1277_v61 = vunpack.c.1.s8 %v245_v18  ;;  %v484_v49 = vld [vmem:[#allocation2 + $0xcb0] sm:$0xff] }
 0x5ef   :  { %v3173_v51 = vcvt.s32.f32 %v869_v26  ;;  %v3197_v38 = vcvt.s32.f32 %v893_v41  ;;  %v3557_v32 = vcvt.s32.f32 %v1253_v62  ;;  %v7932_v7 = vadd.f32 %v10722_v47, %v10765_v28  ;;  %v580_v62 = vld [vmem:[#allocation2 + $0xfb0] sm:$0xff] }
 0x5f0   :  { %8223 = vmatpush.bf16.msra.mxu3 %v5597_v63  ;;  %8185 = vmatpush.bf16.msra.mxu0 %v6148_v33  ;;  %v6340_v44 = vpack.c.bf16 %v5116_v52, %v5092_v29  ;;  %v3581_v37 = vcvt.s32.f32 %v1277_v61  ;;  %v2356_v30 = vunpack.c.2.s8 %v508_v57  ;;  %v2380_v46 = vunpack.c.3.s8 %v508_v57  ;;  %v101_v61 = vld [vmem:[#allocation2 + $0xb8] sm:$0xff] }
 0x5f1   :  { %v5381_v25 = vpack.c.bf16 %v3197_v38, %v3173_v51  ;;  %v7945_v9 = vadd.f32 %v10724_v50, %v7932_v7  ;;  %v2740_v48 = vunpack.c.2.s8 %v604_v1  ;;  %v2764_v19 = vunpack.c.3.s8 %v604_v1  ;;  %v197_v7 = vld [vmem:[#allocation2 + $0x3b8] sm:$0xff] }
 0x5f2   :  { %8198 = vmatpush.bf16.msra.mxu1 %v6340_v44  ;;  %v5573_v4 = vpack.c.bf16 %v3581_v37, %v3557_v32  ;;  %v4660_v10 = vcvt.s32.f32 %v2356_v30  ;;  %v4684_v18 = vcvt.s32.f32 %v2380_v46  ;;  %v821_v60 = vunpack.c.2.s8 %v125_v58 }
 0x5f3   :  { %8211 = vmatpush.bf16.msra.mxu2 %v5381_v25  ;;  %v5044_v47 = vcvt.s32.f32 %v2740_v48  ;;  %v5068_v28 = vcvt.s32.f32 %v2764_v19  ;;  %v845_v39 = vunpack.c.3.s8 %v125_v58  ;;  %v1205_v31 = vunpack.c.2.s8 %v221_v15 }
 0x5f4   :  { %8224 = vmatpush.bf16.msra.mxu3 %v5573_v4  ;;  %v6124_v42 = vpack.c.bf16 %v4684_v18, %v4660_v10  ;;  %v3125_v20 = vcvt.s32.f32 %v821_v60  ;;  %v1229_v53 = vunpack.c.3.s8 %v221_v15  ;;  %v7958_v21 = vadd.f32 %v10742_v6, %v7945_v9 }
 0x5f5   :  { %v6316_v12 = vpack.c.bf16 %v5068_v28, %v5044_v47  ;;  %v3149_v50 = vcvt.s32.f32 %v845_v39  ;;  %v3509_v13 = vcvt.s32.f32 %v1205_v31  ;;  %v8311_v45 = vperm.slane %v10705_v8, 3 }
 0x5f6   :  { %8186 = vmatpush.bf16.msra.mxu0 %v6124_v42  ;;  %v3533_v59 = vcvt.s32.f32 %v1229_v53  ;;  %v7971_v56 = vadd.f32 %v10744_v55, %v7958_v21  ;;  %v8389_v27 = vperm.slane %v10708_v3, 3  ;;  %v2308_v54 = vunpack.c.0.s8 %v508_v57 }
 0x5f7   :  { %8199 = vmatpush.bf16.msra.mxu1 %v6316_v12  ;;  %v5357_v43 = vpack.c.bf16 %v3149_v50, %v3125_v20  ;;  %v2332_v17 = vunpack.c.1.s8 %v508_v57  ;;  %v2692_v2 = vunpack.c.0.s8 %v604_v1  ;;  %v2716_v40 = vunpack.c.1.s8 %v604_v1 }
 0x5f8   :  { %v5549_v23 = vpack.c.bf16 %v3533_v59, %v3509_v13  ;;  %v8359_v24 = vmul.f32 %v8311_v45, %v7971_v56  ;;  %v4612_v6 = vcvt.s32.f32 %v2308_v54  ;;  %v773_v35 = vunpack.c.0.s8 %v125_v58  ;;  %v365_v56 = vld [vmem:[#allocation2 + $0x8f8] sm:$0xff] }
 0x5f9   :  { %8212 = vmatpush.bf16.msra.mxu2 %v5357_v43  ;;  %v4636_v22 = vcvt.s32.f32 %v2332_v17  ;;  %v4996_v8 = vcvt.s32.f32 %v2692_v2  ;;  %v5020_v34 = vcvt.s32.f32 %v2716_v40  ;;  %v797_v29 = vunpack.c.1.s8 %v125_v58 }
 0x5fa   :  { %8225 = vmatpush.bf16.msra.mxu3 %v5549_v23  ;;  %v8437_v55 = vadd.f32 %v8389_v27, %v8359_v24  ;;  %v3077_v26 = vcvt.s32.f32 %v773_v35  ;;  %v1157_v3 = vunpack.c.0.s8 %v221_v15  ;;  %v1181_v41 = vunpack.c.1.s8 %v221_v15 }
 0x5fb   :  { %v6100_v63 = vpack.c.bf16 %v4636_v22, %v4612_v6  ;;  %v6292_v57 = vpack.c.bf16 %v5020_v34, %v4996_v8  ;;  %v3101_v33 = vcvt.s32.f32 %v797_v29  ;;  %v2260_v52 = vunpack.c.2.s8 %v484_v49  ;;  %v461_v6 = vld [vmem:[#allocation2 + $0xbf8] sm:$0xff] }
 0x5fc   :  { %v8461_v1 = vsub.f32 0.0, %v8437_v55  ;;  %v3461_v51 = vcvt.s32.f32 %v1157_v3  ;;  %v3485_v38 = vcvt.s32.f32 %v1181_v41  ;;  %v2284_v32 = vunpack.c.3.s8 %v484_v49 }
 0x5fd   :  { %8187 = vmatpush.bf16.msra.mxu0 %v6100_v63  ;;  %8200 = vmatpush.bf16.msra.mxu1 %v6292_v57  ;;  %v5333_v44 = vpack.c.bf16 %v3101_v33, %v3077_v26  ;;  %v4564_v58 = vcvt.s32.f32 %v2260_v52  ;;  %v2644_v37 = vunpack.c.2.s8 %v580_v62  ;;  %v2668_v30 = vunpack.c.3.s8 %v580_v62  ;;  %v557_v33 = vld [vmem:[#allocation2 + $0xef8] sm:$0xff] }
 0x5fe   :  { %v8504_v46 = vmul.f32 1.442695, %v8461_v1  ;;  %v5525_v25 = vpack.c.bf16 %v3485_v38, %v3461_v51  ;;  %v4588_v15 = vcvt.s32.f32 %v2284_v32  ;;  %v725_v9 = vunpack.c.2.s8 %v101_v61 }
 0x5ff   :  { %8213 = vmatpush.bf16.msra.mxu2 %v5333_v44  ;;  %v4948_v48 = vcvt.s32.f32 %v2644_v37  ;;  %v4972_v19 = vcvt.s32.f32 %v2668_v30  ;;  %v749_v4 = vunpack.c.3.s8 %v101_v61  ;;  %v1109_v10 = vunpack.c.2.s8 %v197_v7 }
 0x600   :  { %9009 = vpow2.f32 %v8504_v46  ;;  %8226 = vmatpush.bf16.msra.mxu3 %v5525_v25  ;;  %v6076_v18 = vpack.c.bf16 %v4588_v15, %v4564_v58  ;;  %v3029_v60 = vcvt.s32.f32 %v725_v9  ;;  %v1133_v47 = vunpack.c.3.s8 %v197_v7  ;;  %v10807_v9 = vpop.f32.mrf.mxu0 }
 0x601   :  { %v6268_v28 = vpack.c.bf16 %v4972_v19, %v4948_v48  ;;  %v3053_v39 = vcvt.s32.f32 %v749_v4  ;;  %v3413_v31 = vcvt.s32.f32 %v1109_v10  ;;  %v2212_v42 = vunpack.c.0.s8 %v484_v49 }
 0x602   :  { %8188 = vmatpush.bf16.msra.mxu0 %v6076_v18  ;;  %v3437_v20 = vcvt.s32.f32 %v1133_v47  ;;  %v2236_v53 = vunpack.c.1.s8 %v484_v49  ;;  %v2596_v21 = vunpack.c.0.s8 %v580_v62  ;;  %v2620_v12 = vunpack.c.1.s8 %v580_v62 }
 0x603   :  { %8201 = vmatpush.bf16.msra.mxu1 %v6268_v28  ;;  %v5309_v50 = vpack.c.bf16 %v3053_v39, %v3029_v60  ;;  %v4516_v13 = vcvt.s32.f32 %v2212_v42  ;;  %v677_v45 = vunpack.c.0.s8 %v101_v61  ;;  %v701_v59 = vunpack.c.1.s8 %v101_v61  ;;  %v653_v61 = vld [vmem:[#allocation2 + $0x11f8] sm:$0xff] }
 0x604   :  { %v5501_v27 = vpack.c.bf16 %v3437_v20, %v3413_v31  ;;  %v4540_v54 = vcvt.s32.f32 %v2236_v53  ;;  %v4900_v43 = vcvt.s32.f32 %v2596_v21  ;;  %v4924_v17 = vcvt.s32.f32 %v2620_v12  ;;  %v10811_v21 = vld [vmem:[#allocation2 + $0x838] sm:$0xff] }
 0x605   :  { %8214 = vmatpush.bf16.msra.mxu2 %v5309_v50  ;;  %v2981_v2 = vcvt.s32.f32 %v677_v45  ;;  %v3005_v40 = vcvt.s32.f32 %v701_v59  ;;  %v1061_v23 = vunpack.c.0.s8 %v197_v7  ;;  %v1085_v24 = vunpack.c.1.s8 %v197_v7  ;;  %v10819_v45 = vld [vmem:[#allocation2 + $0xb38] sm:$0xff] }
 0x606   :  { %v9010_v35 = vpop.eup %9009  ;;  %8227 = vmatpush.bf16.msra.mxu3 %v5501_v27  ;;  %v6052_v49 = vpack.c.bf16 %v4540_v54, %v4516_v13  ;;  %v6244_v22 = vpack.c.bf16 %v4924_v17, %v4900_v43  ;;  %v1781_v8 = vunpack.c.2.s8 %v365_v56  ;;  %v1805_v34 = vunpack.c.3.s8 %v365_v56  ;;  %v10821_v43 = vpop.f32.mrf.mxu1 }
 0x607   :  { %v10798_v29 = vadd.f32 1.0, %v9010_v35  ;;  %v5285_v55 = vpack.c.bf16 %v3005_v40, %v2981_v2  ;;  %v3365_v26 = vcvt.s32.f32 %v1061_v23  ;;  %v3389_v3 = vcvt.s32.f32 %v1085_v24  ;;  %v533_v23 = vld [vmem:[#allocation2 + $0xe38] sm:$0xff] }
 0x608   :  { %8189 = vmatpush.bf16.msra.mxu0 %v6052_v49  ;;  %8202 = vmatpush.bf16.msra.mxu1 %v6244_v22  ;;  %v4085_v41 = vcvt.s32.f32 %v1781_v8  ;;  %v4109_v62 = vcvt.s32.f32 %v1805_v34  ;;  %v2165_v63 = vunpack.c.2.s8 %v461_v6  ;;  %v2189_v57 = vunpack.c.3.s8 %v461_v6 }
 0x609   :  { %9011 = vrcp.f32 %v10798_v29  ;;  %v8834_v52 = vand.u32 2147483648, %v10798_v29  ;;  %8215 = vmatpush.bf16.msra.mxu2 %v5285_v55  ;;  %v5477_v1 = vpack.c.bf16 %v3389_v3, %v3365_v26  ;;  %v8832_v7 = vand.u32 2147483647, %v10798_v29  ;;  %v629_v26 = vld [vmem:[#allocation2 + $0x1138] sm:$0xff]  ;;  %v7985_v3 = vpop.f32.mrf.mxu0 }
 0x60a   :  { %v5837_v51 = vpack.c.bf16 %v4109_v62, %v4085_v41  ;;  %v4469_v38 = vcvt.s32.f32 %v2165_v63  ;;  %v4493_v32 = vcvt.s32.f32 %v2189_v57  ;;  %v2549_v58 = vunpack.c.2.s8 %v557_v33 }
 0x60b   :  { %v10803_v44 = vor.u32 1.1754944e-38, %v8834_v52  ;;  %v2573_v37 = vunpack.c.3.s8 %v557_v33  ;;  %8190 = vmatmul.bf16.vlgmr.msra.gmra.mxu0 %v9194_v11  ;;  %8203 = vmatmul.bf16.vlgmr.msra.gmra.mxu1 %v9198_v16  ;;  %v2933_v46 = vunpack.c.2.s8 %v653_v61  ;;  %v2957_v25 = vunpack.c.3.s8 %v653_v61 }
 0x60c   :  { %8228 = vmatpush.bf16.msra.mxu3 %v5477_v1  ;;  %8234 = vmatpush.bf16.msrb.mxu0 %v5837_v51  ;;  %v6029_v30 = vpack.c.bf16 %v4493_v32, %v4469_v38  ;;  %v1733_v15 = vunpack.c.0.s8 %v365_v56  ;;  %v4853_v48 = vcvt.s32.f32 %v2549_v58  ;;  %v1757_v4 = vunpack.c.1.s8 %v365_v56 }
 0x60d   :  { %v4877_v19 = vcvt.s32.f32 %v2573_v37  ;;  %v2117_v10 = vunpack.c.0.s8 %v461_v6  ;;  %8216 = vmatmul.bf16.vlgmr.msra.gmra.mxu2 %v9163_v14  ;;  %vm8828_vm12 = vweird.f32 %v10798_v29  ;;  %v5237_v18 = vcvt.s32.f32 %v2933_v46 }
 0x60e   :  { %8247 = vmatpush.bf16.msrb.mxu1 %v6029_v30  ;;  %v5261_v60 = vcvt.s32.f32 %v2957_v25  ;;  %v4037_v47 = vcvt.s32.f32 %v1733_v15  ;;  %v2141_v28 = vunpack.c.1.s8 %v461_v6  ;;  %v4061_v42 = vcvt.s32.f32 %v1757_v4 }
 0x60f   :  { %v9012_v39 = vpop.eup %9011  ;;  %v6221_v31 = vpack.c.bf16 %v4877_v19, %v4853_v48  ;;  %v4421_v20 = vcvt.s32.f32 %v2117_v10  ;;  %v2501_v53 = vunpack.c.0.s8 %v557_v33  ;;  %8229 = vmatmul.bf16.vlgmr.msra.gmra.mxu3 %v9169_v36  ;;  %vm10815_vm14 = vcmp.eq.f32.partialorder %v8832_v7, 8.507059e+37  ;;  %v7998_v19 = vpop.f32.mrf.mxu1 }
 0x610   :  { %v8824_v12 = vmul.f32 %v9012_v39, %v10798_v29  ;;  %vm8829_vm13 = vweird.f32 %v9012_v39  ;;  %v6413_v50 = vpack.c.bf16 %v5261_v60, %v5237_v18  ;;  %v4445_v13 = vcvt.s32.f32 %v2141_v28  ;;  %v10840_v28 = vpop.f32.mrf.mxu2 }
 0x611   :  { %8260 = vmatpush.bf16.msrb.mxu2 %v6221_v31  ;;  %v5813_v59 = vpack.c.bf16 %v4061_v42, %v4037_v47  ;;  %v2525_v56 = vunpack.c.1.s8 %v557_v33  ;;  %v4805_v27 = vcvt.s32.f32 %v2501_v53  ;;  %v2885_v54 = vunpack.c.0.s8 %v653_v61  ;;  %vm8830_vm15 = vmor %vm8828_vm12, %vm8829_vm13  ;;  %v317_v47 = vld [vmem:[#allocation2 + $0x778] sm:$0xff] }
 0x612   :  { %v8825_v17 = vsub.f32 1.0, %v8824_v12  ;;  %8273 = vmatpush.bf16.msrb.mxu3 %v6413_v50  ;;  %v6005_v36 = vpack.c.bf16 %v4445_v13, %v4421_v20  ;;  %v2909_v2 = vunpack.c.1.s8 %v653_v61  ;;  %v1685_v40 = vunpack.c.2.s8 %v10811_v21  ;;  %v413_v50 = vld [vmem:[#allocation2 + $0xa78] sm:$0xff]  ;;  %v10844_v13 = vpop.f32.mrf.mxu0 }
 0x613   :  { %8235 = vmatpush.bf16.msrb.mxu0 %v5813_v59  ;;  %v4829_v24 = vcvt.s32.f32 %v2525_v56  ;;  %v5189_v6 = vcvt.s32.f32 %v2885_v54  ;;  %v1709_v35 = vunpack.c.3.s8 %v10811_v21  ;;  %v2069_v49 = vunpack.c.2.s8 %v10819_v45  ;;  %v509_v54 = vld [vmem:[#allocation2 + $0xd78] sm:$0xff] }
 0x614   :  { %v8826_v22 = vmul.f32 %v9012_v39, %v8825_v17  ;;  %8248 = vmatpush.bf16.msrb.mxu1 %v6005_v36  ;;  %v5213_v8 = vcvt.s32.f32 %v2909_v2  ;;  %v3989_v34 = vcvt.s32.f32 %v1685_v40  ;;  %v2093_v55 = vunpack.c.3.s8 %v10819_v45 }
 0x615   :  { %v6197_v41 = vpack.c.bf16 %v4829_v24, %v4805_v27  ;;  %v4013_v62 = vcvt.s32.f32 %v1709_v35  ;;  %v4373_v63 = vcvt.s32.f32 %v2069_v49  ;;  %v2453_v57 = vunpack.c.2.s8 %v533_v23  ;;  %v605_v24 = vld [vmem:[#allocation2 + $0x1078] sm:$0xff] }
 0x616   :  { %v8827_v33 = vadd.f32 %v9012_v39, %v8826_v22  ;;  %v6389_v52 = vpack.c.bf16 %v5213_v8, %v5189_v6  ;;  %v4397_v61 = vcvt.s32.f32 %v2093_v55  ;;  %v2477_v1 = vunpack.c.3.s8 %v533_v23 }
 0x617   :  { %8261 = vmatpush.bf16.msrb.mxu2 %v6197_v41  ;;  %v5789_v51 = vpack.c.bf16 %v4013_v62, %v3989_v34  ;;  %v4757_v38 = vcvt.s32.f32 %v2453_v57  ;;  %v2837_v32 = vunpack.c.2.s8 %v629_v26  ;;  %v2861_v7 = vunpack.c.3.s8 %v629_v26 }
 0x618   :  { %v8831_v58 = vsel %vm8830_vm15, %v9012_v39, %v8827_v33  ;;  %8274 = vmatpush.bf16.msrb.mxu3 %v6389_v52  ;;  %v5981_v37 = vpack.c.bf16 %v4397_v61, %v4373_v63  ;;  %v4781_v30 = vcvt.s32.f32 %v2477_v1  ;;  %v1637_v46 = vunpack.c.0.s8 %v10811_v21  ;;  %v10846_v63 = vpop.f32.mrf.mxu1  ;;  %v8011_v1 = vpop.f32.mrf.mxu2 }
 0x619   :  { %v8836_v25 = vsel %vm10815_vm14, %v10803_v44, %v8831_v58  ;;  %8236 = vmatpush.bf16.msrb.mxu0 %v5789_v51  ;;  %v5141_v15 = vcvt.s32.f32 %v2837_v32  ;;  %v5165_v48 = vcvt.s32.f32 %v2861_v7  ;;  %v1661_v29 = vunpack.c.1.s8 %v10811_v21  ;;  %v10842_v44 = vpop.f32.mrf.mxu3 }
 0x61a   :  { %8917 = vst [vmem:[%s10886_s4 + $0x98] sm:$0xff] %v8836_v25  ;;  %8249 = vmatpush.bf16.msrb.mxu1 %v5981_v37  ;;  %v6173_v4 = vpack.c.bf16 %v4781_v30, %v4757_v38  ;;  %v3941_v10 = vcvt.s32.f32 %v1637_v46  ;;  %v2021_v18 = vunpack.c.0.s8 %v10819_v45  ;;  %v2045_v60 = vunpack.c.1.s8 %v10819_v45 }
 0x61b   :  { %v6365_v39 = vpack.c.bf16 %v5165_v48, %v5141_v15  ;;  %v3965_v31 = vcvt.s32.f32 %v1661_v29  ;;  %v2405_v42 = vunpack.c.0.s8 %v533_v23  ;;  %v2429_v20 = vunpack.c.1.s8 %v533_v23  ;;  %v293_v15 = vld [vmem:[#allocation2 + $0x6b8] sm:$0xff]  ;;  %v8037_v48 = vpop.f32.mrf.mxu0 }
 0x61c   :  { %8262 = vmatpush.bf16.msrb.mxu2 %v6173_v4  ;;  %v4325_v53 = vcvt.s32.f32 %v2021_v18  ;;  %v4349_v21 = vcvt.s32.f32 %v2045_v60  ;;  %v2789_v12 = vunpack.c.0.s8 %v629_v26  ;;  %v2813_v14 = vunpack.c.1.s8 %v629_v26 }
 0x61d   :  { %8275 = vmatpush.bf16.msrb.mxu3 %v6365_v39  ;;  %v5765_v59 = vpack.c.bf16 %v3965_v31, %v3941_v10  ;;  %v4709_v45 = vcvt.s32.f32 %v2405_v42  ;;  %v4733_v56 = vcvt.s32.f32 %v2429_v20  ;;  %v1589_v27 = vunpack.c.2.s8 %v317_v47  ;;  %v389_v42 = vld [vmem:[#allocation2 + $0x9b8] sm:$0xff] }
 0x61e   :  { %v5957_v17 = vpack.c.bf16 %v4349_v21, %v4325_v53  ;;  %v5093_v36 = vcvt.s32.f32 %v2789_v12  ;;  %v5117_v2 = vcvt.s32.f32 %v2813_v14  ;;  %v1613_v40 = vunpack.c.3.s8 %v317_v47  ;;  %v485_v12 = vld [vmem:[#allocation2 + $0xcb8] sm:$0xff] }
 0x61f   :  { %8237 = vmatpush.bf16.msrb.mxu0 %v5765_v59  ;;  %v6149_v23 = vpack.c.bf16 %v4733_v56, %v4709_v45  ;;  %v3893_v6 = vcvt.s32.f32 %v1589_v27  ;;  %v1973_v35 = vunpack.c.2.s8 %v413_v50  ;;  %v1997_v49 = vunpack.c.3.s8 %v413_v50  ;;  %v581_v56 = vld [vmem:[#allocation2 + $0xfb8] sm:$0xff] }
 0x620   :  { %8250 = vmatpush.bf16.msrb.mxu1 %v5957_v17  ;;  %v6341_v22 = vpack.c.bf16 %v5117_v2, %v5093_v36  ;;  %v3917_v8 = vcvt.s32.f32 %v1613_v40  ;;  %v2357_v34 = vunpack.c.2.s8 %v509_v54  ;;  %v2381_v55 = vunpack.c.3.s8 %v509_v54  ;;  %v8050_v2 = vpop.f32.mrf.mxu1 }
 0x621   :  { %8263 = vmatpush.bf16.msrb.mxu2 %v6149_v23  ;;  %v4277_v26 = vcvt.s32.f32 %v1973_v35  ;;  %v4301_v3 = vcvt.s32.f32 %v1997_v49  ;;  %v2741_v41 = vunpack.c.2.s8 %v605_v24  ;;  %v2765_v62 = vunpack.c.3.s8 %v605_v24  ;;  %v8024_v51 = vpop.f32.mrf.mxu3 }
 0x622   :  { %8276 = vmatpush.bf16.msrb.mxu3 %v6341_v22  ;;  %v5741_v57 = vpack.c.bf16 %v3917_v8, %v3893_v6  ;;  %v4661_v33 = vcvt.s32.f32 %v2357_v34  ;;  %v4685_v52 = vcvt.s32.f32 %v2381_v55  ;;  %v1541_v61 = vunpack.c.0.s8 %v317_v47 }
 0x623   :  { %v5933_v38 = vpack.c.bf16 %v4301_v3, %v4277_v26  ;;  %v5045_v32 = vcvt.s32.f32 %v2741_v41  ;;  %v5069_v7 = vcvt.s32.f32 %v2765_v62  ;;  %v1565_v58 = vunpack.c.1.s8 %v317_v47 }
 0x624   :  { %8238 = vmatpush.bf16.msrb.mxu0 %v5741_v57  ;;  %v6125_v37 = vpack.c.bf16 %v4685_v52, %v4661_v33  ;;  %v3845_v30 = vcvt.s32.f32 %v1541_v61  ;;  %v1925_v46 = vunpack.c.0.s8 %v413_v50  ;;  %v1949_v25 = vunpack.c.1.s8 %v413_v50 }
 0x625   :  { %8251 = vmatpush.bf16.msrb.mxu1 %v5933_v38  ;;  %v6317_v29 = vpack.c.bf16 %v5069_v7, %v5045_v32  ;;  %v3869_v19 = vcvt.s32.f32 %v1565_v58  ;;  %v2309_v4 = vunpack.c.0.s8 %v509_v54  ;;  %v2333_v10 = vunpack.c.1.s8 %v509_v54 }
 0x626   :  { %8264 = vmatpush.bf16.msrb.mxu2 %v6125_v37  ;;  %v4229_v18 = vcvt.s32.f32 %v1925_v46  ;;  %v4253_v60 = vcvt.s32.f32 %v1949_v25  ;;  %v2693_v39 = vunpack.c.0.s8 %v605_v24  ;;  %v2717_v31 = vunpack.c.1.s8 %v605_v24 }
 0x627   :  { %8277 = vmatpush.bf16.msrb.mxu3 %v6317_v29  ;;  %v5717_v47 = vpack.c.bf16 %v3869_v19, %v3845_v30  ;;  %v4613_v20 = vcvt.s32.f32 %v2309_v4  ;;  %v4637_v53 = vcvt.s32.f32 %v2333_v10  ;;  %v1493_v21 = vunpack.c.2.s8 %v293_v15 }
 0x628   :  { %v5909_v14 = vpack.c.bf16 %v4253_v60, %v4229_v18  ;;  %v4997_v50 = vcvt.s32.f32 %v2693_v39  ;;  %v5021_v59 = vcvt.s32.f32 %v2717_v31  ;;  %v1517_v45 = vunpack.c.3.s8 %v293_v15 }
 0x629   :  { %8239 = vmatpush.bf16.msrb.mxu0 %v5717_v47  ;;  %v6101_v27 = vpack.c.bf16 %v4637_v53, %v4613_v20  ;;  %v3797_v54 = vcvt.s32.f32 %v1493_v21  ;;  %v1877_v17 = vunpack.c.2.s8 %v389_v42  ;;  %v1901_v36 = vunpack.c.3.s8 %v389_v42  ;;  %v8061_v20 = vpop.f32.mrf.mxu2  ;;  %v10858_v53 = vld [vmem:[#allocation6 + $0x10] sm:$0xff]  ;;  %v8074_v21 = vpop.f32.mrf.mxu3 }
 0x62a   :  { %8252 = vmatpush.bf16.msrb.mxu1 %v5909_v14  ;;  %v6293_v40 = vpack.c.bf16 %v5021_v59, %v4997_v50  ;;  %v3821_v24 = vcvt.s32.f32 %v1517_v45  ;;  %v2261_v23 = vunpack.c.2.s8 %v485_v12  ;;  %v2285_v6 = vunpack.c.3.s8 %v485_v12 }
 0x62b   :  { %8265 = vmatpush.bf16.msrb.mxu2 %v6101_v27  ;;  %v4181_v35 = vcvt.s32.f32 %v1877_v17  ;;  %v4205_v49 = vcvt.s32.f32 %v1901_v36  ;;  %v2645_v22 = vunpack.c.2.s8 %v581_v56  ;;  %v2669_v8 = vunpack.c.3.s8 %v581_v56 }
 0x62c   :  { %8278 = vmatpush.bf16.msrb.mxu3 %v6293_v40  ;;  %v5693_v34 = vpack.c.bf16 %v3821_v24, %v3797_v54  ;;  %v4565_v55 = vcvt.s32.f32 %v2261_v23  ;;  %v4589_v26 = vcvt.s32.f32 %v2285_v6  ;;  %v7997_v3 = vadd.f32 %v10821_v43, %v10807_v9 }
 0x62d   :  { %v5885_v41 = vpack.c.bf16 %v4205_v49, %v4181_v35  ;;  %v4949_v62 = vcvt.s32.f32 %v2645_v22  ;;  %v4973_v57 = vcvt.s32.f32 %v2669_v8  ;;  %v1445_v33 = vunpack.c.0.s8 %v293_v15 }
 0x62e   :  { %8240 = vmatpush.bf16.msrb.mxu0 %v5693_v34  ;;  %v6077_v52 = vpack.c.bf16 %v4589_v26, %v4565_v55  ;;  %v1469_v61 = vunpack.c.1.s8 %v293_v15  ;;  %v1829_v1 = vunpack.c.0.s8 %v389_v42  ;;  %v1853_v51 = vunpack.c.1.s8 %v389_v42  ;;  %v10853_v42 = vld [vmem:[#allocation4 + $0x10] sm:$0xff] }
 0x62f   :  { %8253 = vmatpush.bf16.msrb.mxu1 %v5885_v41  ;;  %v6269_v38 = vpack.c.bf16 %v4973_v57, %v4949_v62  ;;  %v3749_v32 = vcvt.s32.f32 %v1445_v33  ;;  %v2213_v7 = vunpack.c.0.s8 %v485_v12  ;;  %v2237_v58 = vunpack.c.1.s8 %v485_v12  ;;  %v8087_v50 = vpop.f32.mrf.mxu0 }
 0x630   :  { %8266 = vmatpush.bf16.msrb.mxu2 %v6077_v52  ;;  %v3773_v37 = vcvt.s32.f32 %v1469_v61  ;;  %v4133_v30 = vcvt.s32.f32 %v1829_v1  ;;  %v4157_v46 = vcvt.s32.f32 %v1853_v51  ;;  %v2597_v25 = vunpack.c.0.s8 %v581_v56 }
 0x631   :  { %8279 = vmatpush.bf16.msrb.mxu3 %v6269_v38  ;;  %v4517_v9 = vcvt.s32.f32 %v2213_v7  ;;  %v4541_v43 = vcvt.s32.f32 %v2237_v58  ;;  %v2621_v48 = vunpack.c.1.s8 %v581_v56  ;;  %v8010_v29 = vadd.f32 %v10840_v28, %v7997_v3  ;;  %v8100_v59 = vpop.f32.mrf.mxu1  ;;  %v8076_v27 = vpop.f32.mrf.mxu3 }
 0x632   :  { %v5669_v19 = vpack.c.bf16 %v3773_v37, %v3749_v32  ;;  %v5861_v15 = vpack.c.bf16 %v4157_v46, %v4133_v30  ;;  %v4901_v4 = vcvt.s32.f32 %v2597_v25  ;;  %v8312_v47 = vperm.slane %v10853_v42, 4 }
 0x633   :  { %v6053_v10 = vpack.c.bf16 %v4541_v43, %v4517_v9  ;;  %v4925_v18 = vcvt.s32.f32 %v2621_v48  ;;  %v8023_v60 = vadd.f32 %v10842_v44, %v8010_v29  ;;  %v8390_v44 = vperm.slane %v10858_v53, 4 }
 0x634   :  { %8241 = vmatpush.bf16.msrb.mxu0 %v5669_v19  ;;  %8254 = vmatpush.bf16.msrb.mxu1 %v5861_v15  ;;  %v8075_v14 = vadd.f32 %v8074_v21, %v8061_v20  ;;  %v8313_v40 = vperm.slane %v10853_v42, 5  ;;  %v8391_v6 = vperm.slane %v10858_v53, 5 }
 0x635   :  { %8267 = vmatpush.bf16.msrb.mxu2 %v6053_v10  ;;  %v6245_v39 = vpack.c.bf16 %v4925_v18, %v4901_v4  ;;  %v8036_v31 = vadd.f32 %v10844_v13, %v8023_v60 }
 0x637   :  { %8280 = vmatpush.bf16.msrb.mxu3 %v6245_v39  ;;  %8242 = vmatmul.bf16.vlgmr.msrb.gmra.mxu0 %v9178_v0  ;;  %v8049_v28 = vadd.f32 %v10846_v63, %v8036_v31  ;;  %v8063_v0 = vpop.f32.mrf.mxu2  ;;  %v8088_v63 = vadd.f32 %v8087_v50, %v8075_v14  ;;  %v8089_v17 = vpop.f32.mrf.mxu0  ;;  %v8392_v50 = vperm.slane %v10858_v53, 6 }
 0x638   :  { %8255 = vmatmul.bf16.vlgmr.msrb.gmra.mxu1 %v9180_v5  ;;  %8268 = vmatmul.bf16.vlgmr.msrb.gmra.mxu2 %v9194_v11 }
 0x639   :  { %v8360_v13 = vmul.f32 %v8312_v47, %v8049_v28  ;;  %v8101_v54 = vadd.f32 %v8100_v59, %v8088_v63  ;;  %v8102_v36 = vpop.f32.mrf.mxu1 }
 0x63a   :  { %8281 = vmatmul.bf16.vlgmr.msrb.gmra.mxu3 %v9198_v16  ;;  %v8126_v16 = vpop.f32.mrf.mxu3 }
 0x63b   :  { %v8438_v12 = vadd.f32 %v8390_v44, %v8360_v13 }
 0x63d   :  { %v8462_v45 = vsub.f32 0.0, %v8438_v12  ;;  %v8314_v12 = vperm.slane %v10853_v42, 6 }
 0x63f   :  { %v8506_v56 = vmul.f32 1.442695, %v8462_v45  ;;  %v8113_v5 = vpop.f32.mrf.mxu2 }
 0x640   :  { %v8114_v11 = vadd.f32 %v8113_v5, %v8101_v54 }
 0x641   :  { %9013 = vpow2.f32 %v8506_v56 }
 0x642   :  { %v8127_v23 = vadd.f32 %v8126_v16, %v8114_v11  ;;  %v8128_v55 = vpop.f32.mrf.mxu3 }
 0x644   :  { %v8361_v35 = vmul.f32 %v8313_v40, %v8127_v23 }
 0x646   :  { %v8439_v49 = vadd.f32 %v8391_v6, %v8361_v35 }
 0x647   :  { %v9014_v2 = vpop.eup %9013  ;;  %v8115_v22 = vpop.f32.mrf.mxu2 }
 0x648   :  { %v8534_v24 = vadd.f32 1.0, %v9014_v2  ;;  %v8463_v8 = vsub.f32 0.0, %v8439_v49 }
 0x64a   :  { %9015 = vrcp.f32 %v8534_v24  ;;  %v8508_v3 = vmul.f32 1.442695, %v8463_v8  ;;  %v8849_v62 = vand.u32 2147483648, %v8534_v24  ;;  %vm8843_vm0 = vweird.f32 %v8534_v24 }
 0x64b   :  { %v8847_v33 = vand.u32 2147483647, %v8534_v24 }
 0x64c   :  { %9017 = vpow2.f32 %v8508_v3  ;;  %v8850_v61 = vor.u32 1.1754944e-38, %v8849_v62 }
 0x64d   :  { %vm8848_vm3 = vcmp.eq.f32.partialorder %v8847_v33, 8.507059e+37 }
 0x650   :  { %v9016_v34 = vpop.eup %9015 }
 0x651   :  { %v8839_v26 = vmul.f32 %v9016_v34, %v8534_v24  ;;  %vm8844_vm1 = vweird.f32 %v9016_v34 }
 0x652   :  { %vm8845_vm2 = vmor %vm8843_vm0, %vm8844_vm1  ;;  %v9018_v1 = vpop.eup %9017 }
 0x653   :  { %v8840_v41 = vsub.f32 1.0, %v8839_v26  ;;  %v8535_v32 = vadd.f32 1.0, %v9018_v1 }
 0x655   :  { %v8841_v57 = vmul.f32 %v9016_v34, %v8840_v41  ;;  %9019 = vrcp.f32 %v8535_v32  ;;  %v8864_v29 = vand.u32 2147483648, %v8535_v32  ;;  %v8862_v15 = vand.u32 2147483647, %v8535_v32 }
 0x656   :  { %vm8858_vm5 = vweird.f32 %v8535_v32 }
 0x657   :  { %v8842_v52 = vadd.f32 %v9016_v34, %v8841_v57  ;;  %v8865_v10 = vor.u32 1.1754944e-38, %v8864_v29  ;;  %vm8863_vm7 = vcmp.eq.f32.partialorder %v8862_v15, 8.507059e+37 }
 0x659   :  { %v8846_v51 = vsel %vm8845_vm2, %v9016_v34, %v8842_v52  ;;  %v8315_v52 = vperm.slane %v10853_v42, 7 }
 0x65a   :  { %v8851_v38 = vsel %vm8848_vm3, %v8850_v61, %v8846_v51  ;;  %v8139_v7 = vpop.f32.mrf.mxu0 }
 0x65b   :  { %8918 = vst [vmem:[%s10886_s4 + $0xa0] sm:$0xff] %v8851_v38  ;;  %v8152_v58 = vpop.f32.mrf.mxu1  ;;  %v9020_v37 = vpop.eup %9019 }
 0x65c   :  { %v8854_v46 = vmul.f32 %v9020_v37, %v8535_v32  ;;  %vm8859_vm4 = vweird.f32 %v9020_v37  ;;  %v8153_v47 = vadd.f32 %v8152_v58, %v8139_v7  ;;  %v8393_v32 = vperm.slane %v10858_v53, 7 }
 0x65d   :  { %vm8860_vm6 = vmor %vm8858_vm5, %vm8859_vm4 }
 0x65e   :  { %v8855_v48 = vsub.f32 1.0, %v8854_v46 }
 0x660   :  { %v8856_v19 = vmul.f32 %v9020_v37, %v8855_v48 }
 0x662   :  { %v8141_v30 = vpop.f32.mrf.mxu0  ;;  %v8857_v4 = vadd.f32 %v9020_v37, %v8856_v19 }
 0x663   :  { %v8165_v25 = vpop.f32.mrf.mxu2  ;;  %v8154_v9 = vpop.f32.mrf.mxu1 }
 0x664   :  { %v8178_v43 = vpop.f32.mrf.mxu3  ;;  %v8861_v18 = vsel %vm8860_vm6, %v9020_v37, %v8857_v4  ;;  %v8166_v20 = vadd.f32 %v8165_v25, %v8153_v47 }
 0x665   :  { %v8866_v39 = vsel %vm8863_vm7, %v8865_v10, %v8861_v18 }
 0x666   :  { %8919 = vst [vmem:[%s10886_s4 + $0xa8] sm:$0xff] %v8866_v39  ;;  %v8179_v28 = vadd.f32 %v8178_v43, %v8166_v20 }
 0x66b   :  { %v8167_v60 = vpop.f32.mrf.mxu2 }
 0x66c   :  { %v8180_v31 = vpop.f32.mrf.mxu3 }
 0x688   :  { %v8191_v44 = vpop.f32.mrf.mxu0  ;;  %v8204_v21 = vpop.f32.mrf.mxu1 }
 0x689   :  { %v8192_v13 = vadd.f32 %v8191_v44, %v8179_v28 }
 0x68b   :  { %v8205_v14 = vadd.f32 %v8204_v21, %v8192_v13 }
 0x68d   :  { %v8362_v59 = vmul.f32 %v8314_v12, %v8205_v14 }
 0x68f   :  { %v8440_v45 = vadd.f32 %v8392_v50, %v8362_v59 }
 0x690   :  { %v8217_v0 = vpop.f32.mrf.mxu2  ;;  %v8193_v56 = vpop.f32.mrf.mxu0 }
 0x691   :  { %v8464_v63 = vsub.f32 0.0, %v8440_v45  ;;  %v8206_v27 = vpop.f32.mrf.mxu1 }
 0x692   :  { %v8230_v54 = vpop.f32.mrf.mxu3 }
 0x693   :  { %v8510_v17 = vmul.f32 1.442695, %v8464_v63  ;;  %v8231_v55 = vadd.f32 %v8230_v54, %v8217_v0 }
 0x695   :  { %9021 = vpow2.f32 %v8510_v17 }
 0x698   :  { %v8219_v36 = vpop.f32.mrf.mxu2 }
 0x69a   :  { %v8232_v5 = vpop.f32.mrf.mxu3 }
 0x69b   :  { %v9022_v2 = vpop.eup %9021 }
 0x69c   :  { %v8536_v11 = vadd.f32 1.0, %v9022_v2 }
 0x69e   :  { %9023 = vrcp.f32 %v8536_v11  ;;  %v8879_v23 = vand.u32 2147483648, %v8536_v11  ;;  %v8877_v35 = vand.u32 2147483647, %v8536_v11  ;;  %vm8873_vm9 = vweird.f32 %v8536_v11 }
 0x6a0   :  { %v8880_v22 = vor.u32 1.1754944e-38, %v8879_v23  ;;  %vm8878_vm11 = vcmp.eq.f32.partialorder %v8877_v35, 8.507059e+37 }
 0x6a4   :  { %v9024_v40 = vpop.eup %9023 }
 0x6a5   :  { %v8869_v24 = vmul.f32 %v9024_v40, %v8536_v11  ;;  %vm8874_vm8 = vweird.f32 %v9024_v40 }
 0x6a6   :  { %vm8875_vm10 = vmor %vm8873_vm9, %vm8874_vm8 }
 0x6a7   :  { %v8870_v16 = vsub.f32 1.0, %v8869_v24 }
 0x6a9   :  { %v8871_v6 = vmul.f32 %v9024_v40, %v8870_v16 }
 0x6ab   :  { %v8872_v49 = vadd.f32 %v9024_v40, %v8871_v6 }
 0x6ad   :  { %v8876_v8 = vsel %vm8875_vm10, %v9024_v40, %v8872_v49 }
 0x6ae   :  { %v8881_v34 = vsel %vm8878_vm11, %v8880_v22, %v8876_v8 }
 0x6af   :  { %8920 = vst [vmem:[%s10886_s4 + $0xb0] sm:$0xff] %v8881_v34 }
 0x6b4   :  { %v8243_v26 = vpop.f32.mrf.mxu0 }
 0x6b5   :  { %v8256_v3 = vpop.f32.mrf.mxu1  ;;  %v8244_v41 = vadd.f32 %v8243_v26, %v8231_v55 }
 0x6b7   :  { %v8257_v62 = vadd.f32 %v8256_v3, %v8244_v41 }
 0x6bb   :  { %v8269_v57 = vpop.f32.mrf.mxu2 }
 0x6bc   :  { %v8270_v33 = vadd.f32 %v8269_v57, %v8257_v62  ;;  %v8245_v61 = vpop.f32.mrf.mxu0 }
 0x6bd   :  { %v8282_v1 = vpop.f32.mrf.mxu3  ;;  %v8258_v51 = vpop.f32.mrf.mxu1 }
 0x6be   :  { %v8283_v38 = vadd.f32 %v8282_v1, %v8270_v33 }
 0x6c0   :  { %v8363_v7 = vmul.f32 %v8315_v52, %v8283_v38 }
 0x6c2   :  { %v8441_v58 = vadd.f32 %v8393_v32, %v8363_v7 }
 0x6c3   :  { %v8271_v37 = vpop.f32.mrf.mxu2 }
 0x6c4   :  { %v8465_v30 = vsub.f32 0.0, %v8441_v58 }
 0x6c5   :  { %v8284_v46 = vpop.f32.mrf.mxu3 }
 0x6c6   :  { %v8512_v25 = vmul.f32 1.442695, %v8465_v30 }
 0x6c8   :  { %9025 = vpow2.f32 %v8512_v25 }
 0x6ce   :  { %v9026_v9 = vpop.eup %9025 }
 0x6cf   :  { %v8537_v43 = vadd.f32 1.0, %v9026_v9 }
 0x6d1   :  { %9027 = vrcp.f32 %v8537_v43  ;;  %v8894_v42 = vand.u32 2147483648, %v8537_v43  ;;  %v8892_v4 = vand.u32 2147483647, %v8537_v43  ;;  %vm8888_vm13 = vweird.f32 %v8537_v43 }
 0x6d3   :  { %v8895_v53 = vor.u32 1.1754944e-38, %v8894_v42  ;;  %vm8893_vm15 = vcmp.eq.f32.partialorder %v8892_v4, 8.507059e+37 }
 0x6d7   :  { %v9028_v48 = vpop.eup %9027 }
 0x6d8   :  { %v8884_v29 = vmul.f32 %v9028_v48, %v8537_v43  ;;  %vm8889_vm12 = vweird.f32 %v9028_v48 }
 0x6d9   :  { %vm8890_vm14 = vmor %vm8888_vm13, %vm8889_vm12 }
 0x6da   :  { %v8885_v19 = vsub.f32 1.0, %v8884_v29 }
 0x6dc   :  { %v8886_v15 = vmul.f32 %v9028_v48, %v8885_v19 }
 0x6de   :  { %v8887_v10 = vadd.f32 %v9028_v48, %v8886_v15 }
 0x6e0   :  { %v8891_v18 = vsel %vm8890_vm14, %v9028_v48, %v8887_v10 }
 0x6e1   :  { %v8896_v60 = vsel %vm8893_vm15, %v8895_v53, %v8891_v18 }
 0x6e2   :  { %8921 = vst [vmem:[%s10886_s4 + $0xb8] sm:$0xff] %v8896_v60 }
 0x6e3   :  { %8926 = vsyncpa [#allocation3], 1 }
 0x6e4   :  { %8927 = vsyncpa [#allocation5], 1 }

</bundles_post_ra>
